<compile_context>
chip_gen: v6e
topology: v6e:2x2x1
jax: 0.10.0
libtpu: 0.0.40
codegen_flags: <defaults>
</compile_context>

<pallas_src>
import functools

import jax
import jax.numpy as jnp
from jax.experimental import pallas as pl
from jax.experimental.pallas import tpu as pltpu

CHAR_EMBEDDING_LENGTH = 10
EMBEDDING_LENGTH = 10
CHAR_EMB_PAD = 16   # char-embedding width padded so slab rows stay 8-aligned
WORD_EMB_PAD = 16   # word-embedding width padded likewise


# ----------------------------- slab row layouts ---------------------------------

def _add_rows(layout, r, name, n):
    layout[name] = (r, r + n)
    return r + max(8, ((n + 7) // 8) * 8)


def _layout256(H):
    """Rows of the 8H-wide weight slab (BiLSTM layers 1 & 2)."""
    o, r = {}, 0
    r = _add_rows(o, r, 'l1_wih', H)
    r = _add_rows(o, r, 'l1_b', 1)
    r = _add_rows(o, r, 'l1_whh', 2 * H)
    r = _add_rows(o, r, 'l2_wih', 2 * H)
    r = _add_rows(o, r, 'l2_b', 1)
    r = _add_rows(o, r, 'l2_whh', 2 * H)
    o['rows'] = r
    return o


def _layout128(H):
    """Rows of the 4H-wide weight slab (char LSTM + final linear, tag-padded)."""
    o, r = {}, 0
    r = _add_rows(o, r, 'c_wih', CHAR_EMB_PAD)
    r = _add_rows(o, r, 'c_b', 1)
    r = _add_rows(o, r, 'c_whh', H)
    r = _add_rows(o, r, 'w_f', H)
    r = _add_rows(o, r, 'b_f', 1)
    o['rows'] = r
    return o


def _layout32(H):
    """Rows of the H-wide weight slab (combined linear + head linear)."""
    o, r = {}, 0
    r = _add_rows(o, r, 'w_ch', H)
    r = _add_rows(o, r, 'w_ce', WORD_EMB_PAD)
    r = _add_rows(o, r, 'b_c', 1)
    r = _add_rows(o, r, 'w_l', 2 * H)
    r = _add_rows(o, r, 'b_l', 1)
    o['rows'] = r
    return o


# ------------------------------ kernel helpers ----------------------------------

def _bilstm_layer(gx_scr, mask_ref, whh_bd, h_scr, *, S, BP, H):
    """Fused fwd+bwd BiLSTM recurrence over a t-major (S*BP, 8H) projected input.

    gx_scr  : lanes [:4H] = fwd gates, [4H:] = bwd gates (order i|f|g|o per
              direction, g columns pre-scaled x2 for the tanh-from-sigmoid trick).
    whh_bd  : (2H, 8H) bf16 block-diagonal recurrent weight ([hf|hb] -> gates).
    h_scr   : (S*BP, 2H) output, lanes [:H] = fwd hidden, [H:] = bwd hidden.
    mask_ref: (S*BP, 2H) f32, 1.0 where word position t < len[b] (row = t*BP+b).
    Forward is causal (no gating; padded rows zeroed once in the head); the
    backward state is frozen (0/1 select) until t < len[b], matching
    pack_padded_sequence semantics.
    """
    f32, bf16 = jnp.float32, jnp.bfloat16
    H4 = 4 * H
    hf = jnp.zeros((BP, H), f32)
    cf = jnp.zeros((BP, H), f32)
    hb = jnp.zeros((BP, H), f32)
    cb = jnp.zeros((BP, H), f32)
    for i in range(S):                          # static trip count -> fully unrolled
        tf, tb = i, S - 1 - i
        # one fused MXU matmul + one sigmoid pass for both directions/timesteps
        gx = jnp.concatenate([gx_scr[tf * BP:(tf + 1) * BP, 0:H4],
                              gx_scr[tb * BP:(tb + 1) * BP, H4:2 * H4]], axis=1)
        h_cat = jnp.concatenate([hf, hb], axis=1).astype(bf16)
        gates = gx + jnp.dot(h_cat, whh_bd, preferred_element_type=f32)
        sig = jax.nn.sigmoid(gates)
        sf = sig[:, 0:H4]
        sb = sig[:, H4:2 * H4]
        # forward cell at time tf
        cf = sf[:, H:2 * H] * cf + sf[:, 0:H] * (2.0 * sf[:, 2 * H:3 * H] - 1.0)
        hf = sf[:, 3 * H:4 * H] * jnp.tanh(cf)
        h_scr[tf * BP:(tf + 1) * BP, 0:H] = hf
        # backward cell at time tb (0/1 arithmetic select; inputs are finite)
        cb_new = sb[:, H:2 * H] * cb + sb[:, 0:H] * (2.0 * sb[:, 2 * H:3 * H] - 1.0)
        hb_new = sb[:, 3 * H:4 * H] * jnp.tanh(cb_new)
        m = mask_ref[tb * BP:(tb + 1) * BP, 0:H]
        hb = m * hb_new + (1.0 - m) * hb
        cb = m * cb_new + (1.0 - m) * cb
        h_scr[tb * BP:(tb + 1) * BP, H:2 * H] = hb


# --------------------------------- kernel ----------------------------------------

def fused_tagger_kernel(clen_ref, cemb_ref, wemb_ref, mask_ref,
                        slab256_ref, slab128_ref, slab32_ref,
                        out_ref, gxc_scr, gx_scr, h_scr, *, S, BP, C, H):
    f32, bf16 = jnp.float32, jnp.bfloat16
    NSB = S * BP
    H2, H4 = 2 * H, 4 * H
    lo256, lo128, lo32 = _layout256(H), _layout128(H), _layout32(H)

    def rd(ref, lo, name):
        s, e = lo[name]
        return ref[s:e, :]

    # ---------------- char LSTM: last hidden state per word -------------------
    # Input projection hoisted out of the recurrence (bias folded in).
    gxc_scr[...] = (jnp.dot(cemb_ref[...], rd(slab128_ref, lo128, 'c_wih'),
                            preferred_element_type=f32)
                    + rd(slab128_ref, lo128, 'c_b'))
    c_whh = rd(slab128_ref, lo128, 'c_whh').astype(bf16)
    cl = clen_ref[0]
    h = jnp.zeros((NSB, H), f32)
    c = jnp.zeros((NSB, H), f32)
    for t in range(C):                          # static trip count -> fully unrolled
        gates = gxc_scr[t * NSB:(t + 1) * NSB, :] + jnp.dot(
            h.astype(bf16), c_whh, preferred_element_type=f32)
        sig = jax.nn.sigmoid(gates)             # single EUP pass (g cols pre-scaled x2)
        c_new = (sig[:, H:2 * H] * c
                 + sig[:, 0:H] * (2.0 * sig[:, 2 * H:3 * H] - 1.0))
        h_new = sig[:, 3 * H:4 * H] * jnp.tanh(c_new)
        # chars at positions >= char_len are ignored (reference slices to char_len[0])
        mt = (t < cl).astype(f32)
        h = mt * h_new + (1.0 - mt) * h
        c = mt * c_new + (1.0 - mt) * c

    # -------- tanh(linear_combined([char_h ; word_emb])) without any concat ----
    x1 = jnp.tanh(jnp.dot(h, rd(slab32_ref, lo32, 'w_ch'), preferred_element_type=f32)
                  + jnp.dot(wemb_ref[...], rd(slab32_ref, lo32, 'w_ce'),
                            preferred_element_type=f32)
                  + rd(slab32_ref, lo32, 'b_c'))          # (NSB, H)

    # ----------------- BiLSTM layer 1 (fwd + bwd fused per step) ---------------
    gx_scr[...] = (jnp.dot(x1, rd(slab256_ref, lo256, 'l1_wih'),
                           preferred_element_type=f32)
                   + rd(slab256_ref, lo256, 'l1_b'))
    _bilstm_layer(gx_scr, mask_ref, rd(slab256_ref, lo256, 'l1_whh').astype(bf16),
                  h_scr, S=S, BP=BP, H=H)

    # ----------------- BiLSTM layer 2 (fwd + bwd fused per step) ---------------
    # Layer-2 input projection reads the merged [fwd|bwd] layer-1 buffer (one
    # matmul, K = 2H); afterwards h_scr is dead and gets reused for layer 2.
    gx_scr[...] = (jnp.dot(h_scr[...], rd(slab256_ref, lo256, 'l2_wih'),
                           preferred_element_type=f32)
                   + rd(slab256_ref, lo256, 'l2_b'))
    _bilstm_layer(gx_scr, mask_ref, rd(slab256_ref, lo256, 'l2_whh').astype(bf16),
                  h_scr, S=S, BP=BP, H=H)

    # ---- head: tanh(linear) -> linear_final -> log_softmax (lane-dense out) ----
    h12 = h_scr[...] * mask_ref[...]            # pad_packed: zero padded word rows
    z = jnp.tanh(jnp.dot(h12, rd(slab32_ref, lo32, 'w_l'), preferred_element_type=f32)
                 + rd(slab32_ref, lo32, 'b_l'))
    logits = (jnp.dot(z, rd(slab128_ref, lo128, 'w_f'), preferred_element_type=f32)
              + rd(slab128_ref, lo128, 'b_f'))  # pad lanes carry a -1e30 bias
    mx = jnp.max(logits, axis=-1, keepdims=True)
    sh = logits - mx
    lse = jnp.log(jnp.sum(jnp.exp(sh), axis=-1, keepdims=True))
    out_ref[...] = sh - lse                     # padded lanes sliced off outside


# ------------------------------ parameters ---------------------------------------

def _scale_g_cols(w, H):
    """Scale the g-gate columns ([i|f|g|o] ordered 4H axis) by 2 so the kernel can
    use tanh(x) = 2*sigmoid(2x) - 1 with a single sigmoid pass per cell."""
    return w.at[..., 2 * H:3 * H].multiply(2.0)


def init_params(key, vocab_size, tagging_size, char_vocab_size, hidden_size):
    H = hidden_size
    H2, H4, H8 = 2 * H, 4 * H, 8 * H
    assert tagging_size <= H4
    keys = iter(jax.random.split(key, 48))

    def nrm(shape, scale=0.1):
        return (scale * jax.random.normal(next(keys), shape)).astype(jnp.float32)

    def lstm_dir(in_dim):
        # PyTorch layout W_ih (4H,in), W_hh (4H,H), b_ih/b_hh (4H,) -> pre-transposed
        # (in,4H)/(H,4H), bias folded, g-columns scaled x2.
        w_ih, w_hh = nrm((H4, in_dim)), nrm((H4, H))
        b_ih, b_hh = nrm((H4,)), nrm((H4,))
        return (_scale_g_cols(w_ih.T, H), _scale_g_cols(w_hh.T, H),
                _scale_g_cols((b_ih + b_hh)[None, :], H))

    # embeddings
    emb_b = nrm((char_vocab_size, CHAR_EMBEDDING_LENGTH), 1.0)
    emb_a = nrm((vocab_size, EMBEDDING_LENGTH), 1.0)

    # ---- slab128: char LSTM + final linear (tag-padded to 4H lanes) ----
    lo128 = _layout128(H)
    c_wih, c_whh, c_b = lstm_dir(CHAR_EMBEDDING_LENGTH)
    f_w, f_b = nrm((tagging_size, H)), nrm((tagging_size,))
    w_f_pad = jnp.zeros((H, H4), jnp.float32).at[:, :tagging_size].set(f_w.T)
    b_f_pad = jnp.full((1, H4), -1e30, jnp.float32).at[0, :tagging_size].set(f_b)
    slab128 = jnp.zeros((lo128['rows'], H4), jnp.float32)
    slab128 = slab128.at[lo128['c_wih'][0]:lo128['c_wih'][0] + CHAR_EMBEDDING_LENGTH, :].set(c_wih)
    slab128 = slab128.at[lo128['c_b'][0]:lo128['c_b'][1], :].set(c_b)
    slab128 = slab128.at[lo128['c_whh'][0]:lo128['c_whh'][1], :].set(c_whh)
    slab128 = slab128.at[lo128['w_f'][0]:lo128['w_f'][1], :].set(w_f_pad)
    slab128 = slab128.at[lo128['b_f'][0]:lo128['b_f'][1], :].set(b_f_pad)

    # ---- slab32: linear_combined (split char/word halves) + head linear ----
    lo32 = _layout32(H)
    lc_w, lc_b = nrm((H, H + EMBEDDING_LENGTH)), nrm((H,))
    w_ch = lc_w[:, :H].T
    w_ce = jnp.zeros((WORD_EMB_PAD, H), jnp.float32).at[:EMBEDDING_LENGTH, :].set(lc_w[:, H:].T)
    l_w, l_b = nrm((H, H2)), nrm((H,))
    slab32 = jnp.zeros((lo32['rows'], H), jnp.float32)
    slab32 = slab32.at[lo32['w_ch'][0]:lo32['w_ch'][1], :].set(w_ch)
    slab32 = slab32.at[lo32['w_ce'][0]:lo32['w_ce'][1], :].set(w_ce)
    slab32 = slab32.at[lo32['b_c'][0], :].set(lc_b)
    slab32 = slab32.at[lo32['w_l'][0]:lo32['w_l'][1], :].set(l_w.T)
    slab32 = slab32.at[lo32['b_l'][0], :].set(l_b)

    # ---- slab256: 2-layer bidirectional LSTM, direction-major gate columns ----
    lo256 = _layout256(H)
    slab256 = jnp.zeros((lo256['rows'], H8), jnp.float32)
    for layer, name in ((0, 'l1'), (1, 'l2')):
        in_dim = H if layer == 0 else H2
        wih_f, whh_f, bia_f = lstm_dir(in_dim)
        wih_b, whh_b, bia_b = lstm_dir(in_dim)
        wih = jnp.concatenate([wih_f, wih_b], axis=1)     # (in_dim, 8H)
        b = jnp.concatenate([bia_f, bia_b], axis=1)       # (1, 8H)
        whh_bd = (jnp.zeros((H2, H8), jnp.float32)        # block-diagonal recurrent
                  .at[:H, :H4].set(whh_f).at[H:, H4:].set(whh_b))
        slab256 = slab256.at[lo256[name + '_wih'][0]:lo256[name + '_wih'][0] + in_dim, :].set(wih)
        slab256 = slab256.at[lo256[name + '_b'][0], :].set(b[0])
        slab256 = slab256.at[lo256[name + '_whh'][0]:lo256[name + '_whh'][1], :].set(whh_bd)

    return dict(emb_b=emb_b, emb_a=emb_a,
                slab256=slab256, slab128=slab128, slab32=slab32,
                H=H, tags=tagging_size)


# -------------------------------- forward -----------------------------------------

def forward(params, char_ids, word_ids, input_lens, char_len):
    B, S, C = char_ids.shape
    H = params['H']
    tags = params['tags']
    BP = max(8, ((B + 7) // 8) * 8)          # batch padded to full sublane groups
    NSB = S * BP
    H2, H4 = 2 * H, 4 * H

    # ------------- plain-JAX glue: gathers, batch padding, layout --------------
    char_ids_p = jnp.zeros((BP, S, C), jnp.int32).at[:B].set(char_ids)
    word_ids_p = jnp.zeros((BP, S), jnp.int32).at[:B].set(word_ids)
    cemb = jnp.take(params['emb_b'], char_ids_p, axis=0)            # (BP,S,C,10)
    cemb = cemb.transpose(2, 1, 0, 3).reshape(C * NSB, CHAR_EMBEDDING_LENGTH)
    cemb = jnp.pad(cemb, ((0, 0), (0, CHAR_EMB_PAD - CHAR_EMBEDDING_LENGTH)))
    wemb = jnp.take(params['emb_a'], word_ids_p, axis=0)            # (BP,S,10)
    wemb = wemb.transpose(1, 0, 2).reshape(NSB, EMBEDDING_LENGTH)
    wemb = jnp.pad(wemb, ((0, 0), (0, WORD_EMB_PAD - EMBEDDING_LENGTH)))

    lens = jnp.zeros((BP,), jnp.int32).at[:B].set(jnp.asarray(input_lens, jnp.int32))
    valid = (jnp.arange(S, dtype=jnp.int32)[:, None] < lens[None, :]).astype(jnp.float32)
    mask = jnp.broadcast_to(valid[:, :, None], (S, BP, H2)).reshape(NSB, H2)
    clen = jnp.asarray(list(char_len)[:1], jnp.int32)               # (1,) -> SMEM

    vmem = pl.BlockSpec(memory_space=pltpu.MemorySpace.VMEM)
    smem = pl.BlockSpec(memory_space=pltpu.MemorySpace.SMEM)

    out = pl.pallas_call(
        functools.partial(fused_tagger_kernel, S=S, BP=BP, C=C, H=H),
        out_shape=jax.ShapeDtypeStruct((NSB, H4), jnp.float32),
        in_specs=[smem] + [vmem] * 6,
        out_specs=vmem,
        scratch_shapes=[
            pltpu.VMEM((C * NSB, H4), jnp.float32),   # char-LSTM input projection
            pltpu.VMEM((NSB, 8 * H), jnp.float32),    # BiLSTM input projection (reused)
            pltpu.VMEM((NSB, H2), jnp.float32),       # [fwd|bwd] hidden (reused L1->L2)
        ],
    )(clen, cemb, wemb, mask,
      params['slab256'], params['slab128'], params['slab32'])

    logp = out.reshape(S, BP, H4)[:, :B, :tags]
    # pad_packed_sequence truncates to max(input_lens); Python-side slice only.
    T_out = int(max(input_lens))
    return logp[:T_out]


# ---------------------------------- main -------------------------------------------

if __name__ == "__main__":
    vocab_size, tagging_size, char_vocab_size, hidden_size = 50, 5, 30, 32
    B, S, C_max = 2, 8, 6

    key = jax.random.PRNGKey(0)
    kp, k1, k2 = jax.random.split(key, 3)
    params = init_params(kp, vocab_size, tagging_size, char_vocab_size, hidden_size)

    char_ids = jax.random.randint(k1, (B, S, C_max), 0, char_vocab_size, dtype=jnp.int32)
    word_ids = jax.random.randint(k2, (B, S), 0, vocab_size, dtype=jnp.int32)
    input_lens = [8, 6]   # per-sentence word lengths (enforce_sorted=False)
    char_len = [5]        # char_len[0]: chars beyond this index are ignored

    out = forward(params, char_ids, word_ids, input_lens, char_len)
    out = jax.block_until_ready(out)
    assert out.shape == (max(input_lens), B, tagging_size)
    assert bool(jnp.all(jnp.isfinite(out)))
    # log_softmax sanity: probabilities over the real tags sum to 1
    assert bool(jnp.allclose(jnp.sum(jnp.exp(out), axis=-1), 1.0, atol=1e-4))
    print("KERNEL_OK")
</pallas_src>

<mosaic_0001>
module attributes {stable_mosaic.version = 11 : i64} {
  func.func @fused_tagger_kernel(%arg0: memref<1xi32, #tpu.memory_space<smem>>, %arg1: memref<384x16xf32, #tpu.memory_space<vmem>>, %arg2: memref<64x16xf32, #tpu.memory_space<vmem>>, %arg3: memref<64x64xf32, #tpu.memory_space<vmem>>, %arg4: memref<240x256xf32, #tpu.memory_space<vmem>>, %arg5: memref<96x128xf32, #tpu.memory_space<vmem>>, %arg6: memref<128x32xf32, #tpu.memory_space<vmem>>, %arg7: memref<64x128xf32, #tpu.memory_space<vmem>>, %arg8: memref<384x128xf32, #tpu.memory_space<vmem>>, %arg9: memref<64x256xf32, #tpu.memory_space<vmem>>, %arg10: memref<64x64xf32, #tpu.memory_space<vmem>>) attributes {dimension_semantics = [], scalar_prefetch = 0 : i64, scratch_operands = 3 : i64, tpu.core_type = #tpu.core_type<tc>} {
    %c0 = arith.constant 0 : index
    %c0_0 = arith.constant 0 : index
    %0 = vector.load %arg1[%c0, %c0_0] : memref<384x16xf32, #tpu.memory_space<vmem>>, vector<384x16xf32>
    %c0_1 = arith.constant 0 : index
    %c0_2 = arith.constant 0 : index
    %1 = vector.load %arg5[%c0_1, %c0_2] : memref<96x128xf32, #tpu.memory_space<vmem>>, vector<16x128xf32>
    %cst = arith.constant dense<0.000000e+00> : vector<384x128xf32>
    %2 = tpu.matmul %0, %1, %cst {dimension_numbers = #tpu.dot_dimension_numbers<[1], [0], [0], [1], [0, 0, 1, 1], [], []>} : vector<384x16xf32>, vector<16x128xf32>, vector<384x128xf32> -> vector<384x128xf32>
    %c16 = arith.constant 16 : index
    %c0_3 = arith.constant 0 : index
    %3 = vector.load %arg5[%c16, %c0_3] : memref<96x128xf32, #tpu.memory_space<vmem>>, vector<1x128xf32>
    %4 = vector.broadcast %3 : vector<1x128xf32> to vector<384x128xf32>
    %5 = arith.addf %2, %4 : vector<384x128xf32>
    %c0_4 = arith.constant 0 : index
    %c0_5 = arith.constant 0 : index
    %6 = vector.load %arg8[%c0_4, %c0_5] : memref<384x128xf32, #tpu.memory_space<vmem>>, vector<384x128xf32>
    tpu.vector_store %arg8[%c0_4, %c0_5], %5 {strides = array<i32>} : memref<384x128xf32, #tpu.memory_space<vmem>>, vector<384x128xf32>,
    %c24 = arith.constant 24 : index
    %c0_6 = arith.constant 0 : index
    %7 = vector.load %arg5[%c24, %c0_6] : memref<96x128xf32, #tpu.memory_space<vmem>>, vector<32x128xf32>
    %8 = arith.truncf %7 : vector<32x128xf32> to vector<32x128xbf16>
    %c0_7 = arith.constant 0 : index
    %9 = memref.load %arg0[%c0_7] : memref<1xi32, #tpu.memory_space<smem>>
    %cst_8 = arith.constant 0.000000e+00 : f32
    %10 = vector.broadcast %cst_8 : f32 to vector<64x32xf32>
    %cst_9 = arith.constant 0.000000e+00 : f32
    %11 = vector.broadcast %cst_9 : f32 to vector<64x32xf32>
    %c0_10 = arith.constant 0 : index
    %c0_11 = arith.constant 0 : index
    %12 = vector.load %arg8[%c0_10, %c0_11] : memref<384x128xf32, #tpu.memory_space<vmem>>, vector<64x128xf32>
    %13 = arith.truncf %10 : vector<64x32xf32> to vector<64x32xbf16>
    %cst_12 = arith.constant dense<0.000000e+00> : vector<64x128xf32>
    %14 = tpu.matmul %13, %8, %cst_12 {dimension_numbers = #tpu.dot_dimension_numbers<[1], [0], [0], [1], [0, 0, 1, 1], [], []>} : vector<64x32xbf16>, vector<32x128xbf16>, vector<64x128xf32> -> vector<64x128xf32>
    %15 = arith.addf %12, %14 : vector<64x128xf32>
    %16 = arith.negf %15 : vector<64x128xf32>
    %17 = math.exp %16 : vector<64x128xf32>
    %cst_13 = arith.constant 1.000000e+00 : f32
    %18 = vector.broadcast %cst_13 : f32 to vector<64x128xf32>
    %19 = arith.addf %18, %17 : vector<64x128xf32>
    %20 = arith.divf %18, %19 : vector<64x128xf32>
    %21 = vector.extract_strided_slice %20 {offsets = [0, 32], sizes = [64, 32], strides = [1, 1]} : vector<64x128xf32> to vector<64x32xf32>
    %22 = arith.mulf %21, %11 : vector<64x32xf32>
    %23 = vector.extract_strided_slice %20 {offsets = [0, 0], sizes = [64, 32], strides = [1, 1]} : vector<64x128xf32> to vector<64x32xf32>
    %24 = vector.extract_strided_slice %20 {offsets = [0, 64], sizes = [64, 32], strides = [1, 1]} : vector<64x128xf32> to vector<64x32xf32>
    %cst_14 = arith.constant 2.000000e+00 : f32
    %25 = vector.broadcast %cst_14 : f32 to vector<64x32xf32>
    %26 = arith.mulf %25, %24 : vector<64x32xf32>
    %cst_15 = arith.constant 1.000000e+00 : f32
    %27 = vector.broadcast %cst_15 : f32 to vector<64x32xf32>
    %28 = arith.subf %26, %27 : vector<64x32xf32>
    %29 = arith.mulf %23, %28 : vector<64x32xf32>
    %30 = arith.addf %22, %29 : vector<64x32xf32>
    %31 = vector.extract_strided_slice %20 {offsets = [0, 96], sizes = [64, 32], strides = [1, 1]} : vector<64x128xf32> to vector<64x32xf32>
    %32 = math.tanh %30 : vector<64x32xf32>
    %33 = arith.mulf %31, %32 : vector<64x32xf32>
    %c0_i32 = arith.constant 0 : i32
    %34 = arith.cmpi sgt, %9, %c0_i32 : i32
    %35 = arith.extui %34 : i1 to i32
    %36 = arith.sitofp %35 : i32 to f32
    %37 = vector.broadcast %36 : f32 to vector<64x32xf32>
    %38 = arith.mulf %37, %33 : vector<64x32xf32>
    %cst_16 = arith.constant 1.000000e+00 : f32
    %39 = arith.subf %cst_16, %36 : f32
    %40 = vector.broadcast %39 : f32 to vector<64x32xf32>
    %41 = arith.mulf %40, %10 : vector<64x32xf32>
    %42 = arith.addf %38, %41 : vector<64x32xf32>
    %43 = vector.broadcast %36 : f32 to vector<64x32xf32>
    %44 = arith.mulf %43, %30 : vector<64x32xf32>
    %cst_17 = arith.constant 1.000000e+00 : f32
    %45 = arith.subf %cst_17, %36 : f32
    %46 = vector.broadcast %45 : f32 to vector<64x32xf32>
    %47 = arith.mulf %46, %11 : vector<64x32xf32>
    %48 = arith.addf %44, %47 : vector<64x32xf32>
    %c64 = arith.constant 64 : index
    %c0_18 = arith.constant 0 : index
    %49 = vector.load %arg8[%c64, %c0_18] : memref<384x128xf32, #tpu.memory_space<vmem>>, vector<64x128xf32>
    %50 = arith.truncf %42 : vector<64x32xf32> to vector<64x32xbf16>
    %cst_19 = arith.constant dense<0.000000e+00> : vector<64x128xf32>
    %51 = tpu.matmul %50, %8, %cst_19 {dimension_numbers = #tpu.dot_dimension_numbers<[1], [0], [0], [1], [0, 0, 1, 1], [], []>} : vector<64x32xbf16>, vector<32x128xbf16>, vector<64x128xf32> -> vector<64x128xf32>
    %52 = arith.addf %49, %51 : vector<64x128xf32>
    %53 = arith.negf %52 : vector<64x128xf32>
    %54 = math.exp %53 : vector<64x128xf32>
    %cst_20 = arith.constant 1.000000e+00 : f32
    %55 = vector.broadcast %cst_20 : f32 to vector<64x128xf32>
    %56 = arith.addf %55, %54 : vector<64x128xf32>
    %57 = arith.divf %55, %56 : vector<64x128xf32>
    %58 = vector.extract_strided_slice %57 {offsets = [0, 32], sizes = [64, 32], strides = [1, 1]} : vector<64x128xf32> to vector<64x32xf32>
    %59 = arith.mulf %58, %48 : vector<64x32xf32>
    %60 = vector.extract_strided_slice %57 {offsets = [0, 0], sizes = [64, 32], strides = [1, 1]} : vector<64x128xf32> to vector<64x32xf32>
    %61 = vector.extract_strided_slice %57 {offsets = [0, 64], sizes = [64, 32], strides = [1, 1]} : vector<64x128xf32> to vector<64x32xf32>
    %cst_21 = arith.constant 2.000000e+00 : f32
    %62 = vector.broadcast %cst_21 : f32 to vector<64x32xf32>
    %63 = arith.mulf %62, %61 : vector<64x32xf32>
    %cst_22 = arith.constant 1.000000e+00 : f32
    %64 = vector.broadcast %cst_22 : f32 to vector<64x32xf32>
    %65 = arith.subf %63, %64 : vector<64x32xf32>
    %66 = arith.mulf %60, %65 : vector<64x32xf32>
    %67 = arith.addf %59, %66 : vector<64x32xf32>
    %68 = vector.extract_strided_slice %57 {offsets = [0, 96], sizes = [64, 32], strides = [1, 1]} : vector<64x128xf32> to vector<64x32xf32>
    %69 = math.tanh %67 : vector<64x32xf32>
    %70 = arith.mulf %68, %69 : vector<64x32xf32>
    %c1_i32 = arith.constant 1 : i32
    %71 = arith.cmpi sgt, %9, %c1_i32 : i32
    %72 = arith.extui %71 : i1 to i32
    %73 = arith.sitofp %72 : i32 to f32
    %74 = vector.broadcast %73 : f32 to vector<64x32xf32>
    %75 = arith.mulf %74, %70 : vector<64x32xf32>
    %cst_23 = arith.constant 1.000000e+00 : f32
    %76 = arith.subf %cst_23, %73 : f32
    %77 = vector.broadcast %76 : f32 to vector<64x32xf32>
    %78 = arith.mulf %77, %42 : vector<64x32xf32>
    %79 = arith.addf %75, %78 : vector<64x32xf32>
    %80 = vector.broadcast %73 : f32 to vector<64x32xf32>
    %81 = arith.mulf %80, %67 : vector<64x32xf32>
    %cst_24 = arith.constant 1.000000e+00 : f32
    %82 = arith.subf %cst_24, %73 : f32
    %83 = vector.broadcast %82 : f32 to vector<64x32xf32>
    %84 = arith.mulf %83, %48 : vector<64x32xf32>
    %85 = arith.addf %81, %84 : vector<64x32xf32>
    %c128 = arith.constant 128 : index
    %c0_25 = arith.constant 0 : index
    %86 = vector.load %arg8[%c128, %c0_25] : memref<384x128xf32, #tpu.memory_space<vmem>>, vector<64x128xf32>
    %87 = arith.truncf %79 : vector<64x32xf32> to vector<64x32xbf16>
    %cst_26 = arith.constant dense<0.000000e+00> : vector<64x128xf32>
    %88 = tpu.matmul %87, %8, %cst_26 {dimension_numbers = #tpu.dot_dimension_numbers<[1], [0], [0], [1], [0, 0, 1, 1], [], []>} : vector<64x32xbf16>, vector<32x128xbf16>, vector<64x128xf32> -> vector<64x128xf32>
    %89 = arith.addf %86, %88 : vector<64x128xf32>
    %90 = arith.negf %89 : vector<64x128xf32>
    %91 = math.exp %90 : vector<64x128xf32>
    %cst_27 = arith.constant 1.000000e+00 : f32
    %92 = vector.broadcast %cst_27 : f32 to vector<64x128xf32>
    %93 = arith.addf %92, %91 : vector<64x128xf32>
    %94 = arith.divf %92, %93 : vector<64x128xf32>
    %95 = vector.extract_strided_slice %94 {offsets = [0, 32], sizes = [64, 32], strides = [1, 1]} : vector<64x128xf32> to vector<64x32xf32>
    %96 = arith.mulf %95, %85 : vector<64x32xf32>
    %97 = vector.extract_strided_slice %94 {offsets = [0, 0], sizes = [64, 32], strides = [1, 1]} : vector<64x128xf32> to vector<64x32xf32>
    %98 = vector.extract_strided_slice %94 {offsets = [0, 64], sizes = [64, 32], strides = [1, 1]} : vector<64x128xf32> to vector<64x32xf32>
    %cst_28 = arith.constant 2.000000e+00 : f32
    %99 = vector.broadcast %cst_28 : f32 to vector<64x32xf32>
    %100 = arith.mulf %99, %98 : vector<64x32xf32>
    %cst_29 = arith.constant 1.000000e+00 : f32
    %101 = vector.broadcast %cst_29 : f32 to vector<64x32xf32>
    %102 = arith.subf %100, %101 : vector<64x32xf32>
    %103 = arith.mulf %97, %102 : vector<64x32xf32>
    %104 = arith.addf %96, %103 : vector<64x32xf32>
    %105 = vector.extract_strided_slice %94 {offsets = [0, 96], sizes = [64, 32], strides = [1, 1]} : vector<64x128xf32> to vector<64x32xf32>
    %106 = math.tanh %104 : vector<64x32xf32>
    %107 = arith.mulf %105, %106 : vector<64x32xf32>
    %c2_i32 = arith.constant 2 : i32
    %108 = arith.cmpi sgt, %9, %c2_i32 : i32
    %109 = arith.extui %108 : i1 to i32
    %110 = arith.sitofp %109 : i32 to f32
    %111 = vector.broadcast %110 : f32 to vector<64x32xf32>
    %112 = arith.mulf %111, %107 : vector<64x32xf32>
    %cst_30 = arith.constant 1.000000e+00 : f32
    %113 = arith.subf %cst_30, %110 : f32
    %114 = vector.broadcast %113 : f32 to vector<64x32xf32>
    %115 = arith.mulf %114, %79 : vector<64x32xf32>
    %116 = arith.addf %112, %115 : vector<64x32xf32>
    %117 = vector.broadcast %110 : f32 to vector<64x32xf32>
    %118 = arith.mulf %117, %104 : vector<64x32xf32>
    %cst_31 = arith.constant 1.000000e+00 : f32
    %119 = arith.subf %cst_31, %110 : f32
    %120 = vector.broadcast %119 : f32 to vector<64x32xf32>
    %121 = arith.mulf %120, %85 : vector<64x32xf32>
    %122 = arith.addf %118, %121 : vector<64x32xf32>
    %c192 = arith.constant 192 : index
    %c0_32 = arith.constant 0 : index
    %123 = vector.load %arg8[%c192, %c0_32] : memref<384x128xf32, #tpu.memory_space<vmem>>, vector<64x128xf32>
    %124 = arith.truncf %116 : vector<64x32xf32> to vector<64x32xbf16>
    %cst_33 = arith.constant dense<0.000000e+00> : vector<64x128xf32>
    %125 = tpu.matmul %124, %8, %cst_33 {dimension_numbers = #tpu.dot_dimension_numbers<[1], [0], [0], [1], [0, 0, 1, 1], [], []>} : vector<64x32xbf16>, vector<32x128xbf16>, vector<64x128xf32> -> vector<64x128xf32>
    %126 = arith.addf %123, %125 : vector<64x128xf32>
    %127 = arith.negf %126 : vector<64x128xf32>
    %128 = math.exp %127 : vector<64x128xf32>
    %cst_34 = arith.constant 1.000000e+00 : f32
    %129 = vector.broadcast %cst_34 : f32 to vector<64x128xf32>
    %130 = arith.addf %129, %128 : vector<64x128xf32>
    %131 = arith.divf %129, %130 : vector<64x128xf32>
    %132 = vector.extract_strided_slice %131 {offsets = [0, 32], sizes = [64, 32], strides = [1, 1]} : vector<64x128xf32> to vector<64x32xf32>
    %133 = arith.mulf %132, %122 : vector<64x32xf32>
    %134 = vector.extract_strided_slice %131 {offsets = [0, 0], sizes = [64, 32], strides = [1, 1]} : vector<64x128xf32> to vector<64x32xf32>
    %135 = vector.extract_strided_slice %131 {offsets = [0, 64], sizes = [64, 32], strides = [1, 1]} : vector<64x128xf32> to vector<64x32xf32>
    %cst_35 = arith.constant 2.000000e+00 : f32
    %136 = vector.broadcast %cst_35 : f32 to vector<64x32xf32>
    %137 = arith.mulf %136, %135 : vector<64x32xf32>
    %cst_36 = arith.constant 1.000000e+00 : f32
    %138 = vector.broadcast %cst_36 : f32 to vector<64x32xf32>
    %139 = arith.subf %137, %138 : vector<64x32xf32>
    %140 = arith.mulf %134, %139 : vector<64x32xf32>
    %141 = arith.addf %133, %140 : vector<64x32xf32>
    %142 = vector.extract_strided_slice %131 {offsets = [0, 96], sizes = [64, 32], strides = [1, 1]} : vector<64x128xf32> to vector<64x32xf32>
    %143 = math.tanh %141 : vector<64x32xf32>
    %144 = arith.mulf %142, %143 : vector<64x32xf32>
    %c3_i32 = arith.constant 3 : i32
    %145 = arith.cmpi sgt, %9, %c3_i32 : i32
    %146 = arith.extui %145 : i1 to i32
    %147 = arith.sitofp %146 : i32 to f32
    %148 = vector.broadcast %147 : f32 to vector<64x32xf32>
    %149 = arith.mulf %148, %144 : vector<64x32xf32>
    %cst_37 = arith.constant 1.000000e+00 : f32
    %150 = arith.subf %cst_37, %147 : f32
    %151 = vector.broadcast %150 : f32 to vector<64x32xf32>
    %152 = arith.mulf %151, %116 : vector<64x32xf32>
    %153 = arith.addf %149, %152 : vector<64x32xf32>
    %154 = vector.broadcast %147 : f32 to vector<64x32xf32>
    %155 = arith.mulf %154, %141 : vector<64x32xf32>
    %cst_38 = arith.constant 1.000000e+00 : f32
    %156 = arith.subf %cst_38, %147 : f32
    %157 = vector.broadcast %156 : f32 to vector<64x32xf32>
    %158 = arith.mulf %157, %122 : vector<64x32xf32>
    %159 = arith.addf %155, %158 : vector<64x32xf32>
    %c256 = arith.constant 256 : index
    %c0_39 = arith.constant 0 : index
    %160 = vector.load %arg8[%c256, %c0_39] : memref<384x128xf32, #tpu.memory_space<vmem>>, vector<64x128xf32>
    %161 = arith.truncf %153 : vector<64x32xf32> to vector<64x32xbf16>
    %cst_40 = arith.constant dense<0.000000e+00> : vector<64x128xf32>
    %162 = tpu.matmul %161, %8, %cst_40 {dimension_numbers = #tpu.dot_dimension_numbers<[1], [0], [0], [1], [0, 0, 1, 1], [], []>} : vector<64x32xbf16>, vector<32x128xbf16>, vector<64x128xf32> -> vector<64x128xf32>
    %163 = arith.addf %160, %162 : vector<64x128xf32>
    %164 = arith.negf %163 : vector<64x128xf32>
    %165 = math.exp %164 : vector<64x128xf32>
    %cst_41 = arith.constant 1.000000e+00 : f32
    %166 = vector.broadcast %cst_41 : f32 to vector<64x128xf32>
    %167 = arith.addf %166, %165 : vector<64x128xf32>
    %168 = arith.divf %166, %167 : vector<64x128xf32>
    %169 = vector.extract_strided_slice %168 {offsets = [0, 32], sizes = [64, 32], strides = [1, 1]} : vector<64x128xf32> to vector<64x32xf32>
    %170 = arith.mulf %169, %159 : vector<64x32xf32>
    %171 = vector.extract_strided_slice %168 {offsets = [0, 0], sizes = [64, 32], strides = [1, 1]} : vector<64x128xf32> to vector<64x32xf32>
    %172 = vector.extract_strided_slice %168 {offsets = [0, 64], sizes = [64, 32], strides = [1, 1]} : vector<64x128xf32> to vector<64x32xf32>
    %cst_42 = arith.constant 2.000000e+00 : f32
    %173 = vector.broadcast %cst_42 : f32 to vector<64x32xf32>
    %174 = arith.mulf %173, %172 : vector<64x32xf32>
    %cst_43 = arith.constant 1.000000e+00 : f32
    %175 = vector.broadcast %cst_43 : f32 to vector<64x32xf32>
    %176 = arith.subf %174, %175 : vector<64x32xf32>
    %177 = arith.mulf %171, %176 : vector<64x32xf32>
    %178 = arith.addf %170, %177 : vector<64x32xf32>
    %179 = vector.extract_strided_slice %168 {offsets = [0, 96], sizes = [64, 32], strides = [1, 1]} : vector<64x128xf32> to vector<64x32xf32>
    %180 = math.tanh %178 : vector<64x32xf32>
    %181 = arith.mulf %179, %180 : vector<64x32xf32>
    %c4_i32 = arith.constant 4 : i32
    %182 = arith.cmpi sgt, %9, %c4_i32 : i32
    %183 = arith.extui %182 : i1 to i32
    %184 = arith.sitofp %183 : i32 to f32
    %185 = vector.broadcast %184 : f32 to vector<64x32xf32>
    %186 = arith.mulf %185, %181 : vector<64x32xf32>
    %cst_44 = arith.constant 1.000000e+00 : f32
    %187 = arith.subf %cst_44, %184 : f32
    %188 = vector.broadcast %187 : f32 to vector<64x32xf32>
    %189 = arith.mulf %188, %153 : vector<64x32xf32>
    %190 = arith.addf %186, %189 : vector<64x32xf32>
    %191 = vector.broadcast %184 : f32 to vector<64x32xf32>
    %192 = arith.mulf %191, %178 : vector<64x32xf32>
    %cst_45 = arith.constant 1.000000e+00 : f32
    %193 = arith.subf %cst_45, %184 : f32
    %194 = vector.broadcast %193 : f32 to vector<64x32xf32>
    %195 = arith.mulf %194, %159 : vector<64x32xf32>
    %196 = arith.addf %192, %195 : vector<64x32xf32>
    %c320 = arith.constant 320 : index
    %c0_46 = arith.constant 0 : index
    %197 = vector.load %arg8[%c320, %c0_46] : memref<384x128xf32, #tpu.memory_space<vmem>>, vector<64x128xf32>
    %198 = arith.truncf %190 : vector<64x32xf32> to vector<64x32xbf16>
    %cst_47 = arith.constant dense<0.000000e+00> : vector<64x128xf32>
    %199 = tpu.matmul %198, %8, %cst_47 {dimension_numbers = #tpu.dot_dimension_numbers<[1], [0], [0], [1], [0, 0, 1, 1], [], []>} : vector<64x32xbf16>, vector<32x128xbf16>, vector<64x128xf32> -> vector<64x128xf32>
    %200 = arith.addf %197, %199 : vector<64x128xf32>
    %201 = arith.negf %200 : vector<64x128xf32>
    %202 = math.exp %201 : vector<64x128xf32>
    %cst_48 = arith.constant 1.000000e+00 : f32
    %203 = vector.broadcast %cst_48 : f32 to vector<64x128xf32>
    %204 = arith.addf %203, %202 : vector<64x128xf32>
    %205 = arith.divf %203, %204 : vector<64x128xf32>
    %206 = vector.extract_strided_slice %205 {offsets = [0, 32], sizes = [64, 32], strides = [1, 1]} : vector<64x128xf32> to vector<64x32xf32>
    %207 = arith.mulf %206, %196 : vector<64x32xf32>
    %208 = vector.extract_strided_slice %205 {offsets = [0, 0], sizes = [64, 32], strides = [1, 1]} : vector<64x128xf32> to vector<64x32xf32>
    %209 = vector.extract_strided_slice %205 {offsets = [0, 64], sizes = [64, 32], strides = [1, 1]} : vector<64x128xf32> to vector<64x32xf32>
    %cst_49 = arith.constant 2.000000e+00 : f32
    %210 = vector.broadcast %cst_49 : f32 to vector<64x32xf32>
    %211 = arith.mulf %210, %209 : vector<64x32xf32>
    %cst_50 = arith.constant 1.000000e+00 : f32
    %212 = vector.broadcast %cst_50 : f32 to vector<64x32xf32>
    %213 = arith.subf %211, %212 : vector<64x32xf32>
    %214 = arith.mulf %208, %213 : vector<64x32xf32>
    %215 = arith.addf %207, %214 : vector<64x32xf32>
    %216 = vector.extract_strided_slice %205 {offsets = [0, 96], sizes = [64, 32], strides = [1, 1]} : vector<64x128xf32> to vector<64x32xf32>
    %217 = math.tanh %215 : vector<64x32xf32>
    %218 = arith.mulf %216, %217 : vector<64x32xf32>
    %c5_i32 = arith.constant 5 : i32
    %219 = arith.cmpi sgt, %9, %c5_i32 : i32
    %220 = arith.extui %219 : i1 to i32
    %221 = arith.sitofp %220 : i32 to f32
    %222 = vector.broadcast %221 : f32 to vector<64x32xf32>
    %223 = arith.mulf %222, %218 : vector<64x32xf32>
    %cst_51 = arith.constant 1.000000e+00 : f32
    %224 = arith.subf %cst_51, %221 : f32
    %225 = vector.broadcast %224 : f32 to vector<64x32xf32>
    %226 = arith.mulf %225, %190 : vector<64x32xf32>
    %227 = arith.addf %223, %226 : vector<64x32xf32>
    %c0_52 = arith.constant 0 : index
    %c0_53 = arith.constant 0 : index
    %228 = vector.load %arg6[%c0_52, %c0_53] : memref<128x32xf32, #tpu.memory_space<vmem>>, vector<32x32xf32>
    %cst_54 = arith.constant dense<0.000000e+00> : vector<64x32xf32>
    %229 = tpu.matmul %227, %228, %cst_54 {dimension_numbers = #tpu.dot_dimension_numbers<[1], [0], [0], [1], [0, 0, 1, 1], [], []>} : vector<64x32xf32>, vector<32x32xf32>, vector<64x32xf32> -> vector<64x32xf32>
    %c0_55 = arith.constant 0 : index
    %c0_56 = arith.constant 0 : index
    %230 = vector.load %arg2[%c0_55, %c0_56] : memref<64x16xf32, #tpu.memory_space<vmem>>, vector<64x16xf32>
    %c32 = arith.constant 32 : index
    %c0_57 = arith.constant 0 : index
    %231 = vector.load %arg6[%c32, %c0_57] : memref<128x32xf32, #tpu.memory_space<vmem>>, vector<16x32xf32>
    %cst_58 = arith.constant dense<0.000000e+00> : vector<64x32xf32>
    %232 = tpu.matmul %230, %231, %cst_58 {dimension_numbers = #tpu.dot_dimension_numbers<[1], [0], [0], [1], [0, 0, 1, 1], [], []>} : vector<64x16xf32>, vector<16x32xf32>, vector<64x32xf32> -> vector<64x32xf32>
    %233 = arith.addf %229, %232 : vector<64x32xf32>
    %c48 = arith.constant 48 : index
    %c0_59 = arith.constant 0 : index
    %234 = vector.load %arg6[%c48, %c0_59] : memref<128x32xf32, #tpu.memory_space<vmem>>, vector<1x32xf32>
    %235 = vector.broadcast %234 : vector<1x32xf32> to vector<64x32xf32>
    %236 = arith.addf %233, %235 : vector<64x32xf32>
    %237 = math.tanh %236 : vector<64x32xf32>
    %c0_60 = arith.constant 0 : index
    %c0_61 = arith.constant 0 : index
    %238 = vector.load %arg4[%c0_60, %c0_61] : memref<240x256xf32, #tpu.memory_space<vmem>>, vector<32x256xf32>
    %cst_62 = arith.constant dense<0.000000e+00> : vector<64x256xf32>
    %239 = tpu.matmul %237, %238, %cst_62 {dimension_numbers = #tpu.dot_dimension_numbers<[1], [0], [0], [1], [0, 0, 1, 1], [], []>} : vector<64x32xf32>, vector<32x256xf32>, vector<64x256xf32> -> vector<64x256xf32>
    %c32_63 = arith.constant 32 : index
    %c0_64 = arith.constant 0 : index
    %240 = vector.load %arg4[%c32_63, %c0_64] : memref<240x256xf32, #tpu.memory_space<vmem>>, vector<1x256xf32>
    %241 = vector.broadcast %240 : vector<1x256xf32> to vector<64x256xf32>
    %242 = arith.addf %239, %241 : vector<64x256xf32>
    %c0_65 = arith.constant 0 : index
    %c0_66 = arith.constant 0 : index
    %243 = vector.load %arg9[%c0_65, %c0_66] : memref<64x256xf32, #tpu.memory_space<vmem>>, vector<64x256xf32>
    tpu.vector_store %arg9[%c0_65, %c0_66], %242 {strides = array<i32>} : memref<64x256xf32, #tpu.memory_space<vmem>>, vector<64x256xf32>,
    %c40 = arith.constant 40 : index
    %c0_67 = arith.constant 0 : index
    %244 = vector.load %arg4[%c40, %c0_67] : memref<240x256xf32, #tpu.memory_space<vmem>>, vector<64x256xf32>
    %245 = arith.truncf %244 : vector<64x256xf32> to vector<64x256xbf16>
    %cst_68 = arith.constant 0.000000e+00 : f32
    %246 = vector.broadcast %cst_68 : f32 to vector<8x32xf32>
    %cst_69 = arith.constant 0.000000e+00 : f32
    %247 = vector.broadcast %cst_69 : f32 to vector<8x32xf32>
    %cst_70 = arith.constant 0.000000e+00 : f32
    %248 = vector.broadcast %cst_70 : f32 to vector<8x32xf32>
    %cst_71 = arith.constant 0.000000e+00 : f32
    %249 = vector.broadcast %cst_71 : f32 to vector<8x32xf32>
    %c0_72 = arith.constant 0 : index
    %c0_73 = arith.constant 0 : index
    %250 = vector.load %arg9[%c0_72, %c0_73] : memref<64x256xf32, #tpu.memory_space<vmem>>, vector<8x128xf32>
    %c56 = arith.constant 56 : index
    %c128_74 = arith.constant 128 : index
    %251 = vector.load %arg9[%c56, %c128_74] : memref<64x256xf32, #tpu.memory_space<vmem>>, vector<8x128xf32>
    %252 = tpu.concatenate %250, %251 in 1 : vector<8x128xf32>, vector<8x128xf32> -> vector<8x256xf32>
    %253 = tpu.concatenate %246, %248 in 1 : vector<8x32xf32>, vector<8x32xf32> -> vector<8x64xf32>
    %254 = arith.truncf %253 : vector<8x64xf32> to vector<8x64xbf16>
    %cst_75 = arith.constant dense<0.000000e+00> : vector<8x256xf32>
    %255 = tpu.matmul %254, %245, %cst_75 {dimension_numbers = #tpu.dot_dimension_numbers<[1], [0], [0], [1], [0, 0, 1, 1], [], []>} : vector<8x64xbf16>, vector<64x256xbf16>, vector<8x256xf32> -> vector<8x256xf32>
    %256 = arith.addf %252, %255 : vector<8x256xf32>
    %257 = arith.negf %256 : vector<8x256xf32>
    %258 = math.exp %257 : vector<8x256xf32>
    %cst_76 = arith.constant 1.000000e+00 : f32
    %259 = vector.broadcast %cst_76 : f32 to vector<8x256xf32>
    %260 = arith.addf %259, %258 : vector<8x256xf32>
    %261 = arith.divf %259, %260 : vector<8x256xf32>
    %262 = vector.extract_strided_slice %261 {offsets = [0, 0], sizes = [8, 128], strides = [1, 1]} : vector<8x256xf32> to vector<8x128xf32>
    %263 = vector.extract_strided_slice %261 {offsets = [0, 128], sizes = [8, 128], strides = [1, 1]} : vector<8x256xf32> to vector<8x128xf32>
    %264 = vector.extract_strided_slice %262 {offsets = [0, 32], sizes = [8, 32], strides = [1, 1]} : vector<8x128xf32> to vector<8x32xf32>
    %265 = arith.mulf %264, %247 : vector<8x32xf32>
    %266 = vector.extract_strided_slice %262 {offsets = [0, 0], sizes = [8, 32], strides = [1, 1]} : vector<8x128xf32> to vector<8x32xf32>
    %267 = vector.extract_strided_slice %262 {offsets = [0, 64], sizes = [8, 32], strides = [1, 1]} : vector<8x128xf32> to vector<8x32xf32>
    %cst_77 = arith.constant 2.000000e+00 : f32
    %268 = vector.broadcast %cst_77 : f32 to vector<8x32xf32>
    %269 = arith.mulf %268, %267 : vector<8x32xf32>
    %cst_78 = arith.constant 1.000000e+00 : f32
    %270 = vector.broadcast %cst_78 : f32 to vector<8x32xf32>
    %271 = arith.subf %269, %270 : vector<8x32xf32>
    %272 = arith.mulf %266, %271 : vector<8x32xf32>
    %273 = arith.addf %265, %272 : vector<8x32xf32>
    %274 = vector.extract_strided_slice %262 {offsets = [0, 96], sizes = [8, 32], strides = [1, 1]} : vector<8x128xf32> to vector<8x32xf32>
    %275 = math.tanh %273 : vector<8x32xf32>
    %276 = arith.mulf %274, %275 : vector<8x32xf32>
    %c0_79 = arith.constant 0 : index
    %c0_80 = arith.constant 0 : index
    %277 = vector.load %arg10[%c0_79, %c0_80] : memref<64x64xf32, #tpu.memory_space<vmem>>, vector<8x32xf32>
    tpu.vector_store %arg10[%c0_79, %c0_80], %276 {strides = array<i32>} : memref<64x64xf32, #tpu.memory_space<vmem>>, vector<8x32xf32>,
    %278 = vector.extract_strided_slice %263 {offsets = [0, 32], sizes = [8, 32], strides = [1, 1]} : vector<8x128xf32> to vector<8x32xf32>
    %279 = arith.mulf %278, %249 : vector<8x32xf32>
    %280 = vector.extract_strided_slice %263 {offsets = [0, 0], sizes = [8, 32], strides = [1, 1]} : vector<8x128xf32> to vector<8x32xf32>
    %281 = vector.extract_strided_slice %263 {offsets = [0, 64], sizes = [8, 32], strides = [1, 1]} : vector<8x128xf32> to vector<8x32xf32>
    %cst_81 = arith.constant 2.000000e+00 : f32
    %282 = vector.broadcast %cst_81 : f32 to vector<8x32xf32>
    %283 = arith.mulf %282, %281 : vector<8x32xf32>
    %cst_82 = arith.constant 1.000000e+00 : f32
    %284 = vector.broadcast %cst_82 : f32 to vector<8x32xf32>
    %285 = arith.subf %283, %284 : vector<8x32xf32>
    %286 = arith.mulf %280, %285 : vector<8x32xf32>
    %287 = arith.addf %279, %286 : vector<8x32xf32>
    %288 = vector.extract_strided_slice %263 {offsets = [0, 96], sizes = [8, 32], strides = [1, 1]} : vector<8x128xf32> to vector<8x32xf32>
    %289 = math.tanh %287 : vector<8x32xf32>
    %290 = arith.mulf %288, %289 : vector<8x32xf32>
    %c56_83 = arith.constant 56 : index
    %c0_84 = arith.constant 0 : index
    %291 = vector.load %arg3[%c56_83, %c0_84] : memref<64x64xf32, #tpu.memory_space<vmem>>, vector<8x32xf32>
    %292 = arith.mulf %291, %290 : vector<8x32xf32>
    %cst_85 = arith.constant 1.000000e+00 : f32
    %293 = vector.broadcast %cst_85 : f32 to vector<8x32xf32>
    %294 = arith.subf %293, %291 : vector<8x32xf32>
    %295 = arith.mulf %294, %248 : vector<8x32xf32>
    %296 = arith.addf %292, %295 : vector<8x32xf32>
    %297 = arith.mulf %291, %287 : vector<8x32xf32>
    %cst_86 = arith.constant 1.000000e+00 : f32
    %298 = vector.broadcast %cst_86 : f32 to vector<8x32xf32>
    %299 = arith.subf %298, %291 : vector<8x32xf32>
    %300 = arith.mulf %299, %249 : vector<8x32xf32>
    %301 = arith.addf %297, %300 : vector<8x32xf32>
    %c56_87 = arith.constant 56 : index
    %c32_88 = arith.constant 32 : index
    %302 = vector.load %arg10[%c56_87, %c32_88] : memref<64x64xf32, #tpu.memory_space<vmem>>, vector<8x32xf32>
    tpu.vector_store %arg10[%c56_87, %c32_88], %296 {strides = array<i32>} : memref<64x64xf32, #tpu.memory_space<vmem>>, vector<8x32xf32>,
    %c8 = arith.constant 8 : index
    %c0_89 = arith.constant 0 : index
    %303 = vector.load %arg9[%c8, %c0_89] : memref<64x256xf32, #tpu.memory_space<vmem>>, vector<8x128xf32>
    %c48_90 = arith.constant 48 : index
    %c128_91 = arith.constant 128 : index
    %304 = vector.load %arg9[%c48_90, %c128_91] : memref<64x256xf32, #tpu.memory_space<vmem>>, vector<8x128xf32>
    %305 = tpu.concatenate %303, %304 in 1 : vector<8x128xf32>, vector<8x128xf32> -> vector<8x256xf32>
    %306 = tpu.concatenate %276, %296 in 1 : vector<8x32xf32>, vector<8x32xf32> -> vector<8x64xf32>
    %307 = arith.truncf %306 : vector<8x64xf32> to vector<8x64xbf16>
    %cst_92 = arith.constant dense<0.000000e+00> : vector<8x256xf32>
    %308 = tpu.matmul %307, %245, %cst_92 {dimension_numbers = #tpu.dot_dimension_numbers<[1], [0], [0], [1], [0, 0, 1, 1], [], []>} : vector<8x64xbf16>, vector<64x256xbf16>, vector<8x256xf32> -> vector<8x256xf32>
    %309 = arith.addf %305, %308 : vector<8x256xf32>
    %310 = arith.negf %309 : vector<8x256xf32>
    %311 = math.exp %310 : vector<8x256xf32>
    %cst_93 = arith.constant 1.000000e+00 : f32
    %312 = vector.broadcast %cst_93 : f32 to vector<8x256xf32>
    %313 = arith.addf %312, %311 : vector<8x256xf32>
    %314 = arith.divf %312, %313 : vector<8x256xf32>
    %315 = vector.extract_strided_slice %314 {offsets = [0, 0], sizes = [8, 128], strides = [1, 1]} : vector<8x256xf32> to vector<8x128xf32>
    %316 = vector.extract_strided_slice %314 {offsets = [0, 128], sizes = [8, 128], strides = [1, 1]} : vector<8x256xf32> to vector<8x128xf32>
    %317 = vector.extract_strided_slice %315 {offsets = [0, 32], sizes = [8, 32], strides = [1, 1]} : vector<8x128xf32> to vector<8x32xf32>
    %318 = arith.mulf %317, %273 : vector<8x32xf32>
    %319 = vector.extract_strided_slice %315 {offsets = [0, 0], sizes = [8, 32], strides = [1, 1]} : vector<8x128xf32> to vector<8x32xf32>
    %320 = vector.extract_strided_slice %315 {offsets = [0, 64], sizes = [8, 32], strides = [1, 1]} : vector<8x128xf32> to vector<8x32xf32>
    %cst_94 = arith.constant 2.000000e+00 : f32
    %321 = vector.broadcast %cst_94 : f32 to vector<8x32xf32>
    %322 = arith.mulf %321, %320 : vector<8x32xf32>
    %cst_95 = arith.constant 1.000000e+00 : f32
    %323 = vector.broadcast %cst_95 : f32 to vector<8x32xf32>
    %324 = arith.subf %322, %323 : vector<8x32xf32>
    %325 = arith.mulf %319, %324 : vector<8x32xf32>
    %326 = arith.addf %318, %325 : vector<8x32xf32>
    %327 = vector.extract_strided_slice %315 {offsets = [0, 96], sizes = [8, 32], strides = [1, 1]} : vector<8x128xf32> to vector<8x32xf32>
    %328 = math.tanh %326 : vector<8x32xf32>
    %329 = arith.mulf %327, %328 : vector<8x32xf32>
    %c8_96 = arith.constant 8 : index
    %c0_97 = arith.constant 0 : index
    %330 = vector.load %arg10[%c8_96, %c0_97] : memref<64x64xf32, #tpu.memory_space<vmem>>, vector<8x32xf32>
    tpu.vector_store %arg10[%c8_96, %c0_97], %329 {strides = array<i32>} : memref<64x64xf32, #tpu.memory_space<vmem>>, vector<8x32xf32>,
    %331 = vector.extract_strided_slice %316 {offsets = [0, 32], sizes = [8, 32], strides = [1, 1]} : vector<8x128xf32> to vector<8x32xf32>
    %332 = arith.mulf %331, %301 : vector<8x32xf32>
    %333 = vector.extract_strided_slice %316 {offsets = [0, 0], sizes = [8, 32], strides = [1, 1]} : vector<8x128xf32> to vector<8x32xf32>
    %334 = vector.extract_strided_slice %316 {offsets = [0, 64], sizes = [8, 32], strides = [1, 1]} : vector<8x128xf32> to vector<8x32xf32>
    %cst_98 = arith.constant 2.000000e+00 : f32
    %335 = vector.broadcast %cst_98 : f32 to vector<8x32xf32>
    %336 = arith.mulf %335, %334 : vector<8x32xf32>
    %cst_99 = arith.constant 1.000000e+00 : f32
    %337 = vector.broadcast %cst_99 : f32 to vector<8x32xf32>
    %338 = arith.subf %336, %337 : vector<8x32xf32>
    %339 = arith.mulf %333, %338 : vector<8x32xf32>
    %340 = arith.addf %332, %339 : vector<8x32xf32>
    %341 = vector.extract_strided_slice %316 {offsets = [0, 96], sizes = [8, 32], strides = [1, 1]} : vector<8x128xf32> to vector<8x32xf32>
    %342 = math.tanh %340 : vector<8x32xf32>
    %343 = arith.mulf %341, %342 : vector<8x32xf32>
    %c48_100 = arith.constant 48 : index
    %c0_101 = arith.constant 0 : index
    %344 = vector.load %arg3[%c48_100, %c0_101] : memref<64x64xf32, #tpu.memory_space<vmem>>, vector<8x32xf32>
    %345 = arith.mulf %344, %343 : vector<8x32xf32>
    %cst_102 = arith.constant 1.000000e+00 : f32
    %346 = vector.broadcast %cst_102 : f32 to vector<8x32xf32>
    %347 = arith.subf %346, %344 : vector<8x32xf32>
    %348 = arith.mulf %347, %296 : vector<8x32xf32>
    %349 = arith.addf %345, %348 : vector<8x32xf32>
    %350 = arith.mulf %344, %340 : vector<8x32xf32>
    %cst_103 = arith.constant 1.000000e+00 : f32
    %351 = vector.broadcast %cst_103 : f32 to vector<8x32xf32>
    %352 = arith.subf %351, %344 : vector<8x32xf32>
    %353 = arith.mulf %352, %301 : vector<8x32xf32>
    %354 = arith.addf %350, %353 : vector<8x32xf32>
    %c48_104 = arith.constant 48 : index
    %c32_105 = arith.constant 32 : index
    %355 = vector.load %arg10[%c48_104, %c32_105] : memref<64x64xf32, #tpu.memory_space<vmem>>, vector<8x32xf32>
    tpu.vector_store %arg10[%c48_104, %c32_105], %349 {strides = array<i32>} : memref<64x64xf32, #tpu.memory_space<vmem>>, vector<8x32xf32>,
    %c16_106 = arith.constant 16 : index
    %c0_107 = arith.constant 0 : index
    %356 = vector.load %arg9[%c16_106, %c0_107] : memref<64x256xf32, #tpu.memory_space<vmem>>, vector<8x128xf32>
    %c40_108 = arith.constant 40 : index
    %c128_109 = arith.constant 128 : index
    %357 = vector.load %arg9[%c40_108, %c128_109] : memref<64x256xf32, #tpu.memory_space<vmem>>, vector<8x128xf32>
    %358 = tpu.concatenate %356, %357 in 1 : vector<8x128xf32>, vector<8x128xf32> -> vector<8x256xf32>
    %359 = tpu.concatenate %329, %349 in 1 : vector<8x32xf32>, vector<8x32xf32> -> vector<8x64xf32>
    %360 = arith.truncf %359 : vector<8x64xf32> to vector<8x64xbf16>
    %cst_110 = arith.constant dense<0.000000e+00> : vector<8x256xf32>
    %361 = tpu.matmul %360, %245, %cst_110 {dimension_numbers = #tpu.dot_dimension_numbers<[1], [0], [0], [1], [0, 0, 1, 1], [], []>} : vector<8x64xbf16>, vector<64x256xbf16>, vector<8x256xf32> -> vector<8x256xf32>
    %362 = arith.addf %358, %361 : vector<8x256xf32>
    %363 = arith.negf %362 : vector<8x256xf32>
    %364 = math.exp %363 : vector<8x256xf32>
    %cst_111 = arith.constant 1.000000e+00 : f32
    %365 = vector.broadcast %cst_111 : f32 to vector<8x256xf32>
    %366 = arith.addf %365, %364 : vector<8x256xf32>
    %367 = arith.divf %365, %366 : vector<8x256xf32>
    %368 = vector.extract_strided_slice %367 {offsets = [0, 0], sizes = [8, 128], strides = [1, 1]} : vector<8x256xf32> to vector<8x128xf32>
    %369 = vector.extract_strided_slice %367 {offsets = [0, 128], sizes = [8, 128], strides = [1, 1]} : vector<8x256xf32> to vector<8x128xf32>
    %370 = vector.extract_strided_slice %368 {offsets = [0, 32], sizes = [8, 32], strides = [1, 1]} : vector<8x128xf32> to vector<8x32xf32>
    %371 = arith.mulf %370, %326 : vector<8x32xf32>
    %372 = vector.extract_strided_slice %368 {offsets = [0, 0], sizes = [8, 32], strides = [1, 1]} : vector<8x128xf32> to vector<8x32xf32>
    %373 = vector.extract_strided_slice %368 {offsets = [0, 64], sizes = [8, 32], strides = [1, 1]} : vector<8x128xf32> to vector<8x32xf32>
    %cst_112 = arith.constant 2.000000e+00 : f32
    %374 = vector.broadcast %cst_112 : f32 to vector<8x32xf32>
    %375 = arith.mulf %374, %373 : vector<8x32xf32>
    %cst_113 = arith.constant 1.000000e+00 : f32
    %376 = vector.broadcast %cst_113 : f32 to vector<8x32xf32>
    %377 = arith.subf %375, %376 : vector<8x32xf32>
    %378 = arith.mulf %372, %377 : vector<8x32xf32>
    %379 = arith.addf %371, %378 : vector<8x32xf32>
    %380 = vector.extract_strided_slice %368 {offsets = [0, 96], sizes = [8, 32], strides = [1, 1]} : vector<8x128xf32> to vector<8x32xf32>
    %381 = math.tanh %379 : vector<8x32xf32>
    %382 = arith.mulf %380, %381 : vector<8x32xf32>
    %c16_114 = arith.constant 16 : index
    %c0_115 = arith.constant 0 : index
    %383 = vector.load %arg10[%c16_114, %c0_115] : memref<64x64xf32, #tpu.memory_space<vmem>>, vector<8x32xf32>
    tpu.vector_store %arg10[%c16_114, %c0_115], %382 {strides = array<i32>} : memref<64x64xf32, #tpu.memory_space<vmem>>, vector<8x32xf32>,
    %384 = vector.extract_strided_slice %369 {offsets = [0, 32], sizes = [8, 32], strides = [1, 1]} : vector<8x128xf32> to vector<8x32xf32>
    %385 = arith.mulf %384, %354 : vector<8x32xf32>
    %386 = vector.extract_strided_slice %369 {offsets = [0, 0], sizes = [8, 32], strides = [1, 1]} : vector<8x128xf32> to vector<8x32xf32>
    %387 = vector.extract_strided_slice %369 {offsets = [0, 64], sizes = [8, 32], strides = [1, 1]} : vector<8x128xf32> to vector<8x32xf32>
    %cst_116 = arith.constant 2.000000e+00 : f32
    %388 = vector.broadcast %cst_116 : f32 to vector<8x32xf32>
    %389 = arith.mulf %388, %387 : vector<8x32xf32>
    %cst_117 = arith.constant 1.000000e+00 : f32
    %390 = vector.broadcast %cst_117 : f32 to vector<8x32xf32>
    %391 = arith.subf %389, %390 : vector<8x32xf32>
    %392 = arith.mulf %386, %391 : vector<8x32xf32>
    %393 = arith.addf %385, %392 : vector<8x32xf32>
    %394 = vector.extract_strided_slice %369 {offsets = [0, 96], sizes = [8, 32], strides = [1, 1]} : vector<8x128xf32> to vector<8x32xf32>
    %395 = math.tanh %393 : vector<8x32xf32>
    %396 = arith.mulf %394, %395 : vector<8x32xf32>
    %c40_118 = arith.constant 40 : index
    %c0_119 = arith.constant 0 : index
    %397 = vector.load %arg3[%c40_118, %c0_119] : memref<64x64xf32, #tpu.memory_space<vmem>>, vector<8x32xf32>
    %398 = arith.mulf %397, %396 : vector<8x32xf32>
    %cst_120 = arith.constant 1.000000e+00 : f32
    %399 = vector.broadcast %cst_120 : f32 to vector<8x32xf32>
    %400 = arith.subf %399, %397 : vector<8x32xf32>
    %401 = arith.mulf %400, %349 : vector<8x32xf32>
    %402 = arith.addf %398, %401 : vector<8x32xf32>
    %403 = arith.mulf %397, %393 : vector<8x32xf32>
    %cst_121 = arith.constant 1.000000e+00 : f32
    %404 = vector.broadcast %cst_121 : f32 to vector<8x32xf32>
    %405 = arith.subf %404, %397 : vector<8x32xf32>
    %406 = arith.mulf %405, %354 : vector<8x32xf32>
    %407 = arith.addf %403, %406 : vector<8x32xf32>
    %c40_122 = arith.constant 40 : index
    %c32_123 = arith.constant 32 : index
    %408 = vector.load %arg10[%c40_122, %c32_123] : memref<64x64xf32, #tpu.memory_space<vmem>>, vector<8x32xf32>
    tpu.vector_store %arg10[%c40_122, %c32_123], %402 {strides = array<i32>} : memref<64x64xf32, #tpu.memory_space<vmem>>, vector<8x32xf32>,
    %c24_124 = arith.constant 24 : index
    %c0_125 = arith.constant 0 : index
    %409 = vector.load %arg9[%c24_124, %c0_125] : memref<64x256xf32, #tpu.memory_space<vmem>>, vector<8x128xf32>
    %c32_126 = arith.constant 32 : index
    %c128_127 = arith.constant 128 : index
    %410 = vector.load %arg9[%c32_126, %c128_127] : memref<64x256xf32, #tpu.memory_space<vmem>>, vector<8x128xf32>
    %411 = tpu.concatenate %409, %410 in 1 : vector<8x128xf32>, vector<8x128xf32> -> vector<8x256xf32>
    %412 = tpu.concatenate %382, %402 in 1 : vector<8x32xf32>, vector<8x32xf32> -> vector<8x64xf32>
    %413 = arith.truncf %412 : vector<8x64xf32> to vector<8x64xbf16>
    %cst_128 = arith.constant dense<0.000000e+00> : vector<8x256xf32>
    %414 = tpu.matmul %413, %245, %cst_128 {dimension_numbers = #tpu.dot_dimension_numbers<[1], [0], [0], [1], [0, 0, 1, 1], [], []>} : vector<8x64xbf16>, vector<64x256xbf16>, vector<8x256xf32> -> vector<8x256xf32>
    %415 = arith.addf %411, %414 : vector<8x256xf32>
    %416 = arith.negf %415 : vector<8x256xf32>
    %417 = math.exp %416 : vector<8x256xf32>
    %cst_129 = arith.constant 1.000000e+00 : f32
    %418 = vector.broadcast %cst_129 : f32 to vector<8x256xf32>
    %419 = arith.addf %418, %417 : vector<8x256xf32>
    %420 = arith.divf %418, %419 : vector<8x256xf32>
    %421 = vector.extract_strided_slice %420 {offsets = [0, 0], sizes = [8, 128], strides = [1, 1]} : vector<8x256xf32> to vector<8x128xf32>
    %422 = vector.extract_strided_slice %420 {offsets = [0, 128], sizes = [8, 128], strides = [1, 1]} : vector<8x256xf32> to vector<8x128xf32>
    %423 = vector.extract_strided_slice %421 {offsets = [0, 32], sizes = [8, 32], strides = [1, 1]} : vector<8x128xf32> to vector<8x32xf32>
    %424 = arith.mulf %423, %379 : vector<8x32xf32>
    %425 = vector.extract_strided_slice %421 {offsets = [0, 0], sizes = [8, 32], strides = [1, 1]} : vector<8x128xf32> to vector<8x32xf32>
    %426 = vector.extract_strided_slice %421 {offsets = [0, 64], sizes = [8, 32], strides = [1, 1]} : vector<8x128xf32> to vector<8x32xf32>
    %cst_130 = arith.constant 2.000000e+00 : f32
    %427 = vector.broadcast %cst_130 : f32 to vector<8x32xf32>
    %428 = arith.mulf %427, %426 : vector<8x32xf32>
    %cst_131 = arith.constant 1.000000e+00 : f32
    %429 = vector.broadcast %cst_131 : f32 to vector<8x32xf32>
    %430 = arith.subf %428, %429 : vector<8x32xf32>
    %431 = arith.mulf %425, %430 : vector<8x32xf32>
    %432 = arith.addf %424, %431 : vector<8x32xf32>
    %433 = vector.extract_strided_slice %421 {offsets = [0, 96], sizes = [8, 32], strides = [1, 1]} : vector<8x128xf32> to vector<8x32xf32>
    %434 = math.tanh %432 : vector<8x32xf32>
    %435 = arith.mulf %433, %434 : vector<8x32xf32>
    %c24_132 = arith.constant 24 : index
    %c0_133 = arith.constant 0 : index
    %436 = vector.load %arg10[%c24_132, %c0_133] : memref<64x64xf32, #tpu.memory_space<vmem>>, vector<8x32xf32>
    tpu.vector_store %arg10[%c24_132, %c0_133], %435 {strides = array<i32>} : memref<64x64xf32, #tpu.memory_space<vmem>>, vector<8x32xf32>,
    %437 = vector.extract_strided_slice %422 {offsets = [0, 32], sizes = [8, 32], strides = [1, 1]} : vector<8x128xf32> to vector<8x32xf32>
    %438 = arith.mulf %437, %407 : vector<8x32xf32>
    %439 = vector.extract_strided_slice %422 {offsets = [0, 0], sizes = [8, 32], strides = [1, 1]} : vector<8x128xf32> to vector<8x32xf32>
    %440 = vector.extract_strided_slice %422 {offsets = [0, 64], sizes = [8, 32], strides = [1, 1]} : vector<8x128xf32> to vector<8x32xf32>
    %cst_134 = arith.constant 2.000000e+00 : f32
    %441 = vector.broadcast %cst_134 : f32 to vector<8x32xf32>
    %442 = arith.mulf %441, %440 : vector<8x32xf32>
    %cst_135 = arith.constant 1.000000e+00 : f32
    %443 = vector.broadcast %cst_135 : f32 to vector<8x32xf32>
    %444 = arith.subf %442, %443 : vector<8x32xf32>
    %445 = arith.mulf %439, %444 : vector<8x32xf32>
    %446 = arith.addf %438, %445 : vector<8x32xf32>
    %447 = vector.extract_strided_slice %422 {offsets = [0, 96], sizes = [8, 32], strides = [1, 1]} : vector<8x128xf32> to vector<8x32xf32>
    %448 = math.tanh %446 : vector<8x32xf32>
    %449 = arith.mulf %447, %448 : vector<8x32xf32>
    %c32_136 = arith.constant 32 : index
    %c0_137 = arith.constant 0 : index
    %450 = vector.load %arg3[%c32_136, %c0_137] : memref<64x64xf32, #tpu.memory_space<vmem>>, vector<8x32xf32>
    %451 = arith.mulf %450, %449 : vector<8x32xf32>
    %cst_138 = arith.constant 1.000000e+00 : f32
    %452 = vector.broadcast %cst_138 : f32 to vector<8x32xf32>
    %453 = arith.subf %452, %450 : vector<8x32xf32>
    %454 = arith.mulf %453, %402 : vector<8x32xf32>
    %455 = arith.addf %451, %454 : vector<8x32xf32>
    %456 = arith.mulf %450, %446 : vector<8x32xf32>
    %cst_139 = arith.constant 1.000000e+00 : f32
    %457 = vector.broadcast %cst_139 : f32 to vector<8x32xf32>
    %458 = arith.subf %457, %450 : vector<8x32xf32>
    %459 = arith.mulf %458, %407 : vector<8x32xf32>
    %460 = arith.addf %456, %459 : vector<8x32xf32>
    %c32_140 = arith.constant 32 : index
    %c32_141 = arith.constant 32 : index
    %461 = vector.load %arg10[%c32_140, %c32_141] : memref<64x64xf32, #tpu.memory_space<vmem>>, vector<8x32xf32>
    tpu.vector_store %arg10[%c32_140, %c32_141], %455 {strides = array<i32>} : memref<64x64xf32, #tpu.memory_space<vmem>>, vector<8x32xf32>,
    %c32_142 = arith.constant 32 : index
    %c0_143 = arith.constant 0 : index
    %462 = vector.load %arg9[%c32_142, %c0_143] : memref<64x256xf32, #tpu.memory_space<vmem>>, vector<8x128xf32>
    %c24_144 = arith.constant 24 : index
    %c128_145 = arith.constant 128 : index
    %463 = vector.load %arg9[%c24_144, %c128_145] : memref<64x256xf32, #tpu.memory_space<vmem>>, vector<8x128xf32>
    %464 = tpu.concatenate %462, %463 in 1 : vector<8x128xf32>, vector<8x128xf32> -> vector<8x256xf32>
    %465 = tpu.concatenate %435, %455 in 1 : vector<8x32xf32>, vector<8x32xf32> -> vector<8x64xf32>
    %466 = arith.truncf %465 : vector<8x64xf32> to vector<8x64xbf16>
    %cst_146 = arith.constant dense<0.000000e+00> : vector<8x256xf32>
    %467 = tpu.matmul %466, %245, %cst_146 {dimension_numbers = #tpu.dot_dimension_numbers<[1], [0], [0], [1], [0, 0, 1, 1], [], []>} : vector<8x64xbf16>, vector<64x256xbf16>, vector<8x256xf32> -> vector<8x256xf32>
    %468 = arith.addf %464, %467 : vector<8x256xf32>
    %469 = arith.negf %468 : vector<8x256xf32>
    %470 = math.exp %469 : vector<8x256xf32>
    %cst_147 = arith.constant 1.000000e+00 : f32
    %471 = vector.broadcast %cst_147 : f32 to vector<8x256xf32>
    %472 = arith.addf %471, %470 : vector<8x256xf32>
    %473 = arith.divf %471, %472 : vector<8x256xf32>
    %474 = vector.extract_strided_slice %473 {offsets = [0, 0], sizes = [8, 128], strides = [1, 1]} : vector<8x256xf32> to vector<8x128xf32>
    %475 = vector.extract_strided_slice %473 {offsets = [0, 128], sizes = [8, 128], strides = [1, 1]} : vector<8x256xf32> to vector<8x128xf32>
    %476 = vector.extract_strided_slice %474 {offsets = [0, 32], sizes = [8, 32], strides = [1, 1]} : vector<8x128xf32> to vector<8x32xf32>
    %477 = arith.mulf %476, %432 : vector<8x32xf32>
    %478 = vector.extract_strided_slice %474 {offsets = [0, 0], sizes = [8, 32], strides = [1, 1]} : vector<8x128xf32> to vector<8x32xf32>
    %479 = vector.extract_strided_slice %474 {offsets = [0, 64], sizes = [8, 32], strides = [1, 1]} : vector<8x128xf32> to vector<8x32xf32>
    %cst_148 = arith.constant 2.000000e+00 : f32
    %480 = vector.broadcast %cst_148 : f32 to vector<8x32xf32>
    %481 = arith.mulf %480, %479 : vector<8x32xf32>
    %cst_149 = arith.constant 1.000000e+00 : f32
    %482 = vector.broadcast %cst_149 : f32 to vector<8x32xf32>
    %483 = arith.subf %481, %482 : vector<8x32xf32>
    %484 = arith.mulf %478, %483 : vector<8x32xf32>
    %485 = arith.addf %477, %484 : vector<8x32xf32>
    %486 = vector.extract_strided_slice %474 {offsets = [0, 96], sizes = [8, 32], strides = [1, 1]} : vector<8x128xf32> to vector<8x32xf32>
    %487 = math.tanh %485 : vector<8x32xf32>
    %488 = arith.mulf %486, %487 : vector<8x32xf32>
    %c32_150 = arith.constant 32 : index
    %c0_151 = arith.constant 0 : index
    %489 = vector.load %arg10[%c32_150, %c0_151] : memref<64x64xf32, #tpu.memory_space<vmem>>, vector<8x32xf32>
    tpu.vector_store %arg10[%c32_150, %c0_151], %488 {strides = array<i32>} : memref<64x64xf32, #tpu.memory_space<vmem>>, vector<8x32xf32>,
    %490 = vector.extract_strided_slice %475 {offsets = [0, 32], sizes = [8, 32], strides = [1, 1]} : vector<8x128xf32> to vector<8x32xf32>
    %491 = arith.mulf %490, %460 : vector<8x32xf32>
    %492 = vector.extract_strided_slice %475 {offsets = [0, 0], sizes = [8, 32], strides = [1, 1]} : vector<8x128xf32> to vector<8x32xf32>
    %493 = vector.extract_strided_slice %475 {offsets = [0, 64], sizes = [8, 32], strides = [1, 1]} : vector<8x128xf32> to vector<8x32xf32>
    %cst_152 = arith.constant 2.000000e+00 : f32
    %494 = vector.broadcast %cst_152 : f32 to vector<8x32xf32>
    %495 = arith.mulf %494, %493 : vector<8x32xf32>
    %cst_153 = arith.constant 1.000000e+00 : f32
    %496 = vector.broadcast %cst_153 : f32 to vector<8x32xf32>
    %497 = arith.subf %495, %496 : vector<8x32xf32>
    %498 = arith.mulf %492, %497 : vector<8x32xf32>
    %499 = arith.addf %491, %498 : vector<8x32xf32>
    %500 = vector.extract_strided_slice %475 {offsets = [0, 96], sizes = [8, 32], strides = [1, 1]} : vector<8x128xf32> to vector<8x32xf32>
    %501 = math.tanh %499 : vector<8x32xf32>
    %502 = arith.mulf %500, %501 : vector<8x32xf32>
    %c24_154 = arith.constant 24 : index
    %c0_155 = arith.constant 0 : index
    %503 = vector.load %arg3[%c24_154, %c0_155] : memref<64x64xf32, #tpu.memory_space<vmem>>, vector<8x32xf32>
    %504 = arith.mulf %503, %502 : vector<8x32xf32>
    %cst_156 = arith.constant 1.000000e+00 : f32
    %505 = vector.broadcast %cst_156 : f32 to vector<8x32xf32>
    %506 = arith.subf %505, %503 : vector<8x32xf32>
    %507 = arith.mulf %506, %455 : vector<8x32xf32>
    %508 = arith.addf %504, %507 : vector<8x32xf32>
    %509 = arith.mulf %503, %499 : vector<8x32xf32>
    %cst_157 = arith.constant 1.000000e+00 : f32
    %510 = vector.broadcast %cst_157 : f32 to vector<8x32xf32>
    %511 = arith.subf %510, %503 : vector<8x32xf32>
    %512 = arith.mulf %511, %460 : vector<8x32xf32>
    %513 = arith.addf %509, %512 : vector<8x32xf32>
    %c24_158 = arith.constant 24 : index
    %c32_159 = arith.constant 32 : index
    %514 = vector.load %arg10[%c24_158, %c32_159] : memref<64x64xf32, #tpu.memory_space<vmem>>, vector<8x32xf32>
    tpu.vector_store %arg10[%c24_158, %c32_159], %508 {strides = array<i32>} : memref<64x64xf32, #tpu.memory_space<vmem>>, vector<8x32xf32>,
    %c40_160 = arith.constant 40 : index
    %c0_161 = arith.constant 0 : index
    %515 = vector.load %arg9[%c40_160, %c0_161] : memref<64x256xf32, #tpu.memory_space<vmem>>, vector<8x128xf32>
    %c16_162 = arith.constant 16 : index
    %c128_163 = arith.constant 128 : index
    %516 = vector.load %arg9[%c16_162, %c128_163] : memref<64x256xf32, #tpu.memory_space<vmem>>, vector<8x128xf32>
    %517 = tpu.concatenate %515, %516 in 1 : vector<8x128xf32>, vector<8x128xf32> -> vector<8x256xf32>
    %518 = tpu.concatenate %488, %508 in 1 : vector<8x32xf32>, vector<8x32xf32> -> vector<8x64xf32>
    %519 = arith.truncf %518 : vector<8x64xf32> to vector<8x64xbf16>
    %cst_164 = arith.constant dense<0.000000e+00> : vector<8x256xf32>
    %520 = tpu.matmul %519, %245, %cst_164 {dimension_numbers = #tpu.dot_dimension_numbers<[1], [0], [0], [1], [0, 0, 1, 1], [], []>} : vector<8x64xbf16>, vector<64x256xbf16>, vector<8x256xf32> -> vector<8x256xf32>
    %521 = arith.addf %517, %520 : vector<8x256xf32>
    %522 = arith.negf %521 : vector<8x256xf32>
    %523 = math.exp %522 : vector<8x256xf32>
    %cst_165 = arith.constant 1.000000e+00 : f32
    %524 = vector.broadcast %cst_165 : f32 to vector<8x256xf32>
    %525 = arith.addf %524, %523 : vector<8x256xf32>
    %526 = arith.divf %524, %525 : vector<8x256xf32>
    %527 = vector.extract_strided_slice %526 {offsets = [0, 0], sizes = [8, 128], strides = [1, 1]} : vector<8x256xf32> to vector<8x128xf32>
    %528 = vector.extract_strided_slice %526 {offsets = [0, 128], sizes = [8, 128], strides = [1, 1]} : vector<8x256xf32> to vector<8x128xf32>
    %529 = vector.extract_strided_slice %527 {offsets = [0, 32], sizes = [8, 32], strides = [1, 1]} : vector<8x128xf32> to vector<8x32xf32>
    %530 = arith.mulf %529, %485 : vector<8x32xf32>
    %531 = vector.extract_strided_slice %527 {offsets = [0, 0], sizes = [8, 32], strides = [1, 1]} : vector<8x128xf32> to vector<8x32xf32>
    %532 = vector.extract_strided_slice %527 {offsets = [0, 64], sizes = [8, 32], strides = [1, 1]} : vector<8x128xf32> to vector<8x32xf32>
    %cst_166 = arith.constant 2.000000e+00 : f32
    %533 = vector.broadcast %cst_166 : f32 to vector<8x32xf32>
    %534 = arith.mulf %533, %532 : vector<8x32xf32>
    %cst_167 = arith.constant 1.000000e+00 : f32
    %535 = vector.broadcast %cst_167 : f32 to vector<8x32xf32>
    %536 = arith.subf %534, %535 : vector<8x32xf32>
    %537 = arith.mulf %531, %536 : vector<8x32xf32>
    %538 = arith.addf %530, %537 : vector<8x32xf32>
    %539 = vector.extract_strided_slice %527 {offsets = [0, 96], sizes = [8, 32], strides = [1, 1]} : vector<8x128xf32> to vector<8x32xf32>
    %540 = math.tanh %538 : vector<8x32xf32>
    %541 = arith.mulf %539, %540 : vector<8x32xf32>
    %c40_168 = arith.constant 40 : index
    %c0_169 = arith.constant 0 : index
    %542 = vector.load %arg10[%c40_168, %c0_169] : memref<64x64xf32, #tpu.memory_space<vmem>>, vector<8x32xf32>
    tpu.vector_store %arg10[%c40_168, %c0_169], %541 {strides = array<i32>} : memref<64x64xf32, #tpu.memory_space<vmem>>, vector<8x32xf32>,
    %543 = vector.extract_strided_slice %528 {offsets = [0, 32], sizes = [8, 32], strides = [1, 1]} : vector<8x128xf32> to vector<8x32xf32>
    %544 = arith.mulf %543, %513 : vector<8x32xf32>
    %545 = vector.extract_strided_slice %528 {offsets = [0, 0], sizes = [8, 32], strides = [1, 1]} : vector<8x128xf32> to vector<8x32xf32>
    %546 = vector.extract_strided_slice %528 {offsets = [0, 64], sizes = [8, 32], strides = [1, 1]} : vector<8x128xf32> to vector<8x32xf32>
    %cst_170 = arith.constant 2.000000e+00 : f32
    %547 = vector.broadcast %cst_170 : f32 to vector<8x32xf32>
    %548 = arith.mulf %547, %546 : vector<8x32xf32>
    %cst_171 = arith.constant 1.000000e+00 : f32
    %549 = vector.broadcast %cst_171 : f32 to vector<8x32xf32>
    %550 = arith.subf %548, %549 : vector<8x32xf32>
    %551 = arith.mulf %545, %550 : vector<8x32xf32>
    %552 = arith.addf %544, %551 : vector<8x32xf32>
    %553 = vector.extract_strided_slice %528 {offsets = [0, 96], sizes = [8, 32], strides = [1, 1]} : vector<8x128xf32> to vector<8x32xf32>
    %554 = math.tanh %552 : vector<8x32xf32>
    %555 = arith.mulf %553, %554 : vector<8x32xf32>
    %c16_172 = arith.constant 16 : index
    %c0_173 = arith.constant 0 : index
    %556 = vector.load %arg3[%c16_172, %c0_173] : memref<64x64xf32, #tpu.memory_space<vmem>>, vector<8x32xf32>
    %557 = arith.mulf %556, %555 : vector<8x32xf32>
    %cst_174 = arith.constant 1.000000e+00 : f32
    %558 = vector.broadcast %cst_174 : f32 to vector<8x32xf32>
    %559 = arith.subf %558, %556 : vector<8x32xf32>
    %560 = arith.mulf %559, %508 : vector<8x32xf32>
    %561 = arith.addf %557, %560 : vector<8x32xf32>
    %562 = arith.mulf %556, %552 : vector<8x32xf32>
    %cst_175 = arith.constant 1.000000e+00 : f32
    %563 = vector.broadcast %cst_175 : f32 to vector<8x32xf32>
    %564 = arith.subf %563, %556 : vector<8x32xf32>
    %565 = arith.mulf %564, %513 : vector<8x32xf32>
    %566 = arith.addf %562, %565 : vector<8x32xf32>
    %c16_176 = arith.constant 16 : index
    %c32_177 = arith.constant 32 : index
    %567 = vector.load %arg10[%c16_176, %c32_177] : memref<64x64xf32, #tpu.memory_space<vmem>>, vector<8x32xf32>
    tpu.vector_store %arg10[%c16_176, %c32_177], %561 {strides = array<i32>} : memref<64x64xf32, #tpu.memory_space<vmem>>, vector<8x32xf32>,
    %c48_178 = arith.constant 48 : index
    %c0_179 = arith.constant 0 : index
    %568 = vector.load %arg9[%c48_178, %c0_179] : memref<64x256xf32, #tpu.memory_space<vmem>>, vector<8x128xf32>
    %c8_180 = arith.constant 8 : index
    %c128_181 = arith.constant 128 : index
    %569 = vector.load %arg9[%c8_180, %c128_181] : memref<64x256xf32, #tpu.memory_space<vmem>>, vector<8x128xf32>
    %570 = tpu.concatenate %568, %569 in 1 : vector<8x128xf32>, vector<8x128xf32> -> vector<8x256xf32>
    %571 = tpu.concatenate %541, %561 in 1 : vector<8x32xf32>, vector<8x32xf32> -> vector<8x64xf32>
    %572 = arith.truncf %571 : vector<8x64xf32> to vector<8x64xbf16>
    %cst_182 = arith.constant dense<0.000000e+00> : vector<8x256xf32>
    %573 = tpu.matmul %572, %245, %cst_182 {dimension_numbers = #tpu.dot_dimension_numbers<[1], [0], [0], [1], [0, 0, 1, 1], [], []>} : vector<8x64xbf16>, vector<64x256xbf16>, vector<8x256xf32> -> vector<8x256xf32>
    %574 = arith.addf %570, %573 : vector<8x256xf32>
    %575 = arith.negf %574 : vector<8x256xf32>
    %576 = math.exp %575 : vector<8x256xf32>
    %cst_183 = arith.constant 1.000000e+00 : f32
    %577 = vector.broadcast %cst_183 : f32 to vector<8x256xf32>
    %578 = arith.addf %577, %576 : vector<8x256xf32>
    %579 = arith.divf %577, %578 : vector<8x256xf32>
    %580 = vector.extract_strided_slice %579 {offsets = [0, 0], sizes = [8, 128], strides = [1, 1]} : vector<8x256xf32> to vector<8x128xf32>
    %581 = vector.extract_strided_slice %579 {offsets = [0, 128], sizes = [8, 128], strides = [1, 1]} : vector<8x256xf32> to vector<8x128xf32>
    %582 = vector.extract_strided_slice %580 {offsets = [0, 32], sizes = [8, 32], strides = [1, 1]} : vector<8x128xf32> to vector<8x32xf32>
    %583 = arith.mulf %582, %538 : vector<8x32xf32>
    %584 = vector.extract_strided_slice %580 {offsets = [0, 0], sizes = [8, 32], strides = [1, 1]} : vector<8x128xf32> to vector<8x32xf32>
    %585 = vector.extract_strided_slice %580 {offsets = [0, 64], sizes = [8, 32], strides = [1, 1]} : vector<8x128xf32> to vector<8x32xf32>
    %cst_184 = arith.constant 2.000000e+00 : f32
    %586 = vector.broadcast %cst_184 : f32 to vector<8x32xf32>
    %587 = arith.mulf %586, %585 : vector<8x32xf32>
    %cst_185 = arith.constant 1.000000e+00 : f32
    %588 = vector.broadcast %cst_185 : f32 to vector<8x32xf32>
    %589 = arith.subf %587, %588 : vector<8x32xf32>
    %590 = arith.mulf %584, %589 : vector<8x32xf32>
    %591 = arith.addf %583, %590 : vector<8x32xf32>
    %592 = vector.extract_strided_slice %580 {offsets = [0, 96], sizes = [8, 32], strides = [1, 1]} : vector<8x128xf32> to vector<8x32xf32>
    %593 = math.tanh %591 : vector<8x32xf32>
    %594 = arith.mulf %592, %593 : vector<8x32xf32>
    %c48_186 = arith.constant 48 : index
    %c0_187 = arith.constant 0 : index
    %595 = vector.load %arg10[%c48_186, %c0_187] : memref<64x64xf32, #tpu.memory_space<vmem>>, vector<8x32xf32>
    tpu.vector_store %arg10[%c48_186, %c0_187], %594 {strides = array<i32>} : memref<64x64xf32, #tpu.memory_space<vmem>>, vector<8x32xf32>,
    %596 = vector.extract_strided_slice %581 {offsets = [0, 32], sizes = [8, 32], strides = [1, 1]} : vector<8x128xf32> to vector<8x32xf32>
    %597 = arith.mulf %596, %566 : vector<8x32xf32>
    %598 = vector.extract_strided_slice %581 {offsets = [0, 0], sizes = [8, 32], strides = [1, 1]} : vector<8x128xf32> to vector<8x32xf32>
    %599 = vector.extract_strided_slice %581 {offsets = [0, 64], sizes = [8, 32], strides = [1, 1]} : vector<8x128xf32> to vector<8x32xf32>
    %cst_188 = arith.constant 2.000000e+00 : f32
    %600 = vector.broadcast %cst_188 : f32 to vector<8x32xf32>
    %601 = arith.mulf %600, %599 : vector<8x32xf32>
    %cst_189 = arith.constant 1.000000e+00 : f32
    %602 = vector.broadcast %cst_189 : f32 to vector<8x32xf32>
    %603 = arith.subf %601, %602 : vector<8x32xf32>
    %604 = arith.mulf %598, %603 : vector<8x32xf32>
    %605 = arith.addf %597, %604 : vector<8x32xf32>
    %606 = vector.extract_strided_slice %581 {offsets = [0, 96], sizes = [8, 32], strides = [1, 1]} : vector<8x128xf32> to vector<8x32xf32>
    %607 = math.tanh %605 : vector<8x32xf32>
    %608 = arith.mulf %606, %607 : vector<8x32xf32>
    %c8_190 = arith.constant 8 : index
    %c0_191 = arith.constant 0 : index
    %609 = vector.load %arg3[%c8_190, %c0_191] : memref<64x64xf32, #tpu.memory_space<vmem>>, vector<8x32xf32>
    %610 = arith.mulf %609, %608 : vector<8x32xf32>
    %cst_192 = arith.constant 1.000000e+00 : f32
    %611 = vector.broadcast %cst_192 : f32 to vector<8x32xf32>
    %612 = arith.subf %611, %609 : vector<8x32xf32>
    %613 = arith.mulf %612, %561 : vector<8x32xf32>
    %614 = arith.addf %610, %613 : vector<8x32xf32>
    %615 = arith.mulf %609, %605 : vector<8x32xf32>
    %cst_193 = arith.constant 1.000000e+00 : f32
    %616 = vector.broadcast %cst_193 : f32 to vector<8x32xf32>
    %617 = arith.subf %616, %609 : vector<8x32xf32>
    %618 = arith.mulf %617, %566 : vector<8x32xf32>
    %619 = arith.addf %615, %618 : vector<8x32xf32>
    %c8_194 = arith.constant 8 : index
    %c32_195 = arith.constant 32 : index
    %620 = vector.load %arg10[%c8_194, %c32_195] : memref<64x64xf32, #tpu.memory_space<vmem>>, vector<8x32xf32>
    tpu.vector_store %arg10[%c8_194, %c32_195], %614 {strides = array<i32>} : memref<64x64xf32, #tpu.memory_space<vmem>>, vector<8x32xf32>,
    %c56_196 = arith.constant 56 : index
    %c0_197 = arith.constant 0 : index
    %621 = vector.load %arg9[%c56_196, %c0_197] : memref<64x256xf32, #tpu.memory_space<vmem>>, vector<8x128xf32>
    %c0_198 = arith.constant 0 : index
    %c128_199 = arith.constant 128 : index
    %622 = vector.load %arg9[%c0_198, %c128_199] : memref<64x256xf32, #tpu.memory_space<vmem>>, vector<8x128xf32>
    %623 = tpu.concatenate %621, %622 in 1 : vector<8x128xf32>, vector<8x128xf32> -> vector<8x256xf32>
    %624 = tpu.concatenate %594, %614 in 1 : vector<8x32xf32>, vector<8x32xf32> -> vector<8x64xf32>
    %625 = arith.truncf %624 : vector<8x64xf32> to vector<8x64xbf16>
    %cst_200 = arith.constant dense<0.000000e+00> : vector<8x256xf32>
    %626 = tpu.matmul %625, %245, %cst_200 {dimension_numbers = #tpu.dot_dimension_numbers<[1], [0], [0], [1], [0, 0, 1, 1], [], []>} : vector<8x64xbf16>, vector<64x256xbf16>, vector<8x256xf32> -> vector<8x256xf32>
    %627 = arith.addf %623, %626 : vector<8x256xf32>
    %628 = arith.negf %627 : vector<8x256xf32>
    %629 = math.exp %628 : vector<8x256xf32>
    %cst_201 = arith.constant 1.000000e+00 : f32
    %630 = vector.broadcast %cst_201 : f32 to vector<8x256xf32>
    %631 = arith.addf %630, %629 : vector<8x256xf32>
    %632 = arith.divf %630, %631 : vector<8x256xf32>
    %633 = vector.extract_strided_slice %632 {offsets = [0, 0], sizes = [8, 128], strides = [1, 1]} : vector<8x256xf32> to vector<8x128xf32>
    %634 = vector.extract_strided_slice %632 {offsets = [0, 128], sizes = [8, 128], strides = [1, 1]} : vector<8x256xf32> to vector<8x128xf32>
    %635 = vector.extract_strided_slice %633 {offsets = [0, 32], sizes = [8, 32], strides = [1, 1]} : vector<8x128xf32> to vector<8x32xf32>
    %636 = arith.mulf %635, %591 : vector<8x32xf32>
    %637 = vector.extract_strided_slice %633 {offsets = [0, 0], sizes = [8, 32], strides = [1, 1]} : vector<8x128xf32> to vector<8x32xf32>
    %638 = vector.extract_strided_slice %633 {offsets = [0, 64], sizes = [8, 32], strides = [1, 1]} : vector<8x128xf32> to vector<8x32xf32>
    %cst_202 = arith.constant 2.000000e+00 : f32
    %639 = vector.broadcast %cst_202 : f32 to vector<8x32xf32>
    %640 = arith.mulf %639, %638 : vector<8x32xf32>
    %cst_203 = arith.constant 1.000000e+00 : f32
    %641 = vector.broadcast %cst_203 : f32 to vector<8x32xf32>
    %642 = arith.subf %640, %641 : vector<8x32xf32>
    %643 = arith.mulf %637, %642 : vector<8x32xf32>
    %644 = arith.addf %636, %643 : vector<8x32xf32>
    %645 = vector.extract_strided_slice %633 {offsets = [0, 96], sizes = [8, 32], strides = [1, 1]} : vector<8x128xf32> to vector<8x32xf32>
    %646 = math.tanh %644 : vector<8x32xf32>
    %647 = arith.mulf %645, %646 : vector<8x32xf32>
    %c56_204 = arith.constant 56 : index
    %c0_205 = arith.constant 0 : index
    %648 = vector.load %arg10[%c56_204, %c0_205] : memref<64x64xf32, #tpu.memory_space<vmem>>, vector<8x32xf32>
    tpu.vector_store %arg10[%c56_204, %c0_205], %647 {strides = array<i32>} : memref<64x64xf32, #tpu.memory_space<vmem>>, vector<8x32xf32>,
    %649 = vector.extract_strided_slice %634 {offsets = [0, 32], sizes = [8, 32], strides = [1, 1]} : vector<8x128xf32> to vector<8x32xf32>
    %650 = arith.mulf %649, %619 : vector<8x32xf32>
    %651 = vector.extract_strided_slice %634 {offsets = [0, 0], sizes = [8, 32], strides = [1, 1]} : vector<8x128xf32> to vector<8x32xf32>
    %652 = vector.extract_strided_slice %634 {offsets = [0, 64], sizes = [8, 32], strides = [1, 1]} : vector<8x128xf32> to vector<8x32xf32>
    %cst_206 = arith.constant 2.000000e+00 : f32
    %653 = vector.broadcast %cst_206 : f32 to vector<8x32xf32>
    %654 = arith.mulf %653, %652 : vector<8x32xf32>
    %cst_207 = arith.constant 1.000000e+00 : f32
    %655 = vector.broadcast %cst_207 : f32 to vector<8x32xf32>
    %656 = arith.subf %654, %655 : vector<8x32xf32>
    %657 = arith.mulf %651, %656 : vector<8x32xf32>
    %658 = arith.addf %650, %657 : vector<8x32xf32>
    %659 = vector.extract_strided_slice %634 {offsets = [0, 96], sizes = [8, 32], strides = [1, 1]} : vector<8x128xf32> to vector<8x32xf32>
    %660 = math.tanh %658 : vector<8x32xf32>
    %661 = arith.mulf %659, %660 : vector<8x32xf32>
    %c0_208 = arith.constant 0 : index
    %c0_209 = arith.constant 0 : index
    %662 = vector.load %arg3[%c0_208, %c0_209] : memref<64x64xf32, #tpu.memory_space<vmem>>, vector<8x32xf32>
    %663 = arith.mulf %662, %661 : vector<8x32xf32>
    %cst_210 = arith.constant 1.000000e+00 : f32
    %664 = vector.broadcast %cst_210 : f32 to vector<8x32xf32>
    %665 = arith.subf %664, %662 : vector<8x32xf32>
    %666 = arith.mulf %665, %614 : vector<8x32xf32>
    %667 = arith.addf %663, %666 : vector<8x32xf32>
    %c0_211 = arith.constant 0 : index
    %c32_212 = arith.constant 32 : index
    %668 = vector.load %arg10[%c0_211, %c32_212] : memref<64x64xf32, #tpu.memory_space<vmem>>, vector<8x32xf32>
    tpu.vector_store %arg10[%c0_211, %c32_212], %667 {strides = array<i32>} : memref<64x64xf32, #tpu.memory_space<vmem>>, vector<8x32xf32>,
    %c0_213 = arith.constant 0 : index
    %c0_214 = arith.constant 0 : index
    %669 = vector.load %arg10[%c0_213, %c0_214] : memref<64x64xf32, #tpu.memory_space<vmem>>, vector<64x64xf32>
    %c104 = arith.constant 104 : index
    %c0_215 = arith.constant 0 : index
    %670 = vector.load %arg4[%c104, %c0_215] : memref<240x256xf32, #tpu.memory_space<vmem>>, vector<64x256xf32>
    %cst_216 = arith.constant dense<0.000000e+00> : vector<64x256xf32>
    %671 = tpu.matmul %669, %670, %cst_216 {dimension_numbers = #tpu.dot_dimension_numbers<[1], [0], [0], [1], [0, 0, 1, 1], [], []>} : vector<64x64xf32>, vector<64x256xf32>, vector<64x256xf32> -> vector<64x256xf32>
    %c168 = arith.constant 168 : index
    %c0_217 = arith.constant 0 : index
    %672 = vector.load %arg4[%c168, %c0_217] : memref<240x256xf32, #tpu.memory_space<vmem>>, vector<1x256xf32>
    %673 = vector.broadcast %672 : vector<1x256xf32> to vector<64x256xf32>
    %674 = arith.addf %671, %673 : vector<64x256xf32>
    %c0_218 = arith.constant 0 : index
    %c0_219 = arith.constant 0 : index
    %675 = vector.load %arg9[%c0_218, %c0_219] : memref<64x256xf32, #tpu.memory_space<vmem>>, vector<64x256xf32>
    tpu.vector_store %arg9[%c0_218, %c0_219], %674 {strides = array<i32>} : memref<64x256xf32, #tpu.memory_space<vmem>>, vector<64x256xf32>,
    %c176 = arith.constant 176 : index
    %c0_220 = arith.constant 0 : index
    %676 = vector.load %arg4[%c176, %c0_220] : memref<240x256xf32, #tpu.memory_space<vmem>>, vector<64x256xf32>
    %677 = arith.truncf %676 : vector<64x256xf32> to vector<64x256xbf16>
    %cst_221 = arith.constant 0.000000e+00 : f32
    %678 = vector.broadcast %cst_221 : f32 to vector<8x32xf32>
    %cst_222 = arith.constant 0.000000e+00 : f32
    %679 = vector.broadcast %cst_222 : f32 to vector<8x32xf32>
    %cst_223 = arith.constant 0.000000e+00 : f32
    %680 = vector.broadcast %cst_223 : f32 to vector<8x32xf32>
    %cst_224 = arith.constant 0.000000e+00 : f32
    %681 = vector.broadcast %cst_224 : f32 to vector<8x32xf32>
    %c0_225 = arith.constant 0 : index
    %c0_226 = arith.constant 0 : index
    %682 = vector.load %arg9[%c0_225, %c0_226] : memref<64x256xf32, #tpu.memory_space<vmem>>, vector<8x128xf32>
    %c56_227 = arith.constant 56 : index
    %c128_228 = arith.constant 128 : index
    %683 = vector.load %arg9[%c56_227, %c128_228] : memref<64x256xf32, #tpu.memory_space<vmem>>, vector<8x128xf32>
    %684 = tpu.concatenate %682, %683 in 1 : vector<8x128xf32>, vector<8x128xf32> -> vector<8x256xf32>
    %685 = tpu.concatenate %678, %680 in 1 : vector<8x32xf32>, vector<8x32xf32> -> vector<8x64xf32>
    %686 = arith.truncf %685 : vector<8x64xf32> to vector<8x64xbf16>
    %cst_229 = arith.constant dense<0.000000e+00> : vector<8x256xf32>
    %687 = tpu.matmul %686, %677, %cst_229 {dimension_numbers = #tpu.dot_dimension_numbers<[1], [0], [0], [1], [0, 0, 1, 1], [], []>} : vector<8x64xbf16>, vector<64x256xbf16>, vector<8x256xf32> -> vector<8x256xf32>
    %688 = arith.addf %684, %687 : vector<8x256xf32>
    %689 = arith.negf %688 : vector<8x256xf32>
    %690 = math.exp %689 : vector<8x256xf32>
    %cst_230 = arith.constant 1.000000e+00 : f32
    %691 = vector.broadcast %cst_230 : f32 to vector<8x256xf32>
    %692 = arith.addf %691, %690 : vector<8x256xf32>
    %693 = arith.divf %691, %692 : vector<8x256xf32>
    %694 = vector.extract_strided_slice %693 {offsets = [0, 0], sizes = [8, 128], strides = [1, 1]} : vector<8x256xf32> to vector<8x128xf32>
    %695 = vector.extract_strided_slice %693 {offsets = [0, 128], sizes = [8, 128], strides = [1, 1]} : vector<8x256xf32> to vector<8x128xf32>
    %696 = vector.extract_strided_slice %694 {offsets = [0, 32], sizes = [8, 32], strides = [1, 1]} : vector<8x128xf32> to vector<8x32xf32>
    %697 = arith.mulf %696, %679 : vector<8x32xf32>
    %698 = vector.extract_strided_slice %694 {offsets = [0, 0], sizes = [8, 32], strides = [1, 1]} : vector<8x128xf32> to vector<8x32xf32>
    %699 = vector.extract_strided_slice %694 {offsets = [0, 64], sizes = [8, 32], strides = [1, 1]} : vector<8x128xf32> to vector<8x32xf32>
    %cst_231 = arith.constant 2.000000e+00 : f32
    %700 = vector.broadcast %cst_231 : f32 to vector<8x32xf32>
    %701 = arith.mulf %700, %699 : vector<8x32xf32>
    %cst_232 = arith.constant 1.000000e+00 : f32
    %702 = vector.broadcast %cst_232 : f32 to vector<8x32xf32>
    %703 = arith.subf %701, %702 : vector<8x32xf32>
    %704 = arith.mulf %698, %703 : vector<8x32xf32>
    %705 = arith.addf %697, %704 : vector<8x32xf32>
    %706 = vector.extract_strided_slice %694 {offsets = [0, 96], sizes = [8, 32], strides = [1, 1]} : vector<8x128xf32> to vector<8x32xf32>
    %707 = math.tanh %705 : vector<8x32xf32>
    %708 = arith.mulf %706, %707 : vector<8x32xf32>
    %c0_233 = arith.constant 0 : index
    %c0_234 = arith.constant 0 : index
    %709 = vector.load %arg10[%c0_233, %c0_234] : memref<64x64xf32, #tpu.memory_space<vmem>>, vector<8x32xf32>
    tpu.vector_store %arg10[%c0_233, %c0_234], %708 {strides = array<i32>} : memref<64x64xf32, #tpu.memory_space<vmem>>, vector<8x32xf32>,
    %710 = vector.extract_strided_slice %695 {offsets = [0, 32], sizes = [8, 32], strides = [1, 1]} : vector<8x128xf32> to vector<8x32xf32>
    %711 = arith.mulf %710, %681 : vector<8x32xf32>
    %712 = vector.extract_strided_slice %695 {offsets = [0, 0], sizes = [8, 32], strides = [1, 1]} : vector<8x128xf32> to vector<8x32xf32>
    %713 = vector.extract_strided_slice %695 {offsets = [0, 64], sizes = [8, 32], strides = [1, 1]} : vector<8x128xf32> to vector<8x32xf32>
    %cst_235 = arith.constant 2.000000e+00 : f32
    %714 = vector.broadcast %cst_235 : f32 to vector<8x32xf32>
    %715 = arith.mulf %714, %713 : vector<8x32xf32>
    %cst_236 = arith.constant 1.000000e+00 : f32
    %716 = vector.broadcast %cst_236 : f32 to vector<8x32xf32>
    %717 = arith.subf %715, %716 : vector<8x32xf32>
    %718 = arith.mulf %712, %717 : vector<8x32xf32>
    %719 = arith.addf %711, %718 : vector<8x32xf32>
    %720 = vector.extract_strided_slice %695 {offsets = [0, 96], sizes = [8, 32], strides = [1, 1]} : vector<8x128xf32> to vector<8x32xf32>
    %721 = math.tanh %719 : vector<8x32xf32>
    %722 = arith.mulf %720, %721 : vector<8x32xf32>
    %c56_237 = arith.constant 56 : index
    %c0_238 = arith.constant 0 : index
    %723 = vector.load %arg3[%c56_237, %c0_238] : memref<64x64xf32, #tpu.memory_space<vmem>>, vector<8x32xf32>
    %724 = arith.mulf %723, %722 : vector<8x32xf32>
    %cst_239 = arith.constant 1.000000e+00 : f32
    %725 = vector.broadcast %cst_239 : f32 to vector<8x32xf32>
    %726 = arith.subf %725, %723 : vector<8x32xf32>
    %727 = arith.mulf %726, %680 : vector<8x32xf32>
    %728 = arith.addf %724, %727 : vector<8x32xf32>
    %729 = arith.mulf %723, %719 : vector<8x32xf32>
    %cst_240 = arith.constant 1.000000e+00 : f32
    %730 = vector.broadcast %cst_240 : f32 to vector<8x32xf32>
    %731 = arith.subf %730, %723 : vector<8x32xf32>
    %732 = arith.mulf %731, %681 : vector<8x32xf32>
    %733 = arith.addf %729, %732 : vector<8x32xf32>
    %c56_241 = arith.constant 56 : index
    %c32_242 = arith.constant 32 : index
    %734 = vector.load %arg10[%c56_241, %c32_242] : memref<64x64xf32, #tpu.memory_space<vmem>>, vector<8x32xf32>
    tpu.vector_store %arg10[%c56_241, %c32_242], %728 {strides = array<i32>} : memref<64x64xf32, #tpu.memory_space<vmem>>, vector<8x32xf32>,
    %c8_243 = arith.constant 8 : index
    %c0_244 = arith.constant 0 : index
    %735 = vector.load %arg9[%c8_243, %c0_244] : memref<64x256xf32, #tpu.memory_space<vmem>>, vector<8x128xf32>
    %c48_245 = arith.constant 48 : index
    %c128_246 = arith.constant 128 : index
    %736 = vector.load %arg9[%c48_245, %c128_246] : memref<64x256xf32, #tpu.memory_space<vmem>>, vector<8x128xf32>
    %737 = tpu.concatenate %735, %736 in 1 : vector<8x128xf32>, vector<8x128xf32> -> vector<8x256xf32>
    %738 = tpu.concatenate %708, %728 in 1 : vector<8x32xf32>, vector<8x32xf32> -> vector<8x64xf32>
    %739 = arith.truncf %738 : vector<8x64xf32> to vector<8x64xbf16>
    %cst_247 = arith.constant dense<0.000000e+00> : vector<8x256xf32>
    %740 = tpu.matmul %739, %677, %cst_247 {dimension_numbers = #tpu.dot_dimension_numbers<[1], [0], [0], [1], [0, 0, 1, 1], [], []>} : vector<8x64xbf16>, vector<64x256xbf16>, vector<8x256xf32> -> vector<8x256xf32>
    %741 = arith.addf %737, %740 : vector<8x256xf32>
    %742 = arith.negf %741 : vector<8x256xf32>
    %743 = math.exp %742 : vector<8x256xf32>
    %cst_248 = arith.constant 1.000000e+00 : f32
    %744 = vector.broadcast %cst_248 : f32 to vector<8x256xf32>
    %745 = arith.addf %744, %743 : vector<8x256xf32>
    %746 = arith.divf %744, %745 : vector<8x256xf32>
    %747 = vector.extract_strided_slice %746 {offsets = [0, 0], sizes = [8, 128], strides = [1, 1]} : vector<8x256xf32> to vector<8x128xf32>
    %748 = vector.extract_strided_slice %746 {offsets = [0, 128], sizes = [8, 128], strides = [1, 1]} : vector<8x256xf32> to vector<8x128xf32>
    %749 = vector.extract_strided_slice %747 {offsets = [0, 32], sizes = [8, 32], strides = [1, 1]} : vector<8x128xf32> to vector<8x32xf32>
    %750 = arith.mulf %749, %705 : vector<8x32xf32>
    %751 = vector.extract_strided_slice %747 {offsets = [0, 0], sizes = [8, 32], strides = [1, 1]} : vector<8x128xf32> to vector<8x32xf32>
    %752 = vector.extract_strided_slice %747 {offsets = [0, 64], sizes = [8, 32], strides = [1, 1]} : vector<8x128xf32> to vector<8x32xf32>
    %cst_249 = arith.constant 2.000000e+00 : f32
    %753 = vector.broadcast %cst_249 : f32 to vector<8x32xf32>
    %754 = arith.mulf %753, %752 : vector<8x32xf32>
    %cst_250 = arith.constant 1.000000e+00 : f32
    %755 = vector.broadcast %cst_250 : f32 to vector<8x32xf32>
    %756 = arith.subf %754, %755 : vector<8x32xf32>
    %757 = arith.mulf %751, %756 : vector<8x32xf32>
    %758 = arith.addf %750, %757 : vector<8x32xf32>
    %759 = vector.extract_strided_slice %747 {offsets = [0, 96], sizes = [8, 32], strides = [1, 1]} : vector<8x128xf32> to vector<8x32xf32>
    %760 = math.tanh %758 : vector<8x32xf32>
    %761 = arith.mulf %759, %760 : vector<8x32xf32>
    %c8_251 = arith.constant 8 : index
    %c0_252 = arith.constant 0 : index
    %762 = vector.load %arg10[%c8_251, %c0_252] : memref<64x64xf32, #tpu.memory_space<vmem>>, vector<8x32xf32>
    tpu.vector_store %arg10[%c8_251, %c0_252], %761 {strides = array<i32>} : memref<64x64xf32, #tpu.memory_space<vmem>>, vector<8x32xf32>,
    %763 = vector.extract_strided_slice %748 {offsets = [0, 32], sizes = [8, 32], strides = [1, 1]} : vector<8x128xf32> to vector<8x32xf32>
    %764 = arith.mulf %763, %733 : vector<8x32xf32>
    %765 = vector.extract_strided_slice %748 {offsets = [0, 0], sizes = [8, 32], strides = [1, 1]} : vector<8x128xf32> to vector<8x32xf32>
    %766 = vector.extract_strided_slice %748 {offsets = [0, 64], sizes = [8, 32], strides = [1, 1]} : vector<8x128xf32> to vector<8x32xf32>
    %cst_253 = arith.constant 2.000000e+00 : f32
    %767 = vector.broadcast %cst_253 : f32 to vector<8x32xf32>
    %768 = arith.mulf %767, %766 : vector<8x32xf32>
    %cst_254 = arith.constant 1.000000e+00 : f32
    %769 = vector.broadcast %cst_254 : f32 to vector<8x32xf32>
    %770 = arith.subf %768, %769 : vector<8x32xf32>
    %771 = arith.mulf %765, %770 : vector<8x32xf32>
    %772 = arith.addf %764, %771 : vector<8x32xf32>
    %773 = vector.extract_strided_slice %748 {offsets = [0, 96], sizes = [8, 32], strides = [1, 1]} : vector<8x128xf32> to vector<8x32xf32>
    %774 = math.tanh %772 : vector<8x32xf32>
    %775 = arith.mulf %773, %774 : vector<8x32xf32>
    %c48_255 = arith.constant 48 : index
    %c0_256 = arith.constant 0 : index
    %776 = vector.load %arg3[%c48_255, %c0_256] : memref<64x64xf32, #tpu.memory_space<vmem>>, vector<8x32xf32>
    %777 = arith.mulf %776, %775 : vector<8x32xf32>
    %cst_257 = arith.constant 1.000000e+00 : f32
    %778 = vector.broadcast %cst_257 : f32 to vector<8x32xf32>
    %779 = arith.subf %778, %776 : vector<8x32xf32>
    %780 = arith.mulf %779, %728 : vector<8x32xf32>
    %781 = arith.addf %777, %780 : vector<8x32xf32>
    %782 = arith.mulf %776, %772 : vector<8x32xf32>
    %cst_258 = arith.constant 1.000000e+00 : f32
    %783 = vector.broadcast %cst_258 : f32 to vector<8x32xf32>
    %784 = arith.subf %783, %776 : vector<8x32xf32>
    %785 = arith.mulf %784, %733 : vector<8x32xf32>
    %786 = arith.addf %782, %785 : vector<8x32xf32>
    %c48_259 = arith.constant 48 : index
    %c32_260 = arith.constant 32 : index
    %787 = vector.load %arg10[%c48_259, %c32_260] : memref<64x64xf32, #tpu.memory_space<vmem>>, vector<8x32xf32>
    tpu.vector_store %arg10[%c48_259, %c32_260], %781 {strides = array<i32>} : memref<64x64xf32, #tpu.memory_space<vmem>>, vector<8x32xf32>,
    %c16_261 = arith.constant 16 : index
    %c0_262 = arith.constant 0 : index
    %788 = vector.load %arg9[%c16_261, %c0_262] : memref<64x256xf32, #tpu.memory_space<vmem>>, vector<8x128xf32>
    %c40_263 = arith.constant 40 : index
    %c128_264 = arith.constant 128 : index
    %789 = vector.load %arg9[%c40_263, %c128_264] : memref<64x256xf32, #tpu.memory_space<vmem>>, vector<8x128xf32>
    %790 = tpu.concatenate %788, %789 in 1 : vector<8x128xf32>, vector<8x128xf32> -> vector<8x256xf32>
    %791 = tpu.concatenate %761, %781 in 1 : vector<8x32xf32>, vector<8x32xf32> -> vector<8x64xf32>
    %792 = arith.truncf %791 : vector<8x64xf32> to vector<8x64xbf16>
    %cst_265 = arith.constant dense<0.000000e+00> : vector<8x256xf32>
    %793 = tpu.matmul %792, %677, %cst_265 {dimension_numbers = #tpu.dot_dimension_numbers<[1], [0], [0], [1], [0, 0, 1, 1], [], []>} : vector<8x64xbf16>, vector<64x256xbf16>, vector<8x256xf32> -> vector<8x256xf32>
    %794 = arith.addf %790, %793 : vector<8x256xf32>
    %795 = arith.negf %794 : vector<8x256xf32>
    %796 = math.exp %795 : vector<8x256xf32>
    %cst_266 = arith.constant 1.000000e+00 : f32
    %797 = vector.broadcast %cst_266 : f32 to vector<8x256xf32>
    %798 = arith.addf %797, %796 : vector<8x256xf32>
    %799 = arith.divf %797, %798 : vector<8x256xf32>
    %800 = vector.extract_strided_slice %799 {offsets = [0, 0], sizes = [8, 128], strides = [1, 1]} : vector<8x256xf32> to vector<8x128xf32>
    %801 = vector.extract_strided_slice %799 {offsets = [0, 128], sizes = [8, 128], strides = [1, 1]} : vector<8x256xf32> to vector<8x128xf32>
    %802 = vector.extract_strided_slice %800 {offsets = [0, 32], sizes = [8, 32], strides = [1, 1]} : vector<8x128xf32> to vector<8x32xf32>
    %803 = arith.mulf %802, %758 : vector<8x32xf32>
    %804 = vector.extract_strided_slice %800 {offsets = [0, 0], sizes = [8, 32], strides = [1, 1]} : vector<8x128xf32> to vector<8x32xf32>
    %805 = vector.extract_strided_slice %800 {offsets = [0, 64], sizes = [8, 32], strides = [1, 1]} : vector<8x128xf32> to vector<8x32xf32>
    %cst_267 = arith.constant 2.000000e+00 : f32
    %806 = vector.broadcast %cst_267 : f32 to vector<8x32xf32>
    %807 = arith.mulf %806, %805 : vector<8x32xf32>
    %cst_268 = arith.constant 1.000000e+00 : f32
    %808 = vector.broadcast %cst_268 : f32 to vector<8x32xf32>
    %809 = arith.subf %807, %808 : vector<8x32xf32>
    %810 = arith.mulf %804, %809 : vector<8x32xf32>
    %811 = arith.addf %803, %810 : vector<8x32xf32>
    %812 = vector.extract_strided_slice %800 {offsets = [0, 96], sizes = [8, 32], strides = [1, 1]} : vector<8x128xf32> to vector<8x32xf32>
    %813 = math.tanh %811 : vector<8x32xf32>
    %814 = arith.mulf %812, %813 : vector<8x32xf32>
    %c16_269 = arith.constant 16 : index
    %c0_270 = arith.constant 0 : index
    %815 = vector.load %arg10[%c16_269, %c0_270] : memref<64x64xf32, #tpu.memory_space<vmem>>, vector<8x32xf32>
    tpu.vector_store %arg10[%c16_269, %c0_270], %814 {strides = array<i32>} : memref<64x64xf32, #tpu.memory_space<vmem>>, vector<8x32xf32>,
    %816 = vector.extract_strided_slice %801 {offsets = [0, 32], sizes = [8, 32], strides = [1, 1]} : vector<8x128xf32> to vector<8x32xf32>
    %817 = arith.mulf %816, %786 : vector<8x32xf32>
    %818 = vector.extract_strided_slice %801 {offsets = [0, 0], sizes = [8, 32], strides = [1, 1]} : vector<8x128xf32> to vector<8x32xf32>
    %819 = vector.extract_strided_slice %801 {offsets = [0, 64], sizes = [8, 32], strides = [1, 1]} : vector<8x128xf32> to vector<8x32xf32>
    %cst_271 = arith.constant 2.000000e+00 : f32
    %820 = vector.broadcast %cst_271 : f32 to vector<8x32xf32>
    %821 = arith.mulf %820, %819 : vector<8x32xf32>
    %cst_272 = arith.constant 1.000000e+00 : f32
    %822 = vector.broadcast %cst_272 : f32 to vector<8x32xf32>
    %823 = arith.subf %821, %822 : vector<8x32xf32>
    %824 = arith.mulf %818, %823 : vector<8x32xf32>
    %825 = arith.addf %817, %824 : vector<8x32xf32>
    %826 = vector.extract_strided_slice %801 {offsets = [0, 96], sizes = [8, 32], strides = [1, 1]} : vector<8x128xf32> to vector<8x32xf32>
    %827 = math.tanh %825 : vector<8x32xf32>
    %828 = arith.mulf %826, %827 : vector<8x32xf32>
    %c40_273 = arith.constant 40 : index
    %c0_274 = arith.constant 0 : index
    %829 = vector.load %arg3[%c40_273, %c0_274] : memref<64x64xf32, #tpu.memory_space<vmem>>, vector<8x32xf32>
    %830 = arith.mulf %829, %828 : vector<8x32xf32>
    %cst_275 = arith.constant 1.000000e+00 : f32
    %831 = vector.broadcast %cst_275 : f32 to vector<8x32xf32>
    %832 = arith.subf %831, %829 : vector<8x32xf32>
    %833 = arith.mulf %832, %781 : vector<8x32xf32>
    %834 = arith.addf %830, %833 : vector<8x32xf32>
    %835 = arith.mulf %829, %825 : vector<8x32xf32>
    %cst_276 = arith.constant 1.000000e+00 : f32
    %836 = vector.broadcast %cst_276 : f32 to vector<8x32xf32>
    %837 = arith.subf %836, %829 : vector<8x32xf32>
    %838 = arith.mulf %837, %786 : vector<8x32xf32>
    %839 = arith.addf %835, %838 : vector<8x32xf32>
    %c40_277 = arith.constant 40 : index
    %c32_278 = arith.constant 32 : index
    %840 = vector.load %arg10[%c40_277, %c32_278] : memref<64x64xf32, #tpu.memory_space<vmem>>, vector<8x32xf32>
    tpu.vector_store %arg10[%c40_277, %c32_278], %834 {strides = array<i32>} : memref<64x64xf32, #tpu.memory_space<vmem>>, vector<8x32xf32>,
    %c24_279 = arith.constant 24 : index
    %c0_280 = arith.constant 0 : index
    %841 = vector.load %arg9[%c24_279, %c0_280] : memref<64x256xf32, #tpu.memory_space<vmem>>, vector<8x128xf32>
    %c32_281 = arith.constant 32 : index
    %c128_282 = arith.constant 128 : index
    %842 = vector.load %arg9[%c32_281, %c128_282] : memref<64x256xf32, #tpu.memory_space<vmem>>, vector<8x128xf32>
    %843 = tpu.concatenate %841, %842 in 1 : vector<8x128xf32>, vector<8x128xf32> -> vector<8x256xf32>
    %844 = tpu.concatenate %814, %834 in 1 : vector<8x32xf32>, vector<8x32xf32> -> vector<8x64xf32>
    %845 = arith.truncf %844 : vector<8x64xf32> to vector<8x64xbf16>
    %cst_283 = arith.constant dense<0.000000e+00> : vector<8x256xf32>
    %846 = tpu.matmul %845, %677, %cst_283 {dimension_numbers = #tpu.dot_dimension_numbers<[1], [0], [0], [1], [0, 0, 1, 1], [], []>} : vector<8x64xbf16>, vector<64x256xbf16>, vector<8x256xf32> -> vector<8x256xf32>
    %847 = arith.addf %843, %846 : vector<8x256xf32>
    %848 = arith.negf %847 : vector<8x256xf32>
    %849 = math.exp %848 : vector<8x256xf32>
    %cst_284 = arith.constant 1.000000e+00 : f32
    %850 = vector.broadcast %cst_284 : f32 to vector<8x256xf32>
    %851 = arith.addf %850, %849 : vector<8x256xf32>
    %852 = arith.divf %850, %851 : vector<8x256xf32>
    %853 = vector.extract_strided_slice %852 {offsets = [0, 0], sizes = [8, 128], strides = [1, 1]} : vector<8x256xf32> to vector<8x128xf32>
    %854 = vector.extract_strided_slice %852 {offsets = [0, 128], sizes = [8, 128], strides = [1, 1]} : vector<8x256xf32> to vector<8x128xf32>
    %855 = vector.extract_strided_slice %853 {offsets = [0, 32], sizes = [8, 32], strides = [1, 1]} : vector<8x128xf32> to vector<8x32xf32>
    %856 = arith.mulf %855, %811 : vector<8x32xf32>
    %857 = vector.extract_strided_slice %853 {offsets = [0, 0], sizes = [8, 32], strides = [1, 1]} : vector<8x128xf32> to vector<8x32xf32>
    %858 = vector.extract_strided_slice %853 {offsets = [0, 64], sizes = [8, 32], strides = [1, 1]} : vector<8x128xf32> to vector<8x32xf32>
    %cst_285 = arith.constant 2.000000e+00 : f32
    %859 = vector.broadcast %cst_285 : f32 to vector<8x32xf32>
    %860 = arith.mulf %859, %858 : vector<8x32xf32>
    %cst_286 = arith.constant 1.000000e+00 : f32
    %861 = vector.broadcast %cst_286 : f32 to vector<8x32xf32>
    %862 = arith.subf %860, %861 : vector<8x32xf32>
    %863 = arith.mulf %857, %862 : vector<8x32xf32>
    %864 = arith.addf %856, %863 : vector<8x32xf32>
    %865 = vector.extract_strided_slice %853 {offsets = [0, 96], sizes = [8, 32], strides = [1, 1]} : vector<8x128xf32> to vector<8x32xf32>
    %866 = math.tanh %864 : vector<8x32xf32>
    %867 = arith.mulf %865, %866 : vector<8x32xf32>
    %c24_287 = arith.constant 24 : index
    %c0_288 = arith.constant 0 : index
    %868 = vector.load %arg10[%c24_287, %c0_288] : memref<64x64xf32, #tpu.memory_space<vmem>>, vector<8x32xf32>
    tpu.vector_store %arg10[%c24_287, %c0_288], %867 {strides = array<i32>} : memref<64x64xf32, #tpu.memory_space<vmem>>, vector<8x32xf32>,
    %869 = vector.extract_strided_slice %854 {offsets = [0, 32], sizes = [8, 32], strides = [1, 1]} : vector<8x128xf32> to vector<8x32xf32>
    %870 = arith.mulf %869, %839 : vector<8x32xf32>
    %871 = vector.extract_strided_slice %854 {offsets = [0, 0], sizes = [8, 32], strides = [1, 1]} : vector<8x128xf32> to vector<8x32xf32>
    %872 = vector.extract_strided_slice %854 {offsets = [0, 64], sizes = [8, 32], strides = [1, 1]} : vector<8x128xf32> to vector<8x32xf32>
    %cst_289 = arith.constant 2.000000e+00 : f32
    %873 = vector.broadcast %cst_289 : f32 to vector<8x32xf32>
    %874 = arith.mulf %873, %872 : vector<8x32xf32>
    %cst_290 = arith.constant 1.000000e+00 : f32
    %875 = vector.broadcast %cst_290 : f32 to vector<8x32xf32>
    %876 = arith.subf %874, %875 : vector<8x32xf32>
    %877 = arith.mulf %871, %876 : vector<8x32xf32>
    %878 = arith.addf %870, %877 : vector<8x32xf32>
    %879 = vector.extract_strided_slice %854 {offsets = [0, 96], sizes = [8, 32], strides = [1, 1]} : vector<8x128xf32> to vector<8x32xf32>
    %880 = math.tanh %878 : vector<8x32xf32>
    %881 = arith.mulf %879, %880 : vector<8x32xf32>
    %c32_291 = arith.constant 32 : index
    %c0_292 = arith.constant 0 : index
    %882 = vector.load %arg3[%c32_291, %c0_292] : memref<64x64xf32, #tpu.memory_space<vmem>>, vector<8x32xf32>
    %883 = arith.mulf %882, %881 : vector<8x32xf32>
    %cst_293 = arith.constant 1.000000e+00 : f32
    %884 = vector.broadcast %cst_293 : f32 to vector<8x32xf32>
    %885 = arith.subf %884, %882 : vector<8x32xf32>
    %886 = arith.mulf %885, %834 : vector<8x32xf32>
    %887 = arith.addf %883, %886 : vector<8x32xf32>
    %888 = arith.mulf %882, %878 : vector<8x32xf32>
    %cst_294 = arith.constant 1.000000e+00 : f32
    %889 = vector.broadcast %cst_294 : f32 to vector<8x32xf32>
    %890 = arith.subf %889, %882 : vector<8x32xf32>
    %891 = arith.mulf %890, %839 : vector<8x32xf32>
    %892 = arith.addf %888, %891 : vector<8x32xf32>
    %c32_295 = arith.constant 32 : index
    %c32_296 = arith.constant 32 : index
    %893 = vector.load %arg10[%c32_295, %c32_296] : memref<64x64xf32, #tpu.memory_space<vmem>>, vector<8x32xf32>
    tpu.vector_store %arg10[%c32_295, %c32_296], %887 {strides = array<i32>} : memref<64x64xf32, #tpu.memory_space<vmem>>, vector<8x32xf32>,
    %c32_297 = arith.constant 32 : index
    %c0_298 = arith.constant 0 : index
    %894 = vector.load %arg9[%c32_297, %c0_298] : memref<64x256xf32, #tpu.memory_space<vmem>>, vector<8x128xf32>
    %c24_299 = arith.constant 24 : index
    %c128_300 = arith.constant 128 : index
    %895 = vector.load %arg9[%c24_299, %c128_300] : memref<64x256xf32, #tpu.memory_space<vmem>>, vector<8x128xf32>
    %896 = tpu.concatenate %894, %895 in 1 : vector<8x128xf32>, vector<8x128xf32> -> vector<8x256xf32>
    %897 = tpu.concatenate %867, %887 in 1 : vector<8x32xf32>, vector<8x32xf32> -> vector<8x64xf32>
    %898 = arith.truncf %897 : vector<8x64xf32> to vector<8x64xbf16>
    %cst_301 = arith.constant dense<0.000000e+00> : vector<8x256xf32>
    %899 = tpu.matmul %898, %677, %cst_301 {dimension_numbers = #tpu.dot_dimension_numbers<[1], [0], [0], [1], [0, 0, 1, 1], [], []>} : vector<8x64xbf16>, vector<64x256xbf16>, vector<8x256xf32> -> vector<8x256xf32>
    %900 = arith.addf %896, %899 : vector<8x256xf32>
    %901 = arith.negf %900 : vector<8x256xf32>
    %902 = math.exp %901 : vector<8x256xf32>
    %cst_302 = arith.constant 1.000000e+00 : f32
    %903 = vector.broadcast %cst_302 : f32 to vector<8x256xf32>
    %904 = arith.addf %903, %902 : vector<8x256xf32>
    %905 = arith.divf %903, %904 : vector<8x256xf32>
    %906 = vector.extract_strided_slice %905 {offsets = [0, 0], sizes = [8, 128], strides = [1, 1]} : vector<8x256xf32> to vector<8x128xf32>
    %907 = vector.extract_strided_slice %905 {offsets = [0, 128], sizes = [8, 128], strides = [1, 1]} : vector<8x256xf32> to vector<8x128xf32>
    %908 = vector.extract_strided_slice %906 {offsets = [0, 32], sizes = [8, 32], strides = [1, 1]} : vector<8x128xf32> to vector<8x32xf32>
    %909 = arith.mulf %908, %864 : vector<8x32xf32>
    %910 = vector.extract_strided_slice %906 {offsets = [0, 0], sizes = [8, 32], strides = [1, 1]} : vector<8x128xf32> to vector<8x32xf32>
    %911 = vector.extract_strided_slice %906 {offsets = [0, 64], sizes = [8, 32], strides = [1, 1]} : vector<8x128xf32> to vector<8x32xf32>
    %cst_303 = arith.constant 2.000000e+00 : f32
    %912 = vector.broadcast %cst_303 : f32 to vector<8x32xf32>
    %913 = arith.mulf %912, %911 : vector<8x32xf32>
    %cst_304 = arith.constant 1.000000e+00 : f32
    %914 = vector.broadcast %cst_304 : f32 to vector<8x32xf32>
    %915 = arith.subf %913, %914 : vector<8x32xf32>
    %916 = arith.mulf %910, %915 : vector<8x32xf32>
    %917 = arith.addf %909, %916 : vector<8x32xf32>
    %918 = vector.extract_strided_slice %906 {offsets = [0, 96], sizes = [8, 32], strides = [1, 1]} : vector<8x128xf32> to vector<8x32xf32>
    %919 = math.tanh %917 : vector<8x32xf32>
    %920 = arith.mulf %918, %919 : vector<8x32xf32>
    %c32_305 = arith.constant 32 : index
    %c0_306 = arith.constant 0 : index
    %921 = vector.load %arg10[%c32_305, %c0_306] : memref<64x64xf32, #tpu.memory_space<vmem>>, vector<8x32xf32>
    tpu.vector_store %arg10[%c32_305, %c0_306], %920 {strides = array<i32>} : memref<64x64xf32, #tpu.memory_space<vmem>>, vector<8x32xf32>,
    %922 = vector.extract_strided_slice %907 {offsets = [0, 32], sizes = [8, 32], strides = [1, 1]} : vector<8x128xf32> to vector<8x32xf32>
    %923 = arith.mulf %922, %892 : vector<8x32xf32>
    %924 = vector.extract_strided_slice %907 {offsets = [0, 0], sizes = [8, 32], strides = [1, 1]} : vector<8x128xf32> to vector<8x32xf32>
    %925 = vector.extract_strided_slice %907 {offsets = [0, 64], sizes = [8, 32], strides = [1, 1]} : vector<8x128xf32> to vector<8x32xf32>
    %cst_307 = arith.constant 2.000000e+00 : f32
    %926 = vector.broadcast %cst_307 : f32 to vector<8x32xf32>
    %927 = arith.mulf %926, %925 : vector<8x32xf32>
    %cst_308 = arith.constant 1.000000e+00 : f32
    %928 = vector.broadcast %cst_308 : f32 to vector<8x32xf32>
    %929 = arith.subf %927, %928 : vector<8x32xf32>
    %930 = arith.mulf %924, %929 : vector<8x32xf32>
    %931 = arith.addf %923, %930 : vector<8x32xf32>
    %932 = vector.extract_strided_slice %907 {offsets = [0, 96], sizes = [8, 32], strides = [1, 1]} : vector<8x128xf32> to vector<8x32xf32>
    %933 = math.tanh %931 : vector<8x32xf32>
    %934 = arith.mulf %932, %933 : vector<8x32xf32>
    %c24_309 = arith.constant 24 : index
    %c0_310 = arith.constant 0 : index
    %935 = vector.load %arg3[%c24_309, %c0_310] : memref<64x64xf32, #tpu.memory_space<vmem>>, vector<8x32xf32>
    %936 = arith.mulf %935, %934 : vector<8x32xf32>
    %cst_311 = arith.constant 1.000000e+00 : f32
    %937 = vector.broadcast %cst_311 : f32 to vector<8x32xf32>
    %938 = arith.subf %937, %935 : vector<8x32xf32>
    %939 = arith.mulf %938, %887 : vector<8x32xf32>
    %940 = arith.addf %936, %939 : vector<8x32xf32>
    %941 = arith.mulf %935, %931 : vector<8x32xf32>
    %cst_312 = arith.constant 1.000000e+00 : f32
    %942 = vector.broadcast %cst_312 : f32 to vector<8x32xf32>
    %943 = arith.subf %942, %935 : vector<8x32xf32>
    %944 = arith.mulf %943, %892 : vector<8x32xf32>
    %945 = arith.addf %941, %944 : vector<8x32xf32>
    %c24_313 = arith.constant 24 : index
    %c32_314 = arith.constant 32 : index
    %946 = vector.load %arg10[%c24_313, %c32_314] : memref<64x64xf32, #tpu.memory_space<vmem>>, vector<8x32xf32>
    tpu.vector_store %arg10[%c24_313, %c32_314], %940 {strides = array<i32>} : memref<64x64xf32, #tpu.memory_space<vmem>>, vector<8x32xf32>,
    %c40_315 = arith.constant 40 : index
    %c0_316 = arith.constant 0 : index
    %947 = vector.load %arg9[%c40_315, %c0_316] : memref<64x256xf32, #tpu.memory_space<vmem>>, vector<8x128xf32>
    %c16_317 = arith.constant 16 : index
    %c128_318 = arith.constant 128 : index
    %948 = vector.load %arg9[%c16_317, %c128_318] : memref<64x256xf32, #tpu.memory_space<vmem>>, vector<8x128xf32>
    %949 = tpu.concatenate %947, %948 in 1 : vector<8x128xf32>, vector<8x128xf32> -> vector<8x256xf32>
    %950 = tpu.concatenate %920, %940 in 1 : vector<8x32xf32>, vector<8x32xf32> -> vector<8x64xf32>
    %951 = arith.truncf %950 : vector<8x64xf32> to vector<8x64xbf16>
    %cst_319 = arith.constant dense<0.000000e+00> : vector<8x256xf32>
    %952 = tpu.matmul %951, %677, %cst_319 {dimension_numbers = #tpu.dot_dimension_numbers<[1], [0], [0], [1], [0, 0, 1, 1], [], []>} : vector<8x64xbf16>, vector<64x256xbf16>, vector<8x256xf32> -> vector<8x256xf32>
    %953 = arith.addf %949, %952 : vector<8x256xf32>
    %954 = arith.negf %953 : vector<8x256xf32>
    %955 = math.exp %954 : vector<8x256xf32>
    %cst_320 = arith.constant 1.000000e+00 : f32
    %956 = vector.broadcast %cst_320 : f32 to vector<8x256xf32>
    %957 = arith.addf %956, %955 : vector<8x256xf32>
    %958 = arith.divf %956, %957 : vector<8x256xf32>
    %959 = vector.extract_strided_slice %958 {offsets = [0, 0], sizes = [8, 128], strides = [1, 1]} : vector<8x256xf32> to vector<8x128xf32>
    %960 = vector.extract_strided_slice %958 {offsets = [0, 128], sizes = [8, 128], strides = [1, 1]} : vector<8x256xf32> to vector<8x128xf32>
    %961 = vector.extract_strided_slice %959 {offsets = [0, 32], sizes = [8, 32], strides = [1, 1]} : vector<8x128xf32> to vector<8x32xf32>
    %962 = arith.mulf %961, %917 : vector<8x32xf32>
    %963 = vector.extract_strided_slice %959 {offsets = [0, 0], sizes = [8, 32], strides = [1, 1]} : vector<8x128xf32> to vector<8x32xf32>
    %964 = vector.extract_strided_slice %959 {offsets = [0, 64], sizes = [8, 32], strides = [1, 1]} : vector<8x128xf32> to vector<8x32xf32>
    %cst_321 = arith.constant 2.000000e+00 : f32
    %965 = vector.broadcast %cst_321 : f32 to vector<8x32xf32>
    %966 = arith.mulf %965, %964 : vector<8x32xf32>
    %cst_322 = arith.constant 1.000000e+00 : f32
    %967 = vector.broadcast %cst_322 : f32 to vector<8x32xf32>
    %968 = arith.subf %966, %967 : vector<8x32xf32>
    %969 = arith.mulf %963, %968 : vector<8x32xf32>
    %970 = arith.addf %962, %969 : vector<8x32xf32>
    %971 = vector.extract_strided_slice %959 {offsets = [0, 96], sizes = [8, 32], strides = [1, 1]} : vector<8x128xf32> to vector<8x32xf32>
    %972 = math.tanh %970 : vector<8x32xf32>
    %973 = arith.mulf %971, %972 : vector<8x32xf32>
    %c40_323 = arith.constant 40 : index
    %c0_324 = arith.constant 0 : index
    %974 = vector.load %arg10[%c40_323, %c0_324] : memref<64x64xf32, #tpu.memory_space<vmem>>, vector<8x32xf32>
    tpu.vector_store %arg10[%c40_323, %c0_324], %973 {strides = array<i32>} : memref<64x64xf32, #tpu.memory_space<vmem>>, vector<8x32xf32>,
    %975 = vector.extract_strided_slice %960 {offsets = [0, 32], sizes = [8, 32], strides = [1, 1]} : vector<8x128xf32> to vector<8x32xf32>
    %976 = arith.mulf %975, %945 : vector<8x32xf32>
    %977 = vector.extract_strided_slice %960 {offsets = [0, 0], sizes = [8, 32], strides = [1, 1]} : vector<8x128xf32> to vector<8x32xf32>
    %978 = vector.extract_strided_slice %960 {offsets = [0, 64], sizes = [8, 32], strides = [1, 1]} : vector<8x128xf32> to vector<8x32xf32>
    %cst_325 = arith.constant 2.000000e+00 : f32
    %979 = vector.broadcast %cst_325 : f32 to vector<8x32xf32>
    %980 = arith.mulf %979, %978 : vector<8x32xf32>
    %cst_326 = arith.constant 1.000000e+00 : f32
    %981 = vector.broadcast %cst_326 : f32 to vector<8x32xf32>
    %982 = arith.subf %980, %981 : vector<8x32xf32>
    %983 = arith.mulf %977, %982 : vector<8x32xf32>
    %984 = arith.addf %976, %983 : vector<8x32xf32>
    %985 = vector.extract_strided_slice %960 {offsets = [0, 96], sizes = [8, 32], strides = [1, 1]} : vector<8x128xf32> to vector<8x32xf32>
    %986 = math.tanh %984 : vector<8x32xf32>
    %987 = arith.mulf %985, %986 : vector<8x32xf32>
    %c16_327 = arith.constant 16 : index
    %c0_328 = arith.constant 0 : index
    %988 = vector.load %arg3[%c16_327, %c0_328] : memref<64x64xf32, #tpu.memory_space<vmem>>, vector<8x32xf32>
    %989 = arith.mulf %988, %987 : vector<8x32xf32>
    %cst_329 = arith.constant 1.000000e+00 : f32
    %990 = vector.broadcast %cst_329 : f32 to vector<8x32xf32>
    %991 = arith.subf %990, %988 : vector<8x32xf32>
    %992 = arith.mulf %991, %940 : vector<8x32xf32>
    %993 = arith.addf %989, %992 : vector<8x32xf32>
    %994 = arith.mulf %988, %984 : vector<8x32xf32>
    %cst_330 = arith.constant 1.000000e+00 : f32
    %995 = vector.broadcast %cst_330 : f32 to vector<8x32xf32>
    %996 = arith.subf %995, %988 : vector<8x32xf32>
    %997 = arith.mulf %996, %945 : vector<8x32xf32>
    %998 = arith.addf %994, %997 : vector<8x32xf32>
    %c16_331 = arith.constant 16 : index
    %c32_332 = arith.constant 32 : index
    %999 = vector.load %arg10[%c16_331, %c32_332] : memref<64x64xf32, #tpu.memory_space<vmem>>, vector<8x32xf32>
    tpu.vector_store %arg10[%c16_331, %c32_332], %993 {strides = array<i32>} : memref<64x64xf32, #tpu.memory_space<vmem>>, vector<8x32xf32>,
    %c48_333 = arith.constant 48 : index
    %c0_334 = arith.constant 0 : index
    %1000 = vector.load %arg9[%c48_333, %c0_334] : memref<64x256xf32, #tpu.memory_space<vmem>>, vector<8x128xf32>
    %c8_335 = arith.constant 8 : index
    %c128_336 = arith.constant 128 : index
    %1001 = vector.load %arg9[%c8_335, %c128_336] : memref<64x256xf32, #tpu.memory_space<vmem>>, vector<8x128xf32>
    %1002 = tpu.concatenate %1000, %1001 in 1 : vector<8x128xf32>, vector<8x128xf32> -> vector<8x256xf32>
    %1003 = tpu.concatenate %973, %993 in 1 : vector<8x32xf32>, vector<8x32xf32> -> vector<8x64xf32>
    %1004 = arith.truncf %1003 : vector<8x64xf32> to vector<8x64xbf16>
    %cst_337 = arith.constant dense<0.000000e+00> : vector<8x256xf32>
    %1005 = tpu.matmul %1004, %677, %cst_337 {dimension_numbers = #tpu.dot_dimension_numbers<[1], [0], [0], [1], [0, 0, 1, 1], [], []>} : vector<8x64xbf16>, vector<64x256xbf16>, vector<8x256xf32> -> vector<8x256xf32>
    %1006 = arith.addf %1002, %1005 : vector<8x256xf32>
    %1007 = arith.negf %1006 : vector<8x256xf32>
    %1008 = math.exp %1007 : vector<8x256xf32>
    %cst_338 = arith.constant 1.000000e+00 : f32
    %1009 = vector.broadcast %cst_338 : f32 to vector<8x256xf32>
    %1010 = arith.addf %1009, %1008 : vector<8x256xf32>
    %1011 = arith.divf %1009, %1010 : vector<8x256xf32>
    %1012 = vector.extract_strided_slice %1011 {offsets = [0, 0], sizes = [8, 128], strides = [1, 1]} : vector<8x256xf32> to vector<8x128xf32>
    %1013 = vector.extract_strided_slice %1011 {offsets = [0, 128], sizes = [8, 128], strides = [1, 1]} : vector<8x256xf32> to vector<8x128xf32>
    %1014 = vector.extract_strided_slice %1012 {offsets = [0, 32], sizes = [8, 32], strides = [1, 1]} : vector<8x128xf32> to vector<8x32xf32>
    %1015 = arith.mulf %1014, %970 : vector<8x32xf32>
    %1016 = vector.extract_strided_slice %1012 {offsets = [0, 0], sizes = [8, 32], strides = [1, 1]} : vector<8x128xf32> to vector<8x32xf32>
    %1017 = vector.extract_strided_slice %1012 {offsets = [0, 64], sizes = [8, 32], strides = [1, 1]} : vector<8x128xf32> to vector<8x32xf32>
    %cst_339 = arith.constant 2.000000e+00 : f32
    %1018 = vector.broadcast %cst_339 : f32 to vector<8x32xf32>
    %1019 = arith.mulf %1018, %1017 : vector<8x32xf32>
    %cst_340 = arith.constant 1.000000e+00 : f32
    %1020 = vector.broadcast %cst_340 : f32 to vector<8x32xf32>
    %1021 = arith.subf %1019, %1020 : vector<8x32xf32>
    %1022 = arith.mulf %1016, %1021 : vector<8x32xf32>
    %1023 = arith.addf %1015, %1022 : vector<8x32xf32>
    %1024 = vector.extract_strided_slice %1012 {offsets = [0, 96], sizes = [8, 32], strides = [1, 1]} : vector<8x128xf32> to vector<8x32xf32>
    %1025 = math.tanh %1023 : vector<8x32xf32>
    %1026 = arith.mulf %1024, %1025 : vector<8x32xf32>
    %c48_341 = arith.constant 48 : index
    %c0_342 = arith.constant 0 : index
    %1027 = vector.load %arg10[%c48_341, %c0_342] : memref<64x64xf32, #tpu.memory_space<vmem>>, vector<8x32xf32>
    tpu.vector_store %arg10[%c48_341, %c0_342], %1026 {strides = array<i32>} : memref<64x64xf32, #tpu.memory_space<vmem>>, vector<8x32xf32>,
    %1028 = vector.extract_strided_slice %1013 {offsets = [0, 32], sizes = [8, 32], strides = [1, 1]} : vector<8x128xf32> to vector<8x32xf32>
    %1029 = arith.mulf %1028, %998 : vector<8x32xf32>
    %1030 = vector.extract_strided_slice %1013 {offsets = [0, 0], sizes = [8, 32], strides = [1, 1]} : vector<8x128xf32> to vector<8x32xf32>
    %1031 = vector.extract_strided_slice %1013 {offsets = [0, 64], sizes = [8, 32], strides = [1, 1]} : vector<8x128xf32> to vector<8x32xf32>
    %cst_343 = arith.constant 2.000000e+00 : f32
    %1032 = vector.broadcast %cst_343 : f32 to vector<8x32xf32>
    %1033 = arith.mulf %1032, %1031 : vector<8x32xf32>
    %cst_344 = arith.constant 1.000000e+00 : f32
    %1034 = vector.broadcast %cst_344 : f32 to vector<8x32xf32>
    %1035 = arith.subf %1033, %1034 : vector<8x32xf32>
    %1036 = arith.mulf %1030, %1035 : vector<8x32xf32>
    %1037 = arith.addf %1029, %1036 : vector<8x32xf32>
    %1038 = vector.extract_strided_slice %1013 {offsets = [0, 96], sizes = [8, 32], strides = [1, 1]} : vector<8x128xf32> to vector<8x32xf32>
    %1039 = math.tanh %1037 : vector<8x32xf32>
    %1040 = arith.mulf %1038, %1039 : vector<8x32xf32>
    %c8_345 = arith.constant 8 : index
    %c0_346 = arith.constant 0 : index
    %1041 = vector.load %arg3[%c8_345, %c0_346] : memref<64x64xf32, #tpu.memory_space<vmem>>, vector<8x32xf32>
    %1042 = arith.mulf %1041, %1040 : vector<8x32xf32>
    %cst_347 = arith.constant 1.000000e+00 : f32
    %1043 = vector.broadcast %cst_347 : f32 to vector<8x32xf32>
    %1044 = arith.subf %1043, %1041 : vector<8x32xf32>
    %1045 = arith.mulf %1044, %993 : vector<8x32xf32>
    %1046 = arith.addf %1042, %1045 : vector<8x32xf32>
    %1047 = arith.mulf %1041, %1037 : vector<8x32xf32>
    %cst_348 = arith.constant 1.000000e+00 : f32
    %1048 = vector.broadcast %cst_348 : f32 to vector<8x32xf32>
    %1049 = arith.subf %1048, %1041 : vector<8x32xf32>
    %1050 = arith.mulf %1049, %998 : vector<8x32xf32>
    %1051 = arith.addf %1047, %1050 : vector<8x32xf32>
    %c8_349 = arith.constant 8 : index
    %c32_350 = arith.constant 32 : index
    %1052 = vector.load %arg10[%c8_349, %c32_350] : memref<64x64xf32, #tpu.memory_space<vmem>>, vector<8x32xf32>
    tpu.vector_store %arg10[%c8_349, %c32_350], %1046 {strides = array<i32>} : memref<64x64xf32, #tpu.memory_space<vmem>>, vector<8x32xf32>,
    %c56_351 = arith.constant 56 : index
    %c0_352 = arith.constant 0 : index
    %1053 = vector.load %arg9[%c56_351, %c0_352] : memref<64x256xf32, #tpu.memory_space<vmem>>, vector<8x128xf32>
    %c0_353 = arith.constant 0 : index
    %c128_354 = arith.constant 128 : index
    %1054 = vector.load %arg9[%c0_353, %c128_354] : memref<64x256xf32, #tpu.memory_space<vmem>>, vector<8x128xf32>
    %1055 = tpu.concatenate %1053, %1054 in 1 : vector<8x128xf32>, vector<8x128xf32> -> vector<8x256xf32>
    %1056 = tpu.concatenate %1026, %1046 in 1 : vector<8x32xf32>, vector<8x32xf32> -> vector<8x64xf32>
    %1057 = arith.truncf %1056 : vector<8x64xf32> to vector<8x64xbf16>
    %cst_355 = arith.constant dense<0.000000e+00> : vector<8x256xf32>
    %1058 = tpu.matmul %1057, %677, %cst_355 {dimension_numbers = #tpu.dot_dimension_numbers<[1], [0], [0], [1], [0, 0, 1, 1], [], []>} : vector<8x64xbf16>, vector<64x256xbf16>, vector<8x256xf32> -> vector<8x256xf32>
    %1059 = arith.addf %1055, %1058 : vector<8x256xf32>
    %1060 = arith.negf %1059 : vector<8x256xf32>
    %1061 = math.exp %1060 : vector<8x256xf32>
    %cst_356 = arith.constant 1.000000e+00 : f32
    %1062 = vector.broadcast %cst_356 : f32 to vector<8x256xf32>
    %1063 = arith.addf %1062, %1061 : vector<8x256xf32>
    %1064 = arith.divf %1062, %1063 : vector<8x256xf32>
    %1065 = vector.extract_strided_slice %1064 {offsets = [0, 0], sizes = [8, 128], strides = [1, 1]} : vector<8x256xf32> to vector<8x128xf32>
    %1066 = vector.extract_strided_slice %1064 {offsets = [0, 128], sizes = [8, 128], strides = [1, 1]} : vector<8x256xf32> to vector<8x128xf32>
    %1067 = vector.extract_strided_slice %1065 {offsets = [0, 32], sizes = [8, 32], strides = [1, 1]} : vector<8x128xf32> to vector<8x32xf32>
    %1068 = arith.mulf %1067, %1023 : vector<8x32xf32>
    %1069 = vector.extract_strided_slice %1065 {offsets = [0, 0], sizes = [8, 32], strides = [1, 1]} : vector<8x128xf32> to vector<8x32xf32>
    %1070 = vector.extract_strided_slice %1065 {offsets = [0, 64], sizes = [8, 32], strides = [1, 1]} : vector<8x128xf32> to vector<8x32xf32>
    %cst_357 = arith.constant 2.000000e+00 : f32
    %1071 = vector.broadcast %cst_357 : f32 to vector<8x32xf32>
    %1072 = arith.mulf %1071, %1070 : vector<8x32xf32>
    %cst_358 = arith.constant 1.000000e+00 : f32
    %1073 = vector.broadcast %cst_358 : f32 to vector<8x32xf32>
    %1074 = arith.subf %1072, %1073 : vector<8x32xf32>
    %1075 = arith.mulf %1069, %1074 : vector<8x32xf32>
    %1076 = arith.addf %1068, %1075 : vector<8x32xf32>
    %1077 = vector.extract_strided_slice %1065 {offsets = [0, 96], sizes = [8, 32], strides = [1, 1]} : vector<8x128xf32> to vector<8x32xf32>
    %1078 = math.tanh %1076 : vector<8x32xf32>
    %1079 = arith.mulf %1077, %1078 : vector<8x32xf32>
    %c56_359 = arith.constant 56 : index
    %c0_360 = arith.constant 0 : index
    %1080 = vector.load %arg10[%c56_359, %c0_360] : memref<64x64xf32, #tpu.memory_space<vmem>>, vector<8x32xf32>
    tpu.vector_store %arg10[%c56_359, %c0_360], %1079 {strides = array<i32>} : memref<64x64xf32, #tpu.memory_space<vmem>>, vector<8x32xf32>,
    %1081 = vector.extract_strided_slice %1066 {offsets = [0, 32], sizes = [8, 32], strides = [1, 1]} : vector<8x128xf32> to vector<8x32xf32>
    %1082 = arith.mulf %1081, %1051 : vector<8x32xf32>
    %1083 = vector.extract_strided_slice %1066 {offsets = [0, 0], sizes = [8, 32], strides = [1, 1]} : vector<8x128xf32> to vector<8x32xf32>
    %1084 = vector.extract_strided_slice %1066 {offsets = [0, 64], sizes = [8, 32], strides = [1, 1]} : vector<8x128xf32> to vector<8x32xf32>
    %cst_361 = arith.constant 2.000000e+00 : f32
    %1085 = vector.broadcast %cst_361 : f32 to vector<8x32xf32>
    %1086 = arith.mulf %1085, %1084 : vector<8x32xf32>
    %cst_362 = arith.constant 1.000000e+00 : f32
    %1087 = vector.broadcast %cst_362 : f32 to vector<8x32xf32>
    %1088 = arith.subf %1086, %1087 : vector<8x32xf32>
    %1089 = arith.mulf %1083, %1088 : vector<8x32xf32>
    %1090 = arith.addf %1082, %1089 : vector<8x32xf32>
    %1091 = vector.extract_strided_slice %1066 {offsets = [0, 96], sizes = [8, 32], strides = [1, 1]} : vector<8x128xf32> to vector<8x32xf32>
    %1092 = math.tanh %1090 : vector<8x32xf32>
    %1093 = arith.mulf %1091, %1092 : vector<8x32xf32>
    %c0_363 = arith.constant 0 : index
    %c0_364 = arith.constant 0 : index
    %1094 = vector.load %arg3[%c0_363, %c0_364] : memref<64x64xf32, #tpu.memory_space<vmem>>, vector<8x32xf32>
    %1095 = arith.mulf %1094, %1093 : vector<8x32xf32>
    %cst_365 = arith.constant 1.000000e+00 : f32
    %1096 = vector.broadcast %cst_365 : f32 to vector<8x32xf32>
    %1097 = arith.subf %1096, %1094 : vector<8x32xf32>
    %1098 = arith.mulf %1097, %1046 : vector<8x32xf32>
    %1099 = arith.addf %1095, %1098 : vector<8x32xf32>
    %c0_366 = arith.constant 0 : index
    %c32_367 = arith.constant 32 : index
    %1100 = vector.load %arg10[%c0_366, %c32_367] : memref<64x64xf32, #tpu.memory_space<vmem>>, vector<8x32xf32>
    tpu.vector_store %arg10[%c0_366, %c32_367], %1099 {strides = array<i32>} : memref<64x64xf32, #tpu.memory_space<vmem>>, vector<8x32xf32>,
    %c0_368 = arith.constant 0 : index
    %c0_369 = arith.constant 0 : index
    %1101 = vector.load %arg10[%c0_368, %c0_369] : memref<64x64xf32, #tpu.memory_space<vmem>>, vector<64x64xf32>
    %c0_370 = arith.constant 0 : index
    %c0_371 = arith.constant 0 : index
    %1102 = vector.load %arg3[%c0_370, %c0_371] : memref<64x64xf32, #tpu.memory_space<vmem>>, vector<64x64xf32>
    %1103 = arith.mulf %1101, %1102 : vector<64x64xf32>
    %c56_372 = arith.constant 56 : index
    %c0_373 = arith.constant 0 : index
    %1104 = vector.load %arg6[%c56_372, %c0_373] : memref<128x32xf32, #tpu.memory_space<vmem>>, vector<64x32xf32>
    %cst_374 = arith.constant dense<0.000000e+00> : vector<64x32xf32>
    %1105 = tpu.matmul %1103, %1104, %cst_374 {dimension_numbers = #tpu.dot_dimension_numbers<[1], [0], [0], [1], [0, 0, 1, 1], [], []>} : vector<64x64xf32>, vector<64x32xf32>, vector<64x32xf32> -> vector<64x32xf32>
    %c120 = arith.constant 120 : index
    %c0_375 = arith.constant 0 : index
    %1106 = vector.load %arg6[%c120, %c0_375] : memref<128x32xf32, #tpu.memory_space<vmem>>, vector<1x32xf32>
    %1107 = vector.broadcast %1106 : vector<1x32xf32> to vector<64x32xf32>
    %1108 = arith.addf %1105, %1107 : vector<64x32xf32>
    %1109 = math.tanh %1108 : vector<64x32xf32>
    %c56_376 = arith.constant 56 : index
    %c0_377 = arith.constant 0 : index
    %1110 = vector.load %arg5[%c56_376, %c0_377] : memref<96x128xf32, #tpu.memory_space<vmem>>, vector<32x128xf32>
    %cst_378 = arith.constant dense<0.000000e+00> : vector<64x128xf32>
    %1111 = tpu.matmul %1109, %1110, %cst_378 {dimension_numbers = #tpu.dot_dimension_numbers<[1], [0], [0], [1], [0, 0, 1, 1], [], []>} : vector<64x32xf32>, vector<32x128xf32>, vector<64x128xf32> -> vector<64x128xf32>
    %c88 = arith.constant 88 : index
    %c0_379 = arith.constant 0 : index
    %1112 = vector.load %arg5[%c88, %c0_379] : memref<96x128xf32, #tpu.memory_space<vmem>>, vector<1x128xf32>
    %1113 = vector.broadcast %1112 : vector<1x128xf32> to vector<64x128xf32>
    %1114 = arith.addf %1111, %1113 : vector<64x128xf32>
    %cst_380 = arith.constant dense<0xFF800000> : vector<64xf32>
    %1115 = vector.multi_reduction <maximumf>, %1114, %cst_380 [1] : vector<64x128xf32> to vector<64xf32>
    %1116 = vector.shape_cast %1115 : vector<64xf32> to vector<64x1xf32>
    %1117 = vector.broadcast %1116 : vector<64x1xf32> to vector<64x128xf32>
    %1118 = arith.subf %1114, %1117 : vector<64x128xf32>
    %1119 = math.exp %1118 : vector<64x128xf32>
    %cst_381 = arith.constant dense<0.000000e+00> : vector<64xf32>
    %1120 = vector.multi_reduction <add>, %1119, %cst_381 [1] : vector<64x128xf32> to vector<64xf32>
    %1121 = vector.shape_cast %1120 : vector<64xf32> to vector<64x1xf32>
    %1122 = math.log %1121 : vector<64x1xf32>
    %1123 = vector.broadcast %1122 : vector<64x1xf32> to vector<64x128xf32>
    %1124 = arith.subf %1118, %1123 : vector<64x128xf32>
    %c0_382 = arith.constant 0 : index
    %c0_383 = arith.constant 0 : index
    %1125 = vector.load %arg7[%c0_382, %c0_383] : memref<64x128xf32, #tpu.memory_space<vmem>>, vector<64x128xf32>
    tpu.vector_store %arg7[%c0_382, %c0_383], %1124 {strides = array<i32>} : memref<64x128xf32, #tpu.memory_space<vmem>>, vector<64x128xf32>,
    return
  }
}

</mosaic_0001>

<bundles_post_ra>
// kernel: tpu_custom_call.1
= control target key start
LH: loop header
LB: loop body
LE: loop exit
PB: predicated region body
PF: predicated region fallthrough
CT: control target
= control target key end

     0   :  { %vm84_vm0 = vcmask 130048   ;;  %v7134_v5 = vmov 0   ;;  %s9727_s0 = inlined_call_operand.<no memory space> [shape: s32[1], index: 0, kind: input, shape index: {}]   ;;  %s9728_s1 = inlined_call_operand.vmem [shape: f32[384,16], index: 1, kind: input, shape index: {}]   ;;  %s9729_s2 = inlined_call_operand.vmem [shape: f32[64,16], index: 2, kind: input, shape index: {}]   ;;  %s9730_s3 = inlined_call_operand.vmem [shape: f32[64,64], index: 3, kind: input, shape index: {}]   ;;  %s9731_s4 = inlined_call_operand.vmem [shape: f32[240,256], index: 4, kind: input, shape index: {}]   ;;  %s9732_s5 = inlined_call_operand.vmem [shape: f32[96,128], index: 5, kind: input, shape index: {}]   ;;  %s9733_s6 = inlined_call_operand.vmem [shape: f32[128,32], index: 6, kind: input, shape index: {}]   ;;  %s9734_s7 = inlined_call_operand.hbm [shape: f32[64,128], index: 7, kind: output, shape index: {}]  }
   0x1   :  { %v78_v0 = vld [vmem:[%s9732_s5 + $0x8] sm:$0xff]  ;;  %v77_v1 = vld [vmem:[%s9732_s5] sm:$0xff]  ;;  %v585_v3 = vld [vmem:[%s9732_s5 + $0x30] sm:$0xff]  ;;  %6405 = vmatprep.mubr.bf16.mxu1 %v7134_v5 }
   0x2   :  { %v584_v2 = vld [vmem:[%s9732_s5 + $0x28] sm:$0xff]  ;;  %6325 = vmatprep.subr.mxu0 %v78_v0  ;;  %v29_v4 = vld [vmem:[%s9728_s1] sm:$0xff]  ;;  %v582_v8 = vld [vmem:[%s9732_s5 + $0x18] sm:$0xff] }
   0x3   :  { %6326 = vmatpush3.msra.mxu0 %v78_v0  ;;  %v7199_v6 = vpack.c.bf16 %v585_v3, %v584_v2  ;;  %6329 = vmatprep.mubr.msk.f32.mxu0 %vm84_vm0, %v29_v4  ;;  %v30_v7 = vld [vmem:[%s9728_s1 + $0x8] sm:$0xff]  ;;  %v583_v9 = vld [vmem:[%s9732_s5 + $0x20] sm:$0xff]  ;;  %v31_v11 = vld [vmem:[%s9728_s1 + $0x10] sm:$0xff] }
   0x4   :  { %6327 = vmatprep.subr.mxu0 %v77_v1  ;;  %v7211_v10 = vpack.c.bf16 %v583_v9, %v582_v8 }
   0x5   :  { %6401 = vmatprep.subr.bf16.mxu1 %v7199_v6  ;;  %6328 = vmatpush3.msra.mxu0 %v77_v1 }
   0x6   :  { %13 = vsyncpa [#allocation7], 0  ;;  %6402 = vmatpush3.bf16.msra.mxu1 %v7199_v6  ;;  %6330 = vmatmul.mubr.msk.f32.vlgmr.msra.gmra.mxu0 %vm84_vm0, %v30_v7  ;;  %v32_v12 = vld [vmem:[%s9728_s1 + $0x18] sm:$0xff]  ;;  %v33_v13 = vld [vmem:[%s9728_s1 + $0x20] sm:$0xff]  ;;  %s7135_s8 = smov 64   ;;  %s7136_s9 = smov 32  }
   0x7   :  { %6403 = vmatprep.subr.bf16.mxu1 %v7211_v10  ;;  %6332 = vmatprep.mubr.msk.f32.mxu0 %vm84_vm0, %v31_v11  ;;  %v34_v14 = vld [vmem:[%s9728_s1 + $0x28] sm:$0xff]  ;;  %v35_v15 = vld [vmem:[%s9728_s1 + $0x30] sm:$0xff]  ;;  %v36_v16 = vld [vmem:[%s9728_s1 + $0x38] sm:$0xff]  ;;  %p874_p0 = scmp.gt.s32.totalorder %s9727_s0, 0  ;;  %vm597_vm1 = vcmask 261120   ;;  %p1222_p1 = scmp.gt.s32.totalorder %s9727_s0, 1 }
   0x8   :  { %v7253_v20 = vld [vmem:[%s9732_s5 + $0x10] ss:$0 sm:$0xff]  ;;  %p1585_p2 = scmp.gt.s32.totalorder %s9727_s0, 2  ;;  %p1948_p3 = scmp.gt.s32.totalorder %s9727_s0, 3  ;;  %vm3335_vm2 = vcmask 523520   ;;  %vm3214_vm3 = vcmask 523264  }
   0x9   :  { %s875_s18 = scalar_select %p874_p0, 1, 0 }
   0xa   :  { %6404 = vmatpush3.bf16.msra.mxu1 %v7211_v10  ;;  %6333 = vmatmul.mubr.msk.f32.gmra.mxu0 %vm84_vm0, %v32_v12  ;;  %s1586_s20 = scalar_select %p1585_p2, 1, 0 }
   0xb   :  { %6335 = vmatprep.mubr.msk.f32.mxu0 %vm84_vm0, %v33_v13  ;;  %6413 = vmatprep.subr.bf16.mxu1 %v7199_v6  ;;  %s876_s19 = scvt.s32.f32 %s875_s18  ;;  %p2311_p4 = scmp.gt.s32.totalorder %s9727_s0, 4 }
   0xc   :  { %s1223_s18 = scalar_select %p1222_p1, 1, 0 }
   0xd   :  { %6406 = vmatmul.mubr.bf16.vlgmr.msra.gmra.mxu1 %v7134_v5  ;;  %s886_s22 = ssub.f32 1.0, %s876_s19  ;;  %s1587_s21 = scvt.s32.f32 %s1586_s20 }
   0xe   :  { %6336 = vmatmul.mubr.msk.f32.gmra.mxu0 %vm84_vm0, %v34_v14  ;;  %6409 = vmatprep.mubr.bf16.mxu1 %v7134_v5  ;;  %s1949_s20 = scalar_select %p1948_p3, 1, 0 }
   0xf   :  { %6338 = vmatprep.mubr.msk.f32.mxu0 %vm84_vm0, %v35_v15  ;;  %6414 = vmatpush3.bf16.msra.mxu1 %v7199_v6  ;;  %s1597_s26 = ssub.f32 1.0, %s1587_s21  ;;  %p2674_p5 = scmp.gt.s32.totalorder %s9727_s0, 5 }
  0x10   :  { %6415 = vmatprep.subr.bf16.mxu1 %v7211_v10 }
  0x11   :  { %s2675_s27 = scalar_select %p2674_p5, 1, 0 }
  0x12   :  { %6339 = vmatmul.mubr.msk.f32.gmra.mxu0 %vm84_vm0, %v36_v16 }
  0x13   :  { %6416 = vmatpush3.bf16.msra.mxu1 %v7211_v10 }
  0x14   :  { %6425 = vmatprep.subr.bf16.mxu1 %v7199_v6 }
  0x15   :  { %6410 = vmatmul.mubr.bf16.gmra.mxu1 %v7134_v5 }
  0xc6   :  { %v6331_v17 = vpop.f32.mrf.mxu0 }
  0xc7   :  { %v301_v33 = vadd.f32 %v6331_v17, %v7253_v20 }
  0xc8   :  { %v295_v18 = vpop.f32.mrf.mxu0 }
  0xc9   :  { %v296_v24 = vadd.f32 %v7253_v20, %v295_v18 }
  0xca   :  { %v6334_v19 = vpop.f32.mrf.mxu0 }
  0xcb   :  { %v311_v25 = vadd.f32 %v6334_v19, %v7253_v20 }
  0xcc   :  { %v305_v21 = vpop.f32.mrf.mxu0 }
  0xcd   :  { %v306_v22 = vadd.f32 %v7253_v20, %v305_v21  ;;  %v6407_v23 = vpop.f32.mrf.mxu1 }
  0xce   :  { %v6337_v26 = vpop.f32.mrf.mxu0 }
  0xcf   :  { %v668_v27 = vadd.f32 %v6407_v23, %v306_v22  ;;  %v635_v28 = vpop.f32.mrf.mxu1  ;;  %v321_v48 = vadd.f32 %v6337_v26, %v7253_v20 }
  0xd0   :  { %v666_v29 = vadd.f32 %v635_v28, %v296_v24  ;;  %v315_v30 = vpop.f32.mrf.mxu0 }
  0xd1   :  { %v5944_v31 = vmul.f32 -1.442695, %v668_v27  ;;  %v6408_v32 = vpop.f32.mrf.mxu1  ;;  %v316_v40 = vadd.f32 %v7253_v20, %v315_v30 }
  0xd2   :  { %v5942_v34 = vmul.f32 -1.442695, %v666_v29  ;;  %v669_v35 = vadd.f32 %v6408_v32, %v311_v25  ;;  %v6340_v36 = vpop.f32.mrf.mxu0 }
  0xd3   :  { %6566 = vpow2.f32 %v5944_v31  ;;  %v638_v37 = vpop.f32.mrf.mxu1  ;;  %v331_v45 = vadd.f32 %v6340_v36, %v7253_v20 }
  0xd4   :  { %6568 = vpow2.f32 %v5942_v34  ;;  %v5945_v38 = vmul.f32 -1.442695, %v669_v35  ;;  %v667_v39 = vadd.f32 %v638_v37, %v301_v33  ;;  %v325_v41 = vpop.f32.mrf.mxu0 }
  0xd5   :  { %v6411_v42 = vpop.f32.mrf.mxu1  ;;  %v326_v43 = vadd.f32 %v7253_v20, %v325_v41 }
  0xd6   :  { %6570 = vpow2.f32 %v5945_v38  ;;  %v5943_v44 = vmul.f32 -1.442695, %v667_v39 }
  0xd7   :  { %v651_v46 = vpop.f32.mrf.mxu1  ;;  %v672_v47 = vadd.f32 %v6411_v42, %v326_v43 }
  0xd8   :  { %6572 = vpow2.f32 %v5943_v44  ;;  %v670_v49 = vadd.f32 %v651_v46, %v316_v40 }
  0xd9   :  { %v5948_v50 = vmul.f32 -1.442695, %v672_v47  ;;  %v6412_v51 = vpop.f32.mrf.mxu1 }
  0xda   :  { %v5946_v52 = vmul.f32 -1.442695, %v670_v49  ;;  %v673_v53 = vadd.f32 %v6412_v51, %v331_v45 }
  0xdb   :  { %6574 = vpow2.f32 %v5948_v50  ;;  %v654_v54 = vpop.f32.mrf.mxu1 }
  0xdc   :  { %6576 = vpow2.f32 %v5946_v52  ;;  %v5949_v55 = vmul.f32 -1.442695, %v673_v53  ;;  %v671_v56 = vadd.f32 %v654_v54, %v321_v48 }
  0xde   :  { %6578 = vpow2.f32 %v5949_v55  ;;  %v5947_v57 = vmul.f32 -1.442695, %v671_v56 }
  0xe0   :  { %v6567_v58 = vpop.eup %6566  ;;  %6580 = vpow2.f32 %v5947_v57 }
  0xe1   :  { %v6569_v59 = vpop.eup %6568  ;;  %v700_v60 = vadd.f32 1.0, %v6567_v58 }
  0xe2   :  { %v698_v61 = vadd.f32 1.0, %v6569_v59 }
  0xe3   :  { %v6571_v62 = vpop.eup %6570  ;;  %6582 = vrcp.f32 %v700_v60 }
  0xe4   :  { %6584 = vrcp.f32 %v698_v61  ;;  %v701_v63 = vadd.f32 1.0, %v6571_v62 }
  0xe5   :  { %v6573_v0 = vpop.eup %6572 }
  0xe6   :  { %6586 = vrcp.f32 %v701_v63  ;;  %v699_v1 = vadd.f32 1.0, %v6573_v0 }
  0xe8   :  { %v6575_v2 = vpop.eup %6574  ;;  %6588 = vrcp.f32 %v699_v1 }
  0xe9   :  { %v6577_v3 = vpop.eup %6576  ;;  %v704_v4 = vadd.f32 1.0, %v6575_v2 }
  0xea   :  { %v702_v7 = vadd.f32 1.0, %v6577_v3 }
  0xeb   :  { %v6579_v8 = vpop.eup %6578  ;;  %6590 = vrcp.f32 %v704_v4 }
  0xec   :  { %6592 = vrcp.f32 %v702_v7  ;;  %v705_v9 = vadd.f32 1.0, %v6579_v8 }
  0xed   :  { %v6581_v11 = vpop.eup %6580 }
  0xee   :  { %v703_v12 = vadd.f32 1.0, %v6581_v11  ;;  %6594 = vrcp.f32 %v705_v9 }
  0xf0   :  { %v7263_v13 = vpop.eup %6582  ;;  %6596 = vrcp.f32 %v703_v12 }
  0xf1   :  { %v7265_v14 = vpop.eup %6584  ;;  %v732_v15 = vmul.f32 2.0, %v7263_v13  ;;  %v724_v58 = vmul.f32 0.0, %v7263_v13 }
  0xf2   :  { %v730_v16 = vmul.f32 2.0, %v7265_v14  ;;  %v722_v54 = vmul.f32 0.0, %v7265_v14 }
  0xf3   :  { %v7269_v17 = vpop.eup %6586  ;;  %v5952_v18 = vadd.f32 -1.0, %v732_v15 }
  0xf4   :  { %v5950_v19 = vadd.f32 -1.0, %v730_v16  ;;  %v733_v21 = vmul.f32 2.0, %v7269_v17  ;;  %v725_v63 = vmul.f32 0.0, %v7269_v17 }
  0xf5   :  { %v7272_v22 = vpop.eup %6588  ;;  %758 = vrot.lane.b32.xlu1 %v5952_v18, %s7135_s8 }
  0xf6   :  { %754 = vrot.lane.b32.xlu0 %v5950_v19, %s7135_s8  ;;  %v731_v23 = vmul.f32 2.0, %v7272_v22  ;;  %v5953_v24 = vadd.f32 -1.0, %v733_v21  ;;  %v723_v57 = vmul.f32 0.0, %v7272_v22 }
  0xf8   :  { %v7277_v25 = vpop.eup %6590  ;;  %v5951_v26 = vadd.f32 -1.0, %v731_v23 }
  0xf9   :  { %v7279_v27 = vpop.eup %6592  ;;  %760 = vrot.lane.b32.xlu1 %v5953_v24, %s7135_s8  ;;  %v736_v29 = vmul.f32 2.0, %v7277_v25  ;;  %v728_v8 = vmul.f32 0.0, %v7277_v25 }
  0xfa   :  { %756 = vrot.lane.b32.xlu0 %v5951_v26, %s7135_s8  ;;  %v734_v28 = vmul.f32 2.0, %v7279_v27  ;;  %v726_v0 = vmul.f32 0.0, %v7279_v27 }
  0xfb   :  { %v7285_v30 = vpop.eup %6594  ;;  %v5956_v34 = vadd.f32 -1.0, %v736_v29 }
  0xfc   :  { %v5954_v31 = vadd.f32 -1.0, %v734_v28  ;;  %v737_v36 = vmul.f32 2.0, %v7285_v30  ;;  %v729_v16 = vmul.f32 0.0, %v7285_v30 }
  0xfd   :  { %v7287_v32 = vpop.eup %6596 }
  0xfe   :  { %762 = vrot.lane.b32.xlu0 %v5954_v31, %s7135_s8  ;;  %v735_v33 = vmul.f32 2.0, %v7287_v32  ;;  %v5957_v37 = vadd.f32 -1.0, %v737_v36  ;;  %v727_v7 = vmul.f32 0.0, %v7287_v32  ;;  %v37_v31 = vld [vmem:[%s9728_s1 + $0x40] sm:$0xff] }
  0xff   :  { %6341 = vmatprep.mubr.msk.f32.mxu0 %vm84_vm0, %v37_v31 }
 0x100   :  { %v5955_v35 = vadd.f32 -1.0, %v735_v33  ;;  %v38_v33 = vld [vmem:[%s9728_s1 + $0x48] sm:$0xff] }
 0x101   :  { %6342 = vmatmul.mubr.msk.f32.gmra.mxu0 %vm84_vm0, %v38_v33 }
 0x102   :  { %764 = vrot.lane.b32.xlu1 %v5955_v35, %s7135_s8  ;;  %766 = vrot.lane.b32.xlu0 %v5956_v34, %s7135_s8  ;;  %v39_v34 = vld [vmem:[%s9728_s1 + $0x50] sm:$0xff] }
 0x103   :  { %6344 = vmatprep.mubr.msk.f32.mxu0 %vm84_vm0, %v39_v34 }
 0x106   :  { %768 = vrot.lane.b32.xlu1 %v5957_v37, %s7135_s8  ;;  %v40_v37 = vld [vmem:[%s9728_s1 + $0x58] sm:$0xff] }
 0x107   :  { %6345 = vmatmul.mubr.msk.f32.gmra.mxu0 %vm84_vm0, %v40_v37 }
 0x167   :  { %v759_v38 = vpop.permute.xlu1 %758 }
 0x168   :  { %v755_v39 = vpop.permute.xlu0 %754  ;;  %v780_v42 = vmul.f32 %v7263_v13, %v759_v38 }
 0x169   :  { %v778_v40 = vmul.f32 %v7265_v14, %v755_v39  ;;  %v41_v39 = vld [vmem:[%s9728_s1 + $0x60] sm:$0xff] }
 0x16a   :  { %6347 = vmatprep.mubr.msk.f32.mxu0 %vm84_vm0, %v41_v39 }
 0x16b   :  { %794 = vrot.lane.b32.xlu0 %v778_v40, %s7136_s9  ;;  %v761_v44 = vpop.permute.xlu1 %760 }
 0x16c   :  { %v757_v41 = vpop.permute.xlu0 %756  ;;  %v781_v46 = vmul.f32 %v7269_v17, %v761_v44 }
 0x16d   :  { %v779_v43 = vmul.f32 %v7272_v22, %v757_v41  ;;  %v42_v41 = vld [vmem:[%s9728_s1 + $0x68] sm:$0xff] }
 0x16e   :  { %6348 = vmatmul.mubr.msk.f32.gmra.mxu0 %vm84_vm0, %v42_v41 }
 0x16f   :  { %798 = vrot.lane.b32.xlu0 %v780_v42, %s7136_s9  ;;  %796 = vrot.lane.b32.xlu1 %v779_v43, %s7136_s9  ;;  %v7378_v42 = vstv %s876_s19  ;;  %v887_v43 = vstv %s886_s22  ;;  %s1224_s19 = scvt.s32.f32 %s1223_s18 }
 0x170   :  { %v763_v45 = vpop.permute.xlu0 %762  ;;  %s2312_s22 = scalar_select %p2311_p4, 1, 0 }
 0x171   :  { %v782_v47 = vmul.f32 %v7279_v27, %v763_v45  ;;  %v43_v45 = vld [vmem:[%s9728_s1 + $0x70] sm:$0xff]  ;;  %s1234_s24 = ssub.f32 1.0, %s1224_s19 }
 0x172   :  { %6350 = vmatprep.mubr.msk.f32.mxu0 %vm84_vm0, %v43_v45  ;;  %s2313_s23 = scvt.s32.f32 %s2312_s22 }
 0x173   :  { %800 = vrot.lane.b32.xlu1 %v781_v46, %s7136_s9  ;;  %802 = vrot.lane.b32.xlu0 %v782_v47, %s7136_s9 }
 0x174   :  { %v765_v48 = vpop.permute.xlu1 %764  ;;  %v767_v49 = vpop.permute.xlu0 %766  ;;  %s2323_s28 = ssub.f32 1.0, %s2313_s23 }
 0x175   :  { %v783_v50 = vmul.f32 %v7287_v32, %v765_v48  ;;  %v784_v51 = vmul.f32 %v7277_v25, %v767_v49  ;;  %v7388_v49 = vmul.f32 0.0, %v887_v43 }
 0x177   :  { %804 = vrot.lane.b32.xlu1 %v783_v50, %s7136_s9  ;;  %806 = vrot.lane.b32.xlu0 %v784_v51, %s7136_s9  ;;  %v44_v51 = vld [vmem:[%s9728_s1 + $0x78] sm:$0xff] }
 0x178   :  { %v769_v52 = vpop.permute.xlu1 %768  ;;  %6351 = vmatmul.mubr.msk.f32.gmra.mxu0 %vm84_vm0, %v44_v51 }
 0x179   :  { %v785_v53 = vmul.f32 %v7285_v30, %v769_v52 }
 0x17b   :  { %808 = vrot.lane.b32.xlu1 %v785_v53, %s7136_s9 }
 0x1c1   :  { %v6343_v33 = vpop.f32.mrf.mxu0 }
 0x1c3   :  { %v335_v34 = vpop.f32.mrf.mxu0 }
 0x1c4   :  { %v336_v41 = vadd.f32 %v7253_v20, %v335_v34 }
 0x1dd   :  { %v795_v55 = vpop.permute.xlu0 %794 }
 0x1de   :  { %v7312_v56 = vadd.f32 %v795_v55, %v722_v54 }
 0x1e0   :  { %6598 = vtanh.f32 %v7312_v56 }
 0x1e1   :  { %v797_v59 = vpop.permute.xlu1 %796  ;;  %v799_v60 = vpop.permute.xlu0 %798 }
 0x1e2   :  { %v7317_v61 = vadd.f32 %v797_v59, %v723_v57  ;;  %v7319_v62 = vadd.f32 %v799_v60, %v724_v58 }
 0x1e4   :  { %6600 = vtanh.f32 %v7317_v61 }
 0x1e5   :  { %6602 = vtanh.f32 %v7319_v62  ;;  %v801_v1 = vpop.permute.xlu1 %800  ;;  %v803_v2 = vpop.permute.xlu0 %802 }
 0x1e6   :  { %v7325_v3 = vadd.f32 %v801_v1, %v725_v63  ;;  %v7327_v4 = vadd.f32 %v803_v2, %v726_v0 }
 0x1e8   :  { %6604 = vtanh.f32 %v7325_v3 }
 0x1e9   :  { %6606 = vtanh.f32 %v7327_v4  ;;  %v805_v9 = vpop.permute.xlu1 %804  ;;  %v807_v11 = vpop.permute.xlu0 %806 }
 0x1ea   :  { %v7333_v12 = vadd.f32 %v805_v9, %v727_v7  ;;  %v7335_v15 = vadd.f32 %v807_v11, %v728_v8 }
 0x1ec   :  { %6608 = vtanh.f32 %v7333_v12 }
 0x1ed   :  { %v6599_v18 = vpop.eup %6598  ;;  %6610 = vtanh.f32 %v7335_v15  ;;  %v809_v19 = vpop.permute.xlu1 %808 }
 0x1ee   :  { %v7340_v21 = vadd.f32 %v809_v19, %v729_v16  ;;  %842 = vrot.lane.b32.xlu0 %v6599_v18, %s7135_s8 }
 0x1f0   :  { %6612 = vtanh.f32 %v7340_v21 }
 0x1f1   :  { %v6601_v23 = vpop.eup %6600 }
 0x1f2   :  { %v6603_v24 = vpop.eup %6602  ;;  %844 = vrot.lane.b32.xlu1 %v6601_v23, %s7135_s8 }
 0x1f3   :  { %846 = vrot.lane.b32.xlu0 %v6603_v24, %s7135_s8 }
 0x1f5   :  { %v6605_v26 = vpop.eup %6604 }
 0x1f6   :  { %v6607_v28 = vpop.eup %6606  ;;  %848 = vrot.lane.b32.xlu1 %v6605_v26, %s7135_s8 }
 0x1f7   :  { %850 = vrot.lane.b32.xlu0 %v6607_v28, %s7135_s8 }
 0x1f9   :  { %v6609_v29 = vpop.eup %6608 }
 0x1fa   :  { %v6611_v35 = vpop.eup %6610  ;;  %852 = vrot.lane.b32.xlu1 %v6609_v29, %s7135_s8 }
 0x1fb   :  { %854 = vrot.lane.b32.xlu0 %v6611_v35, %s7135_s8  ;;  %v6346_v35 = vpop.f32.mrf.mxu0 }
 0x1fd   :  { %v6613_v36 = vpop.eup %6612 }
 0x1fe   :  { %856 = vrot.lane.b32.xlu1 %v6613_v36, %s7135_s8  ;;  %v345_v36 = vpop.f32.mrf.mxu0 }
 0x1ff   :  { %v346_v39 = vadd.f32 %v7253_v20, %v345_v36 }
 0x22e   :  { %v6349_v37 = vpop.f32.mrf.mxu0 }
 0x260   :  { %v843_v38 = vpop.permute.xlu0 %842 }
 0x261   :  { %v866_v40 = vmul.f32 %v7265_v14, %v843_v38  ;;  %v355_v38 = vpop.f32.mrf.mxu0 }
 0x263   :  { %v878_v46 = vmul.f32 %v7378_v42, %v866_v40  ;;  %v6352_v40 = vpop.f32.mrf.mxu0 }
 0x264   :  { %v845_v44 = vpop.permute.xlu1 %844 }
 0x265   :  { %v867_v14 = vmul.f32 %v7272_v22, %v845_v44  ;;  %v847_v47 = vpop.permute.xlu0 %846  ;;  %v7396_v53 = vadd.f32 %v7388_v49, %v878_v46  ;;  %v351_v44 = vadd.f32 %v6346_v35, %v7253_v20 }
 0x266   :  { %v868_v48 = vmul.f32 %v7263_v13, %v847_v47 }
 0x267   :  { %v879_v50 = vmul.f32 %v7378_v42, %v867_v14  ;;  %v365_v14 = vpop.f32.mrf.mxu0 }
 0x268   :  { %v849_v52 = vpop.permute.xlu1 %848  ;;  %v880_v54 = vmul.f32 %v7378_v42, %v868_v48 }
 0x269   :  { %v7399_v22 = vadd.f32 %v7388_v49, %v879_v50  ;;  %v869_v13 = vmul.f32 %v7269_v17, %v849_v52  ;;  %v851_v55 = vpop.permute.xlu0 %850  ;;  %v341_v50 = vadd.f32 %v6343_v33, %v7253_v20 }
 0x26a   :  { %v870_v57 = vmul.f32 %v7279_v27, %v851_v55  ;;  %v7408_v63 = vadd.f32 %v7388_v49, %v880_v54 }
 0x26b   :  { %v881_v58 = vmul.f32 %v7378_v42, %v869_v13  ;;  %v921_v59 = vpack.c.bf16 %v7399_v22, %v7396_v53  ;;  %v366_v13 = vadd.f32 %v7253_v20, %v365_v14 }
 0x26c   :  { %v853_v60 = vpop.permute.xlu1 %852  ;;  %v882_v1 = vmul.f32 %v7378_v42, %v870_v57  ;;  %v356_v57 = vadd.f32 %v7253_v20, %v355_v38 }
 0x26d   :  { %v7411_v0 = vadd.f32 %v7388_v49, %v881_v58  ;;  %v871_v2 = vmul.f32 %v7287_v32, %v853_v60  ;;  %v855_v17 = vpop.permute.xlu0 %854  ;;  %929 = vrot.lane.b32.xlu0 %v921_v59, %s7136_s9 }
 0x26e   :  { %v872_v27 = vmul.f32 %v7277_v25, %v855_v17  ;;  %v7421_v11 = vadd.f32 %v7388_v49, %v882_v1  ;;  %v371_v1 = vadd.f32 %v6352_v40, %v7253_v20 }
 0x26f   :  { %v883_v7 = vmul.f32 %v7378_v42, %v871_v2  ;;  %v922_v8 = vpack.c.bf16 %v7411_v0, %v7408_v63 }
 0x270   :  { %v857_v9 = vpop.permute.xlu1 %856  ;;  %v884_v18 = vmul.f32 %v7378_v42, %v872_v27 }
 0x271   :  { %v7424_v16 = vadd.f32 %v7388_v49, %v883_v7  ;;  %v873_v32 = vmul.f32 %v7285_v30, %v857_v9  ;;  %931 = vrot.lane.b32.xlu1 %v922_v8, %s7136_s9  ;;  %v361_v7 = vadd.f32 %v6349_v37, %v7253_v20 }
 0x272   :  { %v7433_v23 = vadd.f32 %v7388_v49, %v884_v18 }
 0x273   :  { %v885_v25 = vmul.f32 %v7378_v42, %v873_v32  ;;  %v923_v19 = vpack.c.bf16 %v7424_v16, %v7421_v11 }
 0x275   :  { %v7436_v24 = vadd.f32 %v7388_v49, %v885_v25  ;;  %933 = vrot.lane.b32.xlu0 %v923_v19, %s7136_s9 }
 0x277   :  { %v924_v26 = vpack.c.bf16 %v7436_v24, %v7433_v23 }
 0x279   :  { %935 = vrot.lane.b32.xlu1 %v924_v26, %s7136_s9 }
 0x2df   :  { %v930_v30 = vpop.permute.xlu0 %929 }
 0x2e0   :  { %6417 = vmatprep.mubr.msk.bf16.mxu1 %vm597_vm1, %v930_v30 }
 0x2e3   :  { %v932_v28 = vpop.permute.xlu1 %931 }
 0x2e4   :  { %6418 = vmatmul.mubr.msk.bf16.vlgmr.msra.gmra.mxu1 %vm597_vm1, %v932_v28 }
 0x2e5   :  { %6426 = vmatpush3.bf16.msra.mxu1 %v7199_v6 }
 0x2e6   :  { %6427 = vmatprep.subr.bf16.mxu1 %v7211_v10 }
 0x2e7   :  { %v934_v29 = vpop.permute.xlu0 %933 }
 0x2e8   :  { %6421 = vmatprep.mubr.msk.bf16.mxu1 %vm597_vm1, %v934_v29 }
 0x2e9   :  { %6428 = vmatpush3.bf16.msra.mxu1 %v7211_v10 }
 0x2ea   :  { %6437 = vmatprep.subr.bf16.mxu1 %v7199_v6 }
 0x2eb   :  { %v936_v31 = vpop.permute.xlu1 %935 }
 0x2ec   :  { %6422 = vmatmul.mubr.msk.bf16.gmra.mxu1 %vm597_vm1, %v936_v31 }
 0x3a4   :  { %v6419_v43 = vpop.f32.mrf.mxu1 }
 0x3a5   :  { %v1016_v45 = vadd.f32 %v6419_v43, %v346_v39 }
 0x3a6   :  { %v983_v46 = vpop.f32.mrf.mxu1 }
 0x3a7   :  { %v5964_v47 = vmul.f32 -1.442695, %v1016_v45  ;;  %v1014_v48 = vadd.f32 %v983_v46, %v336_v41 }
 0x3a8   :  { %v6420_v51 = vpop.f32.mrf.mxu1 }
 0x3a9   :  { %6614 = vpow2.f32 %v5964_v47  ;;  %v5962_v52 = vmul.f32 -1.442695, %v1014_v48  ;;  %v1017_v54 = vadd.f32 %v6420_v51, %v351_v44 }
 0x3aa   :  { %v986_v55 = vpop.f32.mrf.mxu1 }
 0x3ab   :  { %6616 = vpow2.f32 %v5962_v52  ;;  %v5965_v58 = vmul.f32 -1.442695, %v1017_v54  ;;  %v1015_v59 = vadd.f32 %v986_v55, %v341_v50 }
 0x3ac   :  { %v6423_v60 = vpop.f32.mrf.mxu1 }
 0x3ad   :  { %6618 = vpow2.f32 %v5965_v58  ;;  %v5963_v2 = vmul.f32 -1.442695, %v1015_v59  ;;  %v1020_v17 = vadd.f32 %v6423_v60, %v366_v13 }
 0x3ae   :  { %v999_v27 = vpop.f32.mrf.mxu1 }
 0x3af   :  { %6620 = vpow2.f32 %v5963_v2  ;;  %v5968_v8 = vmul.f32 -1.442695, %v1020_v17  ;;  %v1018_v9 = vadd.f32 %v999_v27, %v356_v57 }
 0x3b0   :  { %v6424_v18 = vpop.f32.mrf.mxu1 }
 0x3b1   :  { %6622 = vpow2.f32 %v5968_v8  ;;  %v5966_v32 = vmul.f32 -1.442695, %v1018_v9  ;;  %v1021_v25 = vadd.f32 %v6424_v18, %v371_v1 }
 0x3b2   :  { %v1002_v19 = vpop.f32.mrf.mxu1 }
 0x3b3   :  { %6624 = vpow2.f32 %v5966_v32  ;;  %v5969_v26 = vmul.f32 -1.442695, %v1021_v25  ;;  %v1019_v30 = vadd.f32 %v1002_v19, %v361_v7 }
 0x3b5   :  { %6626 = vpow2.f32 %v5969_v26  ;;  %v5967_v28 = vmul.f32 -1.442695, %v1019_v30 }
 0x3b6   :  { %v6615_v29 = vpop.eup %6614 }
 0x3b7   :  { %v1048_v31 = vadd.f32 1.0, %v6615_v29  ;;  %6628 = vpow2.f32 %v5967_v28 }
 0x3b8   :  { %v6617_v33 = vpop.eup %6616 }
 0x3b9   :  { %v1046_v34 = vadd.f32 1.0, %v6617_v33  ;;  %6630 = vrcp.f32 %v1048_v31 }
 0x3ba   :  { %v6619_v35 = vpop.eup %6618 }
 0x3bb   :  { %6632 = vrcp.f32 %v1046_v34  ;;  %v1049_v20 = vadd.f32 1.0, %v6619_v35 }
 0x3bc   :  { %v6621_v36 = vpop.eup %6620 }
 0x3bd   :  { %v1047_v37 = vadd.f32 1.0, %v6621_v36  ;;  %6634 = vrcp.f32 %v1049_v20 }
 0x3be   :  { %v6623_v38 = vpop.eup %6622 }
 0x3bf   :  { %6636 = vrcp.f32 %v1047_v37  ;;  %v1052_v39 = vadd.f32 1.0, %v6623_v38 }
 0x3c0   :  { %v6625_v40 = vpop.eup %6624 }
 0x3c1   :  { %v1050_v41 = vadd.f32 1.0, %v6625_v40  ;;  %6638 = vrcp.f32 %v1052_v39 }
 0x3c2   :  { %v6627_v43 = vpop.eup %6626 }
 0x3c3   :  { %6640 = vrcp.f32 %v1050_v41  ;;  %v1053_v44 = vadd.f32 1.0, %v6627_v43 }
 0x3c4   :  { %v6629_v45 = vpop.eup %6628 }
 0x3c5   :  { %v1051_v46 = vadd.f32 1.0, %v6629_v45  ;;  %6642 = vrcp.f32 %v1053_v44  ;;  %v897_v44 = vmul.f32 %v7378_v42, %v7312_v56  ;;  %v898_v45 = vmul.f32 %v7378_v42, %v7317_v61 }
 0x3c6   :  { %v7458_v14 = vpop.eup %6630 }
 0x3c7   :  { %6644 = vrcp.f32 %v1051_v46  ;;  %v1080_v52 = vmul.f32 2.0, %v7458_v14  ;;  %v899_v46 = vmul.f32 %v7378_v42, %v7319_v62  ;;  %v7524_v61 = vadd.f32 %v898_v45, %v7388_v49  ;;  %v45_v45 = vld [vmem:[%s9728_s1 + $0x80] sm:$0xff] }
 0x3c8   :  { %v7460_v47 = vpop.eup %6632  ;;  %6353 = vmatprep.mubr.msk.f32.mxu0 %vm84_vm0, %v45_v45 }
 0x3c9   :  { %v1078_v48 = vmul.f32 2.0, %v7460_v47  ;;  %v5972_v57 = vadd.f32 -1.0, %v1080_v52  ;;  %v900_v52 = vmul.f32 %v7378_v42, %v7325_v3  ;;  %v7527_v62 = vadd.f32 %v899_v46, %v7388_v49  ;;  %v46_v46 = vld [vmem:[%s9728_s1 + $0x88] sm:$0xff] }
 0x3ca   :  { %v7463_v50 = vpop.eup %6634  ;;  %6354 = vmatmul.mubr.msk.f32.gmra.mxu0 %vm84_vm0, %v46_v46 }
 0x3cb   :  { %v5970_v51 = vadd.f32 -1.0, %v1078_v48  ;;  %v1081_v59 = vmul.f32 2.0, %v7463_v50  ;;  %v7513_v48 = vadd.f32 %v897_v44, %v7388_v49  ;;  %v1072_v3 = vmul.f32 %v7458_v14, %v7527_v62 }
 0x3cc   :  { %v7466_v54 = vpop.eup %6636 }
 0x3cd   :  { %1102 = vrot.lane.b32.xlu0 %v5970_v51, %s7135_s8  ;;  %v1079_v13 = vmul.f32 2.0, %v7466_v54  ;;  %v5973_v17 = vadd.f32 -1.0, %v1081_v59  ;;  %v1070_v51 = vmul.f32 %v7460_v47, %v7513_v48  ;;  %v902_v59 = vmul.f32 %v7378_v42, %v7333_v12 }
 0x3ce   :  { %v7470_v55 = vpop.eup %6638 }
 0x3cf   :  { %v5971_v58 = vadd.f32 -1.0, %v1079_v13  ;;  %v1084_v7 = vmul.f32 2.0, %v7470_v55 }
 0x3d0   :  { %v7473_v60 = vpop.eup %6640 }
 0x3d1   :  { %1106 = vrot.lane.b32.xlu0 %v5972_v57, %s7135_s8  ;;  %1104 = vrot.lane.b32.xlu1 %v5971_v58, %s7135_s8  ;;  %v1082_v1 = vmul.f32 2.0, %v7473_v60  ;;  %v5976_v18 = vadd.f32 -1.0, %v1084_v7  ;;  %v901_v57 = vmul.f32 %v7378_v42, %v7327_v4  ;;  %v1071_v58 = vmul.f32 %v7466_v54, %v7524_v61 }
 0x3d2   :  { %v7478_v2 = vpop.eup %6642 }
 0x3d3   :  { %v5974_v27 = vadd.f32 -1.0, %v1082_v1  ;;  %v1085_v25 = vmul.f32 2.0, %v7478_v2 }
 0x3d4   :  { %v7481_v8 = vpop.eup %6644 }
 0x3d5   :  { %1108 = vrot.lane.b32.xlu1 %v5973_v17, %s7135_s8  ;;  %1110 = vrot.lane.b32.xlu0 %v5974_v27, %s7135_s8  ;;  %v1083_v9 = vmul.f32 2.0, %v7481_v8  ;;  %v5977_v19 = vadd.f32 -1.0, %v1085_v25  ;;  %v7537_v17 = vadd.f32 %v900_v52, %v7388_v49  ;;  %v903_v27 = vmul.f32 %v7378_v42, %v7335_v15 }
 0x3d6   :  { %v7555_v15 = vadd.f32 %v902_v59, %v7388_v49 }
 0x3d7   :  { %v5975_v32 = vadd.f32 -1.0, %v1083_v9  ;;  %v1073_v12 = vmul.f32 %v7463_v50, %v7537_v17 }
 0x3d9   :  { %1114 = vrot.lane.b32.xlu0 %v5976_v18, %s7135_s8  ;;  %1112 = vrot.lane.b32.xlu1 %v5975_v32, %s7135_s8  ;;  %v7546_v18 = vadd.f32 %v901_v57, %v7388_v49  ;;  %v48_v57 = vld [vmem:[%s9728_s1 + $0x98] sm:$0xff] }
 0x3db   :  { %v1074_v32 = vmul.f32 %v7473_v60, %v7546_v18 }
 0x3dd   :  { %1116 = vrot.lane.b32.xlu1 %v5977_v19, %s7135_s8 }
 0x43f   :  { %v1103_v26 = vpop.permute.xlu0 %1102 }
 0x440   :  { %v1126_v30 = vmul.f32 %v7460_v47, %v1103_v26  ;;  %v904_v26 = vmul.f32 %v7378_v42, %v7340_v21 }
 0x442   :  { %1142 = vrot.lane.b32.xlu0 %v1126_v30, %s7136_s9 }
 0x443   :  { %v1105_v28 = vpop.permute.xlu1 %1104  ;;  %v1107_v29 = vpop.permute.xlu0 %1106 }
 0x444   :  { %v1127_v31 = vmul.f32 %v7466_v54, %v1105_v28  ;;  %v1128_v33 = vmul.f32 %v7458_v14, %v1107_v29  ;;  %v7564_v29 = vadd.f32 %v903_v27, %v7388_v49 }
 0x446   :  { %1144 = vrot.lane.b32.xlu1 %v1127_v31, %s7136_s9  ;;  %1146 = vrot.lane.b32.xlu0 %v1128_v33, %s7136_s9  ;;  %v1075_v31 = vmul.f32 %v7481_v8, %v7555_v15  ;;  %v1076_v33 = vmul.f32 %v7470_v55, %v7564_v29 }
 0x447   :  { %v1109_v34 = vpop.permute.xlu1 %1108  ;;  %v1111_v35 = vpop.permute.xlu0 %1110 }
 0x448   :  { %v1129_v20 = vmul.f32 %v7463_v50, %v1109_v34  ;;  %v1130_v36 = vmul.f32 %v7473_v60, %v1111_v35 }
 0x44a   :  { %1148 = vrot.lane.b32.xlu1 %v1129_v20, %s7136_s9  ;;  %1150 = vrot.lane.b32.xlu0 %v1130_v36, %s7136_s9  ;;  %v7577_v20 = vadd.f32 %v904_v26, %v7388_v49 }
 0x44b   :  { %v1113_v37 = vpop.permute.xlu1 %1112  ;;  %v1115_v38 = vpop.permute.xlu0 %1114 }
 0x44c   :  { %v1131_v39 = vmul.f32 %v7481_v8, %v1113_v37  ;;  %v1132_v40 = vmul.f32 %v7470_v55, %v1115_v38  ;;  %v1077_v36 = vmul.f32 %v7478_v2, %v7577_v20 }
 0x44e   :  { %1152 = vrot.lane.b32.xlu1 %v1131_v39, %s7136_s9  ;;  %1154 = vrot.lane.b32.xlu0 %v1132_v40, %s7136_s9 }
 0x44f   :  { %v1117_v41 = vpop.permute.xlu1 %1116 }
 0x450   :  { %v1133_v43 = vmul.f32 %v7478_v2, %v1117_v41 }
 0x452   :  { %1156 = vrot.lane.b32.xlu1 %v1133_v43, %s7136_s9 }
 0x4b4   :  { %v1143_v13 = vpop.permute.xlu0 %1142 }
 0x4b5   :  { %v7521_v56 = vadd.f32 %v1143_v13, %v1070_v51  ;;  %v47_v51 = vld [vmem:[%s9728_s1 + $0x90] sm:$0xff] }
 0x4b6   :  { %6356 = vmatprep.mubr.msk.f32.mxu0 %vm84_vm0, %v47_v51 }
 0x4b7   :  { %6646 = vtanh.f32 %v7521_v56  ;;  %6357 = vmatmul.mubr.msk.f32.gmra.mxu0 %vm84_vm0, %v48_v57 }
 0x4b8   :  { %v1145_v4 = vpop.permute.xlu1 %1144  ;;  %v1147_v1 = vpop.permute.xlu0 %1146 }
 0x4b9   :  { %v7541_v7 = vadd.f32 %v1145_v4, %v1071_v58  ;;  %v7543_v9 = vadd.f32 %v1147_v1, %v1072_v3  ;;  %v49_v3 = vld [vmem:[%s9728_s1 + $0xa0] sm:$0xff]  ;;  %v50_v4 = vld [vmem:[%s9728_s1 + $0xa8] sm:$0xff]  ;;  %v7621_v1 = vstv %s1224_s19 }
 0x4ba   :  { %6359 = vmatprep.mubr.msk.f32.mxu0 %vm84_vm0, %v49_v3 }
 0x4bb   :  { %6648 = vtanh.f32 %v7541_v7  ;;  %6360 = vmatmul.mubr.msk.f32.gmra.mxu0 %vm84_vm0, %v50_v4 }
 0x4bc   :  { %6650 = vtanh.f32 %v7543_v9  ;;  %v1149_v25 = vpop.permute.xlu1 %1148  ;;  %v1151_v19 = vpop.permute.xlu0 %1150 }
 0x4bd   :  { %v7559_v30 = vadd.f32 %v1149_v25, %v1073_v12  ;;  %v7561_v28 = vadd.f32 %v1151_v19, %v1074_v32  ;;  %v51_v12 = vld [vmem:[%s9728_s1 + $0xb0] sm:$0xff]  ;;  %v7630_v19 = vstv %s1234_s24 }
 0x4be   :  { %6362 = vmatprep.mubr.msk.f32.mxu0 %vm84_vm0, %v51_v12 }
 0x4bf   :  { %6652 = vtanh.f32 %v7559_v30 }
 0x4c0   :  { %6654 = vtanh.f32 %v7561_v28  ;;  %v1153_v34 = vpop.permute.xlu1 %1152  ;;  %v1155_v35 = vpop.permute.xlu0 %1154 }
 0x4c1   :  { %v7572_v21 = vadd.f32 %v1153_v34, %v1075_v31  ;;  %v7574_v42 = vadd.f32 %v1155_v35, %v1076_v33  ;;  %v1236_v31 = vmul.f32 %v7630_v19, %v7396_v53  ;;  %v1237_v33 = vmul.f32 %v7630_v19, %v7399_v22  ;;  %v52_v35 = vld [vmem:[%s9728_s1 + $0xb8] sm:$0xff] }
 0x4c2   :  { %6363 = vmatmul.mubr.msk.f32.gmra.mxu0 %vm84_vm0, %v52_v35 }
 0x4c3   :  { %6656 = vtanh.f32 %v7572_v21 }
 0x4c4   :  { %v6647_v37 = vpop.eup %6646  ;;  %6658 = vtanh.f32 %v7574_v42  ;;  %v1157_v38 = vpop.permute.xlu1 %1156 }
 0x4c5   :  { %v7583_v39 = vadd.f32 %v1157_v38, %v1077_v36  ;;  %1190 = vrot.lane.b32.xlu0 %v6647_v37, %s7135_s8 }
 0x4c7   :  { %6660 = vtanh.f32 %v7583_v39 }
 0x4c8   :  { %v6649_v40 = vpop.eup %6648 }
 0x4c9   :  { %v6651_v41 = vpop.eup %6650  ;;  %1192 = vrot.lane.b32.xlu1 %v6649_v40, %s7135_s8  ;;  %v1238_v40 = vmul.f32 %v7630_v19, %v7408_v63 }
 0x4ca   :  { %1194 = vrot.lane.b32.xlu0 %v6651_v41, %s7135_s8  ;;  %v1239_v41 = vmul.f32 %v7630_v19, %v7411_v0  ;;  %v1240_v0 = vmul.f32 %v7630_v19, %v7421_v11  ;;  %v1242_v11 = vmul.f32 %v7630_v19, %v7433_v23 }
 0x4cc   :  { %v6653_v49 = vpop.eup %6652 }
 0x4cd   :  { %v6655_v43 = vpop.eup %6654  ;;  %1196 = vrot.lane.b32.xlu1 %v6653_v49, %s7135_s8 }
 0x4ce   :  { %1198 = vrot.lane.b32.xlu0 %v6655_v43, %s7135_s8 }
 0x4d0   :  { %v6657_v44 = vpop.eup %6656 }
 0x4d1   :  { %v6659_v52 = vpop.eup %6658  ;;  %1200 = vrot.lane.b32.xlu1 %v6657_v44, %s7135_s8 }
 0x4d2   :  { %1202 = vrot.lane.b32.xlu0 %v6659_v52, %s7135_s8  ;;  %v1241_v52 = vmul.f32 %v7630_v19, %v7424_v16  ;;  %v1243_v16 = vmul.f32 %v7630_v19, %v7436_v24 }
 0x4d4   :  { %v6661_v13 = vpop.eup %6660 }
 0x4d5   :  { %1204 = vrot.lane.b32.xlu1 %v6661_v13, %s7135_s8 }
 0x537   :  { %v1191_v58 = vpop.permute.xlu0 %1190 }
 0x538   :  { %v1214_v59 = vmul.f32 %v7460_v47, %v1191_v58 }
 0x53a   :  { %v1226_v32 = vmul.f32 %v7621_v1, %v1214_v59 }
 0x53b   :  { %v1193_v27 = vpop.permute.xlu1 %1192 }
 0x53c   :  { %v1215_v47 = vmul.f32 %v7466_v54, %v1193_v27  ;;  %v1195_v25 = vpop.permute.xlu0 %1194  ;;  %v7642_v36 = vadd.f32 %v1236_v31, %v1226_v32 }
 0x53d   :  { %v1216_v26 = vmul.f32 %v7458_v14, %v1195_v25 }
 0x53e   :  { %v1227_v34 = vmul.f32 %v7621_v1, %v1215_v47 }
 0x53f   :  { %v1197_v54 = vpop.permute.xlu1 %1196  ;;  %v1228_v14 = vmul.f32 %v7621_v1, %v1216_v26  ;;  %v6355_v26 = vpop.f32.mrf.mxu0 }
 0x540   :  { %v7644_v37 = vadd.f32 %v1237_v33, %v1227_v34  ;;  %v1217_v53 = vmul.f32 %v7463_v50, %v1197_v54  ;;  %v1199_v38 = vpop.permute.xlu0 %1198 }
 0x541   :  { %v1218_v22 = vmul.f32 %v7473_v60, %v1199_v38  ;;  %v7656_v45 = vadd.f32 %v1238_v40, %v1228_v14  ;;  %v375_v31 = vpop.f32.mrf.mxu0  ;;  %v7704_v14 = vld [vmem:[%s9732_s5 + $0x10] ss:$0 sm:$0xff] }
 0x542   :  { %v1229_v49 = vmul.f32 %v7621_v1, %v1217_v53  ;;  %v1284_v43 = vpack.c.bf16 %v7644_v37, %v7642_v36 }
 0x543   :  { %v1201_v44 = vpop.permute.xlu1 %1200  ;;  %v1230_v50 = vmul.f32 %v7621_v1, %v1218_v22  ;;  %v376_v22 = vadd.f32 %v7704_v14, %v375_v31 }
 0x544   :  { %v7658_v46 = vadd.f32 %v1239_v41, %v1229_v49  ;;  %v1219_v60 = vmul.f32 %v7481_v8, %v1201_v44  ;;  %v1203_v51 = vpop.permute.xlu0 %1202  ;;  %1292 = vrot.lane.b32.xlu0 %v1284_v43, %s7136_s9 }
 0x545   :  { %v1220_v63 = vmul.f32 %v7470_v55, %v1203_v51  ;;  %v7671_v3 = vadd.f32 %v1240_v0, %v1230_v50  ;;  %v381_v51 = vadd.f32 %v7704_v14, %v6355_v26 }
 0x546   :  { %v1231_v13 = vmul.f32 %v7621_v1, %v1219_v60  ;;  %v1285_v57 = vpack.c.bf16 %v7658_v46, %v7656_v45 }
 0x547   :  { %v1205_v58 = vpop.permute.xlu1 %1204  ;;  %v1232_v59 = vmul.f32 %v7621_v1, %v1220_v63 }
 0x548   :  { %v7673_v8 = vadd.f32 %v1241_v52, %v1231_v13  ;;  %v1221_v55 = vmul.f32 %v7478_v2, %v1205_v58  ;;  %1294 = vrot.lane.b32.xlu1 %v1285_v57, %s7136_s9 }
 0x549   :  { %v7685_v12 = vadd.f32 %v1242_v11, %v1232_v59 }
 0x54a   :  { %v1233_v4 = vmul.f32 %v7621_v1, %v1221_v55  ;;  %v1286_v27 = vpack.c.bf16 %v7673_v8, %v7671_v3 }
 0x54c   :  { %v7687_v32 = vadd.f32 %v1243_v16, %v1233_v4  ;;  %1296 = vrot.lane.b32.xlu0 %v1286_v27, %s7136_s9 }
 0x54e   :  { %v1287_v2 = vpack.c.bf16 %v7687_v32, %v7685_v12 }
 0x550   :  { %1298 = vrot.lane.b32.xlu1 %v1287_v2, %s7136_s9 }
 0x577   :  { %v6358_v33 = vpop.f32.mrf.mxu0 }
 0x578   :  { %v391_v41 = vadd.f32 %v7704_v14, %v6358_v33 }
 0x579   :  { %v385_v34 = vpop.f32.mrf.mxu0 }
 0x57a   :  { %v386_v53 = vadd.f32 %v7704_v14, %v385_v34 }
 0x57b   :  { %v6361_v35 = vpop.f32.mrf.mxu0 }
 0x57d   :  { %v395_v54 = vpop.f32.mrf.mxu0 }
 0x57e   :  { %v396_v58 = vadd.f32 %v7704_v14, %v395_v54 }
 0x582   :  { %v6364_v38 = vpop.f32.mrf.mxu0 }
 0x583   :  { %v411_v16 = vadd.f32 %v7704_v14, %v6364_v38 }
 0x584   :  { %v405_v44 = vpop.f32.mrf.mxu0 }
 0x585   :  { %v406_v13 = vadd.f32 %v7704_v14, %v405_v44 }
 0x5b6   :  { %v1293_v23 = vpop.permute.xlu0 %1292 }
 0x5b7   :  { %6429 = vmatprep.mubr.msk.bf16.mxu1 %vm597_vm1, %v1293_v23  ;;  %v401_v23 = vadd.f32 %v7704_v14, %v6361_v35 }
 0x5ba   :  { %v1295_v24 = vpop.permute.xlu1 %1294 }
 0x5bb   :  { %6430 = vmatmul.mubr.msk.bf16.vlgmr.msra.gmra.mxu1 %vm597_vm1, %v1295_v24 }
 0x5bc   :  { %6438 = vmatpush3.bf16.msra.mxu1 %v7199_v6 }
 0x5bd   :  { %6439 = vmatprep.subr.bf16.mxu1 %v7211_v10 }
 0x5be   :  { %v1297_v47 = vpop.permute.xlu0 %1296 }
 0x5bf   :  { %6433 = vmatprep.mubr.msk.bf16.mxu1 %vm597_vm1, %v1297_v47 }
 0x5c0   :  { %6440 = vmatpush3.bf16.msra.mxu1 %v7211_v10 }
 0x5c1   :  { %6449 = vmatprep.subr.bf16.mxu1 %v7199_v6 }
 0x5c2   :  { %v1299_v25 = vpop.permute.xlu1 %1298 }
 0x5c3   :  { %6434 = vmatmul.mubr.msk.bf16.gmra.mxu1 %vm597_vm1, %v1299_v25 }
 0x67b   :  { %v6431_v40 = vpop.f32.mrf.mxu1 }
 0x67c   :  { %v1379_v49 = vadd.f32 %v6431_v40, %v386_v53 }
 0x67d   :  { %v1346_v43 = vpop.f32.mrf.mxu1 }
 0x67e   :  { %v5984_v50 = vmul.f32 -1.442695, %v1379_v49  ;;  %v1377_v60 = vadd.f32 %v1346_v43, %v376_v22 }
 0x67f   :  { %v6432_v63 = vpop.f32.mrf.mxu1 }
 0x680   :  { %6662 = vpow2.f32 %v5984_v50  ;;  %v5982_v0 = vmul.f32 -1.442695, %v1377_v60  ;;  %v1380_v52 = vadd.f32 %v6432_v63, %v391_v41 }
 0x681   :  { %v1349_v57 = vpop.f32.mrf.mxu1 }
 0x682   :  { %6664 = vpow2.f32 %v5982_v0  ;;  %v5985_v59 = vmul.f32 -1.442695, %v1380_v52  ;;  %v1378_v55 = vadd.f32 %v1349_v57, %v381_v51 }
 0x683   :  { %v6435_v11 = vpop.f32.mrf.mxu1 }
 0x684   :  { %6666 = vpow2.f32 %v5985_v59  ;;  %v5983_v4 = vmul.f32 -1.442695, %v1378_v55  ;;  %v1383_v27 = vadd.f32 %v6435_v11, %v406_v13 }
 0x685   :  { %v1362_v2 = vpop.f32.mrf.mxu1 }
 0x686   :  { %6668 = vpow2.f32 %v5983_v4  ;;  %v5988_v24 = vmul.f32 -1.442695, %v1383_v27  ;;  %v1381_v47 = vadd.f32 %v1362_v2, %v396_v58 }
 0x687   :  { %v6436_v25 = vpop.f32.mrf.mxu1 }
 0x688   :  { %6670 = vpow2.f32 %v5988_v24  ;;  %v5986_v26 = vmul.f32 -1.442695, %v1381_v47  ;;  %v1384_v31 = vadd.f32 %v6436_v25, %v411_v16 }
 0x689   :  { %v1365_v33 = vpop.f32.mrf.mxu1 }
 0x68a   :  { %6672 = vpow2.f32 %v5986_v26  ;;  %v5989_v34 = vmul.f32 -1.442695, %v1384_v31  ;;  %v1382_v54 = vadd.f32 %v1365_v33, %v401_v23 }
 0x68c   :  { %6674 = vpow2.f32 %v5989_v34  ;;  %v5987_v53 = vmul.f32 -1.442695, %v1382_v54 }
 0x68d   :  { %v6663_v38 = vpop.eup %6662 }
 0x68e   :  { %v1411_v22 = vadd.f32 1.0, %v6663_v38  ;;  %6676 = vpow2.f32 %v5987_v53 }
 0x68f   :  { %v6665_v40 = vpop.eup %6664 }
 0x690   :  { %v1409_v41 = vadd.f32 1.0, %v6665_v40  ;;  %6678 = vrcp.f32 %v1411_v22 }
 0x691   :  { %v6667_v49 = vpop.eup %6666 }
 0x692   :  { %6680 = vrcp.f32 %v1409_v41  ;;  %v1412_v35 = vadd.f32 1.0, %v6667_v49 }
 0x693   :  { %v6669_v43 = vpop.eup %6668 }
 0x694   :  { %v1410_v44 = vadd.f32 1.0, %v6669_v43  ;;  %6682 = vrcp.f32 %v1412_v35 }
 0x695   :  { %v6671_v50 = vpop.eup %6670 }
 0x696   :  { %6684 = vrcp.f32 %v1410_v44  ;;  %v1415_v60 = vadd.f32 1.0, %v6671_v50 }
 0x697   :  { %v6673_v51 = vpop.eup %6672 }
 0x698   :  { %v1413_v63 = vadd.f32 1.0, %v6673_v51  ;;  %6686 = vrcp.f32 %v1415_v60 }
 0x699   :  { %v6675_v0 = vpop.eup %6674 }
 0x69a   :  { %6688 = vrcp.f32 %v1413_v63  ;;  %v1416_v52 = vadd.f32 1.0, %v6675_v0 }
 0x69b   :  { %v6677_v13 = vpop.eup %6676 }
 0x69c   :  { %v1414_v57 = vadd.f32 1.0, %v6677_v13  ;;  %6690 = vrcp.f32 %v1416_v52 }
 0x69d   :  { %v7714_v58 = vpop.eup %6678 }
 0x69e   :  { %6692 = vrcp.f32 %v1414_v57  ;;  %v1443_v4 = vmul.f32 2.0, %v7714_v58 }
 0x69f   :  { %v7716_v59 = vpop.eup %6680 }
 0x6a0   :  { %v1441_v55 = vmul.f32 2.0, %v7716_v59  ;;  %v5992_v24 = vadd.f32 -1.0, %v1443_v4 }
 0x6a1   :  { %v7719_v11 = vpop.eup %6682 }
 0x6a2   :  { %v5990_v16 = vadd.f32 -1.0, %v1441_v55  ;;  %v1444_v25 = vmul.f32 2.0, %v7719_v11 }
 0x6a3   :  { %v7722_v27 = vpop.eup %6684 }
 0x6a4   :  { %1465 = vrot.lane.b32.xlu0 %v5990_v16, %s7135_s8  ;;  %v1442_v2 = vmul.f32 2.0, %v7722_v27  ;;  %v5993_v34 = vadd.f32 -1.0, %v1444_v25  ;;  %v1252_v25 = vmul.f32 %v7621_v1, %v7521_v56  ;;  %v1262_v56 = vmul.f32 %v7630_v19, %v7527_v62 }
 0x6a5   :  { %v7726_v23 = vpop.eup %6686 }
 0x6a6   :  { %v5991_v47 = vadd.f32 -1.0, %v1442_v2  ;;  %v1447_v53 = vmul.f32 2.0, %v7726_v23 }
 0x6a7   :  { %v7729_v26 = vpop.eup %6688 }
 0x6a8   :  { %1469 = vrot.lane.b32.xlu0 %v5992_v24, %s7135_s8  ;;  %1467 = vrot.lane.b32.xlu1 %v5991_v47, %s7135_s8  ;;  %v1445_v31 = vmul.f32 2.0, %v7729_v26  ;;  %v5996_v40 = vadd.f32 -1.0, %v1447_v53 }
 0x6a9   :  { %v7734_v33 = vpop.eup %6690 }
 0x6aa   :  { %v5994_v54 = vadd.f32 -1.0, %v1445_v31  ;;  %v1448_v49 = vmul.f32 2.0, %v7734_v33  ;;  %v1260_v31 = vmul.f32 %v7630_v19, %v7513_v48  ;;  %v1255_v48 = vmul.f32 %v7621_v1, %v7559_v30 }
 0x6ab   :  { %v7737_v38 = vpop.eup %6692  ;;  %v1264_v30 = vmul.f32 %v7630_v19, %v7546_v18 }
 0x6ac   :  { %1471 = vrot.lane.b32.xlu1 %v5993_v34, %s7135_s8  ;;  %1473 = vrot.lane.b32.xlu0 %v5994_v54, %s7135_s8  ;;  %v1446_v22 = vmul.f32 2.0, %v7737_v38  ;;  %v5997_v35 = vadd.f32 -1.0, %v1448_v49  ;;  %v1253_v34 = vmul.f32 %v7621_v1, %v7541_v7  ;;  %v1254_v54 = vmul.f32 %v7621_v1, %v7543_v9 }
 0x6ad   :  { %v7770_v53 = vadd.f32 %v1260_v31, %v1252_v25  ;;  %v1256_v7 = vmul.f32 %v7621_v1, %v7561_v28  ;;  %v1257_v28 = vmul.f32 %v7621_v1, %v7572_v21 }
 0x6ae   :  { %v5995_v41 = vadd.f32 -1.0, %v1446_v22 }
 0x6af   :  { %v1433_v22 = vmul.f32 %v7716_v59, %v7770_v53 }
 0x6b0   :  { %1477 = vrot.lane.b32.xlu0 %v5996_v40, %s7135_s8  ;;  %1475 = vrot.lane.b32.xlu1 %v5995_v41, %s7135_s8  ;;  %v1261_v40 = vmul.f32 %v7630_v19, %v7524_v61 }
 0x6b2   :  { %v7784_v9 = vadd.f32 %v1261_v40, %v1253_v34 }
 0x6b4   :  { %1479 = vrot.lane.b32.xlu1 %v5997_v35, %s7135_s8  ;;  %v7786_v35 = vadd.f32 %v1262_v56, %v1254_v54  ;;  %v1434_v61 = vmul.f32 %v7722_v27, %v7784_v9 }
 0x6b6   :  { %v1435_v62 = vmul.f32 %v7714_v58, %v7786_v35 }
 0x716   :  { %v1466_v43 = vpop.permute.xlu0 %1465 }
 0x717   :  { %v1489_v44 = vmul.f32 %v7716_v59, %v1466_v43  ;;  %v1263_v43 = vmul.f32 %v7630_v19, %v7537_v17  ;;  %v1258_v17 = vmul.f32 %v7621_v1, %v7574_v42  ;;  %v1266_v42 = vmul.f32 %v7630_v19, %v7564_v29 }
 0x719   :  { %1505 = vrot.lane.b32.xlu0 %v1489_v44, %s7136_s9 }
 0x71a   :  { %v1468_v50 = vpop.permute.xlu1 %1467  ;;  %v1470_v60 = vpop.permute.xlu0 %1469 }
 0x71b   :  { %v1490_v51 = vmul.f32 %v7722_v27, %v1468_v50  ;;  %v1491_v63 = vmul.f32 %v7714_v58, %v1470_v60  ;;  %v7799_v60 = vadd.f32 %v1263_v43, %v1255_v48  ;;  %v53_v43 = vld [vmem:[%s9728_s1 + $0xc0] sm:$0xff] }
 0x71c   :  { %6365 = vmatprep.mubr.msk.f32.mxu0 %vm84_vm0, %v53_v43 }
 0x71d   :  { %1507 = vrot.lane.b32.xlu1 %v1490_v51, %s7136_s9  ;;  %1509 = vrot.lane.b32.xlu0 %v1491_v63, %s7136_s9  ;;  %v1436_v18 = vmul.f32 %v7719_v11, %v7799_v60 }
 0x71e   :  { %v1472_v0 = vpop.permute.xlu1 %1471  ;;  %v1474_v52 = vpop.permute.xlu0 %1473 }
 0x71f   :  { %v1492_v13 = vmul.f32 %v7719_v11, %v1472_v0  ;;  %v1493_v57 = vmul.f32 %v7729_v26, %v1474_v52  ;;  %v7807_v0 = vadd.f32 %v1264_v30, %v1256_v7  ;;  %v1265_v52 = vmul.f32 %v7630_v19, %v7555_v15 }
 0x720   :  { %v1259_v15 = vmul.f32 %v7621_v1, %v7583_v39 }
 0x721   :  { %1511 = vrot.lane.b32.xlu1 %v1492_v13, %s7136_s9  ;;  %1513 = vrot.lane.b32.xlu0 %v1493_v57, %s7136_s9  ;;  %v1437_v21 = vmul.f32 %v7729_v26, %v7807_v0 }
 0x722   :  { %v1476_v55 = vpop.permute.xlu1 %1475  ;;  %v1478_v16 = vpop.permute.xlu0 %1477 }
 0x723   :  { %v1494_v4 = vmul.f32 %v7737_v38, %v1476_v55  ;;  %v1495_v2 = vmul.f32 %v7726_v23, %v1478_v16  ;;  %v7819_v55 = vadd.f32 %v1265_v52, %v1257_v28 }
 0x725   :  { %1515 = vrot.lane.b32.xlu1 %v1494_v4, %s7136_s9  ;;  %1517 = vrot.lane.b32.xlu0 %v1495_v2, %s7136_s9  ;;  %v7827_v2 = vadd.f32 %v1266_v42, %v1258_v17  ;;  %v1438_v29 = vmul.f32 %v7737_v38, %v7819_v55  ;;  %v57_v17 = vld [vmem:[%s9728_s1 + $0xe0] sm:$0xff] }
 0x726   :  { %v1480_v24 = vpop.permute.xlu1 %1479 }
 0x727   :  { %v1496_v47 = vmul.f32 %v7734_v33, %v1480_v24  ;;  %v1439_v24 = vmul.f32 %v7726_v23, %v7827_v2 }
 0x729   :  { %1519 = vrot.lane.b32.xlu1 %v1496_v47, %s7136_s9  ;;  %v1267_v47 = vmul.f32 %v7630_v19, %v7577_v20 }
 0x72b   :  { %v7841_v34 = vadd.f32 %v1267_v47, %v1259_v15 }
 0x72d   :  { %v1440_v54 = vmul.f32 %v7734_v33, %v7841_v34 }
 0x78b   :  { %v1506_v41 = vpop.permute.xlu0 %1505 }
 0x78c   :  { %v7782_v49 = vadd.f32 %v1506_v41, %v1433_v22 }
 0x78e   :  { %6694 = vtanh.f32 %v7782_v49 }
 0x78f   :  { %v1508_v44 = vpop.permute.xlu1 %1507  ;;  %v1510_v50 = vpop.permute.xlu0 %1509 }
 0x790   :  { %v7803_v51 = vadd.f32 %v1508_v44, %v1434_v61  ;;  %v7805_v63 = vadd.f32 %v1510_v50, %v1435_v62  ;;  %v54_v61 = vld [vmem:[%s9728_s1 + $0xc8] sm:$0xff]  ;;  %v55_v62 = vld [vmem:[%s9728_s1 + $0xd0] sm:$0xff]  ;;  %v56_v44 = vld [vmem:[%s9728_s1 + $0xd8] sm:$0xff] }
 0x791   :  { %6366 = vmatmul.mubr.msk.f32.gmra.mxu0 %vm84_vm0, %v54_v61 }
 0x792   :  { %6696 = vtanh.f32 %v7803_v51  ;;  %6368 = vmatprep.mubr.msk.f32.mxu0 %vm84_vm0, %v55_v62 }
 0x793   :  { %6698 = vtanh.f32 %v7805_v63  ;;  %v1512_v13 = vpop.permute.xlu1 %1511  ;;  %v1514_v57 = vpop.permute.xlu0 %1513 }
 0x794   :  { %v7823_v16 = vadd.f32 %v1512_v13, %v1436_v18  ;;  %v7825_v4 = vadd.f32 %v1514_v57, %v1437_v21  ;;  %v58_v18 = vld [vmem:[%s9728_s1 + $0xe8] sm:$0xff]  ;;  %v7885_v21 = vstv %s1587_s21  ;;  %v59_v13 = vld [vmem:[%s9728_s1 + $0xf0] sm:$0xff]  ;;  %s1950_s21 = scvt.s32.f32 %s1949_s20 }
 0x795   :  { %6369 = vmatmul.mubr.msk.f32.gmra.mxu0 %vm84_vm0, %v56_v44 }
 0x796   :  { %6700 = vtanh.f32 %v7823_v16  ;;  %6371 = vmatprep.mubr.msk.f32.mxu0 %vm84_vm0, %v57_v17 }
 0x797   :  { %6702 = vtanh.f32 %v7825_v4  ;;  %v1516_v39 = vpop.permute.xlu1 %1515  ;;  %v1518_v1 = vpop.permute.xlu0 %1517 }
 0x798   :  { %v7837_v25 = vadd.f32 %v1516_v39, %v1438_v29  ;;  %v7839_v31 = vadd.f32 %v1518_v1, %v1439_v24  ;;  %v7894_v29 = vstv %s1597_s26  ;;  %s1960_s26 = ssub.f32 1.0, %s1950_s21 }
 0x799   :  { %6372 = vmatmul.mubr.msk.f32.gmra.mxu0 %vm84_vm0, %v58_v18  ;;  %v1599_v47 = vmul.f32 %v7894_v29, %v7642_v36  ;;  %v1600_v39 = vmul.f32 %v7894_v29, %v7644_v37 }
 0x79a   :  { %6704 = vtanh.f32 %v7837_v25  ;;  %6374 = vmatprep.mubr.msk.f32.mxu0 %vm84_vm0, %v59_v13 }
 0x79b   :  { %v6695_v22 = vpop.eup %6694  ;;  %6706 = vtanh.f32 %v7839_v31  ;;  %v1520_v40 = vpop.permute.xlu1 %1519 }
 0x79c   :  { %v7847_v20 = vadd.f32 %v1520_v40, %v1440_v54  ;;  %1553 = vrot.lane.b32.xlu0 %v6695_v22, %s7135_s8  ;;  %v60_v54 = vld [vmem:[%s9728_s1 + $0xf8] sm:$0xff] }
 0x79d   :  { %6375 = vmatmul.mubr.msk.f32.gmra.mxu0 %vm84_vm0, %v60_v54 }
 0x79e   :  { %6708 = vtanh.f32 %v7847_v20 }
 0x79f   :  { %v6697_v19 = vpop.eup %6696 }
 0x7a0   :  { %v6699_v56 = vpop.eup %6698  ;;  %1555 = vrot.lane.b32.xlu1 %v6697_v19, %s7135_s8 }
 0x7a1   :  { %1557 = vrot.lane.b32.xlu0 %v6699_v56, %s7135_s8  ;;  %v1601_v56 = vmul.f32 %v7894_v29, %v7656_v45 }
 0x7a3   :  { %v6701_v48 = vpop.eup %6700 }
 0x7a4   :  { %v6703_v41 = vpop.eup %6702  ;;  %1559 = vrot.lane.b32.xlu1 %v6701_v48, %s7135_s8  ;;  %v1602_v48 = vmul.f32 %v7894_v29, %v7658_v46  ;;  %v1603_v46 = vmul.f32 %v7894_v29, %v7671_v3  ;;  %v1605_v3 = vmul.f32 %v7894_v29, %v7685_v12 }
 0x7a5   :  { %1561 = vrot.lane.b32.xlu0 %v6703_v41, %s7135_s8 }
 0x7a7   :  { %v6705_v7 = vpop.eup %6704 }
 0x7a8   :  { %v6707_v30 = vpop.eup %6706  ;;  %1563 = vrot.lane.b32.xlu1 %v6705_v7, %s7135_s8 }
 0x7a9   :  { %1565 = vrot.lane.b32.xlu0 %v6707_v30, %s7135_s8 }
 0x7ab   :  { %v6709_v28 = vpop.eup %6708 }
 0x7ac   :  { %1567 = vrot.lane.b32.xlu1 %v6709_v28, %s7135_s8  ;;  %v1604_v28 = vmul.f32 %v7894_v29, %v7673_v8  ;;  %v1606_v8 = vmul.f32 %v7894_v29, %v7687_v32 }
 0x80e   :  { %v1554_v50 = vpop.permute.xlu0 %1553 }
 0x80f   :  { %v1577_v52 = vmul.f32 %v7716_v59, %v1554_v50 }
 0x811   :  { %v1589_v57 = vmul.f32 %v7885_v21, %v1577_v52 }
 0x812   :  { %v1556_v42 = vpop.permute.xlu1 %1555 }
 0x813   :  { %v1578_v59 = vmul.f32 %v7722_v27, %v1556_v42  ;;  %v1558_v15 = vpop.permute.xlu0 %1557  ;;  %v7906_v22 = vadd.f32 %v1599_v47, %v1589_v57 }
 0x814   :  { %v1579_v24 = vmul.f32 %v7714_v58, %v1558_v15 }
 0x815   :  { %v1590_v1 = vmul.f32 %v7885_v21, %v1578_v59 }
 0x816   :  { %v1560_v27 = vpop.permute.xlu1 %1559  ;;  %v1591_v58 = vmul.f32 %v7885_v21, %v1579_v24 }
 0x817   :  { %v7908_v40 = vadd.f32 %v1600_v39, %v1590_v1  ;;  %v1580_v36 = vmul.f32 %v7719_v11, %v1560_v27  ;;  %v1562_v19 = vpop.permute.xlu0 %1561 }
 0x818   :  { %v1581_v37 = vmul.f32 %v7729_v26, %v1562_v19  ;;  %v7920_v61 = vadd.f32 %v1601_v56, %v1591_v58 }
 0x819   :  { %v1592_v41 = vmul.f32 %v7885_v21, %v1580_v36  ;;  %v1647_v7 = vpack.c.bf16 %v7908_v40, %v7906_v22 }
 0x81a   :  { %v1564_v43 = vpop.permute.xlu1 %1563  ;;  %v1593_v11 = vmul.f32 %v7885_v21, %v1581_v37 }
 0x81b   :  { %v7922_v62 = vadd.f32 %v1602_v48, %v1592_v41  ;;  %v1582_v26 = vmul.f32 %v7737_v38, %v1564_v43  ;;  %v1566_v30 = vpop.permute.xlu0 %1565  ;;  %1655 = vrot.lane.b32.xlu0 %v1647_v7, %s7136_s9 }
 0x81c   :  { %v1583_v45 = vmul.f32 %v7726_v23, %v1566_v30  ;;  %v7935_v52 = vadd.f32 %v1603_v46, %v1593_v11 }
 0x81d   :  { %v1594_v44 = vmul.f32 %v7885_v21, %v1582_v26  ;;  %v1648_v50 = vpack.c.bf16 %v7922_v62, %v7920_v61 }
 0x81e   :  { %v1568_v17 = vpop.permute.xlu1 %1567  ;;  %v1595_v18 = vmul.f32 %v7885_v21, %v1583_v45 }
 0x81f   :  { %v7937_v38 = vadd.f32 %v1604_v28, %v1594_v44  ;;  %v1584_v23 = vmul.f32 %v7734_v33, %v1568_v17  ;;  %1657 = vrot.lane.b32.xlu1 %v1648_v50, %s7136_s9 }
 0x820   :  { %v7949_v57 = vadd.f32 %v1605_v3, %v1595_v18 }
 0x821   :  { %v1596_v42 = vmul.f32 %v7885_v21, %v1584_v23  ;;  %v1649_v13 = vpack.c.bf16 %v7937_v38, %v7935_v52 }
 0x823   :  { %v7951_v59 = vadd.f32 %v1606_v8, %v1596_v42  ;;  %1659 = vrot.lane.b32.xlu0 %v1649_v13, %s7136_s9 }
 0x825   :  { %v1650_v33 = vpack.c.bf16 %v7951_v59, %v7949_v57 }
 0x827   :  { %1661 = vrot.lane.b32.xlu1 %v1650_v33, %s7136_s9 }
 0x851   :  { %v6367_v47 = vpop.f32.mrf.mxu0 }
 0x852   :  { %v421_v30 = vadd.f32 %v7704_v14, %v6367_v47 }
 0x853   :  { %v415_v39 = vpop.f32.mrf.mxu0 }
 0x854   :  { %v416_v37 = vadd.f32 %v7704_v14, %v415_v39 }
 0x855   :  { %v6370_v1 = vpop.f32.mrf.mxu0 }
 0x856   :  { %v431_v48 = vadd.f32 %v7704_v14, %v6370_v1 }
 0x857   :  { %v425_v54 = vpop.f32.mrf.mxu0 }
 0x858   :  { %v426_v36 = vadd.f32 %v7704_v14, %v425_v54 }
 0x859   :  { %v6373_v27 = vpop.f32.mrf.mxu0 }
 0x85b   :  { %v435_v58 = vpop.f32.mrf.mxu0 }
 0x85c   :  { %v436_v17 = vadd.f32 %v7704_v14, %v435_v58 }
 0x85d   :  { %v6376_v19 = vpop.f32.mrf.mxu0 }
 0x85e   :  { %v451_v8 = vadd.f32 %v7704_v14, %v6376_v19 }
 0x85f   :  { %v445_v43 = vpop.f32.mrf.mxu0 }
 0x860   :  { %v446_v44 = vadd.f32 %v7704_v14, %v445_v43 }
 0x88d   :  { %v1656_v12 = vpop.permute.xlu0 %1655 }
 0x88e   :  { %6441 = vmatprep.mubr.msk.bf16.mxu1 %vm597_vm1, %v1656_v12  ;;  %v441_v12 = vadd.f32 %v7704_v14, %v6373_v27 }
 0x891   :  { %v1658_v32 = vpop.permute.xlu1 %1657 }
 0x892   :  { %6442 = vmatmul.mubr.msk.bf16.vlgmr.msra.gmra.mxu1 %vm597_vm1, %v1658_v32 }
 0x893   :  { %6450 = vmatpush3.bf16.msra.mxu1 %v7199_v6 }
 0x894   :  { %6451 = vmatprep.subr.bf16.mxu1 %v7211_v10 }
 0x895   :  { %v1660_v15 = vpop.permute.xlu0 %1659 }
 0x896   :  { %6445 = vmatprep.mubr.msk.bf16.mxu1 %vm597_vm1, %v1660_v15 }
 0x897   :  { %6452 = vmatpush3.bf16.msra.mxu1 %v7211_v10 }
 0x898   :  { %6461 = vmatprep.subr.bf16.mxu1 %v7199_v6 }
 0x899   :  { %v1662_v24 = vpop.permute.xlu1 %1661 }
 0x89a   :  { %6446 = vmatmul.mubr.msk.bf16.gmra.mxu1 %vm597_vm1, %v1662_v24 }
 0x952   :  { %v6443_v56 = vpop.f32.mrf.mxu1 }
 0x953   :  { %v1742_v41 = vadd.f32 %v6443_v56, %v426_v36 }
 0x954   :  { %v1709_v7 = vpop.f32.mrf.mxu1 }
 0x955   :  { %v6004_v11 = vmul.f32 -1.442695, %v1742_v41  ;;  %v1740_v26 = vadd.f32 %v1709_v7, %v416_v37 }
 0x956   :  { %v6444_v45 = vpop.f32.mrf.mxu1 }
 0x957   :  { %6710 = vpow2.f32 %v6004_v11  ;;  %v6002_v46 = vmul.f32 -1.442695, %v1740_v26  ;;  %v1743_v28 = vadd.f32 %v6444_v45, %v431_v48 }
 0x958   :  { %v1712_v50 = vpop.f32.mrf.mxu1 }
 0x959   :  { %6712 = vpow2.f32 %v6002_v46  ;;  %v6005_v18 = vmul.f32 -1.442695, %v1743_v28  ;;  %v1741_v23 = vadd.f32 %v1712_v50, %v421_v30 }
 0x95a   :  { %v6447_v3 = vpop.f32.mrf.mxu1 }
 0x95b   :  { %6714 = vpow2.f32 %v6005_v18  ;;  %v6003_v42 = vmul.f32 -1.442695, %v1741_v23  ;;  %v1746_v13 = vadd.f32 %v6447_v3, %v446_v44 }
 0x95c   :  { %v1725_v33 = vpop.f32.mrf.mxu1 }
 0x95d   :  { %6716 = vpow2.f32 %v6003_v42  ;;  %v6008_v32 = vmul.f32 -1.442695, %v1746_v13  ;;  %v1744_v15 = vadd.f32 %v1725_v33, %v436_v17 }
 0x95e   :  { %v6448_v24 = vpop.f32.mrf.mxu1 }
 0x95f   :  { %6718 = vpow2.f32 %v6008_v32  ;;  %v6006_v47 = vmul.f32 -1.442695, %v1744_v15  ;;  %v1747_v39 = vadd.f32 %v6448_v24, %v451_v8 }
 0x960   :  { %v1728_v1 = vpop.f32.mrf.mxu1 }
 0x961   :  { %6720 = vpow2.f32 %v6006_v47  ;;  %v6009_v54 = vmul.f32 -1.442695, %v1747_v39  ;;  %v1745_v58 = vadd.f32 %v1728_v1, %v441_v12 }
 0x963   :  { %6722 = vpow2.f32 %v6009_v54  ;;  %v6007_v36 = vmul.f32 -1.442695, %v1745_v58 }
 0x964   :  { %v6711_v19 = vpop.eup %6710 }
 0x965   :  { %v1774_v37 = vadd.f32 1.0, %v6711_v19  ;;  %6724 = vpow2.f32 %v6007_v36 }
 0x966   :  { %v6713_v56 = vpop.eup %6712 }
 0x967   :  { %v1772_v48 = vadd.f32 1.0, %v6713_v56  ;;  %6726 = vrcp.f32 %v1774_v37 }
 0x968   :  { %v6715_v41 = vpop.eup %6714 }
 0x969   :  { %6728 = vrcp.f32 %v1772_v48  ;;  %v1775_v14 = vadd.f32 1.0, %v6715_v41 }
 0x96a   :  { %v6717_v27 = vpop.eup %6716 }
 0x96b   :  { %v1773_v7 = vadd.f32 1.0, %v6717_v27  ;;  %6730 = vrcp.f32 %v1775_v14 }
 0x96c   :  { %v6719_v43 = vpop.eup %6718 }
 0x96d   :  { %6732 = vrcp.f32 %v1773_v7  ;;  %v1778_v11 = vadd.f32 1.0, %v6719_v43 }
 0x96e   :  { %v6721_v26 = vpop.eup %6720 }
 0x96f   :  { %v1776_v30 = vadd.f32 1.0, %v6721_v26  ;;  %6734 = vrcp.f32 %v1778_v11 }
 0x970   :  { %v6723_v45 = vpop.eup %6722 }
 0x971   :  { %6736 = vrcp.f32 %v1776_v30  ;;  %v1779_v46 = vadd.f32 1.0, %v6723_v45 }
 0x972   :  { %v6725_v28 = vpop.eup %6724 }
 0x973   :  { %v1777_v44 = vadd.f32 1.0, %v6725_v28  ;;  %6738 = vrcp.f32 %v1779_v46 }
 0x974   :  { %v7973_v50 = vpop.eup %6726 }
 0x975   :  { %6740 = vrcp.f32 %v1777_v44  ;;  %v1806_v8 = vmul.f32 2.0, %v7973_v50 }
 0x976   :  { %v7975_v17 = vpop.eup %6728 }
 0x977   :  { %v1804_v18 = vmul.f32 2.0, %v7975_v17  ;;  %v6012_v12 = vadd.f32 -1.0, %v1806_v8 }
 0x978   :  { %v7978_v23 = vpop.eup %6730 }
 0x979   :  { %v6010_v3 = vadd.f32 -1.0, %v1804_v18  ;;  %v1807_v15 = vmul.f32 2.0, %v7978_v23 }
 0x97a   :  { %v7981_v42 = vpop.eup %6732 }
 0x97b   :  { %1828 = vrot.lane.b32.xlu0 %v6010_v3, %s7135_s8  ;;  %v1805_v13 = vmul.f32 2.0, %v7981_v42  ;;  %v6013_v1 = vadd.f32 -1.0, %v1807_v15  ;;  %v1623_v15 = vmul.f32 %v7894_v29, %v7770_v53  ;;  %v1618_v53 = vmul.f32 %v7885_v21, %v7823_v16 }
 0x97c   :  { %v7985_v33 = vpop.eup %6734  ;;  %v1627_v16 = vmul.f32 %v7894_v29, %v7807_v0 }
 0x97d   :  { %v6011_v32 = vadd.f32 -1.0, %v1805_v13  ;;  %v1810_v58 = vmul.f32 2.0, %v7985_v33 }
 0x97e   :  { %v7988_v24 = vpop.eup %6736 }
 0x97f   :  { %1832 = vrot.lane.b32.xlu0 %v6012_v12, %s7135_s8  ;;  %1830 = vrot.lane.b32.xlu1 %v6011_v32, %s7135_s8  ;;  %v1808_v47 = vmul.f32 2.0, %v7988_v24  ;;  %v6016_v37 = vadd.f32 -1.0, %v1810_v58  ;;  %v1615_v32 = vmul.f32 %v7885_v21, %v7782_v49  ;;  %v1625_v49 = vmul.f32 %v7894_v29, %v7786_v35 }
 0x980   :  { %v7993_v39 = vpop.eup %6738 }
 0x981   :  { %v6014_v54 = vadd.f32 -1.0, %v1808_v47  ;;  %v1811_v48 = vmul.f32 2.0, %v7993_v39  ;;  %v1616_v47 = vmul.f32 %v7885_v21, %v7803_v51  ;;  %v1619_v51 = vmul.f32 %v7885_v21, %v7825_v4 }
 0x982   :  { %v7996_v36 = vpop.eup %6740  ;;  %v1620_v4 = vmul.f32 %v7885_v21, %v7837_v25 }
 0x983   :  { %1834 = vrot.lane.b32.xlu1 %v6013_v1, %s7135_s8  ;;  %1836 = vrot.lane.b32.xlu0 %v6014_v54, %s7135_s8  ;;  %v1809_v19 = vmul.f32 2.0, %v7996_v36  ;;  %v6017_v41 = vadd.f32 -1.0, %v1811_v48  ;;  %v1617_v1 = vmul.f32 %v7885_v21, %v7805_v63  ;;  %v8029_v54 = vadd.f32 %v1623_v15, %v1615_v32 }
 0x985   :  { %v6015_v56 = vadd.f32 -1.0, %v1809_v19  ;;  %v1796_v58 = vmul.f32 %v7975_v17, %v8029_v54  ;;  %v1624_v19 = vmul.f32 %v7894_v29, %v7784_v9  ;;  %v8045_v48 = vadd.f32 %v1625_v49, %v1617_v1 }
 0x987   :  { %1840 = vrot.lane.b32.xlu0 %v6016_v37, %s7135_s8  ;;  %1838 = vrot.lane.b32.xlu1 %v6015_v56, %s7135_s8  ;;  %v8043_v63 = vadd.f32 %v1624_v19, %v1616_v47  ;;  %v1798_v35 = vmul.f32 %v7973_v50, %v8045_v48 }
 0x989   :  { %v1797_v9 = vmul.f32 %v7981_v42, %v8043_v63 }
 0x98b   :  { %1842 = vrot.lane.b32.xlu1 %v6017_v41, %s7135_s8  ;;  %v1626_v41 = vmul.f32 %v7894_v29, %v7799_v60  ;;  %v1621_v60 = vmul.f32 %v7885_v21, %v7839_v31  ;;  %v1629_v31 = vmul.f32 %v7894_v29, %v7827_v2 }
 0x9ed   :  { %v1829_v14 = vpop.permute.xlu0 %1828 }
 0x9ee   :  { %v1852_v27 = vmul.f32 %v7975_v17, %v1829_v14 }
 0x9f0   :  { %1868 = vrot.lane.b32.xlu0 %v1852_v27, %s7136_s9 }
 0x9f1   :  { %v1831_v7 = vpop.permute.xlu1 %1830  ;;  %v1833_v43 = vpop.permute.xlu0 %1832 }
 0x9f2   :  { %v1853_v11 = vmul.f32 %v7981_v42, %v1831_v7  ;;  %v1854_v26 = vmul.f32 %v7973_v50, %v1833_v43  ;;  %v8058_v7 = vadd.f32 %v1626_v41, %v1618_v53  ;;  %v62_v41 = vld [vmem:[%s9728_s1 + $0x108] sm:$0xff] }
 0x9f4   :  { %1870 = vrot.lane.b32.xlu1 %v1853_v11, %s7136_s9  ;;  %1872 = vrot.lane.b32.xlu0 %v1854_v26, %s7136_s9  ;;  %v8066_v26 = vadd.f32 %v1627_v16, %v1619_v51  ;;  %v1799_v0 = vmul.f32 %v7978_v23, %v8058_v7  ;;  %v61_v51 = vld [vmem:[%s9728_s1 + $0x100] sm:$0xff] }
 0x9f5   :  { %v1835_v30 = vpop.permute.xlu1 %1834  ;;  %v1837_v45 = vpop.permute.xlu0 %1836  ;;  %6377 = vmatprep.mubr.msk.f32.mxu0 %vm84_vm0, %v61_v51 }
 0x9f6   :  { %v1855_v46 = vmul.f32 %v7978_v23, %v1835_v30  ;;  %v1856_v28 = vmul.f32 %v7988_v24, %v1837_v45  ;;  %v1628_v30 = vmul.f32 %v7894_v29, %v7819_v55  ;;  %v1800_v25 = vmul.f32 %v7988_v24, %v8066_v26  ;;  %6378 = vmatmul.mubr.msk.f32.gmra.mxu0 %vm84_vm0, %v62_v41 }
 0x9f7   :  { %v1622_v55 = vmul.f32 %v7885_v21, %v7847_v20 }
 0x9f8   :  { %1874 = vrot.lane.b32.xlu1 %v1855_v46, %s7136_s9  ;;  %1876 = vrot.lane.b32.xlu0 %v1856_v28, %s7136_s9  ;;  %v8078_v28 = vadd.f32 %v1628_v30, %v1620_v4  ;;  %v64_v4 = vld [vmem:[%s9728_s1 + $0x118] sm:$0xff]  ;;  %v66_v30 = vld [vmem:[%s9728_s1 + $0x128] sm:$0xff] }
 0x9f9   :  { %v1839_v44 = vpop.permute.xlu1 %1838  ;;  %v1841_v18 = vpop.permute.xlu0 %1840 }
 0x9fa   :  { %v1857_v3 = vmul.f32 %v7996_v36, %v1839_v44  ;;  %v1858_v8 = vmul.f32 %v7985_v33, %v1841_v18  ;;  %v1801_v2 = vmul.f32 %v7996_v36, %v8078_v28 }
 0x9fc   :  { %1878 = vrot.lane.b32.xlu1 %v1857_v3, %s7136_s9  ;;  %1880 = vrot.lane.b32.xlu0 %v1858_v8, %s7136_s9  ;;  %v8086_v3 = vadd.f32 %v1629_v31, %v1621_v60  ;;  %v67_v31 = vld [vmem:[%s9728_s1 + $0x130] sm:$0xff] }
 0x9fd   :  { %v1843_v13 = vpop.permute.xlu1 %1842 }
 0x9fe   :  { %v1859_v12 = vmul.f32 %v7993_v39, %v1843_v13  ;;  %v1802_v8 = vmul.f32 %v7985_v33, %v8086_v3  ;;  %v1630_v13 = vmul.f32 %v7894_v29, %v7841_v34 }
 0xa00   :  { %1882 = vrot.lane.b32.xlu1 %v1859_v12, %s7136_s9  ;;  %v8100_v15 = vadd.f32 %v1630_v13, %v1622_v55  ;;  %v8153_v55 = vstv %s1960_s26  ;;  %s7139_s26 = smov 96  }
 0xa01   :  { %v1963_v13 = vmul.f32 %v8153_v55, %v7908_v40 }
 0xa02   :  { %v1803_v47 = vmul.f32 %v7993_v39, %v8100_v15 }
 0xa62   :  { %v1869_v37 = vpop.permute.xlu0 %1868 }
 0xa63   :  { %v8041_v56 = vadd.f32 %v1869_v37, %v1796_v58 }
 0xa65   :  { %6742 = vtanh.f32 %v8041_v56 }
 0xa66   :  { %v1871_v14 = vpop.permute.xlu1 %1870  ;;  %v1873_v27 = vpop.permute.xlu0 %1872 }
 0xa67   :  { %v8062_v43 = vadd.f32 %v1871_v14, %v1797_v9  ;;  %v8064_v11 = vadd.f32 %v1873_v27, %v1798_v35  ;;  %v63_v9 = vld [vmem:[%s9728_s1 + $0x110] sm:$0xff]  ;;  %v65_v27 = vld [vmem:[%s9728_s1 + $0x120] sm:$0xff] }
 0xa68   :  { %6380 = vmatprep.mubr.msk.f32.mxu0 %vm84_vm0, %v63_v9 }
 0xa69   :  { %6744 = vtanh.f32 %v8062_v43  ;;  %6381 = vmatmul.mubr.msk.f32.gmra.mxu0 %vm84_vm0, %v64_v4 }
 0xa6a   :  { %6746 = vtanh.f32 %v8064_v11  ;;  %v1875_v45 = vpop.permute.xlu1 %1874  ;;  %v1877_v46 = vpop.permute.xlu0 %1876  ;;  %6383 = vmatprep.mubr.msk.f32.mxu0 %vm84_vm0, %v65_v27 }
 0xa6b   :  { %v8082_v44 = vadd.f32 %v1875_v45, %v1799_v0  ;;  %v8084_v18 = vadd.f32 %v1877_v46, %v1800_v25  ;;  %v8144_v0 = vstv %s1950_s21 }
 0xa6d   :  { %6748 = vtanh.f32 %v8082_v44  ;;  %6384 = vmatmul.mubr.msk.f32.gmra.mxu0 %vm84_vm0, %v66_v30 }
 0xa6e   :  { %6750 = vtanh.f32 %v8084_v18  ;;  %v1879_v20 = vpop.permute.xlu1 %1878  ;;  %v1881_v21 = vpop.permute.xlu0 %1880  ;;  %6386 = vmatprep.mubr.msk.f32.mxu0 %vm84_vm0, %v67_v31 }
 0xa6f   :  { %v8096_v12 = vadd.f32 %v1879_v20, %v1801_v2  ;;  %v8098_v32 = vadd.f32 %v1881_v21, %v1802_v8  ;;  %v1962_v8 = vmul.f32 %v8153_v55, %v7906_v22  ;;  %v68_v21 = vld [vmem:[%s9728_s1 + $0x138] sm:$0xff] }
 0xa71   :  { %6752 = vtanh.f32 %v8096_v12  ;;  %6387 = vmatmul.mubr.msk.f32.gmra.mxu0 %vm84_vm0, %v68_v21 }
 0xa72   :  { %v6743_v1 = vpop.eup %6742  ;;  %6754 = vtanh.f32 %v8098_v32  ;;  %v1883_v58 = vpop.permute.xlu1 %1882 }
 0xa73   :  { %v8106_v34 = vadd.f32 %v1883_v58, %v1803_v47  ;;  %1916 = vrot.lane.b32.xlu0 %v6743_v1, %s7135_s8 }
 0xa75   :  { %6756 = vtanh.f32 %v8106_v34 }
 0xa76   :  { %v6745_v29 = vpop.eup %6744 }
 0xa77   :  { %v6747_v19 = vpop.eup %6746  ;;  %1918 = vrot.lane.b32.xlu1 %v6745_v29, %s7135_s8  ;;  %v1964_v29 = vmul.f32 %v8153_v55, %v7920_v61 }
 0xa78   :  { %1920 = vrot.lane.b32.xlu0 %v6747_v19, %s7135_s8  ;;  %v1965_v19 = vmul.f32 %v8153_v55, %v7922_v62  ;;  %v1966_v62 = vmul.f32 %v8153_v55, %v7935_v52  ;;  %v1968_v52 = vmul.f32 %v8153_v55, %v7949_v57 }
 0xa7a   :  { %v6749_v49 = vpop.eup %6748 }
 0xa7b   :  { %v6751_v53 = vpop.eup %6750  ;;  %1922 = vrot.lane.b32.xlu1 %v6749_v49, %s7135_s8 }
 0xa7c   :  { %1924 = vrot.lane.b32.xlu0 %v6751_v53, %s7135_s8 }
 0xa7e   :  { %v6753_v37 = vpop.eup %6752 }
 0xa7f   :  { %v6755_v35 = vpop.eup %6754  ;;  %1926 = vrot.lane.b32.xlu1 %v6753_v37, %s7135_s8 }
 0xa80   :  { %1928 = vrot.lane.b32.xlu0 %v6755_v35, %s7135_s8  ;;  %v1967_v35 = vmul.f32 %v8153_v55, %v7937_v38  ;;  %v1969_v38 = vmul.f32 %v8153_v55, %v7951_v59 }
 0xa82   :  { %v6757_v16 = vpop.eup %6756 }
 0xa83   :  { %1930 = vrot.lane.b32.xlu1 %v6757_v16, %s7135_s8 }
 0xae5   :  { %v1917_v14 = vpop.permute.xlu0 %1916 }
 0xae6   :  { %v1940_v60 = vmul.f32 %v7975_v17, %v1917_v14 }
 0xae8   :  { %v1952_v45 = vmul.f32 %v8144_v0, %v1940_v60 }
 0xae9   :  { %v1919_v25 = vpop.permute.xlu1 %1918 }
 0xaea   :  { %v1941_v17 = vmul.f32 %v7981_v42, %v1919_v25  ;;  %v1921_v46 = vpop.permute.xlu0 %1920  ;;  %v8165_v47 = vadd.f32 %v1962_v8, %v1952_v45 }
 0xaeb   :  { %v1942_v2 = vmul.f32 %v7973_v50, %v1921_v46 }
 0xaec   :  { %v1953_v20 = vmul.f32 %v8144_v0, %v1941_v17 }
 0xaed   :  { %v1923_v42 = vpop.permute.xlu1 %1922  ;;  %v1954_v50 = vmul.f32 %v8144_v0, %v1942_v2  ;;  %v6379_v2 = vpop.f32.mrf.mxu0 }
 0xaee   :  { %v8167_v1 = vadd.f32 %v1963_v13, %v1953_v20  ;;  %v1943_v22 = vmul.f32 %v7978_v23, %v1923_v42  ;;  %v1925_v58 = vpop.permute.xlu0 %1924 }
 0xaef   :  { %v1944_v40 = vmul.f32 %v7988_v24, %v1925_v58  ;;  %v8179_v51 = vadd.f32 %v1964_v29, %v1954_v50  ;;  %v455_v8 = vpop.f32.mrf.mxu0 }
 0xaf0   :  { %v1955_v49 = vmul.f32 %v8144_v0, %v1943_v22  ;;  %v2010_v53 = vpack.c.bf16 %v8167_v1, %v8165_v47 }
 0xaf1   :  { %v1927_v37 = vpop.permute.xlu1 %1926  ;;  %v1956_v23 = vmul.f32 %v8144_v0, %v1944_v40 }
 0xaf2   :  { %v8181_v41 = vadd.f32 %v1965_v19, %v1955_v49  ;;  %v1945_v24 = vmul.f32 %v7996_v36, %v1927_v37  ;;  %v1929_v9 = vpop.permute.xlu0 %1928  ;;  %2018 = vrot.lane.b32.xlu0 %v2010_v53, %s7136_s9 }
 0xaf3   :  { %v1946_v61 = vmul.f32 %v7985_v33, %v1929_v9  ;;  %v8194_v27 = vadd.f32 %v1966_v62, %v1956_v23 }
 0xaf4   :  { %v1957_v16 = vmul.f32 %v8144_v0, %v1945_v24  ;;  %v2011_v4 = vpack.c.bf16 %v8181_v41, %v8179_v51 }
 0xaf5   :  { %v1931_v14 = vpop.permute.xlu1 %1930  ;;  %v1958_v60 = vmul.f32 %v8144_v0, %v1946_v61 }
 0xaf6   :  { %v8196_v36 = vadd.f32 %v1967_v35, %v1957_v16  ;;  %v1947_v33 = vmul.f32 %v7993_v39, %v1931_v14  ;;  %2020 = vrot.lane.b32.xlu1 %v2011_v4, %s7136_s9 }
 0xaf7   :  { %v8208_v31 = vadd.f32 %v1968_v52, %v1958_v60 }
 0xaf8   :  { %v1959_v30 = vmul.f32 %v8144_v0, %v1947_v33  ;;  %v2012_v25 = vpack.c.bf16 %v8196_v36, %v8194_v27 }
 0xafa   :  { %v8210_v45 = vadd.f32 %v1969_v38, %v1959_v30  ;;  %2022 = vrot.lane.b32.xlu0 %v2012_v25, %s7136_s9 }
 0xafc   :  { %v2013_v39 = vpack.c.bf16 %v8210_v45, %v8208_v31 }
 0xafe   :  { %2024 = vrot.lane.b32.xlu1 %v2013_v39, %s7136_s9 }
 0xb29   :  { %v6382_v13 = vpop.f32.mrf.mxu0 }
 0xb2b   :  { %v465_v20 = vpop.f32.mrf.mxu0 }
 0xb2d   :  { %v6385_v21 = vpop.f32.mrf.mxu0 }
 0xb2f   :  { %v475_v42 = vpop.f32.mrf.mxu0 }
 0xb31   :  { %v6388_v22 = vpop.f32.mrf.mxu0 }
 0xb33   :  { %v485_v49 = vpop.f32.mrf.mxu0 }
 0xb64   :  { %v2019_v57 = vpop.permute.xlu0 %2018 }
 0xb65   :  { %6453 = vmatprep.mubr.msk.bf16.mxu1 %vm597_vm1, %v2019_v57 }
 0xb68   :  { %v2021_v59 = vpop.permute.xlu1 %2020 }
 0xb69   :  { %6454 = vmatmul.mubr.msk.bf16.vlgmr.msra.gmra.mxu1 %vm597_vm1, %v2021_v59 }
 0xb6a   :  { %6462 = vmatpush3.bf16.msra.mxu1 %v7199_v6  ;;  %v8226_v6 = vld [vmem:[%s9732_s5 + $0x10] ss:$0 sm:$0xff] }
 0xb6b   :  { %6463 = vmatprep.subr.bf16.mxu1 %v7211_v10  ;;  %v466_v50 = vadd.f32 %v8226_v6, %v465_v20  ;;  %v456_v58 = vadd.f32 %v8226_v6, %v455_v8  ;;  %v471_v40 = vadd.f32 %v8226_v6, %v6382_v13  ;;  %v461_v23 = vadd.f32 %v8226_v6, %v6379_v2 }
 0xb6c   :  { %v2023_v17 = vpop.permute.xlu0 %2022  ;;  %v486_v62 = vadd.f32 %v8226_v6, %v485_v49  ;;  %v476_v16 = vadd.f32 %v8226_v6, %v475_v42  ;;  %v491_v33 = vadd.f32 %v8226_v6, %v6388_v22  ;;  %v481_v25 = vadd.f32 %v8226_v6, %v6385_v21 }
 0xb6d   :  { %6457 = vmatprep.mubr.msk.bf16.mxu1 %vm597_vm1, %v2023_v17 }
 0xb6e   :  { %6464 = vmatpush3.bf16.msra.mxu1 %v7211_v10 }
 0xb70   :  { %v2025_v46 = vpop.permute.xlu1 %2024 }
 0xb71   :  { %6458 = vmatmul.mubr.msk.bf16.gmra.mxu1 %vm597_vm1, %v2025_v46 }
 0xc29   :  { %v6455_v10 = vpop.f32.mrf.mxu1 }
 0xc2a   :  { %v2105_v29 = vadd.f32 %v6455_v10, %v466_v50 }
 0xc2b   :  { %v2072_v19 = vpop.f32.mrf.mxu1 }
 0xc2c   :  { %v6024_v53 = vmul.f32 -1.442695, %v2105_v29  ;;  %v2103_v37 = vadd.f32 %v2072_v19, %v456_v58 }
 0xc2d   :  { %v6456_v24 = vpop.f32.mrf.mxu1 }
 0xc2e   :  { %6758 = vpow2.f32 %v6024_v53  ;;  %v6022_v9 = vmul.f32 -1.442695, %v2103_v37  ;;  %v2106_v61 = vadd.f32 %v6456_v24, %v471_v40 }
 0xc2f   :  { %v2075_v35 = vpop.f32.mrf.mxu1 }
 0xc30   :  { %6760 = vpow2.f32 %v6022_v9  ;;  %v6025_v4 = vmul.f32 -1.442695, %v2106_v61  ;;  %v2104_v14 = vadd.f32 %v2075_v35, %v461_v23 }
 0xc31   :  { %v6459_v60 = vpop.f32.mrf.mxu1 }
 0xc32   :  { %6762 = vpow2.f32 %v6025_v4  ;;  %v6023_v52 = vmul.f32 -1.442695, %v2104_v14  ;;  %v2109_v38 = vadd.f32 %v6459_v60, %v486_v62 }
 0xc33   :  { %v2088_v30 = vpop.f32.mrf.mxu1 }
 0xc34   :  { %6764 = vpow2.f32 %v6023_v52  ;;  %v6028_v39 = vmul.f32 -1.442695, %v2109_v38  ;;  %v2107_v57 = vadd.f32 %v2088_v30, %v476_v16 }
 0xc35   :  { %v6460_v59 = vpop.f32.mrf.mxu1 }
 0xc36   :  { %6766 = vpow2.f32 %v6028_v39  ;;  %v6026_v17 = vmul.f32 -1.442695, %v2107_v57  ;;  %v2110_v46 = vadd.f32 %v6460_v59, %v491_v33 }
 0xc37   :  { %v2091_v2 = vpop.f32.mrf.mxu1 }
 0xc38   :  { %6768 = vpow2.f32 %v6026_v17  ;;  %v6029_v8 = vmul.f32 -1.442695, %v2110_v46  ;;  %v2108_v13 = vadd.f32 %v2091_v2, %v481_v25 }
 0xc3a   :  { %6770 = vpow2.f32 %v6029_v8  ;;  %v6027_v20 = vmul.f32 -1.442695, %v2108_v13 }
 0xc3b   :  { %v6759_v42 = vpop.eup %6758 }
 0xc3c   :  { %v2137_v50 = vadd.f32 1.0, %v6759_v42  ;;  %6772 = vpow2.f32 %v6027_v20 }
 0xc3d   :  { %v6761_v22 = vpop.eup %6760 }
 0xc3e   :  { %v2135_v58 = vadd.f32 1.0, %v6761_v22  ;;  %6774 = vrcp.f32 %v2137_v50 }
 0xc3f   :  { %v6763_v10 = vpop.eup %6762 }
 0xc40   :  { %6776 = vrcp.f32 %v2135_v58  ;;  %v2138_v21 = vadd.f32 1.0, %v6763_v10 }
 0xc41   :  { %v6765_v40 = vpop.eup %6764 }
 0xc42   :  { %v2136_v29 = vadd.f32 1.0, %v6765_v40  ;;  %6778 = vrcp.f32 %v2138_v21 }
 0xc43   :  { %v6767_v19 = vpop.eup %6766 }
 0xc44   :  { %6780 = vrcp.f32 %v2136_v29  ;;  %v2141_v49 = vadd.f32 1.0, %v6767_v19 }
 0xc45   :  { %v6769_v53 = vpop.eup %6768 }
 0xc46   :  { %v2139_v37 = vadd.f32 1.0, %v6769_v53  ;;  %6782 = vrcp.f32 %v2141_v49 }
 0xc47   :  { %v6771_v23 = vpop.eup %6770 }
 0xc48   :  { %6784 = vrcp.f32 %v2139_v37  ;;  %v2142_v24 = vadd.f32 1.0, %v6771_v23 }
 0xc49   :  { %v6773_v9 = vpop.eup %6772 }
 0xc4a   :  { %v2140_v61 = vadd.f32 1.0, %v6773_v9  ;;  %6786 = vrcp.f32 %v2142_v24 }
 0xc4b   :  { %v8236_v62 = vpop.eup %6774 }
 0xc4c   :  { %6788 = vrcp.f32 %v2140_v61  ;;  %v2169_v60 = vmul.f32 2.0, %v8236_v62 }
 0xc4d   :  { %v8238_v35 = vpop.eup %6776 }
 0xc4e   :  { %v2167_v16 = vmul.f32 2.0, %v8238_v35  ;;  %v6032_v30 = vadd.f32 -1.0, %v2169_v60 }
 0xc4f   :  { %v8241_v4 = vpop.eup %6778 }
 0xc50   :  { %v6030_v14 = vadd.f32 -1.0, %v2167_v16  ;;  %v2170_v39 = vmul.f32 2.0, %v8241_v4 }
 0xc51   :  { %v8244_v33 = vpop.eup %6780 }
 0xc52   :  { %2191 = vrot.lane.b32.xlu0 %v6030_v14, %s7135_s8  ;;  %v2168_v52 = vmul.f32 2.0, %v8244_v33  ;;  %v6033_v46 = vadd.f32 -1.0, %v2170_v39  ;;  %v1979_v39 = vmul.f32 %v8144_v0, %v8062_v43  ;;  %v1982_v43 = vmul.f32 %v8144_v0, %v8084_v18 }
 0xc53   :  { %v8248_v38 = vpop.eup %6782  ;;  %v1983_v18 = vmul.f32 %v8144_v0, %v8096_v12 }
 0xc54   :  { %v6031_v25 = vadd.f32 -1.0, %v2168_v52  ;;  %v2173_v8 = vmul.f32 2.0, %v8248_v38 }
 0xc55   :  { %v8251_v57 = vpop.eup %6784 }
 0xc56   :  { %2195 = vrot.lane.b32.xlu0 %v6032_v30, %s7135_s8  ;;  %2193 = vrot.lane.b32.xlu1 %v6031_v25, %s7135_s8  ;;  %v2171_v59 = vmul.f32 2.0, %v8251_v57  ;;  %v6036_v42 = vadd.f32 -1.0, %v2173_v8  ;;  %v1978_v30 = vmul.f32 %v8144_v0, %v8041_v56  ;;  %v1986_v25 = vmul.f32 %v8153_v55, %v8029_v54 }
 0xc57   :  { %v8256_v17 = vpop.eup %6786  ;;  %v1987_v8 = vmul.f32 %v8153_v55, %v8043_v63  ;;  %v1988_v56 = vmul.f32 %v8153_v55, %v8045_v48  ;;  %v1981_v54 = vmul.f32 %v8144_v0, %v8082_v44  ;;  %v1990_v44 = vmul.f32 %v8153_v55, %v8066_v26 }
 0xc58   :  { %v6034_v2 = vadd.f32 -1.0, %v2171_v59  ;;  %v2174_v22 = vmul.f32 2.0, %v8256_v17  ;;  %v1980_v59 = vmul.f32 %v8144_v0, %v8064_v11 }
 0xc59   :  { %v8259_v13 = vpop.eup %6788  ;;  %v8306_v11 = vadd.f32 %v1987_v8, %v1979_v39 }
 0xc5a   :  { %2197 = vrot.lane.b32.xlu1 %v6033_v46, %s7135_s8  ;;  %2199 = vrot.lane.b32.xlu0 %v6034_v2, %s7135_s8  ;;  %v2172_v20 = vmul.f32 2.0, %v8259_v13  ;;  %v6037_v58 = vadd.f32 -1.0, %v2174_v22  ;;  %v8292_v46 = vadd.f32 %v1986_v25, %v1978_v30  ;;  %v1989_v22 = vmul.f32 %v8153_v55, %v8058_v7 }
 0xc5b   :  { %v2160_v63 = vmul.f32 %v8244_v33, %v8306_v11  ;;  %v1984_v7 = vmul.f32 %v8144_v0, %v8098_v32  ;;  %v1992_v32 = vmul.f32 %v8153_v55, %v8086_v3 }
 0xc5c   :  { %v6035_v50 = vadd.f32 -1.0, %v2172_v20  ;;  %v2159_v2 = vmul.f32 %v8238_v35, %v8292_v46 }
 0xc5e   :  { %2203 = vrot.lane.b32.xlu0 %v6036_v42, %s7135_s8  ;;  %2201 = vrot.lane.b32.xlu1 %v6035_v50, %s7135_s8  ;;  %v8308_v50 = vadd.f32 %v1988_v56, %v1980_v59 }
 0xc60   :  { %v2161_v48 = vmul.f32 %v8236_v62, %v8308_v50 }
 0xc62   :  { %2205 = vrot.lane.b32.xlu1 %v6037_v58, %s7135_s8 }
 0xcc4   :  { %v2192_v10 = vpop.permute.xlu0 %2191 }
 0xcc5   :  { %v2215_v21 = vmul.f32 %v8238_v35, %v2192_v10 }
 0xcc7   :  { %2231 = vrot.lane.b32.xlu0 %v2215_v21, %s7136_s9  ;;  %v8321_v21 = vadd.f32 %v1989_v22, %v1981_v54  ;;  %v71_v22 = vld [vmem:[%s9728_s1 + $0x150] sm:$0xff] }
 0xcc8   :  { %v2194_v40 = vpop.permute.xlu1 %2193  ;;  %v2196_v29 = vpop.permute.xlu0 %2195 }
 0xcc9   :  { %v2216_v19 = vmul.f32 %v8244_v33, %v2194_v40  ;;  %v2217_v49 = vmul.f32 %v8236_v62, %v2196_v29  ;;  %v2162_v26 = vmul.f32 %v8241_v4, %v8321_v21 }
 0xccb   :  { %2233 = vrot.lane.b32.xlu1 %v2216_v19, %s7136_s9  ;;  %2235 = vrot.lane.b32.xlu0 %v2217_v49, %s7136_s9  ;;  %v8329_v19 = vadd.f32 %v1990_v44, %v1982_v43  ;;  %v1991_v49 = vmul.f32 %v8153_v55, %v8078_v28  ;;  %v1985_v28 = vmul.f32 %v8144_v0, %v8106_v34  ;;  %v70_v43 = vld [vmem:[%s9728_s1 + $0x148] sm:$0xff]  ;;  %v72_v44 = vld [vmem:[%s9728_s1 + $0x158] sm:$0xff] }
 0xccc   :  { %v2198_v53 = vpop.permute.xlu1 %2197  ;;  %v2200_v37 = vpop.permute.xlu0 %2199 }
 0xccd   :  { %v2218_v23 = vmul.f32 %v8241_v4, %v2198_v53  ;;  %v2219_v24 = vmul.f32 %v8251_v57, %v2200_v37  ;;  %v2163_v12 = vmul.f32 %v8251_v57, %v8329_v19 }
 0xccf   :  { %2237 = vrot.lane.b32.xlu1 %v2218_v23, %s7136_s9  ;;  %2239 = vrot.lane.b32.xlu0 %v2219_v24, %s7136_s9  ;;  %v8341_v23 = vadd.f32 %v1991_v49, %v1983_v18  ;;  %v8407_v49 = vstv %s2313_s23 }
 0xcd0   :  { %v2202_v9 = vpop.permute.xlu1 %2201  ;;  %v2204_v61 = vpop.permute.xlu0 %2203 }
 0xcd1   :  { %v2220_v16 = vmul.f32 %v8259_v13, %v2202_v9  ;;  %v2221_v14 = vmul.f32 %v8248_v38, %v2204_v61  ;;  %v8349_v61 = vadd.f32 %v1992_v32, %v1984_v7  ;;  %v2164_v3 = vmul.f32 %v8259_v13, %v8341_v23  ;;  %v74_v7 = vld [vmem:[%s9728_s1 + $0x168] sm:$0xff] }
 0xcd3   :  { %2241 = vrot.lane.b32.xlu1 %v2220_v16, %s7136_s9  ;;  %2243 = vrot.lane.b32.xlu0 %v2221_v14, %s7136_s9  ;;  %v2165_v16 = vmul.f32 %v8248_v38, %v8349_v61  ;;  %v1993_v14 = vmul.f32 %v8153_v55, %v8100_v15 }
 0xcd4   :  { %v2206_v60 = vpop.permute.xlu1 %2205 }
 0xcd5   :  { %v2222_v52 = vmul.f32 %v8256_v17, %v2206_v60  ;;  %v8363_v30 = vadd.f32 %v1993_v14, %v1985_v28 }
 0xcd7   :  { %2245 = vrot.lane.b32.xlu1 %v2222_v52, %s7136_s9  ;;  %v2166_v25 = vmul.f32 %v8256_v17, %v8363_v30 }
 0xd39   :  { %v2232_v20 = vpop.permute.xlu0 %2231 }
 0xd3a   :  { %v8304_v42 = vadd.f32 %v2232_v20, %v2159_v2  ;;  %v69_v20 = vld [vmem:[%s9728_s1 + $0x140] sm:$0xff] }
 0xd3b   :  { %6389 = vmatprep.mubr.msk.f32.mxu0 %vm84_vm0, %v69_v20 }
 0xd3c   :  { %6790 = vtanh.f32 %v8304_v42  ;;  %6390 = vmatmul.mubr.msk.f32.gmra.mxu0 %vm84_vm0, %v70_v43 }
 0xd3d   :  { %v2234_v58 = vpop.permute.xlu1 %2233  ;;  %v2236_v10 = vpop.permute.xlu0 %2235  ;;  %6392 = vmatprep.mubr.msk.f32.mxu0 %vm84_vm0, %v71_v22 }
 0xd3e   :  { %v8325_v40 = vadd.f32 %v2234_v58, %v2160_v63  ;;  %v8327_v29 = vadd.f32 %v2236_v10, %v2161_v48  ;;  %v73_v58 = vld [vmem:[%s9728_s1 + $0x160] sm:$0xff] }
 0xd40   :  { %6792 = vtanh.f32 %v8325_v40  ;;  %6393 = vmatmul.mubr.msk.f32.gmra.mxu0 %vm84_vm0, %v72_v44 }
 0xd41   :  { %6794 = vtanh.f32 %v8327_v29  ;;  %v2238_v53 = vpop.permute.xlu1 %2237  ;;  %v2240_v37 = vpop.permute.xlu0 %2239  ;;  %6395 = vmatprep.mubr.msk.f32.mxu0 %vm84_vm0, %v73_v58 }
 0xd42   :  { %v8345_v24 = vadd.f32 %v2238_v53, %v2162_v26  ;;  %v8347_v9 = vadd.f32 %v2240_v37, %v2163_v12  ;;  %v75_v12 = vld [vmem:[%s9728_s1 + $0x170] sm:$0xff]  ;;  %v8416_v37 = vstv %s2323_s28  ;;  %s2676_s28 = scvt.s32.f32 %s2675_s27 }
 0xd43   :  { %v2330_v22 = vmul.f32 %v8416_v37, %v8196_v36  ;;  %v2332_v36 = vmul.f32 %v8416_v37, %v8210_v45 }
 0xd44   :  { %6796 = vtanh.f32 %v8345_v24  ;;  %6396 = vmatmul.mubr.msk.f32.gmra.mxu0 %vm84_vm0, %v74_v7  ;;  %s2686_s12 = ssub.f32 1.0, %s2676_s28 }
 0xd45   :  { %6798 = vtanh.f32 %v8347_v9  ;;  %v2242_v34 = vpop.permute.xlu1 %2241  ;;  %v2244_v0 = vpop.permute.xlu0 %2243  ;;  %6398 = vmatprep.mubr.msk.f32.mxu0 %vm84_vm0, %v75_v12 }
 0xd46   :  { %v8359_v60 = vadd.f32 %v2242_v34, %v2164_v3  ;;  %v8361_v52 = vadd.f32 %v2244_v0, %v2165_v16  ;;  %v2325_v3 = vmul.f32 %v8416_v37, %v8165_v47  ;;  %v2326_v16 = vmul.f32 %v8416_v37, %v8167_v1  ;;  %v76_v34 = vld [vmem:[%s9728_s1 + $0x178] sm:$0xff] }
 0xd48   :  { %6800 = vtanh.f32 %v8359_v60  ;;  %6399 = vmatmul.mubr.msk.f32.gmra.mxu0 %vm84_vm0, %v76_v34 }
 0xd49   :  { %v6791_v39 = vpop.eup %6790  ;;  %6802 = vtanh.f32 %v8361_v52  ;;  %v2246_v59 = vpop.permute.xlu1 %2245 }
 0xd4a   :  { %v8369_v15 = vadd.f32 %v2246_v59, %v2166_v25  ;;  %2279 = vrot.lane.b32.xlu0 %v6791_v39, %s7135_s8  ;;  %v2327_v59 = vmul.f32 %v8416_v37, %v8179_v51 }
 0xd4c   :  { %6804 = vtanh.f32 %v8369_v15 }
 0xd4d   :  { %v6793_v55 = vpop.eup %6792 }
 0xd4e   :  { %v6795_v2 = vpop.eup %6794  ;;  %2281 = vrot.lane.b32.xlu1 %v6793_v55, %s7135_s8  ;;  %v2328_v55 = vmul.f32 %v8416_v37, %v8181_v41  ;;  %v2329_v41 = vmul.f32 %v8416_v37, %v8194_v27  ;;  %v2331_v27 = vmul.f32 %v8416_v37, %v8208_v31 }
 0xd4f   :  { %2283 = vrot.lane.b32.xlu0 %v6795_v2, %s7135_s8 }
 0xd51   :  { %v6797_v8 = vpop.eup %6796 }
 0xd52   :  { %v6799_v56 = vpop.eup %6798  ;;  %2285 = vrot.lane.b32.xlu1 %v6797_v8, %s7135_s8 }
 0xd53   :  { %2287 = vrot.lane.b32.xlu0 %v6799_v56, %s7135_s8 }
 0xd55   :  { %v6801_v54 = vpop.eup %6800 }
 0xd56   :  { %v6803_v63 = vpop.eup %6802  ;;  %2289 = vrot.lane.b32.xlu1 %v6801_v54, %s7135_s8 }
 0xd57   :  { %2291 = vrot.lane.b32.xlu0 %v6803_v63, %s7135_s8 }
 0xd59   :  { %v6805_v48 = vpop.eup %6804 }
 0xd5a   :  { %2293 = vrot.lane.b32.xlu1 %v6805_v48, %s7135_s8 }
 0xdbc   :  { %v2280_v18 = vpop.permute.xlu0 %2279 }
 0xdbd   :  { %v2303_v10 = vmul.f32 %v8238_v35, %v2280_v18 }
 0xdbf   :  { %v2315_v32 = vmul.f32 %v8407_v49, %v2303_v10 }
 0xdc0   :  { %v2282_v26 = vpop.permute.xlu1 %2281 }
 0xdc1   :  { %v2304_v35 = vmul.f32 %v8244_v33, %v2282_v26  ;;  %v2284_v53 = vpop.permute.xlu0 %2283  ;;  %v8428_v0 = vadd.f32 %v2325_v3, %v2315_v32 }
 0xdc2   :  { %v2305_v28 = vmul.f32 %v8236_v62, %v2284_v53 }
 0xdc3   :  { %v2316_v14 = vmul.f32 %v8407_v49, %v2304_v35 }
 0xdc4   :  { %v2286_v33 = vpop.permute.xlu1 %2285  ;;  %v2317_v62 = vmul.f32 %v8407_v49, %v2305_v28 }
 0xdc5   :  { %v8430_v25 = vadd.f32 %v2326_v16, %v2316_v14  ;;  %v2306_v47 = vmul.f32 %v8241_v4, %v2286_v33  ;;  %v2288_v39 = vpop.permute.xlu0 %2287 }
 0xdc6   :  { %v2307_v1 = vmul.f32 %v8251_v57, %v2288_v39  ;;  %v8442_v54 = vadd.f32 %v2327_v59, %v2317_v62 }
 0xdc7   :  { %v2318_v2 = vmul.f32 %v8407_v49, %v2306_v47  ;;  %v2373_v8 = vpack.c.bf16 %v8430_v25, %v8428_v0 }
 0xdc8   :  { %v2290_v56 = vpop.permute.xlu1 %2289  ;;  %v2319_v4 = vmul.f32 %v8407_v49, %v2307_v1 }
 0xdc9   :  { %v8444_v20 = vadd.f32 %v2328_v55, %v2318_v2  ;;  %v2308_v57 = vmul.f32 %v8259_v13, %v2290_v56  ;;  %v2292_v43 = vpop.permute.xlu0 %2291  ;;  %2381 = vrot.lane.b32.xlu0 %v2373_v8, %s7136_s9 }
 0xdca   :  { %v2309_v51 = vmul.f32 %v8248_v38, %v2292_v43  ;;  %v8457_v18 = vadd.f32 %v2329_v41, %v2319_v4 }
 0xdcb   :  { %v2320_v63 = vmul.f32 %v8407_v49, %v2308_v57  ;;  %v2374_v48 = vpack.c.bf16 %v8444_v20, %v8442_v54 }
 0xdcc   :  { %v2294_v44 = vpop.permute.xlu1 %2293  ;;  %v2321_v58 = vmul.f32 %v8407_v49, %v2309_v51 }
 0xdcd   :  { %v8459_v13 = vadd.f32 %v2330_v22, %v2320_v63  ;;  %v2310_v38 = vmul.f32 %v8256_v17, %v2294_v44  ;;  %2383 = vrot.lane.b32.xlu1 %v2374_v48, %s7136_s9 }
 0xdce   :  { %v8471_v26 = vadd.f32 %v2331_v27, %v2321_v58 }
 0xdcf   :  { %v2322_v10 = vmul.f32 %v8407_v49, %v2310_v38  ;;  %v2375_v7 = vpack.c.bf16 %v8459_v13, %v8457_v18 }
 0xdd1   :  { %v8473_v12 = vadd.f32 %v2332_v36, %v2322_v10  ;;  %2385 = vrot.lane.b32.xlu0 %v2375_v7, %s7136_s9 }
 0xdd3   :  { %v2376_v17 = vpack.c.bf16 %v8473_v12, %v8471_v26 }
 0xdd5   :  { %2387 = vrot.lane.b32.xlu1 %v2376_v17, %s7136_s9 }
 0xdfc   :  { %v6391_v53 = vpop.f32.mrf.mxu0 }
 0xdfd   :  { %v501_v4 = vadd.f32 %v8226_v6, %v6391_v53 }
 0xdfe   :  { %v495_v28 = vpop.f32.mrf.mxu0 }
 0xdff   :  { %v496_v47 = vadd.f32 %v8226_v6, %v495_v28 }
 0xe00   :  { %v6394_v3 = vpop.f32.mrf.mxu0 }
 0xe01   :  { %v511_v1 = vadd.f32 %v8226_v6, %v6394_v3 }
 0xe02   :  { %v505_v16 = vpop.f32.mrf.mxu0 }
 0xe03   :  { %v506_v33 = vadd.f32 %v8226_v6, %v505_v16 }
 0xe04   :  { %v6397_v14 = vpop.f32.mrf.mxu0 }
 0xe05   :  { %v521_v7 = vadd.f32 %v8226_v6, %v6397_v14 }
 0xe06   :  { %v515_v34 = vpop.f32.mrf.mxu0 }
 0xe07   :  { %v516_v63 = vadd.f32 %v8226_v6, %v515_v34 }
 0xe08   :  { %v6400_v62 = vpop.f32.mrf.mxu0 }
 0xe09   :  { %v531_v38 = vadd.f32 %v8226_v6, %v6400_v62 }
 0xe0a   :  { %v525_v2 = vpop.f32.mrf.mxu0 }
 0xe0b   :  { %v526_v41 = vadd.f32 %v8226_v6, %v525_v2 }
 0xe3b   :  { %v2382_v31 = vpop.permute.xlu0 %2381 }
 0xe3c   :  { %6465 = vmatprep.mubr.msk.bf16.mxu1 %vm597_vm1, %v2382_v31 }
 0xe3f   :  { %v2384_v45 = vpop.permute.xlu1 %2383 }
 0xe40   :  { %6466 = vmatmul.mubr.msk.bf16.vlgmr.msra.gmra.mxu1 %vm597_vm1, %v2384_v45 }
 0xe43   :  { %v2386_v32 = vpop.permute.xlu0 %2385 }
 0xe44   :  { %6469 = vmatprep.mubr.msk.bf16.mxu1 %vm597_vm1, %v2386_v32 }
 0xe47   :  { %v2388_v35 = vpop.permute.xlu1 %2387 }
 0xe48   :  { %6470 = vmatmul.mubr.msk.bf16.gmra.mxu1 %vm597_vm1, %v2388_v35 }
 0xf00   :  { %v6467_v39 = vpop.f32.mrf.mxu1 }
 0xf01   :  { %v2468_v59 = vadd.f32 %v6467_v39, %v506_v33 }
 0xf02   :  { %v2435_v55 = vpop.f32.mrf.mxu1 }
 0xf03   :  { %v6044_v8 = vmul.f32 -1.442695, %v2468_v59  ;;  %v2466_v56 = vadd.f32 %v2435_v55, %v496_v47 }
 0xf04   :  { %v6468_v57 = vpop.f32.mrf.mxu1 }
 0xf05   :  { %6806 = vpow2.f32 %v6044_v8  ;;  %v6042_v43 = vmul.f32 -1.442695, %v2466_v56  ;;  %v2469_v51 = vadd.f32 %v6468_v57, %v511_v1 }
 0xf06   :  { %v2438_v22 = vpop.f32.mrf.mxu1 }
 0xf07   :  { %6808 = vpow2.f32 %v6042_v43  ;;  %v6045_v48 = vmul.f32 -1.442695, %v2469_v51  ;;  %v2467_v44 = vadd.f32 %v2438_v22, %v501_v4 }
 0xf08   :  { %v6471_v58 = vpop.f32.mrf.mxu1 }
 0xf09   :  { %6810 = vpow2.f32 %v6045_v48  ;;  %v6043_v27 = vmul.f32 -1.442695, %v2467_v44  ;;  %v2472_v36 = vadd.f32 %v6471_v58, %v526_v41 }
 0xf0a   :  { %v2451_v10 = vpop.f32.mrf.mxu1 }
 0xf0b   :  { %6812 = vpow2.f32 %v6043_v27  ;;  %v6048_v17 = vmul.f32 -1.442695, %v2472_v36  ;;  %v2470_v31 = vadd.f32 %v2451_v10, %v516_v63 }
 0xf0c   :  { %v6472_v45 = vpop.f32.mrf.mxu1 }
 0xf0d   :  { %6814 = vpow2.f32 %v6048_v17  ;;  %v6046_v32 = vmul.f32 -1.442695, %v2470_v31  ;;  %v2473_v35 = vadd.f32 %v6472_v45, %v531_v38 }
 0xf0e   :  { %v2454_v53 = vpop.f32.mrf.mxu1 }
 0xf0f   :  { %6816 = vpow2.f32 %v6046_v32  ;;  %v6049_v28 = vmul.f32 -1.442695, %v2473_v35  ;;  %v2471_v3 = vadd.f32 %v2454_v53, %v521_v7 }
 0xf11   :  { %6818 = vpow2.f32 %v6049_v28  ;;  %v6047_v16 = vmul.f32 -1.442695, %v2471_v3 }
 0xf12   :  { %v6807_v34 = vpop.eup %6806 }
 0xf13   :  { %v2500_v33 = vadd.f32 1.0, %v6807_v34  ;;  %6820 = vpow2.f32 %v6047_v16 }
 0xf14   :  { %v6809_v62 = vpop.eup %6808 }
 0xf15   :  { %v2498_v47 = vadd.f32 1.0, %v6809_v62  ;;  %6822 = vrcp.f32 %v2500_v33 }
 0xf16   :  { %v6811_v39 = vpop.eup %6810 }
 0xf17   :  { %6824 = vrcp.f32 %v2498_v47  ;;  %v2501_v6 = vadd.f32 1.0, %v6811_v39 }
 0xf18   :  { %v6813_v14 = vpop.eup %6812 }
 0xf19   :  { %v2499_v1 = vadd.f32 1.0, %v6813_v14  ;;  %6826 = vrcp.f32 %v2501_v6 }
 0xf1a   :  { %v6815_v59 = vpop.eup %6814 }
 0xf1b   :  { %6828 = vrcp.f32 %v2499_v1  ;;  %v2504_v55 = vadd.f32 1.0, %v6815_v59 }
 0xf1c   :  { %v6817_v2 = vpop.eup %6816 }
 0xf1d   :  { %v2502_v8 = vadd.f32 1.0, %v6817_v2  ;;  %6830 = vrcp.f32 %v2504_v55 }
 0xf1e   :  { %v6819_v56 = vpop.eup %6818 }
 0xf1f   :  { %6832 = vrcp.f32 %v2502_v8  ;;  %v2505_v4 = vadd.f32 1.0, %v6819_v56 }
 0xf20   :  { %v6821_v57 = vpop.eup %6820 }
 0xf21   :  { %v2503_v43 = vadd.f32 1.0, %v6821_v57  ;;  %6834 = vrcp.f32 %v2505_v4 }
 0xf22   :  { %v8491_v51 = vpop.eup %6822 }
 0xf23   :  { %6836 = vrcp.f32 %v2503_v43  ;;  %v2532_v44 = vmul.f32 2.0, %v8491_v51 }
 0xf24   :  { %v8493_v41 = vpop.eup %6824 }
 0xf25   :  { %v2530_v22 = vmul.f32 2.0, %v8493_v41  ;;  %v6052_v36 = vadd.f32 -1.0, %v2532_v44 }
 0xf26   :  { %v8496_v63 = vpop.eup %6826 }
 0xf27   :  { %v6050_v48 = vadd.f32 -1.0, %v2530_v22  ;;  %v2533_v7 = vmul.f32 2.0, %v8496_v63 }
 0xf28   :  { %v8499_v58 = vpop.eup %6828 }
 0xf29   :  { %2554 = vrot.lane.b32.xlu0 %v6050_v48, %s7135_s8  ;;  %v2531_v38 = vmul.f32 2.0, %v8499_v58  ;;  %v6053_v32 = vadd.f32 -1.0, %v2533_v7  ;;  %v2343_v7 = vmul.f32 %v8407_v49, %v8327_v29  ;;  %v2352_v29 = vmul.f32 %v8416_v37, %v8321_v21 }
 0xf2a   :  { %v8503_v27 = vpop.eup %6830 }
 0xf2b   :  { %v6051_v10 = vadd.f32 -1.0, %v2531_v38  ;;  %v2536_v53 = vmul.f32 2.0, %v8503_v27  ;;  %v2341_v38 = vmul.f32 %v8407_v49, %v8304_v42  ;;  %v2344_v42 = vmul.f32 %v8407_v49, %v8345_v24 }
 0xf2c   :  { %v8506_v17 = vpop.eup %6832  ;;  %v2346_v24 = vmul.f32 %v8407_v49, %v8359_v60  ;;  %v2355_v60 = vmul.f32 %v8416_v37, %v8349_v61 }
 0xf2d   :  { %2558 = vrot.lane.b32.xlu0 %v6052_v36, %s7135_s8  ;;  %2556 = vrot.lane.b32.xlu1 %v6051_v10, %s7135_s8  ;;  %v2534_v31 = vmul.f32 2.0, %v8506_v17  ;;  %v6056_v16 = vadd.f32 -1.0, %v2536_v53  ;;  %v2349_v36 = vmul.f32 %v8416_v37, %v8292_v46  ;;  %v2342_v10 = vmul.f32 %v8407_v49, %v8325_v40 }
 0xf2e   :  { %v8511_v45 = vpop.eup %6834  ;;  %v2351_v53 = vmul.f32 %v8416_v37, %v8308_v50  ;;  %v2345_v46 = vmul.f32 %v8407_v49, %v8347_v9  ;;  %v2353_v50 = vmul.f32 %v8416_v37, %v8329_v19  ;;  %v2360_v9 = vadd.f32 %v2352_v29, %v2344_v42  ;;  %v2707_v42 = vld [vmem:[%s9733_s6 + $0x18] sm:$0xff]  ;;  %v2704_v29 = vld [vmem:[%s9733_s6] sm:$0xff] }
 0xf2f   :  { %v6054_v35 = vadd.f32 -1.0, %v2534_v31  ;;  %v2537_v33 = vmul.f32 2.0, %v8511_v45  ;;  %v2357_v31 = vadd.f32 %v2349_v36, %v2341_v38  ;;  %6489 = vmatprep.subr.mxu1 %v2707_v42 }
 0xf30   :  { %v8514_v28 = vpop.eup %6836  ;;  %v2361_v21 = vadd.f32 %v2353_v50, %v2345_v46  ;;  %6490 = vmatpush3.msra.mxu1 %v2707_v42  ;;  %v2706_v46 = vld [vmem:[%s9733_s6 + $0x10] sm:$0xff] }
 0xf31   :  { %2560 = vrot.lane.b32.xlu1 %v6053_v32, %s7135_s8  ;;  %2562 = vrot.lane.b32.xlu0 %v6054_v35, %s7135_s8  ;;  %v2535_v3 = vmul.f32 2.0, %v8514_v28  ;;  %v6057_v62 = vadd.f32 -1.0, %v2537_v33  ;;  %v2522_v32 = vmul.f32 %v8493_v41, %v2357_v31  ;;  %v2350_v35 = vmul.f32 %v8416_v37, %v8306_v11  ;;  %v2710_v50 = vld [vmem:[%s9729_s2 + $0x10] sm:$0xff] }
 0xf32   :  { %v2526_v19 = vmul.f32 %v8506_v17, %v2361_v21  ;;  %6491 = vmatprep.subr.mxu1 %v2706_v46  ;;  %v2712_v21 = vld [vmem:[%s9729_s2 + $0x20] sm:$0xff] }
 0xf33   :  { %v6055_v34 = vadd.f32 -1.0, %v2535_v3  ;;  %6492 = vmatpush3.msra.mxu1 %v2706_v46  ;;  %v3200_v46 = vld [vmem:[%s9731_s4 + $0xb8] sm:$0xff] }
 0xf35   :  { %2566 = vrot.lane.b32.xlu0 %v6056_v16, %s7135_s8  ;;  %2564 = vrot.lane.b32.xlu1 %v6055_v34, %s7135_s8  ;;  %v2358_v16 = vadd.f32 %v2350_v35, %v2342_v10  ;;  %v2359_v34 = vadd.f32 %v2351_v53, %v2343_v7  ;;  %v2717_v35 = vld [vmem:[%s9733_s6 + $0x28] sm:$0xff]  ;;  %v2716_v53 = vld [vmem:[%s9733_s6 + $0x20] sm:$0xff] }
 0xf36   :  { %6473 = vmatprep.subr.mxu0 %v2717_v35 }
 0xf37   :  { %v2523_v33 = vmul.f32 %v8499_v58, %v2358_v16  ;;  %v2524_v11 = vmul.f32 %v8491_v51, %v2359_v34  ;;  %6474 = vmatpush3.msra.mxu0 %v2717_v35  ;;  %v2705_v16 = vld [vmem:[%s9733_s6 + $0x8] sm:$0xff] }
 0xf38   :  { %6475 = vmatprep.subr.mxu0 %v2716_v53  ;;  %6493 = vmatprep.subr.mxu1 %v2705_v16 }
 0xf39   :  { %2568 = vrot.lane.b32.xlu1 %v6057_v62, %s7135_s8  ;;  %6476 = vmatpush3.msra.mxu0 %v2716_v53 }
 0xf3a   :  { %6494 = vmatpush3.msra.mxu1 %v2705_v16 }
 0xf3b   :  { %6495 = vmatprep.subr.mxu1 %v2704_v29 }
 0xf3c   :  { %6496 = vmatpush3.msra.mxu1 %v2704_v29  ;;  %v3201_v29 = vld [vmem:[%s9731_s4 + $0xc0] sm:$0xff] }
 0xf9b   :  { %v2555_v47 = vpop.permute.xlu0 %2554 }
 0xf9c   :  { %v2578_v39 = vmul.f32 %v8493_v41, %v2555_v47 }
 0xf9e   :  { %2594 = vrot.lane.b32.xlu0 %v2578_v39, %s7136_s9  ;;  %v2347_v39 = vmul.f32 %v8407_v49, %v8361_v52  ;;  %v2348_v52 = vmul.f32 %v8407_v49, %v8369_v15 }
 0xf9f   :  { %v2557_v6 = vpop.permute.xlu1 %2556  ;;  %v2559_v14 = vpop.permute.xlu0 %2558 }
 0xfa0   :  { %v2579_v1 = vmul.f32 %v8499_v58, %v2557_v6  ;;  %v2580_v59 = vmul.f32 %v8491_v51, %v2559_v14 }
 0xfa2   :  { %2596 = vrot.lane.b32.xlu1 %v2579_v1, %s7136_s9  ;;  %2598 = vrot.lane.b32.xlu0 %v2580_v59, %s7136_s9  ;;  %v2354_v1 = vmul.f32 %v8416_v37, %v8341_v23  ;;  %v2525_v59 = vmul.f32 %v8496_v63, %v2360_v9 }
 0xfa3   :  { %v2561_v55 = vpop.permute.xlu1 %2560  ;;  %v2563_v2 = vpop.permute.xlu0 %2562 }
 0xfa4   :  { %v2581_v8 = vmul.f32 %v8496_v63, %v2561_v55  ;;  %v2582_v56 = vmul.f32 %v8506_v17, %v2563_v2 }
 0xfa6   :  { %2600 = vrot.lane.b32.xlu1 %v2581_v8, %s7136_s9  ;;  %2602 = vrot.lane.b32.xlu0 %v2582_v56, %s7136_s9  ;;  %v2362_v8 = vadd.f32 %v2354_v1, %v2346_v24  ;;  %v2677_v24 = vstv %s2676_s28 }
 0xfa7   :  { %v2565_v4 = vpop.permute.xlu1 %2564  ;;  %v2567_v57 = vpop.permute.xlu0 %2566 }
 0xfa8   :  { %v2583_v43 = vmul.f32 %v8514_v28, %v2565_v4  ;;  %v2584_v22 = vmul.f32 %v8503_v27, %v2567_v57  ;;  %v2363_v57 = vadd.f32 %v2355_v60, %v2347_v39  ;;  %v2527_v23 = vmul.f32 %v8514_v28, %v2362_v8  ;;  %v2711_v39 = vld [vmem:[%s9729_s2 + $0x18] sm:$0xff]  ;;  %v2714_v8 = vld [vmem:[%s9729_s2 + $0x30] sm:$0xff] }
 0xfaa   :  { %2604 = vrot.lane.b32.xlu1 %v2583_v43, %s7136_s9  ;;  %2606 = vrot.lane.b32.xlu0 %v2584_v22, %s7136_s9  ;;  %v2528_v43 = vmul.f32 %v8503_v27, %v2363_v57  ;;  %v2356_v22 = vmul.f32 %v8416_v37, %v8363_v30 }
 0xfab   :  { %v2569_v48 = vpop.permute.xlu1 %2568 }
 0xfac   :  { %v2585_v44 = vmul.f32 %v8511_v45, %v2569_v48  ;;  %v2364_v36 = vadd.f32 %v2356_v22, %v2348_v52 }
 0xfae   :  { %2608 = vrot.lane.b32.xlu1 %v2585_v44, %s7136_s9  ;;  %v2529_v15 = vmul.f32 %v8511_v45, %v2364_v36 }
0x1010   :  { %v2595_v3 = vpop.permute.xlu0 %2594 }
0x1011   :  { %v2618_v40 = vadd.f32 %v2595_v3, %v2522_v32 }
0x1013   :  { %6838 = vtanh.f32 %v2618_v40 }
0x1014   :  { %v2597_v62 = vpop.permute.xlu1 %2596  ;;  %v2599_v47 = vpop.permute.xlu0 %2598 }
0x1015   :  { %v2619_v6 = vadd.f32 %v2597_v62, %v2523_v33  ;;  %v2620_v14 = vadd.f32 %v2599_v47, %v2524_v11  ;;  %v2708_v33 = vld [vmem:[%s9729_s2] sm:$0xff]  ;;  %v2709_v11 = vld [vmem:[%s9729_s2 + $0x8] sm:$0xff]  ;;  %v2687_v62 = vstv %s2686_s12 }
0x1016   :  { %6477 = vmatprep.mubr.msk.f32.mxu0 %vm84_vm0, %v2708_v33  ;;  %v2691_v22 = vmul.f32 %v2687_v62, %v8444_v20  ;;  %v2693_v20 = vmul.f32 %v2687_v62, %v8459_v13 }
0x1017   :  { %6840 = vtanh.f32 %v2619_v6  ;;  %6478 = vmatmul.mubr.msk.f32.vlgmr.msra.gmra.mxu0 %vm84_vm0, %v2709_v11  ;;  %v2688_v6 = vmul.f32 %v2687_v62, %v8428_v0  ;;  %v2713_v0 = vld [vmem:[%s9729_s2 + $0x28] sm:$0xff]  ;;  %v3020_v11 = vld [vmem:[%s9731_s4 + $0x38] sm:$0xff] }
0x1018   :  { %6842 = vtanh.f32 %v2620_v14  ;;  %v2601_v55 = vpop.permute.xlu1 %2600  ;;  %v2603_v2 = vpop.permute.xlu0 %2602  ;;  %6480 = vmatprep.mubr.msk.f32.mxu0 %vm84_vm0, %v2710_v50  ;;  %v3019_v50 = vld [vmem:[%s9731_s4 + $0x30] sm:$0xff]  ;;  %3082 = vmatprep.subr.mxu0 %v3020_v11 }
0x1019   :  { %v2621_v56 = vadd.f32 %v2601_v55, %v2525_v59  ;;  %v2622_v4 = vadd.f32 %v2603_v2, %v2526_v19  ;;  %v2689_v55 = vmul.f32 %v2687_v62, %v8430_v25  ;;  %v2715_v25 = vld [vmem:[%s9729_s2 + $0x38] sm:$0xff]  ;;  %3083 = vmatpush1.msra.mxu0 %v3019_v50 }
0x101b   :  { %6844 = vtanh.f32 %v2621_v56  ;;  %6481 = vmatmul.mubr.msk.f32.gmra.mxu0 %vm84_vm0, %v2711_v39 }
0x101c   :  { %6846 = vtanh.f32 %v2622_v4  ;;  %v2605_v61 = vpop.permute.xlu1 %2604  ;;  %v2607_v48 = vpop.permute.xlu0 %2606  ;;  %6483 = vmatprep.mubr.msk.f32.mxu0 %vm84_vm0, %v2712_v21  ;;  %v3017_v21 = vld [vmem:[%s9731_s4 + $0x20] sm:$0xff] }
0x101d   :  { %v2623_v44 = vadd.f32 %v2605_v61, %v2527_v23  ;;  %v2624_v38 = vadd.f32 %v2607_v48, %v2528_v43 }
0x101f   :  { %6848 = vtanh.f32 %v2623_v44  ;;  %6484 = vmatmul.mubr.msk.f32.gmra.mxu0 %vm84_vm0, %v2713_v0 }
0x1020   :  { %v6839_v49 = vpop.eup %6838  ;;  %6850 = vtanh.f32 %v2624_v38  ;;  %v2609_v10 = vpop.permute.xlu1 %2608  ;;  %6486 = vmatprep.mubr.msk.f32.mxu0 %vm84_vm0, %v2714_v8  ;;  %v3188_v8 = vld [vmem:[%s9731_s4 + $0x58] sm:$0xff] }
0x1021   :  { %v2625_v7 = vadd.f32 %v2609_v10, %v2529_v15  ;;  %2642 = vrot.lane.b32.xlu0 %v6839_v49, %s7135_s8  ;;  %v2694_v10 = vmul.f32 %v2687_v62, %v8471_v26 }
0x1023   :  { %6852 = vtanh.f32 %v2625_v7  ;;  %6487 = vmatmul.mubr.msk.f32.gmra.mxu0 %vm84_vm0, %v2715_v25 }
0x1024   :  { %v6841_v31 = vpop.eup %6840 }
0x1025   :  { %v6843_v32 = vpop.eup %6842  ;;  %2644 = vrot.lane.b32.xlu1 %v6841_v31, %s7135_s8 }
0x1026   :  { %2646 = vrot.lane.b32.xlu0 %v6843_v32, %s7135_s8 }
0x1028   :  { %v6845_v30 = vpop.eup %6844 }
0x1029   :  { %v6847_v37 = vpop.eup %6846  ;;  %2648 = vrot.lane.b32.xlu1 %v6845_v30, %s7135_s8 }
0x102a   :  { %2650 = vrot.lane.b32.xlu0 %v6847_v37, %s7135_s8 }
0x102c   :  { %v6849_v3 = vpop.eup %6848 }
0x102d   :  { %v6851_v40 = vpop.eup %6850  ;;  %2652 = vrot.lane.b32.xlu1 %v6849_v3, %s7135_s8 }
0x102e   :  { %2654 = vrot.lane.b32.xlu0 %v6851_v40, %s7135_s8  ;;  %v3202_v40 = vld [vmem:[%s9731_s4 + $0xc8] sm:$0xff] }
0x102f   :  { %v8679_v16 = vpack.c.bf16 %v3202_v40, %v3200_v46 }
0x1030   :  { %v6853_v34 = vpop.eup %6852 }
0x1031   :  { %2656 = vrot.lane.b32.xlu1 %v6853_v34, %s7135_s8  ;;  %v3199_v34 = vld [vmem:[%s9731_s4 + $0xb0] sm:$0xff]  ;;  %3226 = vmatprep.subr.bf16.mxu1 %v8679_v16 }
0x1032   :  { %v8687_v33 = vpack.c.bf16 %v3201_v29, %v3199_v34 }
0x1093   :  { %v2643_v47 = vpop.permute.xlu0 %2642 }
0x1094   :  { %v2666_v9 = vmul.f32 %v8493_v41, %v2643_v47  ;;  %v3195_v47 = vld [vmem:[%s9731_s4 + $0x90] sm:$0xff] }
0x1096   :  { %v2678_v14 = vmul.f32 %v2677_v24, %v2666_v9  ;;  %v3197_v9 = vld [vmem:[%s9731_s4 + $0xa0] sm:$0xff] }
0x1097   :  { %v2645_v1 = vpop.permute.xlu1 %2644 }
0x1098   :  { %v2696_v59 = vadd.f32 %v2688_v6, %v2678_v14  ;;  %v2667_v19 = vmul.f32 %v8499_v58, %v2645_v1  ;;  %v2647_v41 = vpop.permute.xlu0 %2646  ;;  %v2690_v58 = vmul.f32 %v2687_v62, %v8442_v54  ;;  %v2692_v54 = vmul.f32 %v2687_v62, %v8457_v18  ;;  %v3018_v14 = vld [vmem:[%s9731_s4 + $0x28] sm:$0xff]  ;;  %v3192_v1 = vld [vmem:[%s9731_s4 + $0x78] sm:$0xff] }
0x1099   :  { %v2668_v60 = vmul.f32 %v8491_v51, %v2647_v41  ;;  %v8711_v6 = vpack.c.bf16 %v3197_v9, %v3195_v47  ;;  %3084 = vmatprep.subr.mxu0 %v3018_v14  ;;  %v3193_v41 = vld [vmem:[%s9731_s4 + $0x80] sm:$0xff] }
0x109a   :  { %v2679_v2 = vmul.f32 %v2677_v24, %v2667_v19  ;;  %2855 = vrot.lane.b32.xlu0 %v2696_v59, %s7136_s9  ;;  %v3194_v59 = vld [vmem:[%s9731_s4 + $0x88] sm:$0xff]  ;;  %v3191_v19 = vld [vmem:[%s9731_s4 + $0x70] sm:$0xff]  ;;  %3085 = vmatpush1.msra.mxu0 %v3017_v21 }
0x109b   :  { %v2680_v52 = vmul.f32 %v2677_v24, %v2668_v60  ;;  %v2649_v56 = vpop.permute.xlu1 %2648  ;;  %v8733_v60 = vpack.c.bf16 %v3194_v59, %v3192_v1  ;;  %v8735_v0 = vpack.c.bf16 %v3193_v41, %v3191_v19 }
0x109c   :  { %v2697_v51 = vadd.f32 %v2689_v55, %v2679_v2  ;;  %v2669_v4 = vmul.f32 %v8496_v63, %v2649_v56  ;;  %v2651_v57 = vpop.permute.xlu0 %2650  ;;  %v3016_v55 = vld [vmem:[%s9731_s4 + $0x18] sm:$0xff]  ;;  %v3015_v2 = vld [vmem:[%s9731_s4 + $0x10] sm:$0xff]  ;;  %v3189_v56 = vld [vmem:[%s9731_s4 + $0x60] sm:$0xff] }
0x109d   :  { %v2698_v23 = vadd.f32 %v2690_v58, %v2680_v52  ;;  %v2670_v43 = vmul.f32 %v8506_v17, %v2651_v57  ;;  %3086 = vmatprep.subr.mxu0 %v3016_v55  ;;  %v3190_v58 = vld [vmem:[%s9731_s4 + $0x68] sm:$0xff]  ;;  %v3187_v52 = vld [vmem:[%s9731_s4 + $0x50] sm:$0xff]  ;;  %v3024_v55 = vlaneseq }
0x109e   :  { %v2681_v61 = vmul.f32 %v2677_v24, %v2669_v4  ;;  %2857 = vrot.lane.b32.xlu1 %v2697_v51, %s7136_s9  ;;  %3087 = vmatpush1.msra.mxu0 %v3015_v2  ;;  %v3014_v51 = vld [vmem:[%s9731_s4 + $0x8] sm:$0xff]  ;;  %v3013_v4 = vld [vmem:[%s9731_s4] sm:$0xff]  ;;  %v8763_v57 = vpack.c.bf16 %v3190_v58, %v3188_v8  ;;  %v8765_v25 = vpack.c.bf16 %v3189_v56, %v3187_v52 }
0x109f   :  { %v2682_v48 = vmul.f32 %v2677_v24, %v2670_v43  ;;  %2859 = vrot.lane.b32.xlu0 %v2698_v23, %s7136_s9  ;;  %v2653_v63 = vpop.permute.xlu1 %2652  ;;  %3088 = vmatprep.subr.mxu0 %v3014_v51  ;;  %v7137_v23 = vmov 0.0   ;;  %v7138_v43 = vmov 0.0|0.0   ;;  %v8809_v2 = vshrl.u32 %v3024_v55, 7  ;;  %v6075_v58 = vld [vmem:[%s9731_s4 + $0x40] ss:$8 sm:$0x3] }
0x10a0   :  { %v2699_v44 = vadd.f32 %v2691_v22, %v2681_v61  ;;  %v2671_v38 = vmul.f32 %v8514_v28, %v2653_v63  ;;  %v2655_v36 = vpop.permute.xlu0 %2654  ;;  %v2695_v28 = vmul.f32 %v2687_v62, %v8473_v12  ;;  %v3198_v62 = vld [vmem:[%s9731_s4 + $0xa8] sm:$0xff]  ;;  %3122 = vmatprep.mubr.f32.mxu0 %v7137_v23  ;;  %3089 = vmatpush1.msra.mxu0 %v3013_v4 }
0x10a1   :  { %v2700_v15 = vadd.f32 %v2692_v54, %v2682_v48  ;;  %v2672_v17 = vmul.f32 %v8503_v27, %v2655_v36  ;;  %3482 = vmatprep.subr.bf16.mxu0 %v8679_v16  ;;  %v6074_v36 = vld [vmem:[%s9733_s6 + $0x30] ss:$0 sm:$0xff]  ;;  %v3030_v8 = vsub.s32 1, %v8809_v2  ;;  %v3026_v52 = vsub.s32 0, %v8809_v2 }
0x10a2   :  { %v2683_v49 = vmul.f32 %v2677_v24, %v2671_v38  ;;  %2861 = vrot.lane.b32.xlu1 %v2699_v44, %s7136_s9 }
0x10a3   :  { %v2684_v7 = vmul.f32 %v2677_v24, %v2672_v17  ;;  %2863 = vrot.lane.b32.xlu0 %v2700_v15, %s7136_s9  ;;  %v2657_v18 = vpop.permute.xlu1 %2656  ;;  %v3031_v56 = vrot.slane %v6075_v58, %v3030_v8 }
0x10a4   :  { %v2701_v31 = vadd.f32 %v2693_v20, %v2683_v49  ;;  %v2673_v32 = vmul.f32 %v8511_v45, %v2657_v18 }
0x10a5   :  { %v2702_v30 = vadd.f32 %v2694_v10, %v2684_v7 }
0x10a6   :  { %v2685_v37 = vmul.f32 %v2677_v24, %v2673_v32  ;;  %2865 = vrot.lane.b32.xlu1 %v2701_v31, %s7136_s9  ;;  %v3196_v24 = vld [vmem:[%s9731_s4 + $0x98] sm:$0xff] }
0x10a7   :  { %2867 = vrot.lane.b32.xlu0 %v2702_v30, %s7136_s9  ;;  %v8709_v39 = vpack.c.bf16 %v3198_v62, %v3196_v24 }
0x10a8   :  { %v2703_v13 = vadd.f32 %v2695_v28, %v2685_v37 }
0x10aa   :  { %2869 = vrot.lane.b32.xlu1 %v2703_v13, %s7136_s9 }
0x10d7   :  { %v6479_v22 = vpop.f32.mrf.mxu0 }
0x10d9   :  { %v2808_v61 = vpop.f32.mrf.mxu0 }
0x10db   :  { %v6482_v48 = vpop.f32.mrf.mxu0 }
0x10dd   :  { %v2818_v17 = vpop.f32.mrf.mxu0 }
0x10df   :  { %v6485_v18 = vpop.f32.mrf.mxu0 }
0x10e1   :  { %v2828_v28 = vpop.f32.mrf.mxu0 }
0x110c   :  { %v2856_v27 = vpop.permute.xlu0 %2855 }
0x110d   :  { %6497 = vmatprep.mubr.msk.f32.mxu1 %vm597_vm1, %v2856_v27 }
0x1110   :  { %v2858_v26 = vpop.permute.xlu1 %2857 }
0x1111   :  { %v2860_v35 = vpop.permute.xlu0 %2859  ;;  %6498 = vmatmul.mubr.msk.f32.vlgmr.msra.gmra.mxu1 %vm597_vm1, %v2858_v26  ;;  %v6488_v26 = vpop.f32.mrf.mxu0 }
0x1112   :  { %6500 = vmatprep.mubr.msk.f32.mxu1 %vm597_vm1, %v2860_v35  ;;  %3227 = vmatpush1.bf16.msra.mxu1 %v8687_v33 }
0x1113   :  { %3228 = vmatprep.subr.bf16.mxu1 %v8709_v39 }
0x1114   :  { %v2862_v45 = vpop.permute.xlu1 %2861 }
0x1115   :  { %v2864_v53 = vpop.permute.xlu0 %2863  ;;  %6501 = vmatmul.mubr.msk.f32.gmra.mxu1 %vm597_vm1, %v2862_v45 }
0x1116   :  { %6503 = vmatprep.mubr.msk.f32.mxu1 %vm597_vm1, %v2864_v53  ;;  %3229 = vmatpush1.bf16.msra.mxu1 %v8711_v6 }
0x1117   :  { %3230 = vmatprep.subr.bf16.mxu1 %v8733_v60 }
0x1118   :  { %v2866_v12 = vpop.permute.xlu1 %2865 }
0x1119   :  { %v2868_v42 = vpop.permute.xlu0 %2867  ;;  %6504 = vmatmul.mubr.msk.f32.gmra.mxu1 %vm597_vm1, %v2866_v12 }
0x111a   :  { %6506 = vmatprep.mubr.msk.f32.mxu1 %vm597_vm1, %v2868_v42  ;;  %3231 = vmatpush1.bf16.msra.mxu1 %v8735_v0  ;;  %v2838_v42 = vpop.f32.mrf.mxu0 }
0x111b   :  { %3232 = vmatprep.subr.bf16.mxu1 %v8763_v57 }
0x111c   :  { %v2870_v3 = vpop.permute.xlu1 %2869 }
0x111d   :  { %6507 = vmatmul.mubr.msk.f32.gmra.mxu1 %vm597_vm1, %v2870_v3 }
0x111e   :  { %3250 = vmatprep.mubr.bf16.mxu1 %v7134_v5  ;;  %3233 = vmatpush1.bf16.msra.mxu1 %v8765_v25 }
0x111f   :  { %3352 = vmatprep.subr.bf16.mxu1 %v8679_v16 }
0x1121   :  { %3251 = vmatmul.mubr.bf16.vlgmr.msra.gmra.mxu1 %v7138_v43 }
0x1122   :  { %3353 = vmatpush1.bf16.msra.mxu1 %v8687_v33  ;;  %3376 = vmatprep.mubr.bf16.mxu1 %v7134_v5 }
0x1123   :  { %3354 = vmatprep.subr.bf16.mxu1 %v8709_v39 }
0x1126   :  { %3355 = vmatpush1.bf16.msra.mxu1 %v8711_v6 }
0x1127   :  { %3356 = vmatprep.subr.bf16.mxu1 %v8733_v60 }
0x112a   :  { %3357 = vmatpush1.bf16.msra.mxu1 %v8735_v0 }
0x112b   :  { %3358 = vmatprep.subr.bf16.mxu1 %v8763_v57 }
0x112e   :  { %3359 = vmatpush1.bf16.msra.mxu1 %v8765_v25 }
0x112f   :  { %3612 = vmatprep.subr.bf16.mxu1 %v8679_v16 }
0x11d1   :  { %v6499_v54 = vpop.f32.mrf.mxu1 }
0x11d2   :  { %v2959_v44 = vadd.f32 %v6499_v54, %v6479_v22  ;;  %v3027_v22 = vrot.slane %v6075_v58, %v3026_v52 }
0x11d3   :  { %v2953_v63 = vpop.f32.mrf.mxu1 }
0x11d4   :  { %v2954_v38 = vadd.f32 %v2953_v63, %v2808_v61  ;;  %v2998_v10 = vadd.f32 %v6074_v36, %v2959_v44 }
0x11d5   :  { %v6502_v15 = vpop.f32.mrf.mxu1 }
0x11d6   :  { %v2997_v20 = vadd.f32 %v6074_v36, %v2954_v38  ;;  %v2969_v32 = vadd.f32 %v6502_v15, %v6482_v48 }
0x11d7   :  { %v2963_v49 = vpop.f32.mrf.mxu1 }
0x11d8   :  { %6854 = vtanh.f32 %v2997_v20  ;;  %v2964_v7 = vadd.f32 %v2963_v49, %v2818_v17  ;;  %v3000_v13 = vadd.f32 %v6074_v36, %v2969_v32 }
0x11d9   :  { %v6505_v31 = vpop.f32.mrf.mxu1  ;;  %6856 = vtanh.f32 %v2998_v10 }
0x11da   :  { %v2999_v30 = vadd.f32 %v6074_v36, %v2964_v7  ;;  %v2979_v45 = vadd.f32 %v6505_v31, %v6485_v18 }
0x11db   :  { %v2973_v37 = vpop.f32.mrf.mxu1 }
0x11dc   :  { %6858 = vtanh.f32 %v2999_v30  ;;  %v2974_v27 = vadd.f32 %v2973_v37, %v2828_v28  ;;  %v3002_v46 = vadd.f32 %v6074_v36, %v2979_v45 }
0x11dd   :  { %v6508_v35 = vpop.f32.mrf.mxu1  ;;  %6860 = vtanh.f32 %v3000_v13 }
0x11de   :  { %v3001_v53 = vadd.f32 %v6074_v36, %v2974_v27  ;;  %v2989_v29 = vadd.f32 %v6508_v35, %v6488_v26 }
0x11df   :  { %v2983_v3 = vpop.f32.mrf.mxu1 }
0x11e0   :  { %6862 = vtanh.f32 %v3001_v53  ;;  %v2984_v40 = vadd.f32 %v2983_v3, %v2838_v42  ;;  %v3004_v24 = vadd.f32 %v6074_v36, %v2989_v29 }
0x11e1   :  { %6864 = vtanh.f32 %v3002_v46  ;;  %v3252_v1 = vpop.f32.mrf.mxu1 }
0x11e2   :  { %v3003_v11 = vadd.f32 %v6074_v36, %v2984_v40 }
0x11e3   :  { %v3254_v59 = vpop.f32.mrf.mxu1 }
0x11e4   :  { %6866 = vtanh.f32 %v3003_v11 }
0x11e5   :  { %v6855_v12 = vpop.eup %6854  ;;  %6868 = vtanh.f32 %v3004_v24  ;;  %v3256_v19 = vpop.f32.mrf.mxu1 }
0x11e6   :  { %6076 = vmatmul.mubr.msk.f32.vlgmr.msra.gmra.mxu0 %vm597_vm1, %v6855_v12  ;;  %v6857_v34 = vpop.eup %6856 }
0x11e7   :  { %3128 = vmatprep.mubr.f32.mxu0 %v7137_v23  ;;  %3483 = vmatpush1.bf16.msra.mxu0 %v8687_v33  ;;  %v3257_v41 = vpop.f32.mrf.mxu1 }
0x11e8   :  { %3484 = vmatprep.subr.bf16.mxu0 %v8709_v39 }
0x11e9   :  { %v6859_v50 = vpop.eup %6858 }
0x11ea   :  { %6077 = vmatmul.mubr.msk.f32.gmra.mxu0 %vm597_vm1, %v6857_v34  ;;  %v6861_v62 = vpop.eup %6860 }
0x11eb   :  { %3134 = vmatprep.mubr.f32.mxu0 %v7137_v23  ;;  %3485 = vmatpush1.bf16.msra.mxu0 %v8711_v6 }
0x11ec   :  { %3486 = vmatprep.subr.bf16.mxu0 %v8733_v60 }
0x11ed   :  { %v6863_v47 = vpop.eup %6862 }
0x11ee   :  { %6078 = vmatmul.mubr.msk.f32.gmra.mxu0 %vm597_vm1, %v6859_v50  ;;  %v6865_v9 = vpop.eup %6864 }
0x11ef   :  { %3140 = vmatprep.mubr.f32.mxu0 %v7137_v23  ;;  %3487 = vmatpush1.bf16.msra.mxu0 %v8735_v0 }
0x11f0   :  { %3488 = vmatprep.subr.bf16.mxu0 %v8763_v57 }
0x11f1   :  { %v6867_v14 = vpop.eup %6866 }
0x11f2   :  { %6079 = vmatmul.mubr.msk.f32.gmra.mxu0 %vm597_vm1, %v6861_v62  ;;  %v6869_v21 = vpop.eup %6868 }
0x11f3   :  { %3146 = vmatprep.mubr.f32.mxu0 %v7137_v23  ;;  %3489 = vmatpush1.bf16.msra.mxu0 %v8765_v25 }
0x11f4   :  { %3742 = vmatprep.subr.bf16.mxu0 %v8679_v16 }
0x11f6   :  { %6080 = vmatmul.mubr.msk.f32.gmra.mxu0 %vm597_vm1, %v6863_v47 }
0x11f7   :  { %3152 = vmatprep.mubr.f32.mxu0 %v7137_v23 }
0x11fa   :  { %6081 = vmatmul.mubr.msk.f32.gmra.mxu0 %vm597_vm1, %v6865_v9 }
0x11fb   :  { %3158 = vmatprep.mubr.f32.mxu0 %v7137_v23 }
0x11fe   :  { %6082 = vmatmul.mubr.msk.f32.gmra.mxu0 %vm597_vm1, %v6867_v14 }
0x11ff   :  { %3164 = vmatprep.mubr.f32.mxu0 %v7137_v23 }
0x1202   :  { %6083 = vmatmul.mubr.msk.f32.gmra.mxu0 %vm597_vm1, %v6869_v21 }
0x1203   :  { %3506 = vmatprep.mubr.bf16.mxu0 %v7134_v5 }
0x12a6   :  { %v3124_v51 = vpop.f32.mrf.mxu0 }
0x12a7   :  { %v3125_v28 = vadd.f32 %v3124_v51, %v3027_v22 }
0x12a8   :  { %v3126_v4 = vpop.f32.mrf.mxu0 }
0x12a9   :  { %v8820_v61 = vadd.f32 %v3126_v4, %v3031_v56  ;;  %v3259_v35 = vadd.f32 %v3252_v1, %v3125_v28 }
0x12aa   :  { %v3130_v54 = vpop.f32.mrf.mxu0 }
0x12ab   :  { %v8822_v48 = vadd.f32 %v3130_v54, %v3027_v22  ;;  %v6084_v3 = vmul.f32 -1.442695, %v3259_v35 }
0x12ac   :  { %v3132_v63 = vpop.f32.mrf.mxu0 }
0x12ad   :  { %v8824_v44 = vadd.f32 %v3132_v63, %v3031_v56  ;;  %6870 = vpow2.f32 %v6084_v3 }
0x12ae   :  { %v3136_v38 = vpop.f32.mrf.mxu0 }
0x12af   :  { %v8826_v36 = vadd.f32 %v3136_v38, %v3027_v22 }
0x12b0   :  { %v3138_v15 = vpop.f32.mrf.mxu0 }
0x12b1   :  { %v8828_v17 = vadd.f32 %v3138_v15, %v3031_v56 }
0x12b2   :  { %v3142_v20 = vpop.f32.mrf.mxu0 }
0x12b3   :  { %v8830_v49 = vadd.f32 %v3142_v20, %v3027_v22 }
0x12b4   :  { %v3144_v10 = vpop.f32.mrf.mxu0 }
0x12b5   :  { %v8832_v7 = vadd.f32 %v3144_v10, %v3031_v56 }
0x12b6   :  { %v3148_v18 = vpop.f32.mrf.mxu0 }
0x12b7   :  { %v8834_v31 = vadd.f32 %v3148_v18, %v3027_v22 }
0x12b8   :  { %v3150_v32 = vpop.f32.mrf.mxu0 }
0x12b9   :  { %v8836_v30 = vadd.f32 %v3150_v32, %v3031_v56 }
0x12ba   :  { %v3154_v37 = vpop.f32.mrf.mxu0  ;;  %v6871_v24 = vpop.eup %6870 }
0x12bb   :  { %v8838_v13 = vadd.f32 %v3154_v37, %v3027_v22  ;;  %v3267_v62 = vadd.f32 1.0, %v6871_v24 }
0x12bc   :  { %v3156_v27 = vpop.f32.mrf.mxu0 }
0x12bd   :  { %v8840_v26 = vadd.f32 %v3156_v27, %v3031_v56  ;;  %v3316_v27 = vld [vmem:[%s9730_s3 + $0x38] sm:$0xff] }
0x12be   :  { %v3160_v45 = vpop.f32.mrf.mxu0  ;;  %v3322_v35 = vsub.f32 1.0, %v3316_v27 }
0x12bf   :  { %v8842_v53 = vadd.f32 %v3160_v45, %v3027_v22 }
0x12c0   :  { %v3162_v12 = vpop.f32.mrf.mxu0  ;;  %v3323_v45 = vmul.f32 0.0, %v3322_v35 }
0x12c1   :  { %v8844_v42 = vadd.f32 %v3162_v12, %v3031_v56 }
0x12c2   :  { %v3166_v46 = vpop.f32.mrf.mxu0 }
0x12c3   :  { %v8846_v40 = vadd.f32 %v3166_v46, %v3027_v22 }
0x12c4   :  { %v3168_v34 = vpop.f32.mrf.mxu0 }
0x12c5   :  { %v3169_v29 = vadd.f32 %v3168_v34, %v3031_v56 }
0x12c7   :  { %v3260_v11 = vadd.f32 %v3254_v59, %v3169_v29 }
0x12c9   :  { %v6085_v50 = vmul.f32 -1.442695, %v3260_v11 }
0x12cb   :  { %6872 = vpow2.f32 %v6085_v50 }
0x12cc   :  { %6874 = vrcp.f32 %v3267_v62 }
0x12d8   :  { %v6873_v47 = vpop.eup %6872 }
0x12d9   :  { %v3268_v9 = vadd.f32 1.0, %v6873_v47  ;;  %v6875_v14 = vpop.eup %6874 }
0x12da   :  { %v3274_v41 = vmul.f32 2.0, %v6875_v14  ;;  %v3273_v63 = vmul.f32 0.0, %v6875_v14 }
0x12db   :  { %6876 = vrcp.f32 %v3268_v9 }
0x12dc   :  { %v6086_v55 = vadd.f32 -1.0, %v3274_v41 }
0x12e8   :  { %v6877_v21 = vpop.eup %6876 }
0x12e9   :  { %v3298_v1 = vmul.f32 2.0, %v6877_v21  ;;  %v3297_v4 = vmul.f32 0.0, %v6877_v21 }
0x12eb   :  { %v6087_v19 = vadd.f32 -1.0, %v3298_v1 }
0x12ed   :  { %3301 = vrot.lane.b32.xlu0 %v6087_v19, %s7135_s8 }
0x12f1   :  { %3277 = vrot.lane.b32.xlu0 %v6086_v55, %s7135_s8 }
0x135f   :  { %v3302_v58 = vpop.permute.xlu0 %3301 }
0x1360   :  { %v3304_v59 = vmul.f32 %v6877_v21, %v3302_v58 }
0x1362   :  { %3306 = vrot.lane.b32.xlu1 %v3304_v59, %s7136_s9 }
0x1363   :  { %v3278_v56 = vpop.permute.xlu0 %3277 }
0x1364   :  { %v3280_v51 = vmul.f32 %v6875_v14, %v3278_v56 }
0x1366   :  { %3282 = vrot.lane.b32.xlu1 %v3280_v51, %s7136_s9 }
0x13d4   :  { %v3307_v22 = vpop.permute.xlu1 %3306 }
0x13d5   :  { %v3309_v54 = vadd.f32 %v3307_v22, %v3297_v4 }
0x13d7   :  { %6878 = vtanh.f32 %v3309_v54 }
0x13d8   :  { %v3283_v38 = vpop.permute.xlu1 %3282 }
0x13d9   :  { %v8852_v15 = vadd.f32 %v3283_v38, %v3273_v63 }
0x13db   :  { %6880 = vtanh.f32 %v8852_v15 }
0x13e4   :  { %v6879_v20 = vpop.eup %6878 }
0x13e5   :  { %3312 = vrot.lane.b32.xlu0 %v6879_v20, %s7135_s8 }
0x13e8   :  { %v6881_v10 = vpop.eup %6880 }
0x13e9   :  { %3288 = vrot.lane.b32.xlu0 %v6881_v10, %s7135_s8 }
0x1457   :  { %v3313_v18 = vpop.permute.xlu0 %3312 }
0x1458   :  { %v3315_v32 = vmul.f32 %v6877_v21, %v3313_v18 }
0x145a   :  { %3318 = vrot.lane.b32.xlu1 %v3315_v32, %s7136_s9 }
0x145b   :  { %v3289_v28 = vpop.permute.xlu0 %3288 }
0x145c   :  { %v3291_v37 = vmul.f32 %v6875_v14, %v3289_v28 }
0x145e   :  { %3293 = vrot.lane.b32.xlu1 %v3291_v37, %s7136_s9 }
0x1462   :  { %3326 = vrot.lane.b32.xlu1 %v3309_v54, %s7139_s26 }
0x14cc   :  { %v3319_v12 = vpop.permute.xlu1 %3318 }
0x14cd   :  { %v3321_v3 = vmul.f32 %v3319_v12, %v3316_v27 }
0x14cf   :  { %v8863_v46 = vadd.f32 %v3323_v45, %v3321_v3 }
0x14d0   :  { %v3294_v34 = vpop.permute.xlu1 %3293 }
0x14d1   :  { %3296 = vst.msk [vmem:[#allocation4] sm:$0xff] %vm597_vm1, %v3294_v34  ;;  %3332 = vrot.lane.b32.xlu0 %v8863_v46, %s7136_s9 }
0x14d4   :  { %v3327_v29 = vpop.permute.xlu1 %3326 }
0x14d5   :  { %v3329_v11 = vmul.f32 %v3327_v29, %v3316_v27 }
0x14d7   :  { %v8868_v50 = vadd.f32 %v3329_v11, %v3323_v45 }
0x14d9   :  { %3424 = vrot.lane.b32.xlu1 %v8868_v50, %s7136_s9 }
0x1543   :  { %v3333_v24 = vpop.permute.xlu0 %3332 }
0x1544   :  { %3336 = vst.msk [vmem:[#allocation4 + $0x38] sm:$0xff] %vm3335_vm2, %v3333_v24  ;;  %v3339_v62 = vsel %vm597_vm1, %v3294_v34, %v3333_v24 }
0x1545   :  { %v3340_v47 = vpack.c.bf16 %v3339_v62, %v3339_v62 }
0x1547   :  { %6088 = vmatmul.mubr.msk.bf16.vlgmr.msra.gmra.mxu1 %vm3214_vm3, %v3340_v47 }
0x1548   :  { %3613 = vmatpush1.bf16.msra.mxu1 %v8687_v33  ;;  %3636 = vmatprep.mubr.bf16.mxu1 %v7134_v5 }
0x1549   :  { %3614 = vmatprep.subr.bf16.mxu1 %v8709_v39 }
0x154c   :  { %3615 = vmatpush1.bf16.msra.mxu1 %v8711_v6 }
0x154d   :  { %3616 = vmatprep.subr.bf16.mxu1 %v8733_v60 }
0x1550   :  { %3617 = vmatpush1.bf16.msra.mxu1 %v8735_v0 }
0x1551   :  { %3618 = vmatprep.subr.bf16.mxu1 %v8763_v57 }
0x1554   :  { %3619 = vmatpush1.bf16.msra.mxu1 %v8765_v25 }
0x1555   :  { %3872 = vmatprep.subr.bf16.mxu1 %v8679_v16 }
0x1607   :  { %v3378_v9 = vpop.f32.mrf.mxu1 }
0x1608   :  { %v3385_v14 = vadd.f32 %v3378_v9, %v8822_v48 }
0x1609   :  { %v3380_v21 = vpop.f32.mrf.mxu1 }
0x160a   :  { %v6089_v1 = vmul.f32 -1.442695, %v3385_v14  ;;  %v3386_v19 = vadd.f32 %v3380_v21, %v8844_v42  ;;  %v3425_v42 = vpop.permute.xlu1 %3424 }
0x160b   :  { %v3382_v41 = vpop.f32.mrf.mxu1 }
0x160c   :  { %6882 = vpow2.f32 %v6089_v1  ;;  %v6090_v55 = vmul.f32 -1.442695, %v3386_v19 }
0x160d   :  { %v3383_v58 = vpop.f32.mrf.mxu1 }
0x160e   :  { %6884 = vpow2.f32 %v6090_v55 }
0x1619   :  { %v6883_v59 = vpop.eup %6882 }
0x161a   :  { %v3393_v56 = vadd.f32 1.0, %v6883_v59 }
0x161b   :  { %v6885_v51 = vpop.eup %6884 }
0x161c   :  { %6886 = vrcp.f32 %v3393_v56  ;;  %v3394_v4 = vadd.f32 1.0, %v6885_v51 }
0x161e   :  { %6888 = vrcp.f32 %v3394_v4 }
0x1629   :  { %v6887_v22 = vpop.eup %6886 }
0x162a   :  { %v3400_v54 = vmul.f32 2.0, %v6887_v22  ;;  %v3399_v45 = vmul.f32 %v6887_v22, %v8852_v15  ;;  %v3446_v15 = vld [vmem:[%s9730_s3 + $0x30] sm:$0xff] }
0x162b   :  { %v6889_v63 = vpop.eup %6888  ;;  %v3452_v9 = vsub.f32 1.0, %v3446_v15 }
0x162c   :  { %v6091_v38 = vadd.f32 -1.0, %v3400_v54  ;;  %v3428_v48 = vmul.f32 2.0, %v6889_v63  ;;  %v3427_v37 = vmul.f32 %v6889_v63, %v3425_v42 }
0x162d   :  { %v3453_v21 = vmul.f32 %v3452_v9, %v8863_v46  ;;  %v3460_v58 = vmul.f32 %v3452_v9, %v8868_v50 }
0x162e   :  { %3403 = vrot.lane.b32.xlu1 %v6091_v38, %s7135_s8  ;;  %v6092_v20 = vadd.f32 -1.0, %v3428_v48 }
0x1630   :  { %3431 = vrot.lane.b32.xlu0 %v6092_v20, %s7135_s8 }
0x16a0   :  { %v3404_v32 = vpop.permute.xlu1 %3403 }
0x16a1   :  { %v3406_v28 = vmul.f32 %v6887_v22, %v3404_v32 }
0x16a2   :  { %v3432_v10 = vpop.permute.xlu0 %3431 }
0x16a3   :  { %v3434_v18 = vmul.f32 %v6889_v63, %v3432_v10 }
0x16a5   :  { %3436 = vrot.lane.b32.xlu0 %v3434_v18, %s7136_s9 }
0x16a9   :  { %3408 = vrot.lane.b32.xlu0 %v3406_v28, %s7136_s9 }
0x1717   :  { %v3437_v27 = vpop.permute.xlu0 %3436 }
0x1718   :  { %v3439_v35 = vadd.f32 %v3437_v27, %v3427_v37 }
0x171a   :  { %6890 = vtanh.f32 %v3439_v35 }
0x171b   :  { %v3409_v12 = vpop.permute.xlu0 %3408 }
0x171c   :  { %v8891_v3 = vadd.f32 %v3409_v12, %v3399_v45 }
0x171e   :  { %6892 = vtanh.f32 %v8891_v3 }
0x1727   :  { %v6891_v34 = vpop.eup %6890 }
0x1728   :  { %3442 = vrot.lane.b32.xlu1 %v6891_v34, %s7135_s8 }
0x172b   :  { %v6893_v29 = vpop.eup %6892 }
0x172c   :  { %3414 = vrot.lane.b32.xlu1 %v6893_v29, %s7135_s8 }
0x179a   :  { %v3443_v11 = vpop.permute.xlu1 %3442 }
0x179b   :  { %v3445_v24 = vmul.f32 %v6889_v63, %v3443_v11 }
0x179d   :  { %3448 = vrot.lane.b32.xlu0 %v3445_v24, %s7136_s9 }
0x179e   :  { %v3415_v62 = vpop.permute.xlu1 %3414 }
0x179f   :  { %v3417_v47 = vmul.f32 %v6887_v22, %v3415_v62 }
0x17a1   :  { %3419 = vrot.lane.b32.xlu0 %v3417_v47, %s7136_s9 }
0x17a5   :  { %3456 = vrot.lane.b32.xlu0 %v3439_v35, %s7139_s26 }
0x180f   :  { %v3449_v14 = vpop.permute.xlu0 %3448 }
0x1810   :  { %v3451_v1 = vmul.f32 %v3449_v14, %v3446_v15 }
0x1812   :  { %v8903_v19 = vadd.f32 %v3453_v21, %v3451_v1 }
0x1813   :  { %v3420_v41 = vpop.permute.xlu0 %3419 }
0x1814   :  { %3422 = vst.msk [vmem:[#allocation4 + $0x8] sm:$0xff] %vm597_vm1, %v3420_v41  ;;  %3463 = vrot.lane.b32.xlu1 %v8903_v19, %s7136_s9 }
0x1817   :  { %v3457_v55 = vpop.permute.xlu0 %3456 }
0x1818   :  { %v3459_v59 = vmul.f32 %v3457_v55, %v3446_v15 }
0x181a   :  { %v8909_v56 = vadd.f32 %v3460_v58, %v3459_v59 }
0x181c   :  { %3554 = vrot.lane.b32.xlu0 %v8909_v56, %s7136_s9 }
0x1886   :  { %v3464_v51 = vpop.permute.xlu1 %3463 }
0x1887   :  { %3466 = vst.msk [vmem:[#allocation4 + $0x30] sm:$0xff] %vm3335_vm2, %v3464_v51  ;;  %v3469_v46 = vsel %vm597_vm1, %v3420_v41, %v3464_v51 }
0x1888   :  { %v3470_v4 = vpack.c.bf16 %v3469_v46, %v3469_v46 }
0x188a   :  { %6093 = vmatmul.mubr.msk.bf16.vlgmr.msra.gmra.mxu0 %vm3214_vm3, %v3470_v4 }
0x188b   :  { %3743 = vmatpush1.bf16.msra.mxu0 %v8687_v33  ;;  %3766 = vmatprep.mubr.bf16.mxu0 %v7134_v5 }
0x188c   :  { %3744 = vmatprep.subr.bf16.mxu0 %v8709_v39 }
0x188f   :  { %3745 = vmatpush1.bf16.msra.mxu0 %v8711_v6 }
0x1890   :  { %3746 = vmatprep.subr.bf16.mxu0 %v8733_v60 }
0x1893   :  { %3747 = vmatpush1.bf16.msra.mxu0 %v8735_v0 }
0x1894   :  { %3748 = vmatprep.subr.bf16.mxu0 %v8763_v57 }
0x1897   :  { %3749 = vmatpush1.bf16.msra.mxu0 %v8765_v25 }
0x1898   :  { %4002 = vmatprep.subr.bf16.mxu0 %v8679_v16 }
0x194a   :  { %v3508_v50 = vpop.f32.mrf.mxu0 }
0x194b   :  { %v3515_v22 = vadd.f32 %v3508_v50, %v8826_v36 }
0x194c   :  { %v3510_v54 = vpop.f32.mrf.mxu0 }
0x194d   :  { %v6094_v63 = vmul.f32 -1.442695, %v3515_v22  ;;  %v3516_v38 = vadd.f32 %v3510_v54, %v8840_v26  ;;  %v3555_v26 = vpop.permute.xlu0 %3554 }
0x194e   :  { %v3512_v48 = vpop.f32.mrf.mxu0 }
0x194f   :  { %6894 = vpow2.f32 %v6094_v63  ;;  %v6095_v20 = vmul.f32 -1.442695, %v3516_v38 }
0x1950   :  { %v3513_v42 = vpop.f32.mrf.mxu0 }
0x1951   :  { %6896 = vpow2.f32 %v6095_v20 }
0x195c   :  { %v6895_v10 = vpop.eup %6894 }
0x195d   :  { %v3523_v18 = vadd.f32 1.0, %v6895_v10 }
0x195e   :  { %v6897_v32 = vpop.eup %6896 }
0x195f   :  { %6898 = vrcp.f32 %v3523_v18  ;;  %v3524_v28 = vadd.f32 1.0, %v6897_v32 }
0x1961   :  { %6900 = vrcp.f32 %v3524_v28 }
0x196c   :  { %v6899_v37 = vpop.eup %6898 }
0x196d   :  { %v3530_v27 = vmul.f32 2.0, %v6899_v37  ;;  %v3529_v9 = vmul.f32 %v6899_v37, %v8891_v3  ;;  %v3576_v3 = vld [vmem:[%s9730_s3 + $0x28] sm:$0xff] }
0x196e   :  { %v6901_v35 = vpop.eup %6900  ;;  %v3582_v46 = vsub.f32 1.0, %v3576_v3 }
0x196f   :  { %v6096_v45 = vadd.f32 -1.0, %v3530_v27  ;;  %v3558_v36 = vmul.f32 2.0, %v6901_v35  ;;  %v3557_v62 = vmul.f32 %v6901_v35, %v3555_v26 }
0x1970   :  { %v3583_v50 = vmul.f32 %v3582_v46, %v8903_v19  ;;  %v3590_v48 = vmul.f32 %v3582_v46, %v8909_v56 }
0x1971   :  { %3533 = vrot.lane.b32.xlu0 %v6096_v45, %s7135_s8  ;;  %v6097_v12 = vadd.f32 -1.0, %v3558_v36 }
0x1973   :  { %3561 = vrot.lane.b32.xlu1 %v6097_v12, %s7135_s8 }
0x19e3   :  { %v3534_v11 = vpop.permute.xlu0 %3533 }
0x19e4   :  { %v3536_v24 = vmul.f32 %v6899_v37, %v3534_v11 }
0x19e5   :  { %v3562_v34 = vpop.permute.xlu1 %3561 }
0x19e6   :  { %v3564_v29 = vmul.f32 %v6901_v35, %v3562_v34 }
0x19e8   :  { %3566 = vrot.lane.b32.xlu1 %v3564_v29, %s7136_s9 }
0x19ec   :  { %3538 = vrot.lane.b32.xlu1 %v3536_v24, %s7136_s9 }
0x1a5a   :  { %v3567_v47 = vpop.permute.xlu1 %3566 }
0x1a5b   :  { %v3569_v15 = vadd.f32 %v3567_v47, %v3557_v62 }
0x1a5d   :  { %6902 = vtanh.f32 %v3569_v15 }
0x1a5e   :  { %v3539_v14 = vpop.permute.xlu1 %3538 }
0x1a5f   :  { %v8932_v21 = vadd.f32 %v3539_v14, %v3529_v9 }
0x1a61   :  { %6904 = vtanh.f32 %v8932_v21 }
0x1a6a   :  { %v6903_v1 = vpop.eup %6902 }
0x1a6b   :  { %3572 = vrot.lane.b32.xlu0 %v6903_v1, %s7135_s8 }
0x1a6e   :  { %v6905_v41 = vpop.eup %6904 }
0x1a6f   :  { %3544 = vrot.lane.b32.xlu0 %v6905_v41, %s7135_s8 }
0x1add   :  { %v3573_v55 = vpop.permute.xlu0 %3572 }
0x1ade   :  { %v3575_v58 = vmul.f32 %v6901_v35, %v3573_v55 }
0x1ae0   :  { %3578 = vrot.lane.b32.xlu1 %v3575_v58, %s7136_s9 }
0x1ae1   :  { %v3545_v59 = vpop.permute.xlu0 %3544 }
0x1ae2   :  { %v3547_v51 = vmul.f32 %v6899_v37, %v3545_v59 }
0x1ae4   :  { %3549 = vrot.lane.b32.xlu1 %v3547_v51, %s7136_s9 }
0x1ae8   :  { %3586 = vrot.lane.b32.xlu1 %v3569_v15, %s7139_s26 }
0x1b52   :  { %v3579_v4 = vpop.permute.xlu1 %3578 }
0x1b53   :  { %v3581_v22 = vmul.f32 %v3579_v4, %v3576_v3 }
0x1b55   :  { %v8944_v54 = vadd.f32 %v3583_v50, %v3581_v22 }
0x1b56   :  { %v3550_v63 = vpop.permute.xlu1 %3549 }
0x1b57   :  { %3552 = vst.msk [vmem:[#allocation4 + $0x10] sm:$0xff] %vm597_vm1, %v3550_v63  ;;  %3593 = vrot.lane.b32.xlu0 %v8944_v54, %s7136_s9 }
0x1b5a   :  { %v3587_v38 = vpop.permute.xlu1 %3586 }
0x1b5b   :  { %v3589_v20 = vmul.f32 %v3587_v38, %v3576_v3 }
0x1b5d   :  { %v8950_v42 = vadd.f32 %v3590_v48, %v3589_v20 }
0x1b5f   :  { %3684 = vrot.lane.b32.xlu1 %v8950_v42, %s7136_s9 }
0x1bc9   :  { %v3594_v10 = vpop.permute.xlu0 %3593 }
0x1bca   :  { %3596 = vst.msk [vmem:[#allocation4 + $0x28] sm:$0xff] %vm3335_vm2, %v3594_v10  ;;  %v3599_v19 = vsel %vm597_vm1, %v3550_v63, %v3594_v10 }
0x1bcb   :  { %v3600_v18 = vpack.c.bf16 %v3599_v19, %v3599_v19 }
0x1bcd   :  { %6098 = vmatmul.mubr.msk.bf16.vlgmr.msra.gmra.mxu1 %vm3214_vm3, %v3600_v18 }
0x1bce   :  { %3873 = vmatpush1.bf16.msra.mxu1 %v8687_v33  ;;  %3896 = vmatprep.mubr.bf16.mxu1 %v7134_v5 }
0x1bcf   :  { %3874 = vmatprep.subr.bf16.mxu1 %v8709_v39 }
0x1bd2   :  { %3875 = vmatpush1.bf16.msra.mxu1 %v8711_v6 }
0x1bd3   :  { %3876 = vmatprep.subr.bf16.mxu1 %v8733_v60 }
0x1bd6   :  { %3877 = vmatpush1.bf16.msra.mxu1 %v8735_v0 }
0x1bd7   :  { %3878 = vmatprep.subr.bf16.mxu1 %v8763_v57 }
0x1bda   :  { %3879 = vmatpush1.bf16.msra.mxu1 %v8765_v25 }
0x1bdb   :  { %4132 = vmatprep.subr.bf16.mxu1 %v8679_v16 }
0x1c8d   :  { %v3638_v56 = vpop.f32.mrf.mxu1 }
0x1c8e   :  { %v3645_v32 = vadd.f32 %v3638_v56, %v8830_v49 }
0x1c8f   :  { %v3640_v28 = vpop.f32.mrf.mxu1 }
0x1c90   :  { %v6099_v37 = vmul.f32 -1.442695, %v3645_v32  ;;  %v3646_v27 = vadd.f32 %v3640_v28, %v8836_v30  ;;  %v3685_v30 = vpop.permute.xlu1 %3684 }
0x1c91   :  { %v3642_v35 = vpop.f32.mrf.mxu1 }
0x1c92   :  { %6906 = vpow2.f32 %v6099_v37  ;;  %v6100_v45 = vmul.f32 -1.442695, %v3646_v27 }
0x1c93   :  { %v3643_v36 = vpop.f32.mrf.mxu1 }
0x1c94   :  { %6908 = vpow2.f32 %v6100_v45 }
0x1c9f   :  { %v6907_v12 = vpop.eup %6906 }
0x1ca0   :  { %v3653_v26 = vadd.f32 1.0, %v6907_v12 }
0x1ca1   :  { %v6909_v34 = vpop.eup %6908 }
0x1ca2   :  { %6910 = vrcp.f32 %v3653_v26  ;;  %v3654_v29 = vadd.f32 1.0, %v6909_v34 }
0x1ca4   :  { %6912 = vrcp.f32 %v3654_v29 }
0x1caf   :  { %v6911_v11 = vpop.eup %6910 }
0x1cb0   :  { %v3660_v16 = vmul.f32 2.0, %v6911_v11  ;;  %v3659_v59 = vmul.f32 %v6911_v11, %v8932_v21  ;;  %v3706_v21 = vld [vmem:[%s9730_s3 + $0x20] sm:$0xff] }
0x1cb1   :  { %v6913_v24 = vpop.eup %6912  ;;  %v3712_v48 = vsub.f32 1.0, %v3706_v21 }
0x1cb2   :  { %v6101_v62 = vadd.f32 -1.0, %v3660_v16  ;;  %v3688_v49 = vmul.f32 2.0, %v6913_v24  ;;  %v3687_v41 = vmul.f32 %v6913_v24, %v3685_v30 }
0x1cb3   :  { %v3713_v10 = vmul.f32 %v3712_v48, %v8944_v54  ;;  %v3720_v28 = vmul.f32 %v3712_v48, %v8950_v42 }
0x1cb4   :  { %3663 = vrot.lane.b32.xlu1 %v6101_v62, %s7135_s8  ;;  %v6102_v47 = vadd.f32 -1.0, %v3688_v49 }
0x1cb6   :  { %3691 = vrot.lane.b32.xlu0 %v6102_v47, %s7135_s8 }
0x1d26   :  { %v3664_v14 = vpop.permute.xlu1 %3663 }
0x1d27   :  { %v3666_v1 = vmul.f32 %v6911_v11, %v3664_v14 }
0x1d28   :  { %v3692_v15 = vpop.permute.xlu0 %3691 }
0x1d29   :  { %v3694_v9 = vmul.f32 %v6913_v24, %v3692_v15 }
0x1d2b   :  { %3696 = vrot.lane.b32.xlu0 %v3694_v9, %s7136_s9 }
0x1d2f   :  { %3668 = vrot.lane.b32.xlu0 %v3666_v1, %s7136_s9 }
0x1d9d   :  { %v3697_v55 = vpop.permute.xlu0 %3696 }
0x1d9e   :  { %v3699_v58 = vadd.f32 %v3697_v55, %v3687_v41 }
0x1da0   :  { %6914 = vtanh.f32 %v3699_v58 }
0x1da1   :  { %v3669_v51 = vpop.permute.xlu0 %3668 }
0x1da2   :  { %v8973_v3 = vadd.f32 %v3669_v51, %v3659_v59 }
0x1da4   :  { %6916 = vtanh.f32 %v8973_v3 }
0x1dad   :  { %v6915_v46 = vpop.eup %6914 }
0x1dae   :  { %3702 = vrot.lane.b32.xlu1 %v6915_v46, %s7135_s8 }
0x1db1   :  { %v6917_v4 = vpop.eup %6916 }
0x1db2   :  { %3674 = vrot.lane.b32.xlu1 %v6917_v4, %s7135_s8 }
0x1e20   :  { %v3703_v50 = vpop.permute.xlu1 %3702 }
0x1e21   :  { %v3705_v22 = vmul.f32 %v6913_v24, %v3703_v50 }
0x1e23   :  { %3708 = vrot.lane.b32.xlu0 %v3705_v22, %s7136_s9 }
0x1e24   :  { %v3675_v63 = vpop.permute.xlu1 %3674 }
0x1e25   :  { %v3677_v38 = vmul.f32 %v6911_v11, %v3675_v63 }
0x1e27   :  { %3679 = vrot.lane.b32.xlu0 %v3677_v38, %s7136_s9 }
0x1e2b   :  { %3716 = vrot.lane.b32.xlu0 %v3699_v58, %s7139_s26 }
0x1e95   :  { %v3709_v20 = vpop.permute.xlu0 %3708 }
0x1e96   :  { %v3711_v19 = vmul.f32 %v3709_v20, %v3706_v21 }
0x1e98   :  { %v8985_v18 = vadd.f32 %v3713_v10, %v3711_v19 }
0x1e99   :  { %v3680_v56 = vpop.permute.xlu0 %3679 }
0x1e9a   :  { %3682 = vst.msk [vmem:[#allocation4 + $0x18] sm:$0xff] %vm597_vm1, %v3680_v56  ;;  %3723 = vrot.lane.b32.xlu1 %v8985_v18, %s7136_s9 }
0x1e9d   :  { %v3717_v32 = vpop.permute.xlu0 %3716 }
0x1e9e   :  { %v3719_v37 = vmul.f32 %v3717_v32, %v3706_v21 }
0x1ea0   :  { %v8991_v27 = vadd.f32 %v3720_v28, %v3719_v37 }
0x1ea2   :  { %3814 = vrot.lane.b32.xlu0 %v8991_v27, %s7136_s9 }
0x1f0c   :  { %v3724_v35 = vpop.permute.xlu1 %3723 }
0x1f0d   :  { %3726 = vst.msk [vmem:[#allocation4 + $0x20] sm:$0xff] %vm3335_vm2, %v3724_v35  ;;  %v3729_v54 = vsel %vm597_vm1, %v3680_v56, %v3724_v35 }
0x1f0e   :  { %v3730_v45 = vpack.c.bf16 %v3729_v54, %v3729_v54 }
0x1f10   :  { %6103 = vmatmul.mubr.msk.bf16.vlgmr.msra.gmra.mxu0 %vm3214_vm3, %v3730_v45 }
0x1f11   :  { %4003 = vmatpush1.bf16.msra.mxu0 %v8687_v33  ;;  %4026 = vmatprep.mubr.bf16.mxu0 %v7134_v5 }
0x1f12   :  { %4004 = vmatprep.subr.bf16.mxu0 %v8709_v39 }
0x1f15   :  { %4005 = vmatpush1.bf16.msra.mxu0 %v8711_v6 }
0x1f16   :  { %4006 = vmatprep.subr.bf16.mxu0 %v8733_v60 }
0x1f19   :  { %4007 = vmatpush1.bf16.msra.mxu0 %v8735_v0 }
0x1f1a   :  { %4008 = vmatprep.subr.bf16.mxu0 %v8763_v57 }
0x1f1d   :  { %4009 = vmatpush1.bf16.msra.mxu0 %v8765_v25 }
0x1fd0   :  { %v3768_v42 = vpop.f32.mrf.mxu0 }
0x1fd1   :  { %v3775_v36 = vadd.f32 %v3768_v42, %v8834_v31 }
0x1fd2   :  { %v3770_v12 = vpop.f32.mrf.mxu0 }
0x1fd3   :  { %v6104_v26 = vmul.f32 -1.442695, %v3775_v36  ;;  %v3776_v34 = vadd.f32 %v3770_v12, %v8832_v7  ;;  %v3815_v7 = vpop.permute.xlu0 %3814 }
0x1fd4   :  { %v3772_v29 = vpop.f32.mrf.mxu0 }
0x1fd5   :  { %6918 = vpow2.f32 %v6104_v26  ;;  %v6105_v11 = vmul.f32 -1.442695, %v3776_v34 }
0x1fd6   :  { %v3773_v16 = vpop.f32.mrf.mxu0 }
0x1fd7   :  { %6920 = vpow2.f32 %v6105_v11 }
0x1fe2   :  { %v6919_v24 = vpop.eup %6918 }
0x1fe3   :  { %v3783_v62 = vadd.f32 1.0, %v6919_v24 }
0x1fe4   :  { %v6921_v49 = vpop.eup %6920 }
0x1fe5   :  { %6922 = vrcp.f32 %v3783_v62  ;;  %v3784_v47 = vadd.f32 1.0, %v6921_v49 }
0x1fe7   :  { %6924 = vrcp.f32 %v3784_v47 }
0x1ff2   :  { %v6923_v30 = vpop.eup %6922 }
0x1ff3   :  { %v3790_v15 = vmul.f32 2.0, %v6923_v30  ;;  %v3789_v50 = vmul.f32 %v6923_v30, %v8973_v3  ;;  %v3836_v3 = vld [vmem:[%s9730_s3 + $0x18] sm:$0xff] }
0x1ff4   :  { %v6925_v9 = vpop.eup %6924  ;;  %v3842_v56 = vsub.f32 1.0, %v3836_v3 }
0x1ff5   :  { %v6106_v14 = vadd.f32 -1.0, %v3790_v15  ;;  %v3818_v31 = vmul.f32 2.0, %v6925_v9  ;;  %v3817_v51 = vmul.f32 %v6925_v9, %v3815_v7 }
0x1ff6   :  { %v3843_v28 = vmul.f32 %v3842_v56, %v8985_v18  ;;  %v3850_v42 = vmul.f32 %v3842_v56, %v8991_v27 }
0x1ff7   :  { %3793 = vrot.lane.b32.xlu0 %v6106_v14, %s7135_s8  ;;  %v6107_v1 = vadd.f32 -1.0, %v3818_v31 }
0x1ff9   :  { %3821 = vrot.lane.b32.xlu1 %v6107_v1, %s7135_s8 }
0x2069   :  { %v3794_v58 = vpop.permute.xlu0 %3793 }
0x206a   :  { %v3796_v59 = vmul.f32 %v6923_v30, %v3794_v58 }
0x206b   :  { %v3822_v41 = vpop.permute.xlu1 %3821 }
0x206c   :  { %v3824_v55 = vmul.f32 %v6925_v9, %v3822_v41 }
0x206e   :  { %3826 = vrot.lane.b32.xlu1 %v3824_v55, %s7136_s9 }
0x2072   :  { %3798 = vrot.lane.b32.xlu1 %v3796_v59, %s7136_s9 }
0x20e0   :  { %v3827_v46 = vpop.permute.xlu1 %3826 }
0x20e1   :  { %v3829_v4 = vadd.f32 %v3827_v46, %v3817_v51 }
0x20e3   :  { %6926 = vtanh.f32 %v3829_v4 }
0x20e4   :  { %v3799_v22 = vpop.permute.xlu1 %3798 }
0x20e5   :  { %v9013_v63 = vadd.f32 %v3799_v22, %v3789_v50 }
0x20e7   :  { %6928 = vtanh.f32 %v9013_v63 }
0x20f0   :  { %v6927_v38 = vpop.eup %6926 }
0x20f1   :  { %3832 = vrot.lane.b32.xlu0 %v6927_v38, %s7135_s8 }
0x20f4   :  { %v6929_v21 = vpop.eup %6928 }
0x20f5   :  { %3804 = vrot.lane.b32.xlu0 %v6929_v21, %s7135_s8 }
0x2163   :  { %v3833_v48 = vpop.permute.xlu0 %3832 }
0x2164   :  { %v3835_v20 = vmul.f32 %v6925_v9, %v3833_v48 }
0x2166   :  { %3838 = vrot.lane.b32.xlu1 %v3835_v20, %s7136_s9 }
0x2167   :  { %v3805_v10 = vpop.permute.xlu0 %3804 }
0x2168   :  { %v3807_v19 = vmul.f32 %v6923_v30, %v3805_v10 }
0x216a   :  { %3809 = vrot.lane.b32.xlu1 %v3807_v19, %s7136_s9 }
0x216e   :  { %3846 = vrot.lane.b32.xlu1 %v3829_v4, %s7139_s26 }
0x21d8   :  { %v3839_v32 = vpop.permute.xlu1 %3838 }
0x21d9   :  { %v3841_v37 = vmul.f32 %v3839_v32, %v3836_v3 }
0x21db   :  { %v9025_v35 = vadd.f32 %v3843_v28, %v3841_v37 }
0x21dc   :  { %v3810_v54 = vpop.permute.xlu1 %3809 }
0x21dd   :  { %3812 = vst.msk [vmem:[#allocation4 + $0x20] sm:$0xff] %vm597_vm1, %v3810_v54  ;;  %3853 = vrot.lane.b32.xlu0 %v9025_v35, %s7136_s9 }
0x21e0   :  { %v3847_v45 = vpop.permute.xlu1 %3846 }
0x21e1   :  { %v3849_v36 = vmul.f32 %v3847_v45, %v3836_v3 }
0x21e3   :  { %v9031_v12 = vadd.f32 %v3850_v42, %v3849_v36 }
0x21e5   :  { %3944 = vrot.lane.b32.xlu1 %v9031_v12, %s7136_s9 }
0x224f   :  { %v3854_v26 = vpop.permute.xlu0 %3853 }
0x2250   :  { %3856 = vst.msk [vmem:[#allocation4 + $0x18] sm:$0xff] %vm3335_vm2, %v3854_v26  ;;  %v3859_v18 = vsel %vm597_vm1, %v3810_v54, %v3854_v26 }
0x2251   :  { %v3860_v34 = vpack.c.bf16 %v3859_v18, %v3859_v18 }
0x2253   :  { %6108 = vmatmul.mubr.msk.bf16.vlgmr.msra.gmra.mxu1 %vm3214_vm3, %v3860_v34 }
0x2254   :  { %4133 = vmatpush1.bf16.msra.mxu1 %v8687_v33  ;;  %4156 = vmatprep.mubr.bf16.mxu1 %v7134_v5 }
0x2255   :  { %4134 = vmatprep.subr.bf16.mxu1 %v8709_v39 }
0x2258   :  { %4135 = vmatpush1.bf16.msra.mxu1 %v8711_v6 }
0x2259   :  { %4136 = vmatprep.subr.bf16.mxu1 %v8733_v60 }
0x225c   :  { %4137 = vmatpush1.bf16.msra.mxu1 %v8735_v0 }
0x225d   :  { %4138 = vmatprep.subr.bf16.mxu1 %v8763_v57 }
0x2260   :  { %4139 = vmatpush1.bf16.msra.mxu1 %v8765_v25 }
0x2313   :  { %v3898_v27 = vpop.f32.mrf.mxu1 }
0x2314   :  { %v3905_v29 = vadd.f32 %v3898_v27, %v8838_v13 }
0x2315   :  { %v3900_v11 = vpop.f32.mrf.mxu1 }
0x2316   :  { %v6109_v16 = vmul.f32 -1.442695, %v3905_v29  ;;  %v3906_v33 = vadd.f32 %v3900_v11, %v8828_v17  ;;  %v3945_v17 = vpop.permute.xlu1 %3944 }
0x2317   :  { %v3902_v24 = vpop.f32.mrf.mxu1 }
0x2318   :  { %6930 = vpow2.f32 %v6109_v16  ;;  %v6110_v39 = vmul.f32 -1.442695, %v3906_v33 }
0x2319   :  { %v3903_v62 = vpop.f32.mrf.mxu1 }
0x231a   :  { %6932 = vpow2.f32 %v6110_v39 }
0x2325   :  { %v6931_v6 = vpop.eup %6930 }
0x2326   :  { %v3913_v60 = vadd.f32 1.0, %v6931_v6 }
0x2327   :  { %v6933_v49 = vpop.eup %6932 }
0x2328   :  { %6934 = vrcp.f32 %v3913_v60  ;;  %v3914_v0 = vadd.f32 1.0, %v6933_v49 }
0x232a   :  { %6936 = vrcp.f32 %v3914_v0 }
0x2335   :  { %v6935_v57 = vpop.eup %6934 }
0x2336   :  { %v3920_v25 = vmul.f32 2.0, %v6935_v57  ;;  %v3919_v58 = vmul.f32 %v6935_v57, %v9013_v63  ;;  %v3966_v63 = vld [vmem:[%s9730_s3 + $0x10] sm:$0xff] }
0x2337   :  { %v6937_v47 = vpop.eup %6936  ;;  %v3972_v48 = vsub.f32 1.0, %v3966_v63 }
0x2338   :  { %v6111_v30 = vadd.f32 -1.0, %v3920_v25  ;;  %v3948_v13 = vmul.f32 2.0, %v6937_v47  ;;  %v3947_v7 = vmul.f32 %v6937_v47, %v3945_v17 }
0x2339   :  { %v3973_v10 = vmul.f32 %v3972_v48, %v9025_v35  ;;  %v3980_v28 = vmul.f32 %v3972_v48, %v9031_v12 }
0x233a   :  { %3923 = vrot.lane.b32.xlu1 %v6111_v30, %s7135_s8  ;;  %v6112_v15 = vadd.f32 -1.0, %v3948_v13 }
0x233c   :  { %3951 = vrot.lane.b32.xlu0 %v6112_v15, %s7135_s8 }
0x23ac   :  { %v3924_v31 = vpop.permute.xlu1 %3923 }
0x23ad   :  { %v3926_v1 = vmul.f32 %v6935_v57, %v3924_v31 }
0x23ae   :  { %v3952_v9 = vpop.permute.xlu0 %3951 }
0x23af   :  { %v3954_v14 = vmul.f32 %v6937_v47, %v3952_v9 }
0x23b1   :  { %3956 = vrot.lane.b32.xlu0 %v3954_v14, %s7136_s9 }
0x23b5   :  { %3928 = vrot.lane.b32.xlu0 %v3926_v1, %s7136_s9 }
0x2423   :  { %v3957_v41 = vpop.permute.xlu0 %3956 }
0x2424   :  { %v3959_v55 = vadd.f32 %v3957_v41, %v3947_v7 }
0x2426   :  { %6938 = vtanh.f32 %v3959_v55 }
0x2427   :  { %v3929_v59 = vpop.permute.xlu0 %3928 }
0x2428   :  { %v9053_v51 = vadd.f32 %v3929_v59, %v3919_v58 }
0x242a   :  { %6940 = vtanh.f32 %v9053_v51 }
0x2433   :  { %v6939_v46 = vpop.eup %6938 }
0x2434   :  { %3962 = vrot.lane.b32.xlu1 %v6939_v46, %s7135_s8 }
0x2437   :  { %v6941_v4 = vpop.eup %6940 }
0x2438   :  { %3934 = vrot.lane.b32.xlu1 %v6941_v4, %s7135_s8 }
0x24a6   :  { %v3963_v50 = vpop.permute.xlu1 %3962 }
0x24a7   :  { %v3965_v22 = vmul.f32 %v6937_v47, %v3963_v50 }
0x24a9   :  { %3968 = vrot.lane.b32.xlu0 %v3965_v22, %s7136_s9 }
0x24aa   :  { %v3935_v38 = vpop.permute.xlu1 %3934 }
0x24ab   :  { %v3937_v21 = vmul.f32 %v6935_v57, %v3935_v38 }
0x24ad   :  { %3939 = vrot.lane.b32.xlu0 %v3937_v21, %s7136_s9 }
0x24b1   :  { %3976 = vrot.lane.b32.xlu0 %v3959_v55, %s7139_s26 }
0x251b   :  { %v3969_v20 = vpop.permute.xlu0 %3968 }
0x251c   :  { %v3971_v19 = vmul.f32 %v3969_v20, %v3966_v63 }
0x251e   :  { %v9065_v3 = vadd.f32 %v3973_v10, %v3971_v19 }
0x251f   :  { %v3940_v56 = vpop.permute.xlu0 %3939 }
0x2520   :  { %3942 = vst.msk [vmem:[#allocation4 + $0x28] sm:$0xff] %vm597_vm1, %v3940_v56  ;;  %3983 = vrot.lane.b32.xlu1 %v9065_v3, %s7136_s9 }
0x2523   :  { %v3977_v32 = vpop.permute.xlu0 %3976 }
0x2524   :  { %v3979_v37 = vmul.f32 %v3977_v32, %v3966_v63 }
0x2526   :  { %v9071_v54 = vadd.f32 %v3980_v28, %v3979_v37 }
0x2528   :  { %4074 = vrot.lane.b32.xlu0 %v9071_v54, %s7136_s9 }
0x2592   :  { %v3984_v45 = vpop.permute.xlu1 %3983 }
0x2593   :  { %3986 = vst.msk [vmem:[#allocation4 + $0x10] sm:$0xff] %vm3335_vm2, %v3984_v45  ;;  %v3989_v35 = vsel %vm597_vm1, %v3940_v56, %v3984_v45 }
0x2594   :  { %v3990_v42 = vpack.c.bf16 %v3989_v35, %v3989_v35 }
0x2596   :  { %6113 = vmatmul.mubr.msk.bf16.vlgmr.msra.gmra.mxu0 %vm3214_vm3, %v3990_v42 }
0x2597   :  { %4365 = vmatprep.mubr.f32.mxu0 %v7137_v23 }
0x2656   :  { %v4028_v36 = vpop.f32.mrf.mxu0 }
0x2657   :  { %v4035_v26 = vadd.f32 %v4028_v36, %v8842_v53 }
0x2658   :  { %v4030_v12 = vpop.f32.mrf.mxu0 }
0x2659   :  { %v6114_v18 = vmul.f32 -1.442695, %v4035_v26  ;;  %v4036_v34 = vadd.f32 %v4030_v12, %v8824_v44  ;;  %v4075_v44 = vpop.permute.xlu0 %4074 }
0x265a   :  { %v4032_v27 = vpop.f32.mrf.mxu0 }
0x265b   :  { %6942 = vpow2.f32 %v6114_v18  ;;  %v6115_v29 = vmul.f32 -1.442695, %v4036_v34 }
0x265c   :  { %v4033_v11 = vpop.f32.mrf.mxu0 }
0x265d   :  { %6944 = vpow2.f32 %v6115_v29 }
0x2668   :  { %v6943_v16 = vpop.eup %6942 }
0x2669   :  { %v4043_v33 = vadd.f32 1.0, %v6943_v16 }
0x266a   :  { %v6945_v24 = vpop.eup %6944 }
0x266b   :  { %6946 = vrcp.f32 %v4043_v33  ;;  %v4044_v39 = vadd.f32 1.0, %v6945_v24 }
0x266d   :  { %6948 = vrcp.f32 %v4044_v39 }
0x2678   :  { %v6947_v62 = vpop.eup %6946 }
0x2679   :  { %v4050_v6 = vmul.f32 2.0, %v6947_v62  ;;  %v4049_v9 = vmul.f32 %v6947_v62, %v9053_v51  ;;  %v4096_v51 = vld [vmem:[%s9730_s3 + $0x8] sm:$0xff] }
0x267a   :  { %v6949_v60 = vpop.eup %6948  ;;  %v4102_v46 = vsub.f32 1.0, %v4096_v51 }
0x267b   :  { %v6116_v49 = vadd.f32 -1.0, %v4050_v6  ;;  %v4078_v53 = vmul.f32 2.0, %v6949_v60  ;;  %v4077_v13 = vmul.f32 %v6949_v60, %v4075_v44 }
0x267c   :  { %v4103_v50 = vmul.f32 %v4102_v46, %v9065_v3  ;;  %v4110_v48 = vmul.f32 %v4102_v46, %v9071_v54  ;;  %v4257_v46 = vld [vmem:[%s9731_s4 + $0x118] sm:$0xff] }
0x267d   :  { %4053 = vrot.lane.b32.xlu0 %v6116_v49, %s7135_s8  ;;  %v6117_v0 = vadd.f32 -1.0, %v4078_v53 }
0x267f   :  { %4081 = vrot.lane.b32.xlu1 %v6117_v0, %s7135_s8 }
0x26ef   :  { %v4054_v47 = vpop.permute.xlu0 %4053 }
0x26f0   :  { %v4056_v30 = vmul.f32 %v6947_v62, %v4054_v47 }
0x26f1   :  { %v4082_v57 = vpop.permute.xlu1 %4081 }
0x26f2   :  { %v4084_v25 = vmul.f32 %v6949_v60, %v4082_v57 }
0x26f4   :  { %4086 = vrot.lane.b32.xlu1 %v4084_v25, %s7136_s9 }
0x26f8   :  { %4058 = vrot.lane.b32.xlu1 %v4056_v30, %s7136_s9  ;;  %v4263_v30 = vld [vmem:[%s9731_s4 + $0x148] sm:$0xff] }
0x26f9   :  { %4317 = vmatprep.subr.mxu0 %v4263_v30 }
0x2766   :  { %v4087_v15 = vpop.permute.xlu1 %4086 }
0x2767   :  { %v4089_v17 = vadd.f32 %v4087_v15, %v4077_v13  ;;  %v4262_v13 = vld [vmem:[%s9731_s4 + $0x140] sm:$0xff]  ;;  %v4261_v15 = vld [vmem:[%s9731_s4 + $0x138] sm:$0xff] }
0x2768   :  { %4318 = vmatpush1.msra.mxu0 %v4262_v13 }
0x2769   :  { %6950 = vtanh.f32 %v4089_v17  ;;  %4319 = vmatprep.subr.mxu0 %v4261_v15 }
0x276a   :  { %v4059_v14 = vpop.permute.xlu1 %4058 }
0x276b   :  { %v9086_v31 = vadd.f32 %v4059_v14, %v4049_v9  ;;  %v4445_v9 = vld [vmem:[%s9731_s4 + $0x1d8] sm:$0xff]  ;;  %v4260_v14 = vld [vmem:[%s9731_s4 + $0x130] sm:$0xff] }
0x276c   :  { %4320 = vmatpush1.msra.mxu0 %v4260_v14  ;;  %v6123_v14 = vld [vmem:[%s9731_s4 + $0x150] ss:$8 sm:$0x3] }
0x276d   :  { %6952 = vtanh.f32 %v9086_v31 }
0x2776   :  { %v6951_v1 = vpop.eup %6950 }
0x2777   :  { %4092 = vrot.lane.b32.xlu0 %v6951_v1, %s7135_s8  ;;  %v4442_v1 = vld [vmem:[%s9731_s4 + $0x1c0] sm:$0xff] }
0x277a   :  { %v6953_v7 = vpop.eup %6952 }
0x277b   :  { %4064 = vrot.lane.b32.xlu0 %v6953_v7, %s7135_s8  ;;  %v4444_v7 = vld [vmem:[%s9731_s4 + $0x1d0] sm:$0xff] }
0x27e9   :  { %v4093_v41 = vpop.permute.xlu0 %4092 }
0x27ea   :  { %v4095_v55 = vmul.f32 %v6949_v60, %v4093_v41  ;;  %v4259_v41 = vld [vmem:[%s9731_s4 + $0x128] sm:$0xff] }
0x27eb   :  { %4321 = vmatprep.subr.mxu0 %v4259_v41 }
0x27ec   :  { %4098 = vrot.lane.b32.xlu1 %v4095_v55, %s7136_s9  ;;  %v9147_v55 = vpack.c.bf16 %v4444_v7, %v4442_v1  ;;  %v4274_v1 = vrot.slane %v6123_v14, %v3030_v8 }
0x27ed   :  { %v4065_v58 = vpop.permute.xlu0 %4064 }
0x27ee   :  { %v4067_v59 = vmul.f32 %v6947_v62, %v4065_v58  ;;  %v4258_v58 = vld [vmem:[%s9731_s4 + $0x120] sm:$0xff] }
0x27ef   :  { %4322 = vmatpush1.msra.mxu0 %v4258_v58 }
0x27f0   :  { %4069 = vrot.lane.b32.xlu1 %v4067_v59, %s7136_s9  ;;  %v4439_v59 = vld [vmem:[%s9731_s4 + $0x1a8] sm:$0xff]  ;;  %4323 = vmatprep.subr.mxu0 %v4257_v46 }
0x27f4   :  { %4106 = vrot.lane.b32.xlu1 %v4089_v17, %s7139_s26  ;;  %v4443_v17 = vld [vmem:[%s9731_s4 + $0x1c8] sm:$0xff] }
0x285e   :  { %v4099_v4 = vpop.permute.xlu1 %4098 }
0x285f   :  { %v4101_v22 = vmul.f32 %v4099_v4, %v4096_v51  ;;  %v4441_v4 = vld [vmem:[%s9731_s4 + $0x1b8] sm:$0xff] }
0x2861   :  { %v9098_v38 = vadd.f32 %v4103_v50, %v4101_v22  ;;  %v4438_v50 = vld [vmem:[%s9731_s4 + $0x1a0] sm:$0xff] }
0x2862   :  { %v4070_v21 = vpop.permute.xlu1 %4069 }
0x2863   :  { %4072 = vst.msk [vmem:[#allocation4 + $0x30] sm:$0xff] %vm597_vm1, %v4070_v21  ;;  %4113 = vrot.lane.b32.xlu0 %v9098_v38, %s7136_s9 }
0x2866   :  { %v4107_v63 = vpop.permute.xlu1 %4106 }
0x2867   :  { %v4109_v20 = vmul.f32 %v4107_v63, %v4096_v51  ;;  %v4256_v63 = vld [vmem:[%s9731_s4 + $0x110] sm:$0xff] }
0x2868   :  { %4324 = vmatpush1.msra.mxu0 %v4256_v63 }
0x2869   :  { %v4111_v10 = vadd.f32 %v4110_v48, %v4109_v20  ;;  %v4440_v48 = vld [vmem:[%s9731_s4 + $0x1b0] sm:$0xff] }
0x286b   :  { %4204 = vrot.lane.b32.xlu1 %v4111_v10, %s7136_s9  ;;  %v9174_v10 = vpack.c.bf16 %v4440_v48, %v4438_v50 }
0x28d5   :  { %v4114_v19 = vpop.permute.xlu0 %4113 }
0x28d6   :  { %4116 = vst.msk [vmem:[#allocation4 + $0x8] sm:$0xff] %vm3335_vm2, %v4114_v19  ;;  %v4119_v3 = vsel %vm597_vm1, %v4070_v21, %v4114_v19  ;;  %v9166_v21 = vpack.c.bf16 %v4441_v4, %v4439_v59 }
0x28d7   :  { %v4120_v56 = vpack.c.bf16 %v4119_v3, %v4119_v3  ;;  %v4226_v3 = vld [vmem:[%s9730_s3] sm:$0xff] }
0x28d9   :  { %6118 = vmatmul.mubr.msk.bf16.vlgmr.msra.gmra.mxu1 %vm3214_vm3, %v4120_v56  ;;  %v4255_v56 = vld [vmem:[%s9731_s4 + $0x108] sm:$0xff] }
0x28da   :  { %4488 = vmatprep.mubr.bf16.mxu1 %v7134_v5  ;;  %4325 = vmatprep.subr.mxu0 %v4255_v56 }
0x2999   :  { %v4158_v32 = vpop.f32.mrf.mxu1 }
0x299a   :  { %v4165_v28 = vadd.f32 %v4158_v32, %v8846_v40  ;;  %v4254_v32 = vld [vmem:[%s9731_s4 + $0x100] sm:$0xff] }
0x299b   :  { %v4160_v37 = vpop.f32.mrf.mxu1  ;;  %4326 = vmatpush1.msra.mxu0 %v4254_v32 }
0x299c   :  { %v6119_v45 = vmul.f32 -1.442695, %v4165_v28  ;;  %v4166_v54 = vadd.f32 %v4160_v37, %v8820_v61  ;;  %v4205_v61 = vpop.permute.xlu1 %4204  ;;  %v4253_v28 = vld [vmem:[%s9731_s4 + $0xf8] sm:$0xff]  ;;  %v4435_v37 = vld [vmem:[%s9731_s4 + $0x188] sm:$0xff] }
0x299d   :  { %v4162_v35 = vpop.f32.mrf.mxu1  ;;  %4327 = vmatprep.subr.mxu0 %v4253_v28 }
0x299e   :  { %6954 = vpow2.f32 %v6119_v45  ;;  %v6120_v42 = vmul.f32 -1.442695, %v4166_v54  ;;  %v4437_v45 = vld [vmem:[%s9731_s4 + $0x198] sm:$0xff]  ;;  %v4252_v54 = vld [vmem:[%s9731_s4 + $0xf0] sm:$0xff] }
0x299f   :  { %v4163_v36 = vpop.f32.mrf.mxu1  ;;  %v9201_v35 = vpack.c.bf16 %v4437_v45, %v4435_v37  ;;  %4328 = vmatpush1.msra.mxu0 %v4252_v54 }
0x29a0   :  { %6956 = vpow2.f32 %v6120_v42  ;;  %v4434_v42 = vld [vmem:[%s9731_s4 + $0x180] sm:$0xff]  ;;  %v4436_v36 = vld [vmem:[%s9731_s4 + $0x190] sm:$0xff] }
0x29ab   :  { %v6955_v26 = vpop.eup %6954 }
0x29ac   :  { %v4173_v12 = vadd.f32 1.0, %v6955_v26  ;;  %v4251_v26 = vld [vmem:[%s9731_s4 + $0xe8] sm:$0xff] }
0x29ad   :  { %v6957_v18 = vpop.eup %6956  ;;  %4329 = vmatprep.subr.mxu0 %v4251_v26 }
0x29ae   :  { %6958 = vrcp.f32 %v4173_v12  ;;  %v4174_v34 = vadd.f32 1.0, %v6957_v18  ;;  %v9212_v12 = vpack.c.bf16 %v4436_v36, %v4434_v42  ;;  %v4250_v18 = vld [vmem:[%s9731_s4 + $0xe0] sm:$0xff] }
0x29af   :  { %4330 = vmatpush1.msra.mxu0 %v4250_v18 }
0x29b0   :  { %6960 = vrcp.f32 %v4174_v34  ;;  %v4431_v34 = vld [vmem:[%s9731_s4 + $0x168] sm:$0xff] }
0x29bb   :  { %v6959_v27 = vpop.eup %6958 }
0x29bc   :  { %v4180_v29 = vmul.f32 2.0, %v6959_v27  ;;  %v4179_v60 = vmul.f32 %v6959_v27, %v9086_v31  ;;  %v9136_v31 = vpack.c.bf16 %v4445_v9, %v4443_v17 }
0x29bd   :  { %v6961_v11 = vpop.eup %6960 }
0x29be   :  { %v6121_v16 = vadd.f32 -1.0, %v4180_v29  ;;  %v4208_v40 = vmul.f32 2.0, %v6961_v11  ;;  %v4207_v0 = vmul.f32 %v6961_v11, %v4205_v61  ;;  %4464 = vmatprep.subr.bf16.mxu1 %v9136_v31  ;;  %v4433_v29 = vld [vmem:[%s9731_s4 + $0x178] sm:$0xff]  ;;  %v4432_v61 = vld [vmem:[%s9731_s4 + $0x170] sm:$0xff] }
0x29bf   :  { %4465 = vmatpush1.bf16.msra.mxu1 %v9147_v55 }
0x29c0   :  { %4183 = vrot.lane.b32.xlu1 %v6121_v16, %s7135_s8  ;;  %v6122_v33 = vadd.f32 -1.0, %v4208_v40  ;;  %4466 = vmatprep.subr.bf16.mxu1 %v9166_v21  ;;  %v4232_v16 = vsub.f32 1.0, %v4226_v3  ;;  %v9231_v40 = vpack.c.bf16 %v4433_v29, %v4431_v34 }
0x29c2   :  { %4211 = vrot.lane.b32.xlu0 %v6122_v33, %s7135_s8  ;;  %v4248_v33 = vld [vmem:[%s9731_s4 + $0xd0] sm:$0xff] }
0x29c3   :  { %4467 = vmatpush1.bf16.msra.mxu1 %v9174_v10 }
0x29c4   :  { %4468 = vmatprep.subr.bf16.mxu1 %v9201_v35 }
0x29c7   :  { %4469 = vmatpush1.bf16.msra.mxu1 %v9212_v12 }
0x29c8   :  { %4470 = vmatprep.subr.bf16.mxu1 %v9231_v40 }
0x2a32   :  { %v4184_v24 = vpop.permute.xlu1 %4183 }
0x2a33   :  { %v4186_v39 = vmul.f32 %v6959_v27, %v4184_v24 }
0x2a34   :  { %v4212_v62 = vpop.permute.xlu0 %4211 }
0x2a35   :  { %v4214_v6 = vmul.f32 %v6961_v11, %v4212_v62  ;;  %4188 = vrot.lane.b32.xlu1 %v4186_v39, %s7136_s9 }
0x2a37   :  { %4216 = vrot.lane.b32.xlu0 %v4214_v6, %s7136_s9  ;;  %v4233_v6 = vmul.f32 %v4232_v16, %v9098_v38 }
0x2aa7   :  { %v4189_v49 = vpop.permute.xlu1 %4188 }
0x2aa8   :  { %v4191_v53 = vadd.f32 %v4189_v49, %v4179_v60 }
0x2aa9   :  { %v4217_v44 = vpop.permute.xlu0 %4216 }
0x2aaa   :  { %6962 = vtanh.f32 %v4191_v53  ;;  %v4219_v57 = vadd.f32 %v4217_v44, %v4207_v0  ;;  %v4241_v53 = vld [vmem:[#allocation4 + $0x8] sm:$0xff]  ;;  %v4242_v0 = vld [vmem:[#allocation4 + $0x10] sm:$0xff]  ;;  %v4243_v44 = vld [vmem:[#allocation4 + $0x18] sm:$0xff] }
0x2aac   :  { %6964 = vtanh.f32 %v4219_v57  ;;  %v4244_v57 = vld [vmem:[#allocation4 + $0x20] sm:$0xff] }
0x2ab7   :  { %v6963_v25 = vpop.eup %6962 }
0x2ab8   :  { %4194 = vrot.lane.b32.xlu1 %v6963_v25, %s7135_s8  ;;  %v4245_v25 = vld [vmem:[#allocation4 + $0x28] sm:$0xff] }
0x2ab9   :  { %v6965_v47 = vpop.eup %6964 }
0x2aba   :  { %4222 = vrot.lane.b32.xlu0 %v6965_v47, %s7135_s8  ;;  %v4246_v47 = vld [vmem:[#allocation4 + $0x30] sm:$0xff] }
0x2b2a   :  { %v4195_v51 = vpop.permute.xlu1 %4194 }
0x2b2b   :  { %v4197_v22 = vmul.f32 %v6959_v27, %v4195_v51  ;;  %v4249_v27 = vld [vmem:[%s9731_s4 + $0xd8] sm:$0xff] }
0x2b2c   :  { %v4223_v20 = vpop.permute.xlu0 %4222  ;;  %4331 = vmatprep.subr.mxu0 %v4249_v27 }
0x2b2d   :  { %v4225_v19 = vmul.f32 %v6961_v11, %v4223_v20  ;;  %4199 = vrot.lane.b32.xlu1 %v4197_v22, %s7136_s9  ;;  %v4430_v11 = vld [vmem:[%s9731_s4 + $0x160] sm:$0xff]  ;;  %4332 = vmatpush1.msra.mxu0 %v4248_v33 }
0x2b2e   :  { %v9239_v39 = vpack.c.bf16 %v4432_v61, %v4430_v11  ;;  %4719 = vmatprep.subr.bf16.mxu0 %v9136_v31 }
0x2b2f   :  { %4228 = vrot.lane.b32.xlu0 %v4225_v19, %s7136_s9 }
0x2b30   :  { %4471 = vmatpush1.bf16.msra.mxu1 %v9239_v39 }
0x2b31   :  { %4589 = vmatprep.subr.bf16.mxu1 %v9136_v31 }
0x2b33   :  { %4489 = vmatmul.mubr.bf16.vlgmr.msra.gmra.mxu1 %v7138_v43 }
0x2b34   :  { %4590 = vmatpush1.bf16.msra.mxu1 %v9147_v55  ;;  %4613 = vmatprep.mubr.bf16.mxu1 %v7134_v5 }
0x2b35   :  { %4591 = vmatprep.subr.bf16.mxu1 %v9166_v21 }
0x2b38   :  { %4592 = vmatpush1.bf16.msra.mxu1 %v9174_v10 }
0x2b39   :  { %4593 = vmatprep.subr.bf16.mxu1 %v9201_v35 }
0x2b3c   :  { %4594 = vmatpush1.bf16.msra.mxu1 %v9212_v12 }
0x2b3d   :  { %4595 = vmatprep.subr.bf16.mxu1 %v9231_v40 }
0x2b40   :  { %4596 = vmatpush1.bf16.msra.mxu1 %v9239_v39 }
0x2b41   :  { %4849 = vmatprep.subr.bf16.mxu1 %v9136_v31 }
0x2b9f   :  { %v4200_v24 = vpop.permute.xlu1 %4199 }
0x2ba0   :  { %4202 = vst.msk [vmem:[#allocation4 + $0x38] sm:$0xff] %vm597_vm1, %v4200_v24 }
0x2ba1   :  { %v4229_v62 = vpop.permute.xlu0 %4228 }
0x2ba2   :  { %v4231_v60 = vmul.f32 %v4229_v62, %v4226_v3 }
0x2ba4   :  { %v4234_v49 = vadd.f32 %v4233_v6, %v4231_v60 }
0x2ba6   :  { %4236 = vrot.lane.b32.xlu0 %v4234_v49, %s7136_s9 }
0x2ba7   :  { %v4247_v30 = vld [vmem:[#allocation4 + $0x38] sm:$0xff] }
0x2bf3   :  { %v4490_v13 = vpop.f32.mrf.mxu1 }
0x2bf5   :  { %v4492_v15 = vpop.f32.mrf.mxu1 }
0x2bf7   :  { %v4494_v17 = vpop.f32.mrf.mxu1 }
0x2bf9   :  { %v4495_v9 = vpop.f32.mrf.mxu1 }
0x2c18   :  { %v4237_v43 = vpop.permute.xlu0 %4236 }
0x2c19   :  { %4239 = vst.msk [vmem:[#allocation4] sm:$0xff] %vm3335_vm2, %v4237_v43 }
0x2c20   :  { %v4240_v38 = vld [vmem:[#allocation4] sm:$0xff] }
0x2c21   :  { %6124 = vmatmul.mubr.msk.f32.vlgmr.msra.gmra.mxu0 %vm3214_vm3, %v4240_v38 }
0x2c22   :  { %4371 = vmatprep.mubr.f32.mxu0 %v7137_v23  ;;  %4720 = vmatpush1.bf16.msra.mxu0 %v9147_v55 }
0x2c23   :  { %4721 = vmatprep.subr.bf16.mxu0 %v9166_v21 }
0x2c25   :  { %6125 = vmatmul.mubr.msk.f32.gmra.mxu0 %vm3214_vm3, %v4241_v53 }
0x2c26   :  { %4377 = vmatprep.mubr.f32.mxu0 %v7137_v23  ;;  %4722 = vmatpush1.bf16.msra.mxu0 %v9174_v10 }
0x2c27   :  { %4723 = vmatprep.subr.bf16.mxu0 %v9201_v35 }
0x2c29   :  { %6126 = vmatmul.mubr.msk.f32.gmra.mxu0 %vm3214_vm3, %v4242_v0 }
0x2c2a   :  { %4383 = vmatprep.mubr.f32.mxu0 %v7137_v23  ;;  %4724 = vmatpush1.bf16.msra.mxu0 %v9212_v12 }
0x2c2b   :  { %4725 = vmatprep.subr.bf16.mxu0 %v9231_v40 }
0x2c2d   :  { %6127 = vmatmul.mubr.msk.f32.gmra.mxu0 %vm3214_vm3, %v4243_v44 }
0x2c2e   :  { %4389 = vmatprep.mubr.f32.mxu0 %v7137_v23  ;;  %4726 = vmatpush1.bf16.msra.mxu0 %v9239_v39 }
0x2c2f   :  { %4979 = vmatprep.subr.bf16.mxu0 %v9136_v31 }
0x2c31   :  { %6128 = vmatmul.mubr.msk.f32.gmra.mxu0 %vm3214_vm3, %v4244_v57 }
0x2c32   :  { %4395 = vmatprep.mubr.f32.mxu0 %v7137_v23 }
0x2c35   :  { %6129 = vmatmul.mubr.msk.f32.gmra.mxu0 %vm3214_vm3, %v4245_v25 }
0x2c36   :  { %4401 = vmatprep.mubr.f32.mxu0 %v7137_v23 }
0x2c39   :  { %6130 = vmatmul.mubr.msk.f32.gmra.mxu0 %vm3214_vm3, %v4246_v47 }
0x2c3a   :  { %4407 = vmatprep.mubr.f32.mxu0 %v7137_v23  ;;  %v4270_v23 = vrot.slane %v6123_v14, %v3026_v52 }
0x2c3d   :  { %6131 = vmatmul.mubr.msk.f32.gmra.mxu0 %vm3214_vm3, %v4247_v30 }
0x2c3e   :  { %4743 = vmatprep.mubr.bf16.mxu0 %v7134_v5 }
0x2ce1   :  { %v4367_v7 = vpop.f32.mrf.mxu0 }
0x2ce2   :  { %v4368_v28 = vadd.f32 %v4367_v7, %v4270_v23 }
0x2ce3   :  { %v4369_v41 = vpop.f32.mrf.mxu0 }
0x2ce4   :  { %v9290_v58 = vadd.f32 %v4369_v41, %v4274_v1  ;;  %v4497_v36 = vadd.f32 %v4490_v13, %v4368_v28 }
0x2ce5   :  { %v4373_v59 = vpop.f32.mrf.mxu0 }
0x2ce6   :  { %v9292_v51 = vadd.f32 %v4373_v59, %v4270_v23  ;;  %v6132_v29 = vmul.f32 -1.442695, %v4497_v36 }
0x2ce7   :  { %v4375_v46 = vpop.f32.mrf.mxu0 }
0x2ce8   :  { %v9294_v4 = vadd.f32 %v4375_v46, %v4274_v1  ;;  %6966 = vpow2.f32 %v6132_v29 }
0x2ce9   :  { %v4379_v50 = vpop.f32.mrf.mxu0 }
0x2cea   :  { %v9296_v22 = vadd.f32 %v4379_v50, %v4270_v23 }
0x2ceb   :  { %v4381_v63 = vpop.f32.mrf.mxu0 }
0x2cec   :  { %v9298_v48 = vadd.f32 %v4381_v63, %v4274_v1 }
0x2ced   :  { %v4385_v8 = vpop.f32.mrf.mxu0 }
0x2cee   :  { %v9300_v20 = vadd.f32 %v4385_v8, %v4270_v23 }
0x2cef   :  { %v4387_v19 = vpop.f32.mrf.mxu0 }
0x2cf0   :  { %v9302_v2 = vadd.f32 %v4387_v19, %v4274_v1  ;;  %v4554_v19 = vld [vmem:[%s9730_s3 + $0x38] sm:$0xff] }
0x2cf1   :  { %v4391_v52 = vpop.f32.mrf.mxu0 }
0x2cf2   :  { %v9304_v3 = vadd.f32 %v4391_v52, %v4270_v23  ;;  %v4560_v52 = vsub.f32 1.0, %v4554_v19 }
0x2cf3   :  { %v4393_v56 = vpop.f32.mrf.mxu0 }
0x2cf4   :  { %v9306_v32 = vadd.f32 %v4393_v56, %v4274_v1  ;;  %v4561_v56 = vmul.f32 0.0, %v4560_v52 }
0x2cf5   :  { %v4397_v37 = vpop.f32.mrf.mxu0  ;;  %v6967_v6 = vpop.eup %6966 }
0x2cf6   :  { %v9308_v45 = vadd.f32 %v4397_v37, %v4270_v23  ;;  %v4505_v60 = vadd.f32 1.0, %v6967_v6 }
0x2cf7   :  { %v4399_v54 = vpop.f32.mrf.mxu0 }
0x2cf8   :  { %v9310_v42 = vadd.f32 %v4399_v54, %v4274_v1 }
0x2cf9   :  { %v4403_v26 = vpop.f32.mrf.mxu0 }
0x2cfa   :  { %v9312_v18 = vadd.f32 %v4403_v26, %v4270_v23 }
0x2cfb   :  { %v4405_v34 = vpop.f32.mrf.mxu0 }
0x2cfc   :  { %v9314_v27 = vadd.f32 %v4405_v34, %v4274_v1 }
0x2cfd   :  { %v4409_v11 = vpop.f32.mrf.mxu0 }
0x2cfe   :  { %v9316_v16 = vadd.f32 %v4409_v11, %v4270_v23 }
0x2cff   :  { %v4411_v33 = vpop.f32.mrf.mxu0 }
0x2d00   :  { %v4412_v61 = vadd.f32 %v4411_v33, %v4274_v1 }
0x2d02   :  { %v4498_v24 = vadd.f32 %v4492_v15, %v4412_v61 }
0x2d04   :  { %v6133_v62 = vmul.f32 -1.442695, %v4498_v24 }
0x2d06   :  { %6968 = vpow2.f32 %v6133_v62 }
0x2d07   :  { %6970 = vrcp.f32 %v4505_v60 }
0x2d13   :  { %v6969_v49 = vpop.eup %6968 }
0x2d14   :  { %v4506_v43 = vadd.f32 1.0, %v6969_v49  ;;  %v6971_v38 = vpop.eup %6970 }
0x2d15   :  { %v4512_v57 = vmul.f32 2.0, %v6971_v38  ;;  %v4511_v1 = vmul.f32 0.0, %v6971_v38 }
0x2d16   :  { %6972 = vrcp.f32 %v4506_v43 }
0x2d17   :  { %v6134_v25 = vadd.f32 -1.0, %v4512_v57 }
0x2d23   :  { %v6973_v53 = vpop.eup %6972 }
0x2d24   :  { %v4536_v0 = vmul.f32 2.0, %v6973_v53  ;;  %v4535_v17 = vmul.f32 0.0, %v6973_v53 }
0x2d26   :  { %v6135_v44 = vadd.f32 -1.0, %v4536_v0 }
0x2d28   :  { %4539 = vrot.lane.b32.xlu0 %v6135_v44, %s7135_s8 }
0x2d2c   :  { %4515 = vrot.lane.b32.xlu0 %v6134_v25, %s7135_s8 }
0x2d9a   :  { %v4540_v47 = vpop.permute.xlu0 %4539 }
0x2d9b   :  { %v4542_v30 = vmul.f32 %v6973_v53, %v4540_v47 }
0x2d9d   :  { %4544 = vrot.lane.b32.xlu1 %v4542_v30, %s7136_s9 }
0x2d9e   :  { %v4516_v13 = vpop.permute.xlu0 %4515 }
0x2d9f   :  { %v4518_v15 = vmul.f32 %v6971_v38, %v4516_v13 }
0x2da1   :  { %4520 = vrot.lane.b32.xlu1 %v4518_v15, %s7136_s9 }
0x2e0f   :  { %v4545_v9 = vpop.permute.xlu1 %4544 }
0x2e10   :  { %v4547_v14 = vadd.f32 %v4545_v9, %v4535_v17 }
0x2e12   :  { %6974 = vtanh.f32 %v4547_v14 }
0x2e13   :  { %v4521_v7 = vpop.permute.xlu1 %4520 }
0x2e14   :  { %v9322_v41 = vadd.f32 %v4521_v7, %v4511_v1 }
0x2e16   :  { %6976 = vtanh.f32 %v9322_v41 }
0x2e1f   :  { %v6975_v23 = vpop.eup %6974 }
0x2e20   :  { %4550 = vrot.lane.b32.xlu0 %v6975_v23, %s7135_s8 }
0x2e23   :  { %v6977_v59 = vpop.eup %6976 }
0x2e24   :  { %4526 = vrot.lane.b32.xlu0 %v6977_v59, %s7135_s8 }
0x2e92   :  { %v4551_v46 = vpop.permute.xlu0 %4550 }
0x2e93   :  { %v4553_v50 = vmul.f32 %v6973_v53, %v4551_v46 }
0x2e95   :  { %4556 = vrot.lane.b32.xlu1 %v4553_v50, %s7136_s9 }
0x2e96   :  { %v4527_v63 = vpop.permute.xlu0 %4526 }
0x2e97   :  { %v4529_v8 = vmul.f32 %v6971_v38, %v4527_v63 }
0x2e99   :  { %4531 = vrot.lane.b32.xlu1 %v4529_v8, %s7136_s9 }
0x2e9d   :  { %4564 = vrot.lane.b32.xlu1 %v4547_v14, %s7139_s26 }
0x2f07   :  { %v4557_v28 = vpop.permute.xlu1 %4556 }
0x2f08   :  { %v4559_v37 = vmul.f32 %v4557_v28, %v4554_v19 }
0x2f0a   :  { %v9333_v54 = vadd.f32 %v4561_v56, %v4559_v37 }
0x2f0b   :  { %v4532_v36 = vpop.permute.xlu1 %4531 }
0x2f0c   :  { %4534 = vst.msk [vmem:[#allocation4] sm:$0xff] %vm597_vm1, %v4532_v36  ;;  %4570 = vrot.lane.b32.xlu0 %v9333_v54, %s7136_s9 }
0x2f0f   :  { %v4565_v26 = vpop.permute.xlu1 %4564 }
0x2f10   :  { %v4567_v34 = vmul.f32 %v4565_v26, %v4554_v19 }
0x2f12   :  { %v9338_v29 = vadd.f32 %v4567_v34, %v4561_v56 }
0x2f14   :  { %4661 = vrot.lane.b32.xlu1 %v9338_v29, %s7136_s9 }
0x2f7e   :  { %v4571_v11 = vpop.permute.xlu0 %4570 }
0x2f7f   :  { %4573 = vst.msk [vmem:[#allocation4 + $0x38] sm:$0xff] %vm3335_vm2, %v4571_v11  ;;  %v4576_v33 = vsel %vm597_vm1, %v4532_v36, %v4571_v11 }
0x2f80   :  { %v4577_v61 = vpack.c.bf16 %v4576_v33, %v4576_v33 }
0x2f82   :  { %6136 = vmatmul.mubr.msk.bf16.vlgmr.msra.gmra.mxu1 %vm3214_vm3, %v4577_v61 }
0x2f83   :  { %4850 = vmatpush1.bf16.msra.mxu1 %v9147_v55  ;;  %4873 = vmatprep.mubr.bf16.mxu1 %v7134_v5 }
0x2f84   :  { %4851 = vmatprep.subr.bf16.mxu1 %v9166_v21 }
0x2f87   :  { %4852 = vmatpush1.bf16.msra.mxu1 %v9174_v10 }
0x2f88   :  { %4853 = vmatprep.subr.bf16.mxu1 %v9201_v35 }
0x2f8b   :  { %4854 = vmatpush1.bf16.msra.mxu1 %v9212_v12 }
0x2f8c   :  { %4855 = vmatprep.subr.bf16.mxu1 %v9231_v40 }
0x2f8f   :  { %4856 = vmatpush1.bf16.msra.mxu1 %v9239_v39 }
0x2f90   :  { %5109 = vmatprep.subr.bf16.mxu1 %v9136_v31 }
0x3042   :  { %v4615_v24 = vpop.f32.mrf.mxu1 }
0x3043   :  { %v4622_v62 = vadd.f32 %v4615_v24, %v9292_v51 }
0x3044   :  { %v4617_v6 = vpop.f32.mrf.mxu1 }
0x3045   :  { %v6137_v60 = vmul.f32 -1.442695, %v4622_v62  ;;  %v4623_v49 = vadd.f32 %v4617_v6, %v9314_v27  ;;  %v4662_v27 = vpop.permute.xlu1 %4661 }
0x3046   :  { %v4619_v43 = vpop.f32.mrf.mxu1 }
0x3047   :  { %6978 = vpow2.f32 %v6137_v60  ;;  %v6138_v38 = vmul.f32 -1.442695, %v4623_v49 }
0x3048   :  { %v4620_v53 = vpop.f32.mrf.mxu1 }
0x3049   :  { %6980 = vpow2.f32 %v6138_v38 }
0x3054   :  { %v6979_v0 = vpop.eup %6978 }
0x3055   :  { %v4630_v44 = vadd.f32 1.0, %v6979_v0 }
0x3056   :  { %v6981_v57 = vpop.eup %6980 }
0x3057   :  { %6982 = vrcp.f32 %v4630_v44  ;;  %v4631_v25 = vadd.f32 1.0, %v6981_v57 }
0x3059   :  { %6984 = vrcp.f32 %v4631_v25 }
0x3064   :  { %v6983_v47 = vpop.eup %6982 }
0x3065   :  { %v4637_v30 = vmul.f32 2.0, %v6983_v47  ;;  %v4636_v50 = vmul.f32 %v6983_v47, %v9322_v41  ;;  %v9372_v41 = vld [vmem:[%s9730_s3 + $0x30] sm:$0xff] }
0x3066   :  { %v6985_v13 = vpop.eup %6984  ;;  %v4689_v26 = vsub.f32 1.0, %v9372_v41 }
0x3067   :  { %v6139_v15 = vadd.f32 -1.0, %v4637_v30  ;;  %v4665_v51 = vmul.f32 2.0, %v6985_v13  ;;  %v4664_v23 = vmul.f32 %v6985_v13, %v4662_v27 }
0x3068   :  { %v4690_v11 = vmul.f32 %v4689_v26, %v9333_v54  ;;  %v4697_v6 = vmul.f32 %v4689_v26, %v9338_v29 }
0x3069   :  { %4640 = vrot.lane.b32.xlu1 %v6139_v15, %s7135_s8  ;;  %v6140_v17 = vadd.f32 -1.0, %v4665_v51 }
0x306b   :  { %4668 = vrot.lane.b32.xlu0 %v6140_v17, %s7135_s8 }
0x30db   :  { %v4641_v1 = vpop.permute.xlu1 %4640 }
0x30dc   :  { %v4643_v7 = vmul.f32 %v6983_v47, %v4641_v1 }
0x30dd   :  { %v4669_v9 = vpop.permute.xlu0 %4668 }
0x30de   :  { %v4671_v14 = vmul.f32 %v6985_v13, %v4669_v9 }
0x30e0   :  { %4673 = vrot.lane.b32.xlu0 %v4671_v14, %s7136_s9 }
0x30e4   :  { %4645 = vrot.lane.b32.xlu0 %v4643_v7, %s7136_s9 }
0x3152   :  { %v4674_v59 = vpop.permute.xlu0 %4673 }
0x3153   :  { %v4676_v46 = vadd.f32 %v4674_v59, %v4664_v23 }
0x3155   :  { %6986 = vtanh.f32 %v4676_v46 }
0x3156   :  { %v4646_v63 = vpop.permute.xlu0 %4645 }
0x3157   :  { %v9361_v8 = vadd.f32 %v4646_v63, %v4636_v50 }
0x3159   :  { %6988 = vtanh.f32 %v9361_v8 }
0x3162   :  { %v6987_v19 = vpop.eup %6986 }
0x3163   :  { %4679 = vrot.lane.b32.xlu1 %v6987_v19, %s7135_s8 }
0x3166   :  { %v6989_v52 = vpop.eup %6988 }
0x3167   :  { %4651 = vrot.lane.b32.xlu1 %v6989_v52, %s7135_s8 }
0x31d5   :  { %v4680_v56 = vpop.permute.xlu1 %4679 }
0x31d6   :  { %v4682_v28 = vmul.f32 %v6985_v13, %v4680_v56 }
0x31d8   :  { %4685 = vrot.lane.b32.xlu0 %v4682_v28, %s7136_s9 }
0x31d9   :  { %v4652_v37 = vpop.permute.xlu1 %4651 }
0x31da   :  { %v4654_v36 = vmul.f32 %v6983_v47, %v4652_v37 }
0x31dc   :  { %4656 = vrot.lane.b32.xlu0 %v4654_v36, %s7136_s9 }
0x31e0   :  { %4693 = vrot.lane.b32.xlu0 %v4676_v46, %s7139_s26 }
0x324a   :  { %v4686_v34 = vpop.permute.xlu0 %4685 }
0x324b   :  { %v4688_v33 = vmul.f32 %v4686_v34, %v9372_v41 }
0x324d   :  { %v9377_v61 = vadd.f32 %v4690_v11, %v4688_v33 }
0x324e   :  { %v4657_v24 = vpop.permute.xlu0 %4656 }
0x324f   :  { %4659 = vst.msk [vmem:[#allocation4 + $0x8] sm:$0xff] %vm597_vm1, %v4657_v24  ;;  %4700 = vrot.lane.b32.xlu1 %v9377_v61, %s7136_s9 }
0x3252   :  { %v4694_v62 = vpop.permute.xlu0 %4693 }
0x3253   :  { %v4696_v60 = vmul.f32 %v4694_v62, %v9372_v41 }
0x3255   :  { %v9384_v49 = vadd.f32 %v4697_v6, %v4696_v60 }
0x3257   :  { %4791 = vrot.lane.b32.xlu0 %v9384_v49, %s7136_s9 }
0x32c1   :  { %v4701_v54 = vpop.permute.xlu1 %4700 }
0x32c2   :  { %4703 = vst.msk [vmem:[#allocation4 + $0x30] sm:$0xff] %vm3335_vm2, %v4701_v54  ;;  %v4706_v43 = vsel %vm597_vm1, %v4657_v24, %v4701_v54 }
0x32c3   :  { %v4707_v38 = vpack.c.bf16 %v4706_v43, %v4706_v43 }
0x32c5   :  { %6141 = vmatmul.mubr.msk.bf16.vlgmr.msra.gmra.mxu0 %vm3214_vm3, %v4707_v38 }
0x32c6   :  { %4980 = vmatpush1.bf16.msra.mxu0 %v9147_v55  ;;  %5003 = vmatprep.mubr.bf16.mxu0 %v7134_v5 }
0x32c7   :  { %4981 = vmatprep.subr.bf16.mxu0 %v9166_v21 }
0x32ca   :  { %4982 = vmatpush1.bf16.msra.mxu0 %v9174_v10 }
0x32cb   :  { %4983 = vmatprep.subr.bf16.mxu0 %v9201_v35 }
0x32ce   :  { %4984 = vmatpush1.bf16.msra.mxu0 %v9212_v12 }
0x32cf   :  { %4985 = vmatprep.subr.bf16.mxu0 %v9231_v40 }
0x32d2   :  { %4986 = vmatpush1.bf16.msra.mxu0 %v9239_v39 }
0x32d3   :  { %5239 = vmatprep.subr.bf16.mxu0 %v9136_v31 }
0x3385   :  { %v4745_v29 = vpop.f32.mrf.mxu0 }
0x3386   :  { %v4752_v53 = vadd.f32 %v4745_v29, %v9296_v22 }
0x3387   :  { %v4747_v0 = vpop.f32.mrf.mxu0 }
0x3388   :  { %v6142_v44 = vmul.f32 -1.442695, %v4752_v53  ;;  %v4753_v57 = vadd.f32 %v4747_v0, %v9310_v42  ;;  %v4792_v42 = vpop.permute.xlu0 %4791 }
0x3389   :  { %v4749_v25 = vpop.f32.mrf.mxu0 }
0x338a   :  { %6990 = vpow2.f32 %v6142_v44  ;;  %v6143_v47 = vmul.f32 -1.442695, %v4753_v57 }
0x338b   :  { %v4750_v30 = vpop.f32.mrf.mxu0 }
0x338c   :  { %6992 = vpow2.f32 %v6143_v47 }
0x3397   :  { %v6991_v13 = vpop.eup %6990 }
0x3398   :  { %v4760_v15 = vadd.f32 1.0, %v6991_v13 }
0x3399   :  { %v6993_v51 = vpop.eup %6992 }
0x339a   :  { %6994 = vrcp.f32 %v4760_v15  ;;  %v4761_v17 = vadd.f32 1.0, %v6993_v51 }
0x339c   :  { %6996 = vrcp.f32 %v4761_v17 }
0x33a7   :  { %v6995_v27 = vpop.eup %6994 }
0x33a8   :  { %v4767_v9 = vmul.f32 2.0, %v6995_v27  ;;  %v4766_v56 = vmul.f32 %v6995_v27, %v9361_v8  ;;  %v9418_v8 = vld [vmem:[%s9730_s3 + $0x28] sm:$0xff] }
0x33a9   :  { %v6997_v14 = vpop.eup %6996  ;;  %v4819_v62 = vsub.f32 1.0, %v9418_v8 }
0x33aa   :  { %v6144_v1 = vadd.f32 -1.0, %v4767_v9  ;;  %v4795_v22 = vmul.f32 2.0, %v6997_v14  ;;  %v4794_v63 = vmul.f32 %v6997_v14, %v4792_v42 }
0x33ab   :  { %v4820_v60 = vmul.f32 %v4819_v62, %v9377_v61  ;;  %v4827_v53 = vmul.f32 %v4819_v62, %v9384_v49 }
0x33ac   :  { %4770 = vrot.lane.b32.xlu0 %v6144_v1, %s7135_s8  ;;  %v6145_v7 = vadd.f32 -1.0, %v4795_v22 }
0x33ae   :  { %4798 = vrot.lane.b32.xlu1 %v6145_v7, %s7135_s8 }
0x341e   :  { %v4771_v46 = vpop.permute.xlu0 %4770 }
0x341f   :  { %v4773_v50 = vmul.f32 %v6995_v27, %v4771_v46 }
0x3420   :  { %v4799_v23 = vpop.permute.xlu1 %4798 }
0x3421   :  { %v4801_v59 = vmul.f32 %v6997_v14, %v4799_v23 }
0x3423   :  { %4803 = vrot.lane.b32.xlu1 %v4801_v59, %s7136_s9 }
0x3427   :  { %4775 = vrot.lane.b32.xlu1 %v4773_v50, %s7136_s9 }
0x3495   :  { %v4804_v19 = vpop.permute.xlu1 %4803 }
0x3496   :  { %v4806_v52 = vadd.f32 %v4804_v19, %v4794_v63 }
0x3498   :  { %6998 = vtanh.f32 %v4806_v52 }
0x3499   :  { %v4776_v28 = vpop.permute.xlu1 %4775 }
0x349a   :  { %v9407_v37 = vadd.f32 %v4776_v28, %v4766_v56 }
0x349c   :  { %7000 = vtanh.f32 %v9407_v37 }
0x34a5   :  { %v6999_v36 = vpop.eup %6998 }
0x34a6   :  { %4809 = vrot.lane.b32.xlu0 %v6999_v36, %s7135_s8 }
0x34a9   :  { %v7001_v26 = vpop.eup %7000 }
0x34aa   :  { %4781 = vrot.lane.b32.xlu0 %v7001_v26, %s7135_s8 }
0x3518   :  { %v4810_v34 = vpop.permute.xlu0 %4809 }
0x3519   :  { %v4812_v11 = vmul.f32 %v6997_v14, %v4810_v34 }
0x351b   :  { %4815 = vrot.lane.b32.xlu1 %v4812_v11, %s7136_s9 }
0x351c   :  { %v4782_v33 = vpop.permute.xlu0 %4781 }
0x351d   :  { %v4784_v24 = vmul.f32 %v6995_v27, %v4782_v33 }
0x351f   :  { %4786 = vrot.lane.b32.xlu1 %v4784_v24, %s7136_s9 }
0x3523   :  { %4823 = vrot.lane.b32.xlu1 %v4806_v52, %s7139_s26 }
0x358d   :  { %v4816_v6 = vpop.permute.xlu1 %4815 }
0x358e   :  { %v4818_v54 = vmul.f32 %v4816_v6, %v9418_v8 }
0x3590   :  { %v9423_v43 = vadd.f32 %v4820_v60, %v4818_v54 }
0x3591   :  { %v4787_v38 = vpop.permute.xlu1 %4786 }
0x3592   :  { %4789 = vst.msk [vmem:[#allocation4 + $0x10] sm:$0xff] %vm597_vm1, %v4787_v38  ;;  %4830 = vrot.lane.b32.xlu0 %v9423_v43, %s7136_s9 }
0x3595   :  { %v4824_v29 = vpop.permute.xlu1 %4823 }
0x3596   :  { %v4826_v0 = vmul.f32 %v4824_v29, %v9418_v8 }
0x3598   :  { %v9430_v44 = vadd.f32 %v4827_v53, %v4826_v0 }
0x359a   :  { %4921 = vrot.lane.b32.xlu1 %v9430_v44, %s7136_s9 }
0x3604   :  { %v4831_v61 = vpop.permute.xlu0 %4830 }
0x3605   :  { %4833 = vst.msk [vmem:[#allocation4 + $0x28] sm:$0xff] %vm3335_vm2, %v4831_v61  ;;  %v4836_v57 = vsel %vm597_vm1, %v4787_v38, %v4831_v61 }
0x3606   :  { %v4837_v25 = vpack.c.bf16 %v4836_v57, %v4836_v57 }
0x3608   :  { %6146 = vmatmul.mubr.msk.bf16.vlgmr.msra.gmra.mxu1 %vm3214_vm3, %v4837_v25 }
0x3609   :  { %5110 = vmatpush1.bf16.msra.mxu1 %v9147_v55  ;;  %5133 = vmatprep.mubr.bf16.mxu1 %v7134_v5 }
0x360a   :  { %5111 = vmatprep.subr.bf16.mxu1 %v9166_v21 }
0x360d   :  { %5112 = vmatpush1.bf16.msra.mxu1 %v9174_v10 }
0x360e   :  { %5113 = vmatprep.subr.bf16.mxu1 %v9201_v35 }
0x3611   :  { %5114 = vmatpush1.bf16.msra.mxu1 %v9212_v12 }
0x3612   :  { %5115 = vmatprep.subr.bf16.mxu1 %v9231_v40 }
0x3615   :  { %5116 = vmatpush1.bf16.msra.mxu1 %v9239_v39 }
0x3616   :  { %5369 = vmatprep.subr.bf16.mxu1 %v9136_v31 }
0x36c8   :  { %v4875_v49 = vpop.f32.mrf.mxu1 }
0x36c9   :  { %v4882_v47 = vadd.f32 %v4875_v49, %v9300_v20 }
0x36ca   :  { %v4877_v30 = vpop.f32.mrf.mxu1 }
0x36cb   :  { %v6147_v13 = vmul.f32 -1.442695, %v4882_v47  ;;  %v4883_v15 = vadd.f32 %v4877_v30, %v9306_v32  ;;  %v4922_v32 = vpop.permute.xlu1 %4921 }
0x36cc   :  { %v4879_v51 = vpop.f32.mrf.mxu1 }
0x36cd   :  { %7002 = vpow2.f32 %v6147_v13  ;;  %v6148_v17 = vmul.f32 -1.442695, %v4883_v15 }
0x36ce   :  { %v4880_v27 = vpop.f32.mrf.mxu1 }
0x36cf   :  { %7004 = vpow2.f32 %v6148_v17 }
0x36da   :  { %v7003_v9 = vpop.eup %7002 }
0x36db   :  { %v4890_v14 = vadd.f32 1.0, %v7003_v9 }
0x36dc   :  { %v7005_v1 = vpop.eup %7004 }
0x36dd   :  { %7006 = vrcp.f32 %v4890_v14  ;;  %v4891_v22 = vadd.f32 1.0, %v7005_v1 }
0x36df   :  { %7008 = vrcp.f32 %v4891_v22 }
0x36ea   :  { %v7007_v7 = vpop.eup %7006 }
0x36eb   :  { %v4897_v31 = vmul.f32 2.0, %v7007_v7  ;;  %v4896_v36 = vmul.f32 %v7007_v7, %v9407_v37  ;;  %v9464_v37 = vld [vmem:[%s9730_s3 + $0x20] sm:$0xff] }
0x36ec   :  { %v7009_v42 = vpop.eup %7008  ;;  %v4949_v54 = vsub.f32 1.0, %v9464_v37 }
0x36ed   :  { %v6149_v23 = vadd.f32 -1.0, %v4897_v31  ;;  %v4925_v20 = vmul.f32 2.0, %v7009_v42  ;;  %v4924_v52 = vmul.f32 %v7009_v42, %v4922_v32 }
0x36ee   :  { %v4950_v29 = vmul.f32 %v4949_v54, %v9423_v43  ;;  %v4957_v25 = vmul.f32 %v4949_v54, %v9430_v44 }
0x36ef   :  { %4900 = vrot.lane.b32.xlu1 %v6149_v23, %s7135_s8  ;;  %v6150_v59 = vadd.f32 -1.0, %v4925_v20 }
0x36f1   :  { %4928 = vrot.lane.b32.xlu0 %v6150_v59, %s7135_s8 }
0x3761   :  { %v4901_v63 = vpop.permute.xlu1 %4900 }
0x3762   :  { %v4903_v19 = vmul.f32 %v7007_v7, %v4901_v63 }
0x3763   :  { %v4929_v46 = vpop.permute.xlu0 %4928 }
0x3764   :  { %v4931_v50 = vmul.f32 %v7009_v42, %v4929_v46 }
0x3766   :  { %4933 = vrot.lane.b32.xlu0 %v4931_v50, %s7136_s9 }
0x376a   :  { %4905 = vrot.lane.b32.xlu0 %v4903_v19, %s7136_s9 }
0x37d8   :  { %v4934_v56 = vpop.permute.xlu0 %4933 }
0x37d9   :  { %v4936_v28 = vadd.f32 %v4934_v56, %v4924_v52 }
0x37db   :  { %7010 = vtanh.f32 %v4936_v28 }
0x37dc   :  { %v4906_v26 = vpop.permute.xlu0 %4905 }
0x37dd   :  { %v9453_v34 = vadd.f32 %v4906_v26, %v4896_v36 }
0x37df   :  { %7012 = vtanh.f32 %v9453_v34 }
0x37e8   :  { %v7011_v11 = vpop.eup %7010 }
0x37e9   :  { %4939 = vrot.lane.b32.xlu1 %v7011_v11, %s7135_s8 }
0x37ec   :  { %v7013_v33 = vpop.eup %7012 }
0x37ed   :  { %4911 = vrot.lane.b32.xlu1 %v7013_v33, %s7135_s8 }
0x385b   :  { %v4940_v24 = vpop.permute.xlu1 %4939 }
0x385c   :  { %v4942_v62 = vmul.f32 %v7009_v42, %v4940_v24 }
0x385e   :  { %4945 = vrot.lane.b32.xlu0 %v4942_v62, %s7136_s9 }
0x385f   :  { %v4912_v6 = vpop.permute.xlu1 %4911 }
0x3860   :  { %v4914_v60 = vmul.f32 %v7007_v7, %v4912_v6 }
0x3862   :  { %4916 = vrot.lane.b32.xlu0 %v4914_v60, %s7136_s9 }
0x3866   :  { %4953 = vrot.lane.b32.xlu0 %v4936_v28, %s7139_s26 }
0x38d0   :  { %v4946_v38 = vpop.permute.xlu0 %4945 }
0x38d1   :  { %v4948_v53 = vmul.f32 %v4946_v38, %v9464_v37 }
0x38d3   :  { %v9469_v0 = vadd.f32 %v4950_v29, %v4948_v53 }
0x38d4   :  { %v4917_v61 = vpop.permute.xlu0 %4916 }
0x38d5   :  { %4919 = vst.msk [vmem:[#allocation4 + $0x18] sm:$0xff] %vm597_vm1, %v4917_v61  ;;  %4960 = vrot.lane.b32.xlu1 %v9469_v0, %s7136_s9 }
0x38d8   :  { %v4954_v57 = vpop.permute.xlu0 %4953 }
0x38d9   :  { %v4956_v49 = vmul.f32 %v4954_v57, %v9464_v37 }
0x38db   :  { %v9476_v47 = vadd.f32 %v4957_v25, %v4956_v49 }
0x38dd   :  { %5051 = vrot.lane.b32.xlu0 %v9476_v47, %s7136_s9 }
0x3947   :  { %v4961_v43 = vpop.permute.xlu1 %4960 }
0x3948   :  { %4963 = vst.msk [vmem:[#allocation4 + $0x20] sm:$0xff] %vm3335_vm2, %v4961_v43  ;;  %v4966_v30 = vsel %vm597_vm1, %v4917_v61, %v4961_v43 }
0x3949   :  { %v4967_v13 = vpack.c.bf16 %v4966_v30, %v4966_v30 }
0x394b   :  { %6151 = vmatmul.mubr.msk.bf16.vlgmr.msra.gmra.mxu0 %vm3214_vm3, %v4967_v13 }
0x394c   :  { %5240 = vmatpush1.bf16.msra.mxu0 %v9147_v55  ;;  %5263 = vmatprep.mubr.bf16.mxu0 %v7134_v5 }
0x394d   :  { %5241 = vmatprep.subr.bf16.mxu0 %v9166_v21 }
0x3950   :  { %5242 = vmatpush1.bf16.msra.mxu0 %v9174_v10 }
0x3951   :  { %5243 = vmatprep.subr.bf16.mxu0 %v9201_v35 }
0x3954   :  { %5244 = vmatpush1.bf16.msra.mxu0 %v9212_v12 }
0x3955   :  { %5245 = vmatprep.subr.bf16.mxu0 %v9231_v40 }
0x3958   :  { %5246 = vmatpush1.bf16.msra.mxu0 %v9239_v39 }
0x3a0b   :  { %v5005_v44 = vpop.f32.mrf.mxu0 }
0x3a0c   :  { %v5012_v15 = vadd.f32 %v5005_v44, %v9304_v3 }
0x3a0d   :  { %v5007_v51 = vpop.f32.mrf.mxu0 }
0x3a0e   :  { %v6152_v17 = vmul.f32 -1.442695, %v5012_v15  ;;  %v5013_v27 = vadd.f32 %v5007_v51, %v9302_v2  ;;  %v5052_v2 = vpop.permute.xlu0 %5051 }
0x3a0f   :  { %v5009_v9 = vpop.f32.mrf.mxu0 }
0x3a10   :  { %7014 = vpow2.f32 %v6152_v17  ;;  %v6153_v14 = vmul.f32 -1.442695, %v5013_v27 }
0x3a11   :  { %v5010_v1 = vpop.f32.mrf.mxu0 }
0x3a12   :  { %7016 = vpow2.f32 %v6153_v14 }
0x3a1d   :  { %v7015_v22 = vpop.eup %7014 }
0x3a1e   :  { %v5020_v7 = vadd.f32 1.0, %v7015_v22 }
0x3a1f   :  { %v7017_v31 = vpop.eup %7016 }
0x3a20   :  { %7018 = vrcp.f32 %v5020_v7  ;;  %v5021_v42 = vadd.f32 1.0, %v7017_v31 }
0x3a22   :  { %7020 = vrcp.f32 %v5021_v42 }
0x3a2d   :  { %v7019_v23 = vpop.eup %7018 }
0x3a2e   :  { %v5027_v20 = vmul.f32 2.0, %v7019_v23  ;;  %v5026_v26 = vmul.f32 %v7019_v23, %v9453_v34  ;;  %v9509_v34 = vld [vmem:[%s9730_s3 + $0x18] sm:$0xff] }
0x3a2f   :  { %v7021_v59 = vpop.eup %7020  ;;  %v5079_v29 = vsub.f32 1.0, %v9509_v34 }
0x3a30   :  { %v6154_v32 = vadd.f32 -1.0, %v5027_v20  ;;  %v5055_v3 = vmul.f32 2.0, %v7021_v59  ;;  %v5054_v56 = vmul.f32 %v7021_v59, %v5052_v2 }
0x3a31   :  { %v5080_v61 = vmul.f32 %v5079_v29, %v9469_v0  ;;  %v5087_v30 = vmul.f32 %v5079_v29, %v9476_v47 }
0x3a32   :  { %5030 = vrot.lane.b32.xlu0 %v6154_v32, %s7135_s8  ;;  %v6155_v46 = vadd.f32 -1.0, %v5055_v3 }
0x3a34   :  { %5058 = vrot.lane.b32.xlu1 %v6155_v46, %s7135_s8 }
0x3aa4   :  { %v5031_v19 = vpop.permute.xlu0 %5030 }
0x3aa5   :  { %v5033_v52 = vmul.f32 %v7019_v23, %v5031_v19 }
0x3aa6   :  { %v5059_v50 = vpop.permute.xlu1 %5058 }
0x3aa7   :  { %v5061_v63 = vmul.f32 %v7021_v59, %v5059_v50 }
0x3aa9   :  { %5063 = vrot.lane.b32.xlu1 %v5061_v63, %s7136_s9 }
0x3aad   :  { %5035 = vrot.lane.b32.xlu1 %v5033_v52, %s7136_s9 }
0x3b1b   :  { %v5064_v28 = vpop.permute.xlu1 %5063 }
0x3b1c   :  { %v5066_v36 = vadd.f32 %v5064_v28, %v5054_v56 }
0x3b1e   :  { %7022 = vtanh.f32 %v5066_v36 }
0x3b1f   :  { %v5036_v11 = vpop.permute.xlu1 %5035 }
0x3b20   :  { %v9498_v33 = vadd.f32 %v5036_v11, %v5026_v26  ;;  %v9554_v11 = vld [vmem:[%s9730_s3 + $0x10] sm:$0xff] }
0x3b22   :  { %7024 = vtanh.f32 %v9498_v33 }
0x3b2b   :  { %v7023_v24 = vpop.eup %7022 }
0x3b2c   :  { %5069 = vrot.lane.b32.xlu0 %v7023_v24, %s7135_s8 }
0x3b2f   :  { %v7025_v62 = vpop.eup %7024 }
0x3b30   :  { %5041 = vrot.lane.b32.xlu0 %v7025_v62, %s7135_s8 }
0x3b9e   :  { %v5070_v6 = vpop.permute.xlu0 %5069 }
0x3b9f   :  { %v5072_v60 = vmul.f32 %v7021_v59, %v5070_v6 }
0x3ba1   :  { %5075 = vrot.lane.b32.xlu1 %v5072_v60, %s7136_s9 }
0x3ba2   :  { %v5042_v54 = vpop.permute.xlu0 %5041 }
0x3ba3   :  { %v5044_v38 = vmul.f32 %v7019_v23, %v5042_v54 }
0x3ba5   :  { %5046 = vrot.lane.b32.xlu1 %v5044_v38, %s7136_s9 }
0x3ba9   :  { %5083 = vrot.lane.b32.xlu1 %v5066_v36, %s7139_s26 }
0x3c13   :  { %v5076_v53 = vpop.permute.xlu1 %5075 }
0x3c14   :  { %v5078_v57 = vmul.f32 %v5076_v53, %v9509_v34 }
0x3c16   :  { %v9514_v25 = vadd.f32 %v5080_v61, %v5078_v57 }
0x3c17   :  { %v5047_v49 = vpop.permute.xlu1 %5046 }
0x3c18   :  { %5049 = vst.msk [vmem:[#allocation4 + $0x20] sm:$0xff] %vm597_vm1, %v5047_v49  ;;  %5090 = vrot.lane.b32.xlu0 %v9514_v25, %s7136_s9 }
0x3c1b   :  { %v5084_v43 = vpop.permute.xlu1 %5083 }
0x3c1c   :  { %v5086_v13 = vmul.f32 %v5084_v43, %v9509_v34 }
0x3c1e   :  { %v9521_v44 = vadd.f32 %v5087_v30, %v5086_v13 }
0x3c20   :  { %5181 = vrot.lane.b32.xlu1 %v9521_v44, %s7136_s9 }
0x3c8a   :  { %v5091_v0 = vpop.permute.xlu0 %5090 }
0x3c8b   :  { %5093 = vst.msk [vmem:[#allocation4 + $0x18] sm:$0xff] %vm3335_vm2, %v5091_v0  ;;  %v5096_v15 = vsel %vm597_vm1, %v5047_v49, %v5091_v0 }
0x3c8c   :  { %v5097_v51 = vpack.c.bf16 %v5096_v15, %v5096_v15 }
0x3c8e   :  { %6156 = vmatmul.mubr.msk.bf16.vlgmr.msra.gmra.mxu1 %vm3214_vm3, %v5097_v51 }
0x3c8f   :  { %5370 = vmatpush1.bf16.msra.mxu1 %v9147_v55  ;;  %5393 = vmatprep.mubr.bf16.mxu1 %v7134_v5 }
0x3c90   :  { %5371 = vmatprep.subr.bf16.mxu1 %v9166_v21 }
0x3c93   :  { %5372 = vmatpush1.bf16.msra.mxu1 %v9174_v10 }
0x3c94   :  { %5373 = vmatprep.subr.bf16.mxu1 %v9201_v35 }
0x3c97   :  { %5374 = vmatpush1.bf16.msra.mxu1 %v9212_v12 }
0x3c98   :  { %5375 = vmatprep.subr.bf16.mxu1 %v9231_v40 }
0x3c9b   :  { %5376 = vmatpush1.bf16.msra.mxu1 %v9239_v39 }
0x3d4e   :  { %v5135_v47 = vpop.f32.mrf.mxu1 }
0x3d4f   :  { %v5142_v17 = vadd.f32 %v5135_v47, %v9308_v45 }
0x3d50   :  { %v5137_v27 = vpop.f32.mrf.mxu1 }
0x3d51   :  { %v6157_v9 = vmul.f32 -1.442695, %v5142_v17  ;;  %v5143_v55 = vadd.f32 %v5137_v27, %v9298_v48  ;;  %v5182_v48 = vpop.permute.xlu1 %5181 }
0x3d52   :  { %v5139_v5 = vpop.f32.mrf.mxu1 }
0x3d53   :  { %7026 = vpow2.f32 %v6157_v9  ;;  %v6158_v21 = vmul.f32 -1.442695, %v5143_v55 }
0x3d54   :  { %v5140_v14 = vpop.f32.mrf.mxu1 }
0x3d55   :  { %7028 = vpow2.f32 %v6158_v21 }
0x3d60   :  { %v7027_v10 = vpop.eup %7026 }
0x3d61   :  { %v5150_v35 = vadd.f32 1.0, %v7027_v10 }
0x3d62   :  { %v7029_v1 = vpop.eup %7028 }
0x3d63   :  { %7030 = vrcp.f32 %v5150_v35  ;;  %v5151_v12 = vadd.f32 1.0, %v7029_v1 }
0x3d65   :  { %7032 = vrcp.f32 %v5151_v12 }
0x3d70   :  { %v7031_v40 = vpop.eup %7030 }
0x3d71   :  { %v5157_v39 = vmul.f32 2.0, %v7031_v40  ;;  %v5156_v2 = vmul.f32 %v7031_v40, %v9498_v33  ;;  %v5209_v33 = vsub.f32 1.0, %v9554_v11 }
0x3d72   :  { %v7033_v22 = vpop.eup %7032 }
0x3d73   :  { %v6159_v7 = vadd.f32 -1.0, %v5157_v39  ;;  %v5185_v45 = vmul.f32 2.0, %v7033_v22  ;;  %v5184_v32 = vmul.f32 %v7033_v22, %v5182_v48  ;;  %v5210_v62 = vmul.f32 %v5209_v33, %v9514_v25 }
0x3d74   :  { %v5217_v29 = vmul.f32 %v5209_v33, %v9521_v44 }
0x3d75   :  { %5160 = vrot.lane.b32.xlu1 %v6159_v7, %s7135_s8  ;;  %v6160_v31 = vadd.f32 -1.0, %v5185_v45 }
0x3d77   :  { %5188 = vrot.lane.b32.xlu0 %v6160_v31, %s7135_s8 }
0x3de7   :  { %v5161_v20 = vpop.permute.xlu1 %5160 }
0x3de8   :  { %v5163_v59 = vmul.f32 %v7031_v40, %v5161_v20 }
0x3de9   :  { %v5189_v42 = vpop.permute.xlu0 %5188 }
0x3dea   :  { %v5191_v23 = vmul.f32 %v7033_v22, %v5189_v42 }
0x3dec   :  { %5193 = vrot.lane.b32.xlu0 %v5191_v23, %s7136_s9 }
0x3df0   :  { %5165 = vrot.lane.b32.xlu0 %v5163_v59, %s7136_s9 }
0x3e5e   :  { %v5194_v3 = vpop.permute.xlu0 %5193 }
0x3e5f   :  { %v5196_v46 = vadd.f32 %v5194_v3, %v5184_v32 }
0x3e61   :  { %7034 = vtanh.f32 %v5196_v46 }
0x3e62   :  { %v5166_v50 = vpop.permute.xlu0 %5165 }
0x3e63   :  { %v9543_v63 = vadd.f32 %v5166_v50, %v5156_v2  ;;  %v9591_v2 = vld [vmem:[%s9730_s3 + $0x8] sm:$0xff] }
0x3e64   :  { %v5339_v50 = vsub.f32 1.0, %v9591_v2 }
0x3e65   :  { %7036 = vtanh.f32 %v9543_v63 }
0x3e6e   :  { %v7035_v19 = vpop.eup %7034 }
0x3e6f   :  { %5199 = vrot.lane.b32.xlu1 %v7035_v19, %s7135_s8 }
0x3e72   :  { %v7037_v52 = vpop.eup %7036 }
0x3e73   :  { %5171 = vrot.lane.b32.xlu1 %v7037_v52, %s7135_s8 }
0x3ee1   :  { %v5200_v56 = vpop.permute.xlu1 %5199 }
0x3ee2   :  { %v5202_v28 = vmul.f32 %v7033_v22, %v5200_v56 }
0x3ee4   :  { %5205 = vrot.lane.b32.xlu0 %v5202_v28, %s7136_s9 }
0x3ee5   :  { %v5172_v36 = vpop.permute.xlu1 %5171 }
0x3ee6   :  { %v5174_v26 = vmul.f32 %v7031_v40, %v5172_v36 }
0x3ee8   :  { %5176 = vrot.lane.b32.xlu0 %v5174_v26, %s7136_s9 }
0x3eec   :  { %5213 = vrot.lane.b32.xlu0 %v5196_v46, %s7139_s26 }
0x3f56   :  { %v5206_v24 = vpop.permute.xlu0 %5205 }
0x3f57   :  { %v5208_v6 = vmul.f32 %v5206_v24, %v9554_v11 }
0x3f59   :  { %v9559_v60 = vadd.f32 %v5210_v62, %v5208_v6 }
0x3f5a   :  { %v5177_v54 = vpop.permute.xlu0 %5176 }
0x3f5b   :  { %5179 = vst.msk [vmem:[#allocation4 + $0x28] sm:$0xff] %vm597_vm1, %v5177_v54  ;;  %5220 = vrot.lane.b32.xlu1 %v9559_v60, %s7136_s9  ;;  %v5340_v19 = vmul.f32 %v5339_v50, %v9559_v60 }
0x3f5e   :  { %v5214_v38 = vpop.permute.xlu0 %5213 }
0x3f5f   :  { %v5216_v53 = vmul.f32 %v5214_v38, %v9554_v11 }
0x3f61   :  { %v9566_v61 = vadd.f32 %v5217_v29, %v5216_v53 }
0x3f63   :  { %5311 = vrot.lane.b32.xlu0 %v9566_v61, %s7136_s9  ;;  %v5347_v26 = vmul.f32 %v5339_v50, %v9566_v61  ;;  %v5501_v50 = vld [vmem:[%s9733_s6 + $0x38] sm:$0xff] }
0x3fcd   :  { %v5221_v57 = vpop.permute.xlu1 %5220 }
0x3fce   :  { %5223 = vst.msk [vmem:[#allocation4 + $0x10] sm:$0xff] %vm3335_vm2, %v5221_v57  ;;  %v5226_v25 = vsel %vm597_vm1, %v5177_v54, %v5221_v57 }
0x3fcf   :  { %v5227_v49 = vpack.c.bf16 %v5226_v25, %v5226_v25 }
0x3fd1   :  { %6161 = vmatmul.mubr.msk.bf16.vlgmr.msra.gmra.mxu0 %vm3214_vm3, %v5227_v49 }
0x4091   :  { %v5265_v43 = vpop.f32.mrf.mxu0 }
0x4092   :  { %v5272_v30 = vadd.f32 %v5265_v43, %v9312_v18 }
0x4093   :  { %v5267_v13 = vpop.f32.mrf.mxu0 }
0x4094   :  { %v6162_v44 = vmul.f32 -1.442695, %v5272_v30  ;;  %v5273_v0 = vadd.f32 %v5267_v13, %v9294_v4  ;;  %v5312_v4 = vpop.permute.xlu0 %5311 }
0x4095   :  { %v5269_v15 = vpop.f32.mrf.mxu0 }
0x4096   :  { %7038 = vpow2.f32 %v6162_v44  ;;  %v6163_v51 = vmul.f32 -1.442695, %v5273_v0 }
0x4097   :  { %v5270_v47 = vpop.f32.mrf.mxu0 }
0x4098   :  { %7040 = vpow2.f32 %v6163_v51 }
0x40a3   :  { %v7039_v17 = vpop.eup %7038 }
0x40a4   :  { %v5280_v27 = vadd.f32 1.0, %v7039_v17 }
0x40a5   :  { %v7041_v9 = vpop.eup %7040 }
0x40a6   :  { %7042 = vrcp.f32 %v5280_v27  ;;  %v5281_v55 = vadd.f32 1.0, %v7041_v9 }
0x40a8   :  { %7044 = vrcp.f32 %v5281_v55 }
0x40b3   :  { %v7043_v5 = vpop.eup %7042 }
0x40b4   :  { %v5287_v21 = vmul.f32 2.0, %v7043_v5  ;;  %v5286_v31 = vmul.f32 %v7043_v5, %v9543_v63 }
0x40b5   :  { %v7045_v14 = vpop.eup %7044 }
0x40b6   :  { %v6164_v10 = vadd.f32 -1.0, %v5287_v21  ;;  %v5315_v18 = vmul.f32 2.0, %v7045_v14  ;;  %v5314_v22 = vmul.f32 %v7045_v14, %v5312_v4 }
0x40b8   :  { %5290 = vrot.lane.b32.xlu0 %v6164_v10, %s7135_s8  ;;  %v6165_v35 = vadd.f32 -1.0, %v5315_v18 }
0x40ba   :  { %5318 = vrot.lane.b32.xlu1 %v6165_v35, %s7135_s8 }
0x412a   :  { %v5291_v40 = vpop.permute.xlu0 %5290 }
0x412b   :  { %v5293_v39 = vmul.f32 %v7043_v5, %v5291_v40  ;;  %v5508_v40 = vld [vmem:[%s9733_s6 + $0x70] sm:$0xff] }
0x412c   :  { %v5319_v1 = vpop.permute.xlu1 %5318  ;;  %6509 = vmatprep.subr.mxu0 %v5508_v40 }
0x412d   :  { %v5321_v12 = vmul.f32 %v7045_v14, %v5319_v1  ;;  %6510 = vmatpush3.msra.mxu0 %v5508_v40 }
0x412f   :  { %5323 = vrot.lane.b32.xlu1 %v5321_v12, %s7136_s9 }
0x4133   :  { %5295 = vrot.lane.b32.xlu1 %v5293_v39, %s7136_s9  ;;  %v5507_v39 = vld [vmem:[%s9733_s6 + $0x68] sm:$0xff] }
0x4134   :  { %6511 = vmatprep.subr.mxu0 %v5507_v39 }
0x4135   :  { %6512 = vmatpush3.msra.mxu0 %v5507_v39 }
0x41a1   :  { %v5324_v7 = vpop.permute.xlu1 %5323 }
0x41a2   :  { %v5326_v45 = vadd.f32 %v5324_v7, %v5314_v22  ;;  %v5506_v22 = vld [vmem:[%s9733_s6 + $0x60] sm:$0xff] }
0x41a3   :  { %6513 = vmatprep.subr.mxu0 %v5506_v22 }
0x41a4   :  { %7046 = vtanh.f32 %v5326_v45  ;;  %6514 = vmatpush3.msra.mxu0 %v5506_v22  ;;  %v6180_v22 = vld [vmem:[%s9732_s5 + $0x58] ss:$0 sm:$0xff] }
0x41a5   :  { %v5296_v48 = vpop.permute.xlu1 %5295 }
0x41a6   :  { %v9580_v42 = vadd.f32 %v5296_v48, %v5286_v31 }
0x41a8   :  { %7048 = vtanh.f32 %v9580_v42 }
0x41b1   :  { %v7047_v23 = vpop.eup %7046 }
0x41b2   :  { %5329 = vrot.lane.b32.xlu0 %v7047_v23, %s7135_s8  ;;  %v5504_v23 = vld [vmem:[%s9733_s6 + $0x50] sm:$0xff] }
0x41b5   :  { %v7049_v20 = vpop.eup %7048 }
0x41b6   :  { %5301 = vrot.lane.b32.xlu0 %v7049_v20, %s7135_s8  ;;  %v5463_v20 = vld [vmem:[%s9730_s3] sm:$0xff] }
0x4224   :  { %v5330_v59 = vpop.permute.xlu0 %5329 }
0x4225   :  { %v5332_v32 = vmul.f32 %v7045_v14, %v5330_v59  ;;  %v5503_v59 = vld [vmem:[%s9733_s6 + $0x48] sm:$0xff] }
0x4227   :  { %5335 = vrot.lane.b32.xlu1 %v5332_v32, %s7136_s9  ;;  %v5502_v32 = vld [vmem:[%s9733_s6 + $0x40] sm:$0xff] }
0x4228   :  { %v5302_v3 = vpop.permute.xlu0 %5301 }
0x4229   :  { %v5304_v46 = vmul.f32 %v7043_v5, %v5302_v3  ;;  %v5469_v3 = vsub.f32 1.0, %v5463_v20 }
0x422b   :  { %5306 = vrot.lane.b32.xlu1 %v5304_v46, %s7136_s9 }
0x422f   :  { %5343 = vrot.lane.b32.xlu1 %v5326_v45, %s7139_s26 }
0x4299   :  { %v5336_v63 = vpop.permute.xlu1 %5335 }
0x429a   :  { %v5338_v52 = vmul.f32 %v5336_v63, %v9591_v2 }
0x429c   :  { %v9596_v56 = vadd.f32 %v5340_v19, %v5338_v52 }
0x429d   :  { %v5307_v28 = vpop.permute.xlu1 %5306 }
0x429e   :  { %5309 = vst.msk [vmem:[#allocation4 + $0x30] sm:$0xff] %vm597_vm1, %v5307_v28  ;;  %5350 = vrot.lane.b32.xlu0 %v9596_v56, %s7136_s9  ;;  %v5470_v19 = vmul.f32 %v5469_v3, %v9596_v56  ;;  %v5480_v56 = vld [vmem:[#allocation4 + $0x18] sm:$0xff] }
0x42a1   :  { %v5344_v36 = vpop.permute.xlu1 %5343 }
0x42a2   :  { %v5346_v33 = vmul.f32 %v5344_v36, %v9591_v2 }
0x42a4   :  { %v5348_v24 = vadd.f32 %v5347_v26, %v5346_v33 }
0x42a6   :  { %5441 = vrot.lane.b32.xlu1 %v5348_v24, %s7136_s9  ;;  %v5479_v24 = vld [vmem:[#allocation4 + $0x10] sm:$0xff] }
0x4310   :  { %v5351_v62 = vpop.permute.xlu0 %5350 }
0x4311   :  { %5353 = vst.msk [vmem:[#allocation4 + $0x8] sm:$0xff] %vm3335_vm2, %v5351_v62  ;;  %v5356_v6 = vsel %vm597_vm1, %v5307_v28, %v5351_v62 }
0x4312   :  { %v5357_v60 = vpack.c.bf16 %v5356_v6, %v5356_v6 }
0x4314   :  { %6166 = vmatmul.mubr.msk.bf16.vlgmr.msra.gmra.mxu1 %vm3214_vm3, %v5357_v60  ;;  %v5495_v60 = vmul.f32 %v5479_v24, %v9554_v11 }
0x4318   :  { %v5478_v26 = vld [vmem:[#allocation4 + $0x8] sm:$0xff] }
0x4319   :  { %v5494_v6 = vmul.f32 %v5478_v26, %v9591_v2 }
0x43d4   :  { %v5395_v54 = vpop.f32.mrf.mxu1 }
0x43d5   :  { %v5402_v38 = vadd.f32 %v5395_v54, %v9316_v16  ;;  %v5481_v54 = vld [vmem:[#allocation4 + $0x20] sm:$0xff] }
0x43d6   :  { %v5397_v29 = vpop.f32.mrf.mxu1 }
0x43d7   :  { %v6167_v53 = vmul.f32 -1.442695, %v5402_v38  ;;  %v5403_v61 = vadd.f32 %v5397_v29, %v9290_v58  ;;  %v5442_v58 = vpop.permute.xlu1 %5441  ;;  %v5496_v38 = vmul.f32 %v5480_v56, %v9509_v34  ;;  %v5497_v29 = vmul.f32 %v5481_v54, %v9464_v37  ;;  %v5654_v34 = vld [vmem:[%s9732_s5 + $0x50] sm:$0xff] }
0x43d8   :  { %v5399_v57 = vpop.f32.mrf.mxu1  ;;  %6537 = vmatprep.subr.mxu1 %v5654_v34 }
0x43d9   :  { %7050 = vpow2.f32 %v6167_v53  ;;  %v6168_v25 = vmul.f32 -1.442695, %v5403_v61  ;;  %v5482_v53 = vld [vmem:[#allocation4 + $0x28] sm:$0xff]  ;;  %v5483_v61 = vld [vmem:[#allocation4 + $0x30] sm:$0xff]  ;;  %6538 = vmatpush3.msra.mxu1 %v5654_v34 }
0x43da   :  { %v5400_v49 = vpop.f32.mrf.mxu1  ;;  %v5498_v2 = vmul.f32 %v5482_v53, %v9418_v8  ;;  %v5499_v11 = vmul.f32 %v5483_v61, %v9372_v41  ;;  %v5653_v41 = vld [vmem:[%s9732_s5 + $0x48] sm:$0xff]  ;;  %v5652_v8 = vld [vmem:[%s9732_s5 + $0x40] sm:$0xff] }
0x43db   :  { %7052 = vpow2.f32 %v6168_v25  ;;  %v5492_v25 = vld [vmem:[%s9730_s3 + $0x38] sm:$0xff]  ;;  %6539 = vmatprep.subr.mxu1 %v5653_v41 }
0x43dc   :  { %6540 = vmatpush3.msra.mxu1 %v5653_v41  ;;  %v5651_v49 = vld [vmem:[%s9732_s5 + $0x38] sm:$0xff]  ;;  %s7140_s5 = smov [#allocation6]  }
0x43dd   :  { %6541 = vmatprep.subr.mxu1 %v5652_v8  ;;  %s5882_s11 = sshll.u32 %s7140_s5, 4  ;;  %s5883_s11 = int_to_ptr.vmem [resolvable:$true] %s5882_s11 }
0x43de   :  { %6542 = vmatpush3.msra.mxu1 %v5652_v8  ;;  %s7112_s12 = scalar_lea.vmem %s5883_s11, 1024  ;;  %p7117_p7 = scmp.lt.s32.totalorder %s5883_s11, %s5883_s11 }
0x43df   :  { %6543 = vmatprep.subr.mxu1 %v5651_v49  ;;  %p7113_p6 = scmp.ne.s32.totalorder %s5883_s11, %s7112_s12  ;;  %p7118_p8 = scmp.lt.s32.totalorder %s7112_s12, %s7112_s12 }
0x43e0   :  { %6544 = vmatpush3.msra.mxu1 %v5651_v49 }
0x43e1   :  { %p7119_p9 = por %p7118_p8, %p7117_p7 }
0x43e3   :  { %p7120_p10 = pnand %p7119_p9, %p7113_p6 }
0x43e6   :  { %v7051_v43 = vpop.eup %7050 }
0x43e7   :  { %v5410_v30 = vadd.f32 1.0, %v7051_v43  ;;  %v6171_v43 = vld [vmem:[%s9733_s6 + $0x78] ss:$0 sm:$0xff] }
0x43e8   :  { %v7053_v13 = vpop.eup %7052 }
0x43e9   :  { %7054 = vrcp.f32 %v5410_v30  ;;  %v5411_v44 = vadd.f32 1.0, %v7053_v13 }
0x43eb   :  { %7056 = vrcp.f32 %v5411_v44 }
0x43f6   :  { %v7055_v0 = vpop.eup %7054 }
0x43f7   :  { %v5417_v15 = vmul.f32 2.0, %v7055_v0  ;;  %v5416_v21 = vmul.f32 %v7055_v0, %v9580_v42  ;;  %v5505_v42 = vld [vmem:[%s9733_s6 + $0x58] sm:$0xff] }
0x43f8   :  { %v7057_v51 = vpop.eup %7056  ;;  %6515 = vmatprep.subr.mxu0 %v5505_v42 }
0x43f9   :  { %v6169_v47 = vadd.f32 -1.0, %v5417_v15  ;;  %v5445_v16 = vmul.f32 2.0, %v7057_v51  ;;  %v5444_v18 = vmul.f32 %v7057_v51, %v5442_v58  ;;  %6516 = vmatpush3.msra.mxu0 %v5505_v42 }
0x43fa   :  { %6517 = vmatprep.subr.mxu0 %v5504_v23 }
0x43fb   :  { %5420 = vrot.lane.b32.xlu1 %v6169_v47, %s7135_s8  ;;  %v6170_v17 = vadd.f32 -1.0, %v5445_v16  ;;  %6518 = vmatpush3.msra.mxu0 %v5504_v23 }
0x43fc   :  { %6519 = vmatprep.subr.mxu0 %v5503_v59 }
0x43fd   :  { %5448 = vrot.lane.b32.xlu0 %v6170_v17, %s7135_s8  ;;  %6520 = vmatpush3.msra.mxu0 %v5503_v59 }
0x43fe   :  { %6521 = vmatprep.subr.mxu0 %v5502_v32 }
0x43ff   :  { %6522 = vmatpush3.msra.mxu0 %v5502_v32 }
0x4400   :  { %6523 = vmatprep.subr.mxu0 %v5501_v50 }
0x4401   :  { %6524 = vmatpush3.msra.mxu0 %v5501_v50 }
0x446d   :  { %v5421_v27 = vpop.permute.xlu1 %5420 }
0x446e   :  { %v5423_v9 = vmul.f32 %v7055_v0, %v5421_v27 }
0x446f   :  { %v5449_v55 = vpop.permute.xlu0 %5448 }
0x4470   :  { %v5451_v5 = vmul.f32 %v7057_v51, %v5449_v55  ;;  %5425 = vrot.lane.b32.xlu1 %v5423_v9, %s7136_s9 }
0x4472   :  { %5453 = vrot.lane.b32.xlu0 %v5451_v5, %s7136_s9 }
0x44e2   :  { %v5426_v14 = vpop.permute.xlu1 %5425 }
0x44e3   :  { %v5428_v10 = vadd.f32 %v5426_v14, %v5416_v21 }
0x44e4   :  { %v5454_v35 = vpop.permute.xlu0 %5453 }
0x44e5   :  { %7058 = vtanh.f32 %v5428_v10  ;;  %v5456_v4 = vadd.f32 %v5454_v35, %v5444_v18 }
0x44e7   :  { %7060 = vtanh.f32 %v5456_v4 }
0x44f2   :  { %v7059_v1 = vpop.eup %7058 }
0x44f3   :  { %5431 = vrot.lane.b32.xlu1 %v7059_v1, %s7135_s8 }
0x44f4   :  { %v7061_v12 = vpop.eup %7060 }
0x44f5   :  { %5459 = vrot.lane.b32.xlu0 %v7061_v12, %s7135_s8 }
0x4565   :  { %v5432_v7 = vpop.permute.xlu1 %5431 }
0x4566   :  { %v5434_v45 = vmul.f32 %v7055_v0, %v5432_v7 }
0x4567   :  { %v5460_v31 = vpop.permute.xlu0 %5459 }
0x4568   :  { %v5462_v48 = vmul.f32 %v7057_v51, %v5460_v31  ;;  %5436 = vrot.lane.b32.xlu1 %v5434_v45, %s7136_s9 }
0x456a   :  { %5465 = vrot.lane.b32.xlu0 %v5462_v48, %s7136_s9 }
0x45da   :  { %v5437_v46 = vpop.permute.xlu1 %5436 }
0x45db   :  { %5439 = vst.msk [vmem:[#allocation4 + $0x38] sm:$0xff] %vm597_vm1, %v5437_v46 }
0x45dc   :  { %v5466_v63 = vpop.permute.xlu0 %5465 }
0x45dd   :  { %v5468_v52 = vmul.f32 %v5466_v63, %v5463_v20 }
0x45df   :  { %v5471_v28 = vadd.f32 %v5470_v19, %v5468_v52 }
0x45e1   :  { %5473 = vrot.lane.b32.xlu0 %v5471_v28, %s7136_s9 }
0x45e2   :  { %v5484_v57 = vld [vmem:[#allocation4 + $0x38] sm:$0xff] }
0x45e3   :  { %v5500_v37 = vmul.f32 %v5492_v25, %v5484_v57 }
0x4653   :  { %v5474_v36 = vpop.permute.xlu0 %5473 }
0x4654   :  { %5476 = vst.msk [vmem:[#allocation4] sm:$0xff] %vm3335_vm2, %v5474_v36 }
0x465b   :  { %v5477_v33 = vld [vmem:[#allocation4] sm:$0xff] }
0x465c   :  { %v5493_v62 = vmul.f32 %v5477_v33, %v5463_v20 }
0x465e   :  { %6525 = vmatprep.mubr.msk.f32.mxu0 %vm3214_vm3, %v5493_v62 }
0x465f   :  { %6526 = vmatmul.mubr.msk.f32.vlgmr.msra.gmra.mxu0 %vm3214_vm3, %v5494_v6 }
0x4660   :  { %6528 = vmatprep.mubr.msk.f32.mxu0 %vm3214_vm3, %v5495_v60 }
0x4663   :  { %6529 = vmatmul.mubr.msk.f32.gmra.mxu0 %vm3214_vm3, %v5496_v38 }
0x4664   :  { %6531 = vmatprep.mubr.msk.f32.mxu0 %vm3214_vm3, %v5497_v29 }
0x4667   :  { %6532 = vmatmul.mubr.msk.f32.gmra.mxu0 %vm3214_vm3, %v5498_v2 }
0x4668   :  { %6534 = vmatprep.mubr.msk.f32.mxu0 %vm3214_vm3, %v5499_v11 }
0x466b   :  { %6535 = vmatmul.mubr.msk.f32.gmra.mxu0 %vm3214_vm3, %v5500_v37 }
0x471f   :  { %v6527_v30 = vpop.f32.mrf.mxu0 }
0x4720   :  { %v5610_v13 = vadd.f32 %v6527_v30, %v6171_v43 }
0x4721   :  { %v5604_v44 = vpop.f32.mrf.mxu0 }
0x4722   :  { %v5605_v0 = vadd.f32 %v6171_v43, %v5604_v44 }
0x4723   :  { %v6530_v15 = vpop.f32.mrf.mxu0 }
0x4724   :  { %7062 = vtanh.f32 %v5605_v0  ;;  %v5620_v51 = vadd.f32 %v6530_v15, %v6171_v43 }
0x4725   :  { %7064 = vtanh.f32 %v5610_v13  ;;  %v5614_v47 = vpop.f32.mrf.mxu0 }
0x4726   :  { %v5615_v16 = vadd.f32 %v6171_v43, %v5614_v47 }
0x4727   :  { %v6533_v17 = vpop.f32.mrf.mxu0 }
0x4728   :  { %7066 = vtanh.f32 %v5615_v16  ;;  %v5630_v58 = vadd.f32 %v6533_v17, %v6171_v43 }
0x4729   :  { %7068 = vtanh.f32 %v5620_v51  ;;  %v5624_v27 = vpop.f32.mrf.mxu0 }
0x472a   :  { %v5625_v9 = vadd.f32 %v6171_v43, %v5624_v27 }
0x472b   :  { %v6536_v55 = vpop.f32.mrf.mxu0 }
0x472c   :  { %7070 = vtanh.f32 %v5625_v9  ;;  %v5640_v5 = vadd.f32 %v6536_v55, %v6171_v43 }
0x472d   :  { %7072 = vtanh.f32 %v5630_v58  ;;  %v5634_v21 = vpop.f32.mrf.mxu0 }
0x472e   :  { %v5635_v14 = vadd.f32 %v6171_v43, %v5634_v21 }
0x4730   :  { %7074 = vtanh.f32 %v5635_v14 }
0x4731   :  { %v7063_v10 = vpop.eup %7062  ;;  %7076 = vtanh.f32 %v5640_v5 }
0x4732   :  { %v7065_v18 = vpop.eup %7064  ;;  %6545 = vmatprep.mubr.msk.f32.mxu1 %vm597_vm1, %v7063_v10 }
0x4733   :  { %6546 = vmatmul.mubr.msk.f32.vlgmr.msra.gmra.mxu1 %vm597_vm1, %v7065_v18 }
0x4735   :  { %v7067_v35 = vpop.eup %7066 }
0x4736   :  { %v7069_v4 = vpop.eup %7068  ;;  %6548 = vmatprep.mubr.msk.f32.mxu1 %vm597_vm1, %v7067_v35 }
0x4737   :  { %6549 = vmatmul.mubr.msk.f32.gmra.mxu1 %vm597_vm1, %v7069_v4 }
0x4739   :  { %v7071_v1 = vpop.eup %7070 }
0x473a   :  { %v7073_v12 = vpop.eup %7072  ;;  %6551 = vmatprep.mubr.msk.f32.mxu1 %vm597_vm1, %v7071_v1 }
0x473b   :  { %6552 = vmatmul.mubr.msk.f32.gmra.mxu1 %vm597_vm1, %v7073_v12 }
0x473d   :  { %v7075_v40 = vpop.eup %7074 }
0x473e   :  { %v7077_v39 = vpop.eup %7076  ;;  %6554 = vmatprep.mubr.msk.f32.mxu1 %vm597_vm1, %v7075_v40 }
0x473f   :  { %6555 = vmatmul.mubr.msk.f32.gmra.mxu1 %vm597_vm1, %v7077_v39 }
0x47f3   :  { %v6547_v7 = vpop.f32.mrf.mxu1 }
0x47f4   :  { %v5756_v45 = vadd.f32 %v6547_v7, %v6180_v22 }
0x47f5   :  { %v5750_v31 = vpop.f32.mrf.mxu1 }
0x47f6   :  { %v5751_v48 = vadd.f32 %v6180_v22, %v5750_v31  ;;  %5791 = vmax.xlane.f32.xlu1 %v5756_v45 }
0x47f7   :  { %v6550_v42 = vpop.f32.mrf.mxu1 }
0x47f8   :  { %5789 = vmax.xlane.f32.xlu0 %v5751_v48  ;;  %v5766_v20 = vadd.f32 %v6550_v42, %v6180_v22 }
0x47f9   :  { %v5760_v23 = vpop.f32.mrf.mxu1 }
0x47fa   :  { %v5761_v3 = vadd.f32 %v6180_v22, %v5760_v23 }
0x47fb   :  { %v6553_v59 = vpop.f32.mrf.mxu1 }
0x47fc   :  { %5795 = vmax.xlane.f32.xlu0 %v5766_v20  ;;  %v5776_v19 = vadd.f32 %v6553_v59, %v6180_v22 }
0x47fd   :  { %v5770_v32 = vpop.f32.mrf.mxu1 }
0x47fe   :  { %v5771_v46 = vadd.f32 %v6180_v22, %v5770_v32 }
0x47ff   :  { %v6556_v50 = vpop.f32.mrf.mxu1 }
0x4800   :  { %5797 = vmax.xlane.f32.xlu1 %v5771_v46  ;;  %5793 = vmax.xlane.f32.xlu0 %v5761_v3  ;;  %v5786_v28 = vadd.f32 %v6556_v50, %v6180_v22 }
0x4801   :  { %v5780_v63 = vpop.f32.mrf.mxu1 }
0x4802   :  { %v5781_v52 = vadd.f32 %v6180_v22, %v5780_v63 }
0x4804   :  { %5799 = vmax.xlane.f32.xlu0 %v5776_v19  ;;  %5801 = vmax.xlane.f32.xlu1 %v5781_v52 }
0x4808   :  { %5803 = vmax.xlane.f32.xlu0 %v5786_v28 }
0x487f   :  { %v5792_v36 = vpop.xlane.xlu1 %5791 }
0x4880   :  { %v9692_v26 = vsub.f32 %v5756_v45, %v5792_v36 }
0x4881   :  { %v5790_v33 = vpop.xlane.xlu0 %5789 }
0x4882   :  { %v5815_v24 = vmul.f32 1.442695, %v9692_v26  ;;  %v9695_v62 = vsub.f32 %v5751_v48, %v5790_v33 }
0x4884   :  { %7078 = vpow2.f32 %v5815_v24  ;;  %v5813_v6 = vmul.f32 1.442695, %v9695_v62 }
0x4885   :  { %v5796_v60 = vpop.xlane.xlu0 %5795 }
0x4886   :  { %7080 = vpow2.f32 %v5813_v6  ;;  %v9698_v56 = vsub.f32 %v5766_v20, %v5796_v60 }
0x4888   :  { %v5819_v54 = vmul.f32 1.442695, %v9698_v56 }
0x4889   :  { %v5798_v38 = vpop.xlane.xlu1 %5797  ;;  %v5794_v29 = vpop.xlane.xlu0 %5793 }
0x488a   :  { %7082 = vpow2.f32 %v5819_v54  ;;  %v9701_v53 = vsub.f32 %v5761_v3, %v5794_v29  ;;  %v9703_v61 = vsub.f32 %v5771_v46, %v5798_v38 }
0x488c   :  { %v5817_v2 = vmul.f32 1.442695, %v9701_v53  ;;  %v5821_v37 = vmul.f32 1.442695, %v9703_v61 }
0x488d   :  { %v5800_v11 = vpop.xlane.xlu0 %5799  ;;  %v5802_v57 = vpop.xlane.xlu1 %5801 }
0x488e   :  { %v9706_v25 = vsub.f32 %v5776_v19, %v5800_v11  ;;  %7084 = vpow2.f32 %v5817_v2  ;;  %v9709_v34 = vsub.f32 %v5781_v52, %v5802_v57 }
0x4890   :  { %v5823_v41 = vmul.f32 1.442695, %v9706_v25  ;;  %v5825_v13 = vmul.f32 1.442695, %v9709_v34 }
0x4891   :  { %v7079_v8 = vpop.eup %7078  ;;  %v5804_v49 = vpop.xlane.xlu0 %5803 }
0x4892   :  { %7086 = vpow2.f32 %v5823_v41  ;;  %v9712_v43 = vsub.f32 %v5786_v28, %v5804_v49  ;;  %5831 = vadd.xlane.f32.xlu0 %v7079_v8 }
0x4893   :  { %v7081_v30 = vpop.eup %7080  ;;  %7088 = vpow2.f32 %v5821_v37 }
0x4894   :  { %v5827_v44 = vmul.f32 1.442695, %v9712_v43  ;;  %5829 = vadd.xlane.f32.xlu1 %v7081_v30 }
0x4896   :  { %7090 = vpow2.f32 %v5827_v44 }
0x4897   :  { %v7083_v0 = vpop.eup %7082  ;;  %7092 = vpow2.f32 %v5825_v13 }
0x4898   :  { %5835 = vadd.xlane.f32.xlu0 %v7083_v0 }
0x489b   :  { %v7085_v15 = vpop.eup %7084 }
0x489c   :  { %5833 = vadd.xlane.f32.xlu1 %v7085_v15 }
0x489f   :  { %v7087_v51 = vpop.eup %7086 }
0x48a0   :  { %v7089_v47 = vpop.eup %7088  ;;  %5839 = vadd.xlane.f32.xlu0 %v7087_v51 }
0x48a1   :  { %5837 = vadd.xlane.f32.xlu1 %v7089_v47 }
0x48a3   :  { %v7091_v16 = vpop.eup %7090 }
0x48a4   :  { %v7093_v17 = vpop.eup %7092  ;;  %5843 = vadd.xlane.f32.xlu0 %v7091_v16 }
0x48a5   :  { %5841 = vadd.xlane.f32.xlu1 %v7093_v17 }
0x491b   :  { %v5832_v58 = vpop.xlane.xlu0 %5831 }
0x491c   :  { %7094 = vlog2.f32 %v5832_v58 }
0x491d   :  { %v5830_v27 = vpop.xlane.xlu1 %5829 }
0x491e   :  { %7096 = vlog2.f32 %v5830_v27 }
0x4921   :  { %v5836_v9 = vpop.xlane.xlu0 %5835 }
0x4922   :  { %7098 = vlog2.f32 %v5836_v9 }
0x4925   :  { %v5834_v55 = vpop.xlane.xlu1 %5833 }
0x4926   :  { %7100 = vlog2.f32 %v5834_v55 }
0x4929   :  { %v7095_v5 = vpop.eup %7094  ;;  %v5840_v21 = vpop.xlane.xlu0 %5839 }
0x492a   :  { %v5848_v14 = vmul.f32 0.6931472, %v7095_v5  ;;  %7102 = vlog2.f32 %v5840_v21  ;;  %v5838_v10 = vpop.xlane.xlu1 %5837 }
0x492b   :  { %v7097_v18 = vpop.eup %7096  ;;  %7104 = vlog2.f32 %v5838_v10 }
0x492c   :  { %v5862_v35 = vsub.f32 %v9692_v26, %v5848_v14  ;;  %v5846_v4 = vmul.f32 0.6931472, %v7097_v18 }
0x492d   :  { %v5844_v1 = vpop.xlane.xlu0 %5843 }
0x492e   :  { %5870 = vst [vmem:[#allocation6 + $0x8] sm:$0xff] %v5862_v35  ;;  %v5861_v12 = vsub.f32 %v9695_v62, %v5846_v4  ;;  %7106 = vlog2.f32 %v5844_v1  ;;  %v5842_v40 = vpop.xlane.xlu1 %5841 }
0x492f   :  { %v7099_v39 = vpop.eup %7098  ;;  %7108 = vlog2.f32 %v5842_v40 }
0x4930   :  { %5869 = vst [vmem:[#allocation6] sm:$0xff] %v5861_v12  ;;  %v5852_v22 = vmul.f32 0.6931472, %v7099_v39 }
0x4932   :  { %v5864_v7 = vsub.f32 %v9698_v56, %v5852_v22 }
0x4933   :  { %v7101_v45 = vpop.eup %7100 }
0x4934   :  { %5872 = vst [vmem:[#allocation6 + $0x18] sm:$0xff] %v5864_v7  ;;  %v5850_v31 = vmul.f32 0.6931472, %v7101_v45 }
0x4936   :  { %v5863_v42 = vsub.f32 %v9701_v53, %v5850_v31 }
0x4937   :  { %v7103_v48 = vpop.eup %7102 }
0x4938   :  { %v7105_v23 = vpop.eup %7104  ;;  %v5856_v20 = vmul.f32 0.6931472, %v7103_v48  ;;  %5871 = vst [vmem:[#allocation6 + $0x10] sm:$0xff] %v5863_v42 }
0x4939   :  { %v5854_v59 = vmul.f32 0.6931472, %v7105_v23 }
0x493a   :  { %v5866_v32 = vsub.f32 %v9706_v25, %v5856_v20 }
0x493b   :  { %v7107_v3 = vpop.eup %7106  ;;  %v5865_v46 = vsub.f32 %v9703_v61, %v5854_v59 }
0x493c   :  { %v7109_v50 = vpop.eup %7108  ;;  %5874 = vst [vmem:[#allocation6 + $0x28] sm:$0xff] %v5866_v32  ;;  %v5860_v63 = vmul.f32 0.6931472, %v7107_v3 }
0x493d   :  { %5873 = vst [vmem:[#allocation6 + $0x20] sm:$0xff] %v5865_v46  ;;  %v5858_v19 = vmul.f32 0.6931472, %v7109_v50 }
0x493e   :  { %v5868_v52 = vsub.f32 %v9712_v43, %v5860_v63 }
0x493f   :  { %v5867_v28 = vsub.f32 %v9709_v34, %v5858_v19 }
0x4940   :  { %5876 = vst [vmem:[#allocation6 + $0x38] sm:$0xff] %v5868_v52 }
0x4941   :  { %5875 = vst [vmem:[#allocation6 + $0x30] sm:$0xff] %v5867_v28 }
0x4942   :  { %7123 = shalt.err (!%p7120_p10)
}
0x4943   :  { %s7141_s13 = smov 128   ;;  %s7142_s8 = smov 8  }
0x4944   :  { %5888 = dma.vmem_to_hbm [thread:$0]  %s5883_s11, 1024, %s9734_s7, [#allocation7], %s7141_s13, %s7141_s13, %s7142_s8  }
0x4945   :  { %7132 = dma.done.wait [#allocation7], 1024  }
0x4946   :  { %7133 = vsyncadd [#allocation7], 4294966272 }
0x4947   :  { %5892 = vsyncpa [#allocation7], 1 }

</bundles_post_ra>
